<compile_context>
chip_gen: v6e
topology: v6e:2x2x1
jax: 0.10.0
libtpu: 0.0.40
codegen_flags: <defaults>
</compile_context>

<pallas_src>
import functools

import numpy as np
import jax
import jax.numpy as jnp
from jax import lax
from jax.experimental import pallas as pl
from jax.experimental.pallas import tpu as pltpu

ROWS = 6
COLS = 7
P = ROWS * COLS            # 42 spatial positions
NUM_IN_CH = 3
NF1 = 32                   # conv1 filters
NF2 = 64                   # conv2 filters
HIDDEN_FC = 128
OUTPUT_SIZE = COLS

D1 = NF1 * P               # 1344
D2 = NF2 * P               # 2688
LANES = 128                # lane-dense input / output width

DEFAULT_BLOCK_B = 512      # batch rows per grid step
_MEGACORE_SPLIT_B = 256    # batches >= this always get >= 2 grid steps (v7x)

# VMEM budget model for vmem_limit_bytes: resident bf16 weights are ~8.3 MiB
# and double-buffered by the default pipeline (~17 MiB); activation
# temporaries are budgeted at a conservative 36 KiB per batch row.
_WEIGHT_VMEM_BYTES = 20 << 20
_ACT_BYTES_PER_ROW = 36 << 10


def _round_up(n, m):
    return ((n + m - 1) // m) * m


@functools.lru_cache(maxsize=1)
def _vmem_cap_bytes():
    # Per-generation scoped-VMEM ceiling (v5e/v6e: 128 MiB, v7x: 64 MiB per TC).
    try:
        cap = int(pltpu.get_tpu_info().vmem_capacity_bytes) - (16 << 20)
        return max(32 << 20, cap)
    except Exception:
        return 48 << 20


def _pick_vmem_limit(tb):
    need = _WEIGHT_VMEM_BYTES + tb * _ACT_BYTES_PER_ROW
    return int(max(32 << 20, min(need, _vmem_cap_bytes())))


# --------------------------------------------------------------------------
# Kernel
# --------------------------------------------------------------------------
def _cnn_kernel(board_ref,
                w1_ref, b1_ref, w2_ref, b2_ref, w3_ref, b3_ref, w4_ref, b4_ref,
                o_ref):
    bf16 = jnp.bfloat16

    # board tile: (TB, 128) int8; lanes [0:42]=board, [42:84]=board,
    # [84:126]=board, [126:128]=pad(2). One per-lane compare builds the three
    # one-hot planes (==1 / ==-1 / ==0) in place: no f32 round trip, no concat.
    b = board_ref[...].astype(jnp.int32)
    lane = lax.broadcasted_iota(jnp.int32, b.shape, 1)
    target = jnp.where(lane < P, 1, jnp.where(lane < 2 * P, -1, 0))
    xin = (b == target).astype(bf16)                               # (TB, 128)

    # conv1 (3x3, pad 1) as ONE dense matmul over the lane-padded channel
    # stack (K=128 fills the MXU contraction much better than 3 x K=42).
    h1 = jnp.dot(xin, w1_ref[...], preferred_element_type=jnp.float32)
    h1 = jnp.maximum(h1 + b1_ref[...], 0.0).astype(bf16)           # (TB, 1344)

    # conv2 (3x3, pad 1) as a single dense matmul over the CHW-flat activation.
    h2 = jnp.dot(h1, w2_ref[...], preferred_element_type=jnp.float32) + b2_ref[...]
    h2 = jnp.maximum(h2, 0.0).astype(bf16)                         # (TB, 2688)

    # fc1 + ReLU.
    h3 = jnp.dot(h2, w3_ref[...], preferred_element_type=jnp.float32) + b3_ref[...]
    h3 = jnp.maximum(h3, 0.0).astype(bf16)                         # (TB, 128)

    # fc2 -> logits, zero-padded to 128 lanes for unmasked lane-dense stores
    # (the wrapper slices [:, :7]).
    o_ref[...] = jnp.dot(h3, w4_ref[...], preferred_element_type=jnp.float32) + b4_ref[...]


@functools.partial(jax.jit, static_argnames=("tb", "vmem_limit"))
def _cnn_pallas(board_i8, kparams, *, tb, vmem_limit):
    (w1, b1, w2, b2, w3, b3, w4, b4) = kparams
    Bp = board_i8.shape[0]
    nb = Bp // tb

    def _resident(a):
        # Full-array block with a constant block index: DMA'd into VMEM once
        # and kept resident across all grid steps.
        return pl.BlockSpec(a.shape, lambda i, _nd=a.ndim: (0,) * _nd)

    grid_spec = pltpu.PrefetchScalarGridSpec(
        num_scalar_prefetch=0,
        grid=(nb,),
        in_specs=[pl.BlockSpec((tb, LANES), lambda i: (i, 0))]
        + [_resident(a) for a in (w1, b1, w2, b2, w3, b3, w4, b4)],
        out_specs=pl.BlockSpec((tb, LANES), lambda i: (i, 0)),
    )
    return pl.pallas_call(
        _cnn_kernel,
        out_shape=jax.ShapeDtypeStruct((Bp, LANES), jnp.float32),
        grid_spec=grid_spec,
        compiler_params=pltpu.CompilerParams(
            dimension_semantics=("parallel",),     # megacore-shard the batch
            vmem_limit_bytes=vmem_limit,           # per-generation budget
        ),
    )(board_i8, w1, b1, w2, b2, w3, b3, w4, b4)


# --------------------------------------------------------------------------
# Parameter preparation: torch-layout weights -> kernel weights
# --------------------------------------------------------------------------
def _conv3x3_same_scatter():
    """S[dr, dc, p_in, p_out] = 1 iff input position p_in feeds output position
    p_out through kernel tap (dr, dc) of a 3x3 / stride-1 / pad-1 conv."""
    S = np.zeros((3, 3, P, P), dtype=np.float32)
    for dr in range(3):
        for dc in range(3):
            for ro in range(ROWS):
                for co in range(COLS):
                    ri, ci = ro + dr - 1, co + dc - 1
                    if 0 <= ri < ROWS and 0 <= ci < COLS:
                        S[dr, dc, ri * COLS + ci, ro * COLS + co] = 1.0
    return jnp.asarray(S)


def _conv_to_dense(w):
    """(Cout, Cin, 3, 3) conv weight -> dense (Cin*P, Cout*P) so that
    y_chw_flat = x_chw_flat @ dense (+ per-channel bias)."""
    cout, cin = w.shape[0], w.shape[1]
    S = _conv3x3_same_scatter()
    d = jnp.einsum("ocij,ijpq->cpoq", w.astype(jnp.float32), S)
    return d.reshape(cin * P, cout * P)


def prepare_kernel_params(torch_params, compute_dtype=jnp.bfloat16):
    """torch-layout params -> (bf16 matmul weights, f32 (1,N) biases)."""
    c1w, c1b, c2w, c2b, f1w, f1b, f2w, f2b = torch_params
    cd = compute_dtype

    # conv1: (126, 1344) dense matrix, zero-padded along the contraction axis
    # to 128 rows so it consumes the lane-padded one-hot input in ONE matmul.
    w1_dense = _conv_to_dense(c1w)                                 # (3*42, 32*42)
    w1 = jnp.zeros((LANES, D1), jnp.float32).at[: 3 * P].set(w1_dense)
    b1 = jnp.repeat(c1b.astype(jnp.float32), P)[None, :]           # (1, 1344)

    w2 = _conv_to_dense(c2w)                                       # (1344, 2688)
    b2 = jnp.repeat(c2b.astype(jnp.float32), P)[None, :]           # (1, 2688)

    w3 = f1w.astype(jnp.float32).T                                 # (2688, 128)
    b3 = f1b.astype(jnp.float32)[None, :]                          # (1, 128)

    # fc2 zero-padded to 128 output lanes (lane-dense store; wrapper slices :7).
    w4 = jnp.zeros((HIDDEN_FC, LANES), jnp.float32)
    w4 = w4.at[:, :OUTPUT_SIZE].set(f2w.astype(jnp.float32).T)     # (128, 128)
    b4 = jnp.zeros((1, LANES), jnp.float32)
    b4 = b4.at[0, :OUTPUT_SIZE].set(f2b.astype(jnp.float32))       # (1, 128)

    # TODO(synk): on v7x, w2/w3 could be fp8 with per-channel scales to halve
    # resident-weight VMEM; kept bf16 pending accuracy validation.
    return (w1.astype(cd), b1, w2.astype(cd), b2, w3.astype(cd), b3,
            w4.astype(cd), b4)


def init_params(key):
    """torch.nn default init (U(-1/sqrt(fan_in), +)), torch weight layouts."""
    ks = jax.random.split(key, 8)

    def u(k, shape, fan_in):
        bound = 1.0 / float(np.sqrt(fan_in))
        return jax.random.uniform(k, shape, jnp.float32, -bound, bound)

    c1w = u(ks[0], (NF1, NUM_IN_CH, 3, 3), NUM_IN_CH * 9)
    c1b = u(ks[1], (NF1,), NUM_IN_CH * 9)
    c2w = u(ks[2], (NF2, NF1, 3, 3), NF1 * 9)
    c2b = u(ks[3], (NF2,), NF1 * 9)
    f1w = u(ks[4], (HIDDEN_FC, D2), D2)
    f1b = u(ks[5], (HIDDEN_FC,), D2)
    f2w = u(ks[6], (OUTPUT_SIZE, HIDDEN_FC), HIDDEN_FC)
    f2b = u(ks[7], (OUTPUT_SIZE,), HIDDEN_FC)
    return (c1w, c1b, c2w, c2b, f1w, f1b, f2w, f2b)


# --------------------------------------------------------------------------
# Public forward (matches Connect4CNN.forward semantics)
# --------------------------------------------------------------------------
def connect4_cnn_forward(board, kernel_params, *, block_b=DEFAULT_BLOCK_B):
    """board: (B, 6, 7) or (6, 7) with values {-1, 0, 1}. Returns (B, 7) or (7,) f32."""
    orig_ndim = board.ndim
    if board.ndim == 2:
        board = board[None]
    if board.ndim != 3:
        raise ValueError(f"expected 2- or 3-D board, got shape {board.shape}")
    B = board.shape[0]

    flat = board.reshape(B, P).astype(jnp.int8)
    # Replicate the raw board into the three one-hot lane groups and pad to a
    # lane-dense 128-wide int8 row (pad value 2 never matches any plane).
    x = jnp.concatenate(
        [flat, flat, flat, jnp.full((B, LANES - 3 * P), 2, jnp.int8)], axis=1)

    # Adaptive batch tiling: <= 31 padded rows, and >= 2 grid steps once the
    # batch is big enough to split (keeps both v7x TensorCores busy).
    nb = max(1, -(-B // block_b))
    if nb == 1 and B >= _MEGACORE_SPLIT_B:
        nb = 2
    tb = _round_up(-(-B // nb), 32)
    Bp = nb * tb
    if Bp != B:
        x = jnp.pad(x, ((0, Bp - B), (0, 0)))   # zero rows == empty boards, discarded

    out = _cnn_pallas(x, kernel_params, tb=tb, vmem_limit=_pick_vmem_limit(tb))
    out = out[:B, :OUTPUT_SIZE]
    if orig_ndim == 2:
        out = out[0]
    return out


# --------------------------------------------------------------------------
# Pure-JAX reference (true sliding-window convs) for validation
# --------------------------------------------------------------------------
def reference_forward(board, torch_params):
    c1w, c1b, c2w, c2b, f1w, f1b, f2w, f2b = torch_params
    x = board
    if x.ndim == 2:
        x = x[None]
    x = x.astype(jnp.float32)
    ch = jnp.stack([(x == 1), (x == -1), (x == 0)], axis=1).astype(jnp.float32)
    y = lax.conv_general_dilated(ch, c1w, (1, 1), "SAME",
                                 dimension_numbers=("NCHW", "OIHW", "NCHW"))
    y = jnp.maximum(y + c1b[None, :, None, None], 0.0)
    y = lax.conv_general_dilated(y, c2w, (1, 1), "SAME",
                                 dimension_numbers=("NCHW", "OIHW", "NCHW"))
    y = jnp.maximum(y + c2b[None, :, None, None], 0.0)
    y = y.reshape(y.shape[0], -1)                 # CHW flatten, same as torch .view
    y = jnp.maximum(y @ f1w.T + f1b, 0.0)
    return y @ f2w.T + f2b


if __name__ == "__main__":
    key = jax.random.PRNGKey(0)
    k_params, k_board = jax.random.split(key)

    torch_params = init_params(k_params)
    kernel_params = prepare_kernel_params(torch_params)

    # Small deterministic Connect4 boards: batch=2, shape (6, 7), values {-1,0,1}.
    board = jax.random.randint(k_board, (2, ROWS, COLS), minval=-1, maxval=2).astype(jnp.int8)

    out = jax.block_until_ready(connect4_cnn_forward(board, kernel_params))
    assert out.shape == (2, OUTPUT_SIZE) and out.dtype == jnp.float32

    # Unbatched (6, 7) path, matching the torch squeeze logic.
    out_single = jax.block_until_ready(connect4_cnn_forward(board[0], kernel_params))
    assert out_single.shape == (OUTPUT_SIZE,)

    # Cross-check against the pure-JAX reference (bf16 MXU matmuls -> loose tol).
    ref = reference_forward(board, torch_params)
    assert jnp.allclose(out, ref, atol=2e-2, rtol=2e-2), (
        f"max abs diff {float(jnp.max(jnp.abs(out - ref)))}")
    assert jnp.allclose(out_single, ref[0], atol=2e-2, rtol=2e-2)

    print("KERNEL_OK")
</pallas_src>

<mosaic_0001>
module attributes {stable_mosaic.version = 11 : i64} {
  func.func @_cnn_kernel(%arg0: i32, %arg1: memref<32x128xi8, #tpu.memory_space<vmem>>, %arg2: memref<128x1344xbf16, #tpu.memory_space<vmem>>, %arg3: memref<1x1344xf32, #tpu.memory_space<vmem>>, %arg4: memref<1344x2688xbf16, #tpu.memory_space<vmem>>, %arg5: memref<1x2688xf32, #tpu.memory_space<vmem>>, %arg6: memref<2688x128xbf16, #tpu.memory_space<vmem>>, %arg7: memref<1x128xf32, #tpu.memory_space<vmem>>, %arg8: memref<128x128xbf16, #tpu.memory_space<vmem>>, %arg9: memref<1x128xf32, #tpu.memory_space<vmem>>, %arg10: memref<32x128xf32, #tpu.memory_space<vmem>>) attributes {dimension_semantics = [#tpu.dimension_semantics<parallel>], iteration_bounds = array<i64: 1>, scalar_prefetch = 0 : i64, scratch_operands = 0 : i64, tpu.core_type = #tpu.core_type<tc>, window_params = [{transform_indices = @transform_0, window_bounds = array<i64: 32, 128>}, {pipeline_mode = #tpu.pipeline_mode<synchronous>, transform_indices = @transform_1, window_bounds = array<i64: 128, 1344>}, {pipeline_mode = #tpu.pipeline_mode<synchronous>, transform_indices = @transform_2, window_bounds = array<i64: 1, 1344>}, {pipeline_mode = #tpu.pipeline_mode<synchronous>, transform_indices = @transform_3, window_bounds = array<i64: 1344, 2688>}, {pipeline_mode = #tpu.pipeline_mode<synchronous>, transform_indices = @transform_4, window_bounds = array<i64: 1, 2688>}, {pipeline_mode = #tpu.pipeline_mode<synchronous>, transform_indices = @transform_5, window_bounds = array<i64: 2688, 128>}, {pipeline_mode = #tpu.pipeline_mode<synchronous>, transform_indices = @transform_6, window_bounds = array<i64: 1, 128>}, {pipeline_mode = #tpu.pipeline_mode<synchronous>, transform_indices = @transform_7, window_bounds = array<i64: 128, 128>}, {pipeline_mode = #tpu.pipeline_mode<synchronous>, transform_indices = @transform_8, window_bounds = array<i64: 1, 128>}, {transform_indices = @transform_9, window_bounds = array<i64: 32, 128>}]} {
    %c0 = arith.constant 0 : index
    %c0_0 = arith.constant 0 : index
    %0 = vector.load %arg1[%c0, %c0_0] : memref<32x128xi8, #tpu.memory_space<vmem>>, vector<32x128xi8>
    %1 = arith.extsi %0 : vector<32x128xi8> to vector<32x128xi32>
    %2 = tpu.iota {dimensions = array<i32: 1>} : vector<32x128xi32>
    %c42_i32 = arith.constant 42 : i32
    %3 = vector.broadcast %c42_i32 : i32 to vector<32x128xi32>
    %4 = arith.cmpi slt, %2, %3 : vector<32x128xi32>
    %c84_i32 = arith.constant 84 : i32
    %5 = vector.broadcast %c84_i32 : i32 to vector<32x128xi32>
    %6 = arith.cmpi slt, %2, %5 : vector<32x128xi32>
    %c-1_i32 = arith.constant -1 : i32
    %c0_i32 = arith.constant 0 : i32
    %7 = vector.broadcast %c-1_i32 : i32 to vector<32x128xi32>
    %8 = vector.broadcast %c0_i32 : i32 to vector<32x128xi32>
    %9 = arith.select %6, %7, %8 : vector<32x128xi1>, vector<32x128xi32>
    %c1_i32 = arith.constant 1 : i32
    %10 = vector.broadcast %c1_i32 : i32 to vector<32x128xi32>
    %11 = arith.select %4, %10, %9 : vector<32x128xi1>, vector<32x128xi32>
    %12 = arith.cmpi eq, %1, %11 : vector<32x128xi32>
    %13 = arith.extui %12 : vector<32x128xi1> to vector<32x128xi32>
    %14 = arith.sitofp %13 : vector<32x128xi32> to vector<32x128xf32>
    %15 = arith.truncf %14 : vector<32x128xf32> to vector<32x128xbf16>
    %c0_1 = arith.constant 0 : index
    %c0_2 = arith.constant 0 : index
    %16 = vector.load %arg2[%c0_1, %c0_2] : memref<128x1344xbf16, #tpu.memory_space<vmem>>, vector<128x1344xbf16>
    %cst = arith.constant dense<0.000000e+00> : vector<32x1344xf32>
    %17 = tpu.matmul %15, %16, %cst {dimension_numbers = #tpu.dot_dimension_numbers<[1], [0], [0], [1], [0, 0, 1, 1], [], []>} : vector<32x128xbf16>, vector<128x1344xbf16>, vector<32x1344xf32> -> vector<32x1344xf32>
    %c0_3 = arith.constant 0 : index
    %c0_4 = arith.constant 0 : index
    %18 = vector.load %arg3[%c0_3, %c0_4] : memref<1x1344xf32, #tpu.memory_space<vmem>>, vector<1x1344xf32>
    %19 = vector.broadcast %18 : vector<1x1344xf32> to vector<32x1344xf32>
    %20 = arith.addf %17, %19 : vector<32x1344xf32>
    %cst_5 = arith.constant 0.000000e+00 : f32
    %21 = vector.broadcast %cst_5 : f32 to vector<32x1344xf32>
    %22 = arith.maximumf %20, %21 : vector<32x1344xf32>
    %23 = arith.truncf %22 : vector<32x1344xf32> to vector<32x1344xbf16>
    %c0_6 = arith.constant 0 : index
    %c0_7 = arith.constant 0 : index
    %24 = vector.load %arg4[%c0_6, %c0_7] : memref<1344x2688xbf16, #tpu.memory_space<vmem>>, vector<1344x2688xbf16>
    %cst_8 = arith.constant dense<0.000000e+00> : vector<32x2688xf32>
    %25 = tpu.matmul %23, %24, %cst_8 {dimension_numbers = #tpu.dot_dimension_numbers<[1], [0], [0], [1], [0, 0, 1, 1], [], []>} : vector<32x1344xbf16>, vector<1344x2688xbf16>, vector<32x2688xf32> -> vector<32x2688xf32>
    %c0_9 = arith.constant 0 : index
    %c0_10 = arith.constant 0 : index
    %26 = vector.load %arg5[%c0_9, %c0_10] : memref<1x2688xf32, #tpu.memory_space<vmem>>, vector<1x2688xf32>
    %27 = vector.broadcast %26 : vector<1x2688xf32> to vector<32x2688xf32>
    %28 = arith.addf %25, %27 : vector<32x2688xf32>
    %cst_11 = arith.constant 0.000000e+00 : f32
    %29 = vector.broadcast %cst_11 : f32 to vector<32x2688xf32>
    %30 = arith.maximumf %28, %29 : vector<32x2688xf32>
    %31 = arith.truncf %30 : vector<32x2688xf32> to vector<32x2688xbf16>
    %c0_12 = arith.constant 0 : index
    %c0_13 = arith.constant 0 : index
    %32 = vector.load %arg6[%c0_12, %c0_13] : memref<2688x128xbf16, #tpu.memory_space<vmem>>, vector<2688x128xbf16>
    %cst_14 = arith.constant dense<0.000000e+00> : vector<32x128xf32>
    %33 = tpu.matmul %31, %32, %cst_14 {dimension_numbers = #tpu.dot_dimension_numbers<[1], [0], [0], [1], [0, 0, 1, 1], [], []>} : vector<32x2688xbf16>, vector<2688x128xbf16>, vector<32x128xf32> -> vector<32x128xf32>
    %c0_15 = arith.constant 0 : index
    %c0_16 = arith.constant 0 : index
    %34 = vector.load %arg7[%c0_15, %c0_16] : memref<1x128xf32, #tpu.memory_space<vmem>>, vector<1x128xf32>
    %35 = vector.broadcast %34 : vector<1x128xf32> to vector<32x128xf32>
    %36 = arith.addf %33, %35 : vector<32x128xf32>
    %cst_17 = arith.constant 0.000000e+00 : f32
    %37 = vector.broadcast %cst_17 : f32 to vector<32x128xf32>
    %38 = arith.maximumf %36, %37 : vector<32x128xf32>
    %39 = arith.truncf %38 : vector<32x128xf32> to vector<32x128xbf16>
    %c0_18 = arith.constant 0 : index
    %c0_19 = arith.constant 0 : index
    %40 = vector.load %arg8[%c0_18, %c0_19] : memref<128x128xbf16, #tpu.memory_space<vmem>>, vector<128x128xbf16>
    %cst_20 = arith.constant dense<0.000000e+00> : vector<32x128xf32>
    %41 = tpu.matmul %39, %40, %cst_20 {dimension_numbers = #tpu.dot_dimension_numbers<[1], [0], [0], [1], [0, 0, 1, 1], [], []>} : vector<32x128xbf16>, vector<128x128xbf16>, vector<32x128xf32> -> vector<32x128xf32>
    %c0_21 = arith.constant 0 : index
    %c0_22 = arith.constant 0 : index
    %42 = vector.load %arg9[%c0_21, %c0_22] : memref<1x128xf32, #tpu.memory_space<vmem>>, vector<1x128xf32>
    %43 = vector.broadcast %42 : vector<1x128xf32> to vector<32x128xf32>
    %44 = arith.addf %41, %43 : vector<32x128xf32>
    %c0_23 = arith.constant 0 : index
    %c0_24 = arith.constant 0 : index
    %45 = vector.load %arg10[%c0_23, %c0_24] : memref<32x128xf32, #tpu.memory_space<vmem>>, vector<32x128xf32>
    tpu.vector_store %arg10[%c0_23, %c0_24], %44 {strides = array<i32>} : memref<32x128xf32, #tpu.memory_space<vmem>>, vector<32x128xf32>,
    return
  }
  func.func @transform_0(%arg0: i32) -> (i32, i32) {
    %c0_i32 = arith.constant 0 : i32
    %c0_i32_0 = arith.constant 0 : i32
    return %arg0, %c0_i32 : i32, i32
  }
  func.func @transform_1(%arg0: i32) -> (i32, i32) {
    %c0_i32 = arith.constant 0 : i32
    %c0_i32_0 = arith.constant 0 : i32
    %c0_i32_1 = arith.constant 0 : i32
    return %c0_i32, %c0_i32_0 : i32, i32
  }
  func.func @transform_2(%arg0: i32) -> (i32, i32) {
    %c0_i32 = arith.constant 0 : i32
    %c0_i32_0 = arith.constant 0 : i32
    %c0_i32_1 = arith.constant 0 : i32
    return %c0_i32, %c0_i32_0 : i32, i32
  }
  func.func @transform_3(%arg0: i32) -> (i32, i32) {
    %c0_i32 = arith.constant 0 : i32
    %c0_i32_0 = arith.constant 0 : i32
    %c0_i32_1 = arith.constant 0 : i32
    return %c0_i32, %c0_i32_0 : i32, i32
  }
  func.func @transform_4(%arg0: i32) -> (i32, i32) {
    %c0_i32 = arith.constant 0 : i32
    %c0_i32_0 = arith.constant 0 : i32
    %c0_i32_1 = arith.constant 0 : i32
    return %c0_i32, %c0_i32_0 : i32, i32
  }
  func.func @transform_5(%arg0: i32) -> (i32, i32) {
    %c0_i32 = arith.constant 0 : i32
    %c0_i32_0 = arith.constant 0 : i32
    %c0_i32_1 = arith.constant 0 : i32
    return %c0_i32, %c0_i32_0 : i32, i32
  }
  func.func @transform_6(%arg0: i32) -> (i32, i32) {
    %c0_i32 = arith.constant 0 : i32
    %c0_i32_0 = arith.constant 0 : i32
    %c0_i32_1 = arith.constant 0 : i32
    return %c0_i32, %c0_i32_0 : i32, i32
  }
  func.func @transform_7(%arg0: i32) -> (i32, i32) {
    %c0_i32 = arith.constant 0 : i32
    %c0_i32_0 = arith.constant 0 : i32
    %c0_i32_1 = arith.constant 0 : i32
    return %c0_i32, %c0_i32_0 : i32, i32
  }
  func.func @transform_8(%arg0: i32) -> (i32, i32) {
    %c0_i32 = arith.constant 0 : i32
    %c0_i32_0 = arith.constant 0 : i32
    %c0_i32_1 = arith.constant 0 : i32
    return %c0_i32, %c0_i32_0 : i32, i32
  }
  func.func @transform_9(%arg0: i32) -> (i32, i32) {
    %c0_i32 = arith.constant 0 : i32
    %c0_i32_0 = arith.constant 0 : i32
    return %arg0, %c0_i32 : i32, i32
  }
}

</mosaic_0001>

<bundles_post_ra>
// kernel: _cnn_pallas.1
= control target key start
LH: loop header
LB: loop body
LE: loop exit
PB: predicated region body
PF: predicated region fallthrough
CT: control target
= control target key end

     0   :  { %14 = vsyncpa [#allocation3], 0  ;;  %s25413_s0 = inlined_call_operand.hbm [shape: s8[32,128], index: 0, kind: input, shape index: {}]   ;;  %s25414_s1 = inlined_call_operand.vmem [shape: bf16[128,1344], index: 1, kind: input, shape index: {}]   ;;  %s25415_s2 = inlined_call_operand.hbm [shape: f32[1,1344], index: 2, kind: input, shape index: {}]   ;;  %s25416_s3 = inlined_call_operand.hbm [shape: bf16[1344,2688], index: 3, kind: input, shape index: {}]   ;;  %s25417_s4 = inlined_call_operand.hbm [shape: f32[1,2688], index: 4, kind: input, shape index: {}]   ;;  %s25418_s5 = inlined_call_operand.hbm [shape: bf16[2688,128], index: 5, kind: input, shape index: {}]   ;;  %s25419_s6 = inlined_call_operand.hbm [shape: f32[1,128], index: 6, kind: input, shape index: {}]   ;;  %s25420_s7 = inlined_call_operand.hbm [shape: bf16[128,128], index: 7, kind: input, shape index: {}]   ;;  %s25421_s8 = inlined_call_operand.hbm [shape: f32[1,128], index: 8, kind: input, shape index: {}]   ;;  %s25422_s9 = inlined_call_operand.hbm [shape: f32[32,128], index: 9, kind: output, shape index: {}]  }
   0x1   :  { %15 = vsyncpa [#allocation6], 0 }
   0x2   :  { %16 = vsyncpa [#allocation9], 0 }
   0x3   :  { %17 = vsyncpa [#allocation12], 0 }
   0x4   :  { %18 = vsyncpa [#allocation15], 0 }
   0x5   :  { %19 = vsyncpa [#allocation4], 0  ;;  %s23383_s30 = smov [#allocation5]   ;;  %s23384_s11 = smov [#allocation8]  }
   0x6   :  { %s38_s10 = sshll.u32 %s23383_s30, 4  ;;  %s60_s12 = sshll.u32 %s23384_s11, 4  ;;  %s39_s10 = int_to_ptr.vmem [resolvable:$true] %s38_s10  ;;  %s61_s12 = int_to_ptr.vmem [resolvable:$true] %s60_s12 }
   0x7   :  { %s23199_s13 = scalar_lea.vmem %s39_s10, 176  ;;  %s23203_s14 = scalar_lea.vmem %s39_s10, 192 }
   0x8   :  { %p23200_p0 = scmp.ne.s32.totalorder %s39_s10, %s23199_s13  ;;  %p23204_p1 = scmp.lt.s32.totalorder %s39_s10, %s39_s10 }
   0x9   :  { %p23205_p2 = scmp.lt.s32.totalorder %s23203_s14, %s23199_s13 }
   0xb   :  { %p23206_p3 = por %p23205_p2, %p23204_p1 }
   0xd   :  { %p23207_p4 = pnand %p23206_p3, %p23200_p0 }
   0xf   :  { %23210 = shalt.err (!%p23207_p4)
}
  0x10   :  { %41 = dma.hbm_to_vmem [thread:$0]  %s25415_s2, 176, %s39_s10, [#allocation6]  }
  0x11   :  { %s23219_s17 = scalar_lea.vmem %s61_s12, 336  ;;  %s23223_s18 = scalar_lea.vmem %s61_s12, 352 }
  0x12   :  { %p23220_p5 = scmp.ne.s32.totalorder %s61_s12, %s23219_s17  ;;  %p23224_p6 = scmp.lt.s32.totalorder %s61_s12, %s61_s12 }
  0x13   :  { %p23225_p7 = scmp.lt.s32.totalorder %s23223_s18, %s23219_s17 }
  0x15   :  { %p23226_p8 = por %p23225_p7, %p23224_p6 }
  0x17   :  { %p23227_p9 = pnand %p23226_p8, %p23220_p5 }
  0x19   :  { %23230 = shalt.err (!%p23227_p9)
}
  0x1a   :  { %63 = dma.hbm_to_vmem [thread:$0]  %s25417_s4, 336, %s61_s12, [#allocation9]  }
  0x1b   :  { %s23385_s21 = smov [#allocation11]   ;;  %s23386_s23 = smov [#allocation2]  }
  0x1c   :  { %s82_s22 = sshll.u32 %s23385_s21, 4  ;;  %s26_s24 = sshll.u32 %s23386_s23, 4  ;;  %s83_s22 = int_to_ptr.vmem [resolvable:$true] %s82_s22  ;;  %s27_s24 = int_to_ptr.vmem [resolvable:$true] %s26_s24 }
  0x1d   :  { %s23239_s25 = scalar_lea.vmem %s83_s22, 16  ;;  %s23243_s2 = scalar_lea.vmem %s83_s22, 32 }
  0x1e   :  { %p23240_p10 = scmp.ne.s32.totalorder %s83_s22, %s23239_s25  ;;  %p23244_p11 = scmp.lt.s32.totalorder %s83_s22, %s83_s22 }
  0x1f   :  { %p23245_p12 = scmp.lt.s32.totalorder %s23243_s2, %s23239_s25 }
  0x21   :  { %p23246_p13 = por %p23245_p12, %p23244_p11 }
  0x23   :  { %p23247_p0 = pnand %p23246_p13, %p23240_p10 }
  0x25   :  { %23250 = shalt.err (!%p23247_p0)
}
  0x26   :  { %85 = dma.hbm_to_vmem [thread:$0]  %s25419_s6, 16, %s83_s22, [#allocation12]  }
  0x27   :  { %s23259_s28 = scalar_lea.vmem %s27_s24, 128  ;;  %p23264_p2 = scmp.lt.s32.totalorder %s27_s24, %s27_s24 }
  0x28   :  { %p23260_p1 = scmp.ne.s32.totalorder %s27_s24, %s23259_s28  ;;  %p23265_p3 = scmp.lt.s32.totalorder %s23259_s28, %s23259_s28 }
  0x2a   :  { %p23266_p4 = por %p23265_p3, %p23264_p2 }
  0x2c   :  { %p23267_p5 = pnand %p23266_p4, %p23260_p1 }
  0x2e   :  { %23270 = shalt.err (!%p23267_p5)
}
  0x2f   :  { %29 = dma.hbm_to_vmem [thread:$0]  %s25413_s0, 128, %s27_s24, [#allocation3]  }
  0x30   :  { %s23387_s30 = smov [#allocation7]  }
  0x31   :  { %s47_s10 = sshll.u32 %s23387_s30, 4  ;;  %s48_s10 = int_to_ptr.vmem [resolvable:$true] %s47_s10 }
  0x32   :  { %s23279_s11 = scalar_lea.vmem %s48_s10, 225792  ;;  %p23284_p7 = scmp.lt.s32.totalorder %s48_s10, %s48_s10 }
  0x33   :  { %p23280_p6 = scmp.ne.s32.totalorder %s48_s10, %s23279_s11  ;;  %p23285_p8 = scmp.lt.s32.totalorder %s23279_s11, %s23279_s11 }
  0x35   :  { %p23286_p9 = por %p23285_p8, %p23284_p7 }
  0x37   :  { %p23287_p10 = pnand %p23286_p9, %p23280_p6 }
  0x39   :  { %23290 = shalt.err (!%p23287_p10)
}
  0x3a   :  { %s23388_s6 = smov 1344   ;;  %s23389_s12 = smov 84  }
  0x3b   :  { %53 = dma.hbm_to_vmem [thread:$0]  %s25416_s3, 225792, %s48_s10, [#allocation6], %s23388_s6, %s23388_s6, %s23389_s12  }
  0x3c   :  { %s23390_s15 = smov [#allocation10]  }
  0x3d   :  { %s69_s16 = sshll.u32 %s23390_s15, 4  ;;  %s70_s16 = int_to_ptr.vmem [resolvable:$true] %s69_s16 }
  0x3e   :  { %s23299_s0 = scalar_lea.vmem %s70_s16, 21504  ;;  %p23304_p12 = scmp.lt.s32.totalorder %s70_s16, %s70_s16 }
  0x3f   :  { %p23300_p11 = scmp.ne.s32.totalorder %s70_s16, %s23299_s0  ;;  %p23305_p13 = scmp.lt.s32.totalorder %s23299_s0, %s23299_s0 }
  0x41   :  { %p23306_p0 = por %p23305_p13, %p23304_p12 }
  0x43   :  { %p23307_p1 = pnand %p23306_p0, %p23300_p11 }
  0x45   :  { %23310 = shalt.err (!%p23307_p1)
}
  0x46   :  { %s23391_s17 = smov 64   ;;  %s23392_s18 = smov 4  }
  0x47   :  { %75 = dma.hbm_to_vmem [thread:$0]  %s25418_s5, 21504, %s70_s16, [#allocation9], %s23391_s17, %s23391_s17, %s23392_s18  }
  0x48   :  { %s23393_s21 = smov [#allocation13]   ;;  %s23394_s23 = smov [#allocation14]  }
  0x49   :  { %s91_s22 = sshll.u32 %s23393_s21, 4  ;;  %s104_s3 = sshll.u32 %s23394_s23, 4  ;;  %s92_s22 = int_to_ptr.vmem [resolvable:$true] %s91_s22  ;;  %s105_s3 = int_to_ptr.vmem [resolvable:$true] %s104_s3 }
  0x4a   :  { %s23319_s24 = scalar_lea.vmem %s92_s22, 1024  ;;  %p23324_p3 = scmp.lt.s32.totalorder %s92_s22, %s92_s22 }
  0x4b   :  { %p23320_p2 = scmp.ne.s32.totalorder %s92_s22, %s23319_s24  ;;  %p23325_p4 = scmp.lt.s32.totalorder %s23319_s24, %s23319_s24 }
  0x4d   :  { %p23326_p5 = por %p23325_p4, %p23324_p3 }
  0x4f   :  { %p23327_p6 = pnand %p23326_p5, %p23320_p2 }
  0x51   :  { %23330 = shalt.err (!%p23327_p6)
}
  0x52   :  { %97 = dma.hbm_to_vmem [thread:$0]  %s25420_s7, 1024, %s92_s22, [#allocation12], %s23391_s17, %s23391_s17, %s23392_s18  }
  0x53   :  { %s23339_s26 = scalar_lea.vmem %s105_s3, 16  ;;  %s23343_s5 = scalar_lea.vmem %s105_s3, 32 }
  0x54   :  { %p23340_p7 = scmp.ne.s32.totalorder %s105_s3, %s23339_s26  ;;  %p23344_p8 = scmp.lt.s32.totalorder %s105_s3, %s105_s3 }
  0x55   :  { %p23345_p9 = scmp.lt.s32.totalorder %s23343_s5, %s23339_s26 }
  0x57   :  { %p23346_p10 = por %p23345_p9, %p23344_p8 }
  0x59   :  { %p23347_p11 = pnand %p23346_p10, %p23340_p7 }
  0x5b   :  { %23350 = shalt.err (!%p23347_p11)
}
  0x5c   :  { %107 = dma.hbm_to_vmem [thread:$0]  %s25421_s8, 16, %s105_s3, [#allocation15]  }
  0x5d   :  { %23371 = dma.done.wait [#allocation3], 128  }
  0x5e   :  { %23372 = vsyncadd [#allocation3], 4294967168 }
  0x5f   :  { %23373 = dma.done.wait [#allocation6], 225968  }
  0x60   :  { %23374 = vsyncadd [#allocation6], 4294741328 }
  0x61   :  { %23375 = dma.done.wait [#allocation9], 21840  }
  0x62   :  { %23376 = vsyncadd [#allocation9], 4294945456 }
  0x63   :  { %23377 = dma.done.wait [#allocation12], 1040  }
  0x64   :  { %23378 = vsyncadd [#allocation12], 4294966256 }
  0x65   :  { %23379 = dma.done.wait [#allocation15], 16  }
  0x66   :  { %23380 = vsyncadd [#allocation15], 4294967280  ;;  %v25423_v0 = vmov 0   ;;  %v20277_v1 = vld [vmem:[%s25414_s1 + $0x26c] ss:$44 sps:$4 sm:$0xff]   ;;  %v138_v18 = vlaneseq  ;;  %v133_v29 = vld [vmem:[#allocation2] sm:$0xff] }
  0x67   :  { %793 = vmatprep.mubr.bf16.mxu0 %v25423_v0  ;;  %846 = vmatprep.mubr.bf16.mxu1 %v25423_v0  ;;  %v20279_v2 = vld [vmem:[%s25414_s1 + $0x274] ss:$44 sps:$4 sm:$0xff]   ;;  %v20282_v4 = vld [vmem:[%s25414_s1 + $0x270] ss:$44 sps:$4 sm:$0xff]   ;;  %v20288_v8 = vld [vmem:[%s25414_s1 + $0x218] ss:$44 sps:$4 sm:$0xff]   ;;  %v134_v35 = vunpack.c.0.s8 %v133_v29  ;;  %v135_v36 = vunpack.c.1.s8 %v133_v29  ;;  %v136_v47 = vunpack.c.2.s8 %v133_v29  ;;  %v137_v48 = vunpack.c.3.s8 %v133_v29 }
  0x68   :  { %761 = vmatprep.subr.bf16.mxu0 %v20277_v1  ;;  %v20281_v3 = vld [vmem:[%s25414_s1 + $0x268] ss:$44 sps:$4 sm:$0xff]   ;;  %814 = vmatprep.subr.bf16.mxu1 %v20279_v2  ;;  %v20287_v7 = vld [vmem:[%s25414_s1 + $0x210] ss:$44 sps:$4 sm:$0xff]   ;;  %v20293_v11 = vld [vmem:[%s25414_s1 + $0x1b8] ss:$44 sps:$4 sm:$0xff]  }
  0x69   :  { %v20283_v5 = vld [vmem:[%s25414_s1 + $0x214] ss:$44 sps:$4 sm:$0xff]   ;;  %762 = vmatpush1.bf16.msra.mxu0 %v20281_v3  ;;  %815 = vmatpush1.bf16.msra.mxu1 %v20282_v4  ;;  %v20285_v6 = vld [vmem:[%s25414_s1 + $0x21c] ss:$44 sps:$4 sm:$0xff]   ;;  %v20291_v10 = vld [vmem:[%s25414_s1 + $0x1c4] ss:$44 sps:$4 sm:$0xff]  }
  0x6a   :  { %763 = vmatprep.subr.bf16.mxu0 %v20283_v5  ;;  %816 = vmatprep.subr.bf16.mxu1 %v20285_v6  ;;  %v20289_v9 = vld [vmem:[%s25414_s1 + $0x1bc] ss:$44 sps:$4 sm:$0xff]   ;;  %v20294_v12 = vld [vmem:[%s25414_s1 + $0x1c0] ss:$44 sps:$4 sm:$0xff]   ;;  %v20295_v13 = vld [vmem:[%s25414_s1 + $0x164] ss:$44 sps:$4 sm:$0xff]  }
  0x6b   :  { %v20297_v14 = vld [vmem:[%s25414_s1 + $0x16c] ss:$44 sps:$4 sm:$0xff]   ;;  %v20300_v16 = vld [vmem:[%s25414_s1 + $0x168] ss:$44 sps:$4 sm:$0xff]   ;;  %v20306_v21 = vld [vmem:[%s25414_s1 + $0x110] ss:$44 sps:$4 sm:$0xff]  }
  0x6c   :  { %v20299_v15 = vld [vmem:[%s25414_s1 + $0x160] ss:$44 sps:$4 sm:$0xff]   ;;  %v20305_v20 = vld [vmem:[%s25414_s1 + $0x108] ss:$44 sps:$4 sm:$0xff]   ;;  %v139_v23 = vand.u32 127, %v138_v18  ;;  %vm12004_vm8 = vcmask 523264  }
  0x6d   :  { %764 = vmatpush1.bf16.msra.mxu0 %v20287_v7  ;;  %817 = vmatpush1.bf16.msra.mxu1 %v20288_v8  ;;  %v20301_v17 = vld [vmem:[%s25414_s1 + $0x10c] ss:$44 sps:$4 sm:$0xff]   ;;  %v20303_v19 = vld [vmem:[%s25414_s1 + $0x114] ss:$44 sps:$4 sm:$0xff]   ;;  %v20309_v24 = vld [vmem:[%s25414_s1 + $0xbc] ss:$44 sps:$4 sm:$0xff]  }
  0x6e   :  { %765 = vmatprep.subr.bf16.mxu0 %v20289_v9  ;;  %818 = vmatprep.subr.bf16.mxu1 %v20291_v10  ;;  %v20307_v22 = vld [vmem:[%s25414_s1 + $0xb4] ss:$44 sps:$4 sm:$0xff]   ;;  %v20311_v25 = vld [vmem:[%s25414_s1 + $0xb0] ss:$44 sps:$4 sm:$0xff]   ;;  %v20312_v26 = vld [vmem:[%s25414_s1 + $0xb8] ss:$44 sps:$4 sm:$0xff]  }
  0x6f   :  { %vm141_vm0 = vcmp.lt.s32.totalorder %v139_v23, 84  ;;  %v20313_v27 = vld [vmem:[%s25414_s1 + $0x5c] ss:$44 sps:$4 sm:$0xff]   ;;  %v20315_v28 = vld [vmem:[%s25414_s1 + $0x64] ss:$44 sps:$4 sm:$0xff]   ;;  %vm140_vm1 = vcmp.lt.s32.totalorder %v139_v23, 42 }
  0x70   :  { %v20317_v30 = vld [vmem:[%s25414_s1 + $0x58] ss:$44 sps:$4 sm:$0xff]   ;;  %v142_v31 = vsel %vm141_vm0, 4294967295, %v25423_v0  ;;  %v20318_v32 = vld [vmem:[%s25414_s1 + $0x60] ss:$44 sps:$4 sm:$0xff]  }
  0x71   :  { %766 = vmatpush1.bf16.msra.mxu0 %v20293_v11  ;;  %819 = vmatpush1.bf16.msra.mxu1 %v20294_v12  ;;  %v20319_v33 = vld [vmem:[%s25414_s1 + $0x4] ss:$44 sps:$4 sm:$0xff]   ;;  %v20321_v34 = vld [vmem:[%s25414_s1 + $0xc] ss:$44 sps:$4 sm:$0xff]   ;;  %v143_v37 = vsel %vm140_vm1, 1, %v142_v31 }
  0x72   :  { %767 = vmatprep.subr.bf16.mxu0 %v20295_v13  ;;  %820 = vmatprep.subr.bf16.mxu1 %v20297_v14  ;;  %v20323_v38 = vld [vmem:[%s25414_s1] ss:$44 sps:$4 sm:$0xff]   ;;  %v20324_v39 = vld [vmem:[%s25414_s1 + $0x8] ss:$44 sps:$4 sm:$0xff]   ;;  %vm144_vm2 = vcmp.eq.s32.totalorder %v134_v35, %v143_v37  ;;  %vm145_vm3 = vcmp.eq.s32.totalorder %v135_v36, %v143_v37  ;;  %v20327_v40 = vld [vmem:[%s25414_s1 + $0x284] ss:$44 sps:$4 sm:$0xff]   ;;  %vm146_vm5 = vcmp.eq.s32.totalorder %v136_v47, %v143_v37 }
  0x73   :  { %v20336_v41 = vld [vmem:[%s25414_s1 + $0x27c] ss:$44 sps:$4 sm:$0xff]   ;;  %v20325_v42 = vld [vmem:[%s25414_s1 + $0x280] ss:$44 sps:$4 sm:$0xff]   ;;  %vm23583_vm4 = vmpackc.low %vm145_vm3, %vm144_vm2  ;;  %v23396_v49 = vmov 1.0|1.0   ;;  %vm147_vm6 = vcmp.eq.s32.totalorder %v137_v48, %v143_v37 }
  0x74   :  { %v20334_v44 = vld [vmem:[%s25414_s1 + $0x278] ss:$44 sps:$4 sm:$0xff]   ;;  %v20328_v50 = vld [vmem:[%s25414_s1 + $0x228] ss:$44 sps:$4 sm:$0xff]   ;;  %v20340_v52 = vld [vmem:[%s25414_s1 + $0x220] ss:$44 sps:$4 sm:$0xff]  }
  0x75   :  { %768 = vmatpush1.bf16.msra.mxu0 %v20299_v15  ;;  %821 = vmatpush1.bf16.msra.mxu1 %v20300_v16  ;;  %v20330_v45 = vld [vmem:[%s25414_s1 + $0x22c] ss:$44 sps:$4 sm:$0xff]   ;;  %v20342_v46 = vld [vmem:[%s25414_s1 + $0x224] ss:$44 sps:$4 sm:$0xff]   ;;  %v20333_v51 = vld [vmem:[%s25414_s1 + $0x1d4] ss:$44 sps:$4 sm:$0xff]  }
  0x76   :  { %769 = vmatprep.subr.bf16.mxu0 %v20301_v17  ;;  %822 = vmatprep.subr.bf16.mxu1 %v20303_v19  ;;  %v20348_v53 = vld [vmem:[%s25414_s1 + $0x1cc] ss:$44 sps:$4 sm:$0xff]   ;;  %v20331_v54 = vld [vmem:[%s25414_s1 + $0x1d0] ss:$44 sps:$4 sm:$0xff]   ;;  %v20346_v56 = vld [vmem:[%s25414_s1 + $0x1c8] ss:$44 sps:$4 sm:$0xff]  }
  0x77   :  { %v20339_v55 = vld [vmem:[%s25414_s1 + $0x17c] ss:$44 sps:$4 sm:$0xff]   ;;  %vm23625_vm7 = vmpackc.low %vm147_vm6, %vm146_vm5  ;;  %v20354_v58 = vld [vmem:[%s25414_s1 + $0x174] ss:$44 sps:$4 sm:$0xff]  }
  0x78   :  { %v20337_v59 = vld [vmem:[%s25414_s1 + $0x178] ss:$44 sps:$4 sm:$0xff]   ;;  %v20352_v60 = vld [vmem:[%s25414_s1 + $0x170] ss:$44 sps:$4 sm:$0xff]   ;;  %v20343_v63 = vld [vmem:[%s25414_s1 + $0x120] ss:$44 sps:$4 sm:$0xff]  }
  0x79   :  { %770 = vmatpush1.bf16.msra.mxu0 %v20305_v20  ;;  %823 = vmatpush1.bf16.msra.mxu1 %v20306_v21  ;;  %v20345_v61 = vld [vmem:[%s25414_s1 + $0x124] ss:$44 sps:$4 sm:$0xff]   ;;  %v20360_v62 = vld [vmem:[%s25414_s1 + $0x11c] ss:$44 sps:$4 sm:$0xff]   ;;  %v20351_v1 = vld [vmem:[%s25414_s1 + $0xcc] ss:$44 sps:$4 sm:$0xff]  }
  0x7a   :  { %771 = vmatprep.subr.bf16.mxu0 %v20307_v22  ;;  %824 = vmatprep.subr.bf16.mxu1 %v20309_v24  ;;  %v20358_v2 = vld [vmem:[%s25414_s1 + $0x118] ss:$44 sps:$4 sm:$0xff]   ;;  %v20349_v4 = vld [vmem:[%s25414_s1 + $0xc8] ss:$44 sps:$4 sm:$0xff]   ;;  %v20364_v6 = vld [vmem:[%s25414_s1 + $0xc0] ss:$44 sps:$4 sm:$0xff]  }
  0x7b   :  { %v20366_v3 = vld [vmem:[%s25414_s1 + $0xc4] ss:$44 sps:$4 sm:$0xff]   ;;  %v20357_v5 = vld [vmem:[%s25414_s1 + $0x74] ss:$44 sps:$4 sm:$0xff]   ;;  %v20370_v7 = vld [vmem:[%s25414_s1 + $0x6c] ss:$44 sps:$4 sm:$0xff]  }
  0x7c   :  { %v20355_v8 = vld [vmem:[%s25414_s1 + $0x70] ss:$44 sps:$4 sm:$0xff]   ;;  %v20368_v10 = vld [vmem:[%s25414_s1 + $0x68] ss:$44 sps:$4 sm:$0xff]   ;;  %v20361_v12 = vld [vmem:[%s25414_s1 + $0x18] ss:$44 sps:$4 sm:$0xff]  }
  0x7d   :  { %772 = vmatpush1.bf16.msra.mxu0 %v20311_v25  ;;  %825 = vmatpush1.bf16.msra.mxu1 %v20312_v26  ;;  %v20363_v9 = vld [vmem:[%s25414_s1 + $0x1c] ss:$44 sps:$4 sm:$0xff]   ;;  %v20374_v11 = vld [vmem:[%s25414_s1 + $0x14] ss:$44 sps:$4 sm:$0xff]   ;;  %v20383_v15 = vld [vmem:[%s25414_s1 + $0x28c] ss:$44 sps:$4 sm:$0xff]  }
  0x7e   :  { %773 = vmatprep.subr.bf16.mxu0 %v20313_v27  ;;  %826 = vmatprep.subr.bf16.mxu1 %v20315_v28  ;;  %v20367_v13 = vld [vmem:[%s25414_s1 + $0x290] ss:$44 sps:$4 sm:$0xff]   ;;  %v20371_v16 = vld [vmem:[%s25414_s1 + $0x238] ss:$44 sps:$4 sm:$0xff]   ;;  %v20381_v17 = vld [vmem:[%s25414_s1 + $0x288] ss:$44 sps:$4 sm:$0xff]  }
  0x7f   :  { %v20372_v14 = vld [vmem:[%s25414_s1 + $0x10] ss:$44 sps:$4 sm:$0xff]   ;;  %v20386_v19 = vld [vmem:[%s25414_s1 + $0x234] ss:$44 sps:$4 sm:$0xff]   ;;  %v20387_v24 = vld [vmem:[%s25414_s1 + $0x1d8] ss:$44 sps:$4 sm:$0xff]  }
  0x80   :  { %v20375_v20 = vld [vmem:[%s25414_s1 + $0x1e0] ss:$44 sps:$4 sm:$0xff]   ;;  %v20384_v21 = vld [vmem:[%s25414_s1 + $0x230] ss:$44 sps:$4 sm:$0xff]   ;;  %v20376_v22 = vld [vmem:[%s25414_s1 + $0x188] ss:$44 sps:$4 sm:$0xff]  }
  0x81   :  { %774 = vmatpush1.bf16.msra.mxu0 %v20317_v30  ;;  %827 = vmatpush1.bf16.msra.mxu1 %v20318_v32  ;;  %v20389_v23 = vld [vmem:[%s25414_s1 + $0x1dc] ss:$44 sps:$4 sm:$0xff]   ;;  %v20392_v25 = vld [vmem:[%s25414_s1 + $0x184] ss:$44 sps:$4 sm:$0xff]   ;;  %v20390_v27 = vld [vmem:[%s25414_s1 + $0x180] ss:$44 sps:$4 sm:$0xff]  }
  0x82   :  { %775 = vmatprep.subr.bf16.mxu0 %v20319_v33  ;;  %828 = vmatprep.subr.bf16.mxu1 %v20321_v34  ;;  %v20377_v26 = vld [vmem:[%s25414_s1 + $0x130] ss:$44 sps:$4 sm:$0xff]   ;;  %v20395_v28 = vld [vmem:[%s25414_s1 + $0x12c] ss:$44 sps:$4 sm:$0xff]   ;;  %v20393_v30 = vld [vmem:[%s25414_s1 + $0x128] ss:$44 sps:$4 sm:$0xff]  }
  0x83   :  { %v20378_v29 = vld [vmem:[%s25414_s1 + $0xd8] ss:$44 sps:$4 sm:$0xff]   ;;  %v20398_v31 = vld [vmem:[%s25414_s1 + $0xd4] ss:$44 sps:$4 sm:$0xff]   ;;  %v20396_v33 = vld [vmem:[%s25414_s1 + $0xd0] ss:$44 sps:$4 sm:$0xff]  }
  0x84   :  { %v20379_v32 = vld [vmem:[%s25414_s1 + $0x80] ss:$44 sps:$4 sm:$0xff]   ;;  %v20401_v34 = vld [vmem:[%s25414_s1 + $0x7c] ss:$44 sps:$4 sm:$0xff]   ;;  %v20399_v36 = vld [vmem:[%s25414_s1 + $0x78] ss:$44 sps:$4 sm:$0xff]  }
  0x85   :  { %776 = vmatpush1.bf16.msra.mxu0 %v20323_v38  ;;  %829 = vmatpush1.bf16.msra.mxu1 %v20324_v39  ;;  %v20380_v35 = vld [vmem:[%s25414_s1 + $0x28] ss:$44 sps:$4 sm:$0xff]   ;;  %v20404_v37 = vld [vmem:[%s25414_s1 + $0x24] ss:$44 sps:$4 sm:$0xff]   ;;  %v20402_v39 = vld [vmem:[%s25414_s1 + $0x20] ss:$44 sps:$4 sm:$0xff]  }
  0x86   :  { %920 = vmatprep.subr.bf16.mxu1 %v20327_v40  ;;  %867 = vmatprep.subr.bf16.mxu0 %v20336_v41  ;;  %v20410_v38 = vld [vmem:[#allocation7 + $0xf1c] ss:$84 sps:$4 sm:$0xff]   ;;  %v20408_v41 = vld [vmem:[#allocation7 + $0xf18] ss:$84 sps:$4 sm:$0xff]   ;;  %v20423_v43 = vld [vmem:[#allocation7 + $0x2a0] ss:$84 sps:$4 sm:$0xff]  }
  0x87   :  { %v20407_v40 = vld [vmem:[#allocation7 + $0x49c] ss:$84 sps:$4 sm:$0xff]   ;;  %v20422_v47 = vld [vmem:[#allocation7 + $0xdcc] ss:$84 sps:$4 sm:$0xff]   ;;  %s23397_s1 = smov [#allocation16]  }
  0x88   :  { %17745 = vmatmul.mubr.msk.bf16.vlgmr.msra.gmra.mxu0 %vm23583_vm4, %v23396_v49  ;;  %17749 = vmatmul.mubr.msk.bf16.vlgmr.msra.gmra.mxu1 %vm23583_vm4, %v23396_v49  ;;  %v20411_v48 = vld [vmem:[#allocation7 + $0x3f0] ss:$84 sps:$4 sm:$0xff]   ;;  %s17636_s8 = sshll.u32 %s23397_s1, 4  ;;  %s17637_s8 = int_to_ptr.vmem [resolvable:$true] %s17636_s8 }
  0x89   :  { %921 = vmatpush1.bf16.msra.mxu1 %v20325_v42  ;;  %868 = vmatpush1.bf16.msra.mxu0 %v20334_v44  ;;  %v20416_v42 = vld [vmem:[#allocation7 + $0xe74] ss:$84 sps:$4 sm:$0xff]   ;;  %v20405_v44 = vld [vmem:[#allocation7 + $0x498] ss:$84 sps:$4 sm:$0xff]   ;;  %v20435_v57 = vld [vmem:[#allocation7 + $0x150] ss:$84 sps:$4 sm:$0xff]   ;;  %p23356_p13 = scmp.lt.s32.totalorder %s17637_s8, %s17637_s8 }
  0x8a   :  { %922 = vmatprep.subr.bf16.mxu1 %v20330_v45  ;;  %869 = vmatprep.subr.bf16.mxu0 %v20342_v46  ;;  %v20413_v45 = vld [vmem:[#allocation7 + $0x3f4] ss:$84 sps:$4 sm:$0xff]   ;;  %v20414_v46 = vld [vmem:[#allocation7 + $0xe70] ss:$84 sps:$4 sm:$0xff]   ;;  %s23351_s29 = scalar_lea.vmem %s17637_s8, 512 }
  0x8b   :  { %856 = vmatprep.mubr.bf16.mxu1 %v25423_v0  ;;  %803 = vmatprep.mubr.bf16.mxu0 %v25423_v0  ;;  %p23352_p12 = scmp.ne.s32.totalorder %s17637_s8, %s23351_s29  ;;  %p23357_p0 = scmp.lt.s32.totalorder %s23351_s29, %s23351_s29 }
  0x8d   :  { %923 = vmatpush1.bf16.msra.mxu1 %v20328_v50  ;;  %870 = vmatpush1.bf16.msra.mxu0 %v20340_v52  ;;  %v20419_v50 = vld [vmem:[#allocation7 + $0x34c] ss:$84 sps:$4 sm:$0xff]   ;;  %v20428_v52 = vld [vmem:[#allocation7 + $0xd24] ss:$84 sps:$4 sm:$0xff]   ;;  %p23358_p1 = por %p23357_p0, %p23356_p13 }
  0x8e   :  { %924 = vmatprep.subr.bf16.mxu1 %v20333_v51  ;;  %871 = vmatprep.subr.bf16.mxu0 %v20348_v53  ;;  %v20420_v51 = vld [vmem:[#allocation7 + $0xdc8] ss:$84 sps:$4 sm:$0xff]  }
  0x8f   :  { %v20417_v53 = vld [vmem:[#allocation7 + $0x348] ss:$84 sps:$4 sm:$0xff]   ;;  %p23359_p2 = pnand %p23358_p1, %p23352_p12 }
  0x90   :  { %17751 = vmatmul.mubr.msk.bf16.gmra.mxu1 %vm23625_vm7, %v23396_v49  ;;  %17747 = vmatmul.mubr.msk.bf16.gmra.mxu0 %vm23625_vm7, %v23396_v49 }
  0x91   :  { %925 = vmatpush1.bf16.msra.mxu1 %v20331_v54  ;;  %872 = vmatpush1.bf16.msra.mxu0 %v20346_v56  ;;  %v20425_v54 = vld [vmem:[#allocation7 + $0x2a4] ss:$84 sps:$4 sm:$0xff]   ;;  %v20434_v56 = vld [vmem:[#allocation7 + $0xc7c] ss:$84 sps:$4 sm:$0xff]  }
  0x92   :  { %926 = vmatprep.subr.bf16.mxu1 %v20339_v55  ;;  %873 = vmatprep.subr.bf16.mxu0 %v20354_v58  ;;  %v20426_v55 = vld [vmem:[#allocation7 + $0xd20] ss:$84 sps:$4 sm:$0xff]   ;;  %v20431_v58 = vld [vmem:[#allocation7 + $0x1fc] ss:$84 sps:$4 sm:$0xff]  }
  0x93   :  { %952 = vmatprep.mubr.bf16.mxu1 %v25423_v0  ;;  %899 = vmatprep.mubr.bf16.mxu0 %v25423_v0 }
  0x95   :  { %927 = vmatpush1.bf16.msra.mxu1 %v20337_v59  ;;  %874 = vmatpush1.bf16.msra.mxu0 %v20352_v60  ;;  %v20432_v59 = vld [vmem:[#allocation7 + $0xc78] ss:$84 sps:$4 sm:$0xff]   ;;  %v20440_v60 = vld [vmem:[#allocation7 + $0xbd4] ss:$84 sps:$4 sm:$0xff]  }
  0x96   :  { %928 = vmatprep.subr.bf16.mxu1 %v20345_v61  ;;  %875 = vmatprep.subr.bf16.mxu0 %v20360_v62  ;;  %v20429_v61 = vld [vmem:[#allocation7 + $0x1f8] ss:$84 sps:$4 sm:$0xff]   ;;  %v20437_v62 = vld [vmem:[#allocation7 + $0x154] ss:$84 sps:$4 sm:$0xff]  }
  0x99   :  { %929 = vmatpush1.bf16.msra.mxu1 %v20343_v63  ;;  %876 = vmatpush1.bf16.msra.mxu0 %v20358_v2  ;;  %v20438_v63 = vld [vmem:[#allocation7 + $0xbd0] ss:$84 sps:$4 sm:$0xff]   ;;  %v20444_v2 = vld [vmem:[#allocation7 + $0xb28] ss:$84 sps:$4 sm:$0xff]  }
  0x9a   :  { %930 = vmatprep.subr.bf16.mxu1 %v20351_v1  ;;  %877 = vmatprep.subr.bf16.mxu0 %v20366_v3  ;;  %v20446_v1 = vld [vmem:[#allocation7 + $0xb2c] ss:$84 sps:$4 sm:$0xff]   ;;  %v20452_v3 = vld [vmem:[#allocation7 + $0xa84] ss:$84 sps:$4 sm:$0xff]  }
  0x9d   :  { %931 = vmatpush1.bf16.msra.mxu1 %v20349_v4  ;;  %878 = vmatpush1.bf16.msra.mxu0 %v20364_v6  ;;  %v20441_v4 = vld [vmem:[#allocation7 + $0xa8] ss:$84 sps:$4 sm:$0xff]   ;;  %v20450_v6 = vld [vmem:[#allocation7 + $0xa80] ss:$84 sps:$4 sm:$0xff]  }
  0x9e   :  { %932 = vmatprep.subr.bf16.mxu1 %v20357_v5  ;;  %879 = vmatprep.subr.bf16.mxu0 %v20370_v7  ;;  %v20449_v5 = vld [vmem:[#allocation7 + $0x4] ss:$84 sps:$4 sm:$0xff]   ;;  %v20458_v7 = vld [vmem:[#allocation7 + $0x145c] ss:$84 sps:$4 sm:$0xff]  }
  0xa1   :  { %933 = vmatpush1.bf16.msra.mxu1 %v20355_v8  ;;  %880 = vmatpush1.bf16.msra.mxu0 %v20368_v10  ;;  %v20447_v8 = vld [vmem:[#allocation7] ss:$84 sps:$4 sm:$0xff]   ;;  %v20456_v10 = vld [vmem:[#allocation7 + $0x1458] ss:$84 sps:$4 sm:$0xff]  }
  0xa2   :  { %934 = vmatprep.subr.bf16.mxu1 %v20363_v9  ;;  %881 = vmatprep.subr.bf16.mxu0 %v20374_v11  ;;  %v20455_v9 = vld [vmem:[#allocation7 + $0x9dc] ss:$84 sps:$4 sm:$0xff]   ;;  %v20464_v11 = vld [vmem:[#allocation7 + $0x13b4] ss:$84 sps:$4 sm:$0xff]  }
  0xa5   :  { %935 = vmatpush1.bf16.msra.mxu1 %v20361_v12  ;;  %882 = vmatpush1.bf16.msra.mxu0 %v20372_v14  ;;  %v20453_v12 = vld [vmem:[#allocation7 + $0x9d8] ss:$84 sps:$4 sm:$0xff]   ;;  %v20462_v14 = vld [vmem:[#allocation7 + $0x13b0] ss:$84 sps:$4 sm:$0xff]  }
  0xa6   :  { %20188 = vmatprep.subr.bf16.mxu1 %v20367_v13  ;;  %973 = vmatprep.subr.bf16.mxu0 %v20383_v15  ;;  %v20470_v15 = vld [vmem:[#allocation7 + $0x130c] ss:$84 sps:$4 sm:$0xff]  }
  0xa8   :  { %17757 = vmatmul.mubr.msk.bf16.vlgmr.msra.gmra.mxu1 %vm23583_vm4, %v23396_v49  ;;  %17753 = vmatmul.mubr.msk.bf16.vlgmr.msra.gmra.mxu0 %vm23583_vm4, %v23396_v49 }
  0xa9   :  { %20189 = vmatpush3.bf16.msra.mxu1 %v20367_v13  ;;  %909 = vmatprep.mubr.bf16.mxu0 %v25423_v0  ;;  %v20461_v13 = vld [vmem:[#allocation7 + $0x934] ss:$84 sps:$4 sm:$0xff]  }
  0xaa   :  { %20190 = vmatprep.subr.bf16.mxu1 %v20371_v16  ;;  %962 = vmatprep.mubr.bf16.mxu1 %v25423_v0 }
  0xab   :  { %974 = vmatpush1.bf16.msra.mxu0 %v20381_v17  ;;  %v20467_v17 = vld [vmem:[#allocation7 + $0x88c] ss:$84 sps:$4 sm:$0xff]  }
  0xac   :  { %975 = vmatprep.subr.bf16.mxu0 %v20386_v19  ;;  %v20468_v19 = vld [vmem:[#allocation7 + $0x1308] ss:$84 sps:$4 sm:$0xff]  }
  0xad   :  { %20191 = vmatpush3.bf16.msra.mxu1 %v20371_v16  ;;  %v20459_v16 = vld [vmem:[#allocation7 + $0x930] ss:$84 sps:$4 sm:$0xff]  }
  0xae   :  { %20192 = vmatprep.subr.bf16.mxu1 %v20375_v20 }
  0xaf   :  { %976 = vmatpush1.bf16.msra.mxu0 %v20384_v21  ;;  %v20465_v21 = vld [vmem:[#allocation7 + $0x888] ss:$84 sps:$4 sm:$0xff]  }
  0xb0   :  { %17755 = vmatmul.mubr.msk.bf16.gmra.mxu0 %vm23625_vm7, %v23396_v49  ;;  %17759 = vmatmul.mubr.msk.bf16.gmra.mxu1 %vm23625_vm7, %v23396_v49 }
  0xb1   :  { %20193 = vmatpush3.bf16.msra.mxu1 %v20375_v20  ;;  %20204 = vmatprep.mubr.msk.bf16.mxu1 %vm23583_vm4, %v23396_v49  ;;  %v20476_v20 = vld [vmem:[#allocation7 + $0x1264] ss:$84 sps:$4 sm:$0xff]  }
  0xb2   :  { %20194 = vmatprep.subr.bf16.mxu1 %v20376_v22  ;;  %977 = vmatprep.subr.bf16.mxu0 %v20389_v23  ;;  %v20474_v23 = vld [vmem:[#allocation7 + $0x1260] ss:$84 sps:$4 sm:$0xff]  }
  0xb3   :  { %978 = vmatpush1.bf16.msra.mxu0 %v20387_v24  ;;  %1005 = vmatprep.mubr.bf16.mxu0 %v25423_v0  ;;  %v20482_v24 = vld [vmem:[#allocation7 + $0x11bc] ss:$84 sps:$4 sm:$0xff]  }
  0xb4   :  { %979 = vmatprep.subr.bf16.mxu0 %v20392_v25  ;;  %v20471_v25 = vld [vmem:[#allocation7 + $0x7e0] ss:$84 sps:$4 sm:$0xff]  }
  0xb5   :  { %20195 = vmatpush3.bf16.msra.mxu1 %v20376_v22  ;;  %v20473_v22 = vld [vmem:[#allocation7 + $0x7e4] ss:$84 sps:$4 sm:$0xff]  }
  0xb6   :  { %20196 = vmatprep.subr.bf16.mxu1 %v20377_v26 }
  0xb7   :  { %980 = vmatpush1.bf16.msra.mxu0 %v20390_v27  ;;  %v20480_v27 = vld [vmem:[#allocation7 + $0x11b8] ss:$84 sps:$4 sm:$0xff]  }
  0xb8   :  { %981 = vmatprep.subr.bf16.mxu0 %v20395_v28  ;;  %v20488_v28 = vld [vmem:[#allocation7 + $0x1114] ss:$84 sps:$4 sm:$0xff]  }
  0xb9   :  { %20197 = vmatpush3.bf16.msra.mxu1 %v20377_v26  ;;  %v20479_v26 = vld [vmem:[#allocation7 + $0x73c] ss:$84 sps:$4 sm:$0xff]  }
  0xba   :  { %20198 = vmatprep.subr.bf16.mxu1 %v20378_v29 }
  0xbb   :  { %982 = vmatpush1.bf16.msra.mxu0 %v20393_v30  ;;  %v20485_v30 = vld [vmem:[#allocation7 + $0x694] ss:$84 sps:$4 sm:$0xff]  }
  0xbc   :  { %983 = vmatprep.subr.bf16.mxu0 %v20398_v31  ;;  %v20486_v31 = vld [vmem:[#allocation7 + $0x1110] ss:$84 sps:$4 sm:$0xff]  }
  0xbd   :  { %20199 = vmatpush3.bf16.msra.mxu1 %v20378_v29  ;;  %v20477_v29 = vld [vmem:[#allocation7 + $0x738] ss:$84 sps:$4 sm:$0xff]  }
  0xbe   :  { %20200 = vmatprep.subr.bf16.mxu1 %v20379_v32 }
  0xbf   :  { %984 = vmatpush1.bf16.msra.mxu0 %v20396_v33  ;;  %v20483_v33 = vld [vmem:[#allocation7 + $0x690] ss:$84 sps:$4 sm:$0xff]  }
  0xc0   :  { %985 = vmatprep.subr.bf16.mxu0 %v20401_v34  ;;  %v20491_v34 = vld [vmem:[#allocation7 + $0x5ec] ss:$84 sps:$4 sm:$0xff]  }
  0xc1   :  { %20201 = vmatpush3.bf16.msra.mxu1 %v20379_v32  ;;  %v20494_v32 = vld [vmem:[#allocation7 + $0x106c] ss:$84 sps:$4 sm:$0xff]  }
  0xc2   :  { %20202 = vmatprep.subr.bf16.mxu1 %v20380_v35 }
  0xc3   :  { %986 = vmatpush1.bf16.msra.mxu0 %v20399_v36  ;;  %v20500_v36 = vld [vmem:[#allocation7 + $0xfc4] ss:$84 sps:$4 sm:$0xff]  }
  0xc4   :  { %987 = vmatprep.subr.bf16.mxu0 %v20404_v37  ;;  %v20489_v37 = vld [vmem:[#allocation7 + $0x5e8] ss:$84 sps:$4 sm:$0xff]  }
  0xc5   :  { %20203 = vmatpush3.bf16.msra.mxu1 %v20380_v35  ;;  %v20492_v35 = vld [vmem:[#allocation7 + $0x1068] ss:$84 sps:$4 sm:$0xff]  }
  0xc6   :  { %12064 = vmatprep.subr.bf16.mxu1 %v20410_v38  ;;  %v20497_v38 = vld [vmem:[#allocation7 + $0x544] ss:$84 sps:$4 sm:$0xff]  }
  0xc7   :  { %988 = vmatpush1.bf16.msra.mxu0 %v20402_v39  ;;  %v20498_v39 = vld [vmem:[#allocation7 + $0xfc0] ss:$84 sps:$4 sm:$0xff]  }
  0xc8   :  { %20205 = vmatmul.mubr.msk.bf16.vlgmr.msra.gmra.mxu1 %vm23625_vm7, %v23396_v49  ;;  %12011 = vmatprep.subr.bf16.mxu0 %v20407_v40  ;;  %v20506_v40 = vld [vmem:[#allocation7 + $0x241c] ss:$84 sps:$4 sm:$0xff]  }
  0xc9   :  { %12065 = vmatpush1.bf16.msra.mxu1 %v20408_v41  ;;  %v20495_v41 = vld [vmem:[#allocation7 + $0x540] ss:$84 sps:$4 sm:$0xff]  }
  0xca   :  { %17761 = vmatmul.mubr.msk.bf16.vlgmr.msra.gmra.mxu0 %vm23583_vm4, %v23396_v49  ;;  %12066 = vmatprep.subr.bf16.mxu1 %v20416_v42  ;;  %v20503_v42 = vld [vmem:[#allocation7 + $0x199c] ss:$84 sps:$4 sm:$0xff]  }
  0xcb   :  { %1015 = vmatprep.mubr.bf16.mxu0 %v25423_v0  ;;  %12012 = vmatpush1.bf16.msra.mxu0 %v20405_v44  ;;  %v23795_v44 = vshrl.u32 %v138_v18, 7 }
  0xcc   :  { %12013 = vmatprep.subr.bf16.mxu0 %v20413_v45 }
  0xcd   :  { %12067 = vmatpush1.bf16.msra.mxu1 %v20414_v46  ;;  %v23798_v45 = vsub.s32 2, %v23795_v44  ;;  %v23801_v46 = vsub.s32 3, %v23795_v44 }
  0xce   :  { %12068 = vmatprep.subr.bf16.mxu1 %v20422_v47  ;;  %v23803_v47 = vld [vmem:[#allocation5] sm:$0xff] }
  0xcf   :  { %12014 = vmatpush1.bf16.msra.mxu0 %v20411_v48  ;;  %25442 = vst [vmem:[#allocation23_spill] sm:$0xff] %v23798_v45  ;;  %25443 = vst [vmem:[#allocation24_spill] sm:$0xff] %v23801_v46  ;;  %v23806_v48 = vsub.s32 1, %v23795_v44  ;;  %v23815_v18 = vrot.slane %v23803_v47, %v23801_v46 }
  0xd0   :  { %12015 = vmatprep.subr.bf16.mxu0 %v20419_v50  ;;  %v23809_v50 = vsub.s32 0, %v23795_v44 }
  0xd1   :  { %12069 = vmatpush1.bf16.msra.mxu1 %v20420_v51  ;;  %v269_v51 = vrot.slane %v23803_v47, %v23798_v45 }
  0xd2   :  { %17763 = vmatmul.mubr.msk.bf16.gmra.mxu0 %vm23625_vm7, %v23396_v49  ;;  %12070 = vmatprep.subr.bf16.mxu1 %v20428_v52  ;;  %v20443_v49 = vld [vmem:[#allocation7 + $0xac] ss:$84 sps:$4 sm:$0xff]  }
  0xd3   :  { %12016 = vmatpush1.bf16.msra.mxu0 %v20417_v53 }
  0xd4   :  { %12017 = vmatprep.subr.bf16.mxu0 %v20425_v54  ;;  %v265_v54 = vrot.slane %v23803_v47, %v23806_v48 }
  0xd5   :  { %12071 = vmatpush1.bf16.msra.mxu1 %v20426_v55  ;;  %v261_v55 = vrot.slane %v23803_v47, %v23809_v50 }
  0xd6   :  { %12072 = vmatprep.subr.bf16.mxu1 %v20434_v56 }
  0xd7   :  { %12018 = vmatpush1.bf16.msra.mxu0 %v20423_v43 }
  0xd8   :  { %12019 = vmatprep.subr.bf16.mxu0 %v20431_v58 }
  0xd9   :  { %12073 = vmatpush1.bf16.msra.mxu1 %v20432_v59 }
  0xda   :  { %12074 = vmatprep.subr.bf16.mxu1 %v20440_v60 }
  0xdb   :  { %12020 = vmatpush1.bf16.msra.mxu0 %v20429_v61 }
  0xdc   :  { %12021 = vmatprep.subr.bf16.mxu0 %v20437_v62 }
  0xdd   :  { %12075 = vmatpush1.bf16.msra.mxu1 %v20438_v63 }
  0xde   :  { %12076 = vmatprep.subr.bf16.mxu1 %v20446_v1 }
  0xdf   :  { %12022 = vmatpush1.bf16.msra.mxu0 %v20435_v57 }
  0xe0   :  { %12023 = vmatprep.subr.bf16.mxu0 %v20443_v49 }
  0xe1   :  { %12077 = vmatpush1.bf16.msra.mxu1 %v20444_v2 }
  0xe2   :  { %12078 = vmatprep.subr.bf16.mxu1 %v20452_v3 }
  0xe3   :  { %12024 = vmatpush1.bf16.msra.mxu0 %v20441_v4 }
  0xe4   :  { %12025 = vmatprep.subr.bf16.mxu0 %v20449_v5 }
  0xe5   :  { %12079 = vmatpush1.bf16.msra.mxu1 %v20450_v6 }
  0xe6   :  { %12080 = vmatprep.subr.bf16.mxu1 %v20458_v7 }
  0xe7   :  { %12026 = vmatpush1.bf16.msra.mxu0 %v20447_v8 }
  0xe8   :  { %12027 = vmatprep.subr.bf16.mxu0 %v20455_v9 }
  0xe9   :  { %12081 = vmatpush2.bf16.msra.mxu1 %v20456_v10 }
  0xea   :  { %12082 = vmatprep.subr.bf16.mxu1 %v20464_v11 }
  0xeb   :  { %12028 = vmatpush2.bf16.msra.mxu0 %v20453_v12 }
  0xec   :  { %12029 = vmatprep.subr.bf16.mxu0 %v20461_v13 }
  0xed   :  { %12083 = vmatpush2.bf16.msra.mxu1 %v20462_v14  ;;  %v20501_v14 = vld [vmem:[#allocation7 + $0x1998] ss:$84 sps:$4 sm:$0xff]  }
  0xee   :  { %12084 = vmatprep.subr.bf16.mxu1 %v20470_v15  ;;  %v20504_v15 = vld [vmem:[#allocation7 + $0x2418] ss:$84 sps:$4 sm:$0xff]  }
  0xef   :  { %12030 = vmatpush2.bf16.msra.mxu0 %v20459_v16 }
  0xf0   :  { %12031 = vmatprep.subr.bf16.mxu0 %v20467_v17 }
  0xf1   :  { %12085 = vmatpush2.bf16.msra.mxu1 %v20468_v19  ;;  %v20509_v19 = vld [vmem:[#allocation7 + $0x18f4] ss:$84 sps:$4 sm:$0xff]  }
  0xf2   :  { %12086 = vmatprep.subr.bf16.mxu1 %v20476_v20  ;;  %v20512_v20 = vld [vmem:[#allocation7 + $0x2374] ss:$84 sps:$4 sm:$0xff]  }
  0xf3   :  { %12032 = vmatpush2.bf16.msra.mxu0 %v20465_v21 }
  0xf4   :  { %12033 = vmatprep.subr.bf16.mxu0 %v20473_v22 }
  0xf5   :  { %12087 = vmatpush2.bf16.msra.mxu1 %v20474_v23 }
  0xf6   :  { %12088 = vmatprep.subr.bf16.mxu1 %v20482_v24 }
  0xf7   :  { %12034 = vmatpush2.bf16.msra.mxu0 %v20471_v25 }
  0xf8   :  { %12035 = vmatprep.subr.bf16.mxu0 %v20479_v26 }
  0xf9   :  { %12089 = vmatpush2.bf16.msra.mxu1 %v20480_v27 }
  0xfa   :  { %12090 = vmatprep.subr.bf16.mxu1 %v20488_v28 }
  0xfb   :  { %12036 = vmatpush2.bf16.msra.mxu0 %v20477_v29 }
  0xfc   :  { %12037 = vmatprep.subr.bf16.mxu0 %v20485_v30 }
  0xfd   :  { %12091 = vmatpush2.bf16.msra.mxu1 %v20486_v31 }
  0xfe   :  { %12092 = vmatprep.subr.bf16.mxu1 %v20494_v32 }
  0xff   :  { %12038 = vmatpush2.bf16.msra.mxu0 %v20483_v33 }
 0x100   :  { %12039 = vmatprep.subr.bf16.mxu0 %v20491_v34 }
 0x101   :  { %12093 = vmatpush2.bf16.msra.mxu1 %v20492_v35 }
 0x102   :  { %12094 = vmatprep.subr.bf16.mxu1 %v20500_v36 }
 0x103   :  { %12040 = vmatpush2.bf16.msra.mxu0 %v20489_v37 }
 0x104   :  { %12041 = vmatprep.subr.bf16.mxu0 %v20497_v38 }
 0x105   :  { %12095 = vmatpush2.bf16.msra.mxu1 %v20498_v39 }
 0x106   :  { %12170 = vmatprep.subr.bf16.mxu1 %v20506_v40  ;;  %v20507_v40 = vld [vmem:[#allocation7 + $0x18f0] ss:$84 sps:$4 sm:$0xff]  }
 0x107   :  { %12042 = vmatpush2.bf16.msra.mxu0 %v20495_v41  ;;  %v20510_v41 = vld [vmem:[#allocation7 + $0x2370] ss:$84 sps:$4 sm:$0xff]  }
 0x108   :  { %12117 = vmatprep.subr.bf16.mxu0 %v20503_v42 }
 0x148   :  { %v795_v52 = vpop.f32.mrf.mxu0  ;;  %v848_v53 = vpop.f32.mrf.mxu1 }
 0x149   :  { %v849_v56 = vadd.f32 %v848_v53, %v269_v51  ;;  %v796_v57 = vadd.f32 %v795_v52, %v261_v55 }
 0x14a   :  { %v797_v43 = vpop.f32.mrf.mxu0  ;;  %v850_v58 = vpop.f32.mrf.mxu1 }
 0x14b   :  { %v851_v59 = vadd.f32 %v850_v58, %v23815_v18  ;;  %v798_v62 = vadd.f32 %v797_v43, %v265_v54  ;;  %v1077_v49 = vmax.f32 %v849_v56, 0.0  ;;  %v1075_v16 = vmax.f32 %v796_v57, 0.0  ;;  %v20518_v56 = vld [vmem:[#allocation7 + $0x22cc] ss:$84 sps:$4 sm:$0xff]   ;;  %v20513_v43 = vld [vmem:[#allocation7 + $0x1848] ss:$84 sps:$4 sm:$0xff]  }
 0x14c   :  { %v799_v60 = vpop.f32.mrf.mxu0  ;;  %v852_v61 = vpop.f32.mrf.mxu1  ;;  %v20516_v58 = vld [vmem:[#allocation7 + $0x22c8] ss:$84 sps:$4 sm:$0xff]  }
 0x14d   :  { %v800_v63 = vadd.f32 %v799_v60, %v261_v55  ;;  %v853_v1 = vadd.f32 %v852_v61, %v269_v51  ;;  %v1078_v4 = vmax.f32 %v851_v59, 0.0  ;;  %v1076_v11 = vmax.f32 %v798_v62, 0.0  ;;  %v20521_v61 = vld [vmem:[#allocation7 + $0x17a4] ss:$84 sps:$4 sm:$0xff]  }
 0x14e   :  { %v801_v2 = vpop.f32.mrf.mxu0  ;;  %v854_v3 = vpop.f32.mrf.mxu1  ;;  %v20524_v62 = vld [vmem:[#allocation7 + $0x2224] ss:$84 sps:$4 sm:$0xff]  }
 0x14f   :  { %v1088_v5 = vmax.f32 %v853_v1, 0.0  ;;  %v802_v6 = vadd.f32 %v801_v2, %v265_v54  ;;  %v855_v7 = vadd.f32 %v854_v3, %v23815_v18  ;;  %v1086_v8 = vmax.f32 %v800_v63, 0.0  ;;  %v20527_v2 = vld [vmem:[#allocation7 + $0x16fc] ss:$84 sps:$4 sm:$0xff]  }
 0x150   :  { %v805_v9 = vpop.f32.mrf.mxu0  ;;  %v858_v10 = vpop.f32.mrf.mxu1  ;;  %v20530_v3 = vld [vmem:[#allocation7 + $0x217c] ss:$84 sps:$4 sm:$0xff]  }
 0x151   :  { %v1087_v12 = vmax.f32 %v802_v6, 0.0  ;;  %v1089_v13 = vmax.f32 %v855_v7, 0.0  ;;  %v23823_v17 = vpack.c.bf16 %v1088_v5, %v1077_v49  ;;  %v806_v21 = vadd.f32 %v805_v9, %v261_v55  ;;  %v20522_v49 = vld [vmem:[#allocation7 + $0x2220] ss:$84 sps:$4 sm:$0xff]   ;;  %v20528_v5 = vld [vmem:[#allocation7 + $0x2178] ss:$84 sps:$4 sm:$0xff]  }
 0x152   :  { %v807_v22 = vpop.f32.mrf.mxu0  ;;  %v859_v23 = vadd.f32 %v858_v10, %v269_v51  ;;  %v860_v24 = vpop.f32.mrf.mxu1  ;;  %v23830_v29 = vpack.c.bf16 %v1086_v8, %v1075_v16  ;;  %v20533_v6 = vld [vmem:[#allocation7 + $0x1654] ss:$84 sps:$4 sm:$0xff]   ;;  %v23850_v8 = vsub.s32 5, %v23795_v44  ;;  %v23853_v9 = vsub.s32 7, %v23795_v44  ;;  %v20531_v10 = vld [vmem:[#allocation7 + $0x1650] ss:$84 sps:$4 sm:$0xff]  }
 0x153   :  { %v23825_v25 = vpack.c.bf16 %v1087_v12, %v1076_v11  ;;  %v23827_v26 = vpack.c.bf16 %v1089_v13, %v1078_v4  ;;  %v808_v27 = vadd.f32 %v807_v22, %v265_v54  ;;  %v861_v28 = vadd.f32 %v860_v24, %v23815_v18  ;;  %v20525_v4 = vld [vmem:[#allocation7 + $0x16f8] ss:$84 sps:$4 sm:$0xff]   ;;  %v20536_v7 = vld [vmem:[#allocation7 + $0x20d4] ss:$84 sps:$4 sm:$0xff]   ;;  %v20534_v11 = vld [vmem:[#allocation7 + $0x20d0] ss:$84 sps:$4 sm:$0xff]  }
 0x154   :  { %v809_v30 = vpop.f32.mrf.mxu0  ;;  %v862_v31 = vpop.f32.mrf.mxu1  ;;  %v1097_v34 = vmax.f32 %v806_v21, 0.0  ;;  %v1099_v36 = vmax.f32 %v859_v23, 0.0  ;;  %v23857_v12 = vrot.slane %v23803_v47, %v23850_v8  ;;  %v23861_v13 = vrot.slane %v23803_v47, %v23853_v9  ;;  %v20540_v21 = vld [vmem:[#allocation7 + $0x2028] ss:$84 sps:$4 sm:$0xff]   ;;  %v20545_v22 = vld [vmem:[#allocation7 + $0x1504] ss:$84 sps:$4 sm:$0xff]  }
 0x155   :  { %12043 = vmatprep.mubr.bf16.mxu0 %v23825_v25  ;;  %12096 = vmatprep.mubr.bf16.mxu1 %v23827_v26  ;;  %v810_v32 = vadd.f32 %v809_v30, %v261_v55  ;;  %v863_v33 = vadd.f32 %v862_v31, %v269_v51  ;;  %v1098_v35 = vmax.f32 %v808_v27, 0.0  ;;  %v1100_v37 = vmax.f32 %v861_v28, 0.0  ;;  %v20515_v51 = vld [vmem:[#allocation7 + $0x184c] ss:$84 sps:$4 sm:$0xff]   ;;  %v20548_v23 = vld [vmem:[#allocation7 + $0x1f84] ss:$84 sps:$4 sm:$0xff]  }
 0x156   :  { %12044 = vmatmul.mubr.bf16.vlgmr.msra.gmra.mxu0 %v23830_v29  ;;  %12097 = vmatmul.mubr.bf16.vlgmr.msra.gmra.mxu1 %v23823_v17  ;;  %v811_v38 = vpop.f32.mrf.mxu0  ;;  %v864_v39 = vpop.f32.mrf.mxu1 }
 0x157   :  { %12118 = vmatpush1.bf16.msra.mxu0 %v20501_v14  ;;  %12171 = vmatpush1.bf16.msra.mxu1 %v20504_v15  ;;  %v1108_v42 = vmax.f32 %v810_v32, 0.0  ;;  %v812_v52 = vadd.f32 %v811_v38, %v265_v54  ;;  %v1110_v53 = vmax.f32 %v863_v33, 0.0  ;;  %v865_v55 = vadd.f32 %v864_v39, %v23815_v18  ;;  %v20519_v18 = vld [vmem:[#allocation7 + $0x17a0] ss:$84 sps:$4 sm:$0xff]  }
 0x158   :  { %12119 = vmatprep.subr.bf16.mxu0 %v20509_v19  ;;  %12172 = vmatprep.subr.bf16.mxu1 %v20512_v20  ;;  %v20539_v14 = vld [vmem:[#allocation7 + $0x15ac] ss:$84 sps:$4 sm:$0xff]   ;;  %v20537_v20 = vld [vmem:[#allocation7 + $0x15a8] ss:$84 sps:$4 sm:$0xff]  }
 0x159   :  { %v1109_v59 = vmax.f32 %v812_v52, 0.0  ;;  %v1111_v60 = vmax.f32 %v865_v55, 0.0  ;;  %v23837_v63 = vpack.c.bf16 %v1108_v42, %v1097_v34  ;;  %v23839_v1 = vpack.c.bf16 %v1110_v53, %v1099_v36  ;;  %v20542_v15 = vld [vmem:[#allocation7 + $0x202c] ss:$84 sps:$4 sm:$0xff]   ;;  %v20554_v42 = vld [vmem:[#allocation7 + $0x295c] ss:$84 sps:$4 sm:$0xff]  }
 0x15a   :  { %v20543_v33 = vld [vmem:[#allocation7 + $0x1500] ss:$84 sps:$4 sm:$0xff]   ;;  %v20549_v52 = vld [vmem:[#allocation7 + $0x1ed8] ss:$84 sps:$4 sm:$0xff]  }
 0x15b   :  { %12120 = vmatpush1.bf16.msra.mxu0 %v20507_v40  ;;  %12173 = vmatpush1.bf16.msra.mxu1 %v20510_v41  ;;  %v23841_v54 = vpack.c.bf16 %v1109_v59, %v1098_v35  ;;  %v23843_v57 = vpack.c.bf16 %v1111_v60, %v1100_v37  ;;  %v20546_v34 = vld [vmem:[#allocation7 + $0x1f80] ss:$84 sps:$4 sm:$0xff]   ;;  %v20551_v41 = vld [vmem:[#allocation7 + $0x1edc] ss:$84 sps:$4 sm:$0xff]   ;;  %v20552_v53 = vld [vmem:[#allocation7 + $0x2958] ss:$84 sps:$4 sm:$0xff]  }
 0x15c   :  { %12121 = vmatprep.subr.bf16.mxu0 %v20515_v51  ;;  %12174 = vmatprep.subr.bf16.mxu1 %v20518_v56  ;;  %v20560_v59 = vld [vmem:[#allocation7 + $0x28b4] ss:$84 sps:$4 sm:$0xff]   ;;  %v20555_v60 = vld [vmem:[#allocation7 + $0x1e30] ss:$84 sps:$4 sm:$0xff]  }
 0x15d   :  { %12053 = vmatprep.mubr.bf16.mxu0 %v23841_v54  ;;  %12106 = vmatprep.mubr.bf16.mxu1 %v23843_v57 }
 0x15e   :  { %12054 = vmatmul.mubr.bf16.gmra.mxu0 %v23837_v63  ;;  %12107 = vmatmul.mubr.bf16.gmra.mxu1 %v23839_v1 }
 0x15f   :  { %12122 = vmatpush1.bf16.msra.mxu0 %v20513_v43  ;;  %12175 = vmatpush1.bf16.msra.mxu1 %v20516_v58  ;;  %v20557_v58 = vld [vmem:[#allocation7 + $0x1e34] ss:$84 sps:$4 sm:$0xff]  }
 0x160   :  { %12123 = vmatprep.subr.bf16.mxu0 %v20521_v61  ;;  %12176 = vmatprep.subr.bf16.mxu1 %v20524_v62  ;;  %v20558_v61 = vld [vmem:[#allocation7 + $0x28b0] ss:$84 sps:$4 sm:$0xff]   ;;  %v20563_v62 = vld [vmem:[#allocation7 + $0x1d8c] ss:$84 sps:$4 sm:$0xff]  }
 0x163   :  { %12124 = vmatpush1.bf16.msra.mxu0 %v20519_v18  ;;  %12177 = vmatpush1.bf16.msra.mxu1 %v20522_v49  ;;  %v20566_v18 = vld [vmem:[#allocation7 + $0x280c] ss:$84 sps:$4 sm:$0xff]   ;;  %v20561_v49 = vld [vmem:[#allocation7 + $0x1d88] ss:$84 sps:$4 sm:$0xff]  }
 0x164   :  { %12125 = vmatprep.subr.bf16.mxu0 %v20527_v2  ;;  %12178 = vmatprep.subr.bf16.mxu1 %v20530_v3  ;;  %v20564_v2 = vld [vmem:[#allocation7 + $0x2808] ss:$84 sps:$4 sm:$0xff]  }
 0x167   :  { %12126 = vmatpush1.bf16.msra.mxu0 %v20525_v4  ;;  %12179 = vmatpush1.bf16.msra.mxu1 %v20528_v5  ;;  %v20569_v4 = vld [vmem:[#allocation7 + $0x1ce4] ss:$84 sps:$4 sm:$0xff]  }
 0x168   :  { %12127 = vmatprep.subr.bf16.mxu0 %v20533_v6  ;;  %12180 = vmatprep.subr.bf16.mxu1 %v20536_v7  ;;  %v23863_v16 = vpop.f32.mrf.mxu0  ;;  %v23865_v19 = vpop.f32.mrf.mxu1  ;;  %v20572_v5 = vld [vmem:[#allocation7 + $0x2764] ss:$84 sps:$4 sm:$0xff]   ;;  %v20567_v7 = vld [vmem:[#allocation7 + $0x1ce0] ss:$84 sps:$4 sm:$0xff]  }
 0x16a   :  { %v903_v24 = vpop.f32.mrf.mxu0  ;;  %v956_v27 = vpop.f32.mrf.mxu1 }
 0x16b   :  { %12128 = vmatpush1.bf16.msra.mxu0 %v20531_v10  ;;  %12181 = vmatpush1.bf16.msra.mxu1 %v20534_v11  ;;  %v904_v28 = vadd.f32 %v903_v24, %v23857_v12  ;;  %v957_v30 = vadd.f32 %v956_v27, %v23861_v13  ;;  %v20570_v10 = vld [vmem:[#allocation7 + $0x2760] ss:$84 sps:$4 sm:$0xff]   ;;  %v23891_v27 = vsub.s32 4, %v23795_v44 }
 0x16c   :  { %12129 = vmatprep.subr.bf16.mxu0 %v20539_v14  ;;  %12182 = vmatprep.subr.bf16.mxu1 %v20542_v15  ;;  %v23869_v31 = vpop.f32.mrf.mxu0  ;;  %v23871_v32 = vpop.f32.mrf.mxu1  ;;  %v20575_v14 = vld [vmem:[#allocation7 + $0x1c3c] ss:$84 sps:$4 sm:$0xff]  }
 0x16d   :  { %v1080_v37 = vmax.f32 %v904_v28, 0.0  ;;  %v1082_v39 = vmax.f32 %v957_v30, 0.0  ;;  %v20578_v15 = vld [vmem:[#allocation7 + $0x26bc] ss:$84 sps:$4 sm:$0xff]   ;;  %25444 = vst [vmem:[#allocation25_spill] sm:$0xff] %v23891_v27 }
 0x16e   :  { %v907_v35 = vpop.f32.mrf.mxu0  ;;  %v960_v36 = vpop.f32.mrf.mxu1  ;;  %v20581_v30 = vld [vmem:[#allocation7 + $0x1b94] ss:$84 sps:$4 sm:$0xff]  }
 0x16f   :  { %12130 = vmatpush1.bf16.msra.mxu0 %v20537_v20  ;;  %12183 = vmatpush1.bf16.msra.mxu1 %v20540_v21  ;;  %v908_v38 = vadd.f32 %v907_v35, %v23857_v12  ;;  %v961_v40 = vadd.f32 %v960_v36, %v23861_v13  ;;  %v23886_v20 = vsub.s32 6, %v23795_v44  ;;  %v20579_v35 = vld [vmem:[#allocation7 + $0x1b90] ss:$84 sps:$4 sm:$0xff]  }
 0x170   :  { %12131 = vmatprep.subr.bf16.mxu0 %v20545_v22  ;;  %12184 = vmatprep.subr.bf16.mxu1 %v20548_v23  ;;  %v23881_v3 = vpop.f32.mrf.mxu1  ;;  %v23883_v6 = vpop.f32.mrf.mxu0  ;;  %v20573_v22 = vld [vmem:[#allocation7 + $0x1c38] ss:$84 sps:$4 sm:$0xff]   ;;  %v20582_v36 = vld [vmem:[#allocation7 + $0x2610] ss:$84 sps:$4 sm:$0xff]  }
 0x171   :  { %v1091_v55 = vmax.f32 %v908_v38, 0.0  ;;  %v1093_v51 = vmax.f32 %v961_v40, 0.0  ;;  %v20576_v23 = vld [vmem:[#allocation7 + $0x26b8] ss:$84 sps:$4 sm:$0xff]   ;;  %v285_v28 = vrot.slane %v23803_v47, %v23886_v20  ;;  %v277_v38 = vrot.slane %v23803_v47, %v23891_v27 }
 0x172   :  { %v966_v11 = vpop.f32.mrf.mxu1  ;;  %v913_v21 = vpop.f32.mrf.mxu0  ;;  %v20587_v40 = vld [vmem:[#allocation7 + $0x1aec] ss:$84 sps:$4 sm:$0xff]  }
 0x173   :  { %12132 = vmatpush1.bf16.msra.mxu0 %v20543_v33  ;;  %12185 = vmatpush1.bf16.msra.mxu1 %v20546_v34  ;;  %v23875_v56 = vpack.c.bf16 %v1091_v55, %v1080_v37  ;;  %v23877_v43 = vpack.c.bf16 %v1093_v51, %v1082_v39  ;;  %v20584_v33 = vld [vmem:[#allocation7 + $0x2614] ss:$84 sps:$4 sm:$0xff]   ;;  %v955_v39 = vadd.f32 %v23865_v19, %v285_v28 }
 0x174   :  { %12133 = vmatprep.subr.bf16.mxu0 %v20551_v41  ;;  %12186 = vmatprep.subr.bf16.mxu1 %v20554_v42  ;;  %v23888_v24 = vpop.f32.mrf.mxu1  ;;  %v915_v34 = vpop.f32.mrf.mxu0  ;;  %v959_v44 = vadd.f32 %v23871_v32, %v285_v28  ;;  %v20590_v41 = vld [vmem:[#allocation7 + $0x256c] ss:$84 sps:$4 sm:$0xff]   ;;  %v906_v47 = vadd.f32 %v23869_v31, %v277_v38  ;;  %v20593_v32 = vld [vmem:[#allocation7 + $0x1a44] ss:$84 sps:$4 sm:$0xff]  }
 0x175   :  { %12149 = vmatprep.mubr.bf16.mxu0 %v23875_v56  ;;  %12202 = vmatprep.mubr.bf16.mxu1 %v23877_v43  ;;  %v1081_v19 = vmax.f32 %v955_v39, 0.0  ;;  %v916_v39 = vadd.f32 %v915_v34, %v277_v38  ;;  %v20606_v34 = vld [vmem:[#allocation7 + $0x35d0] ss:$84 sps:$4 sm:$0xff]  }
 0x176   :  { %v970_v37 = vpop.f32.mrf.mxu1  ;;  %v917_v42 = vpop.f32.mrf.mxu0 }
 0x177   :  { %12134 = vmatpush2.bf16.msra.mxu0 %v20549_v52  ;;  %12187 = vmatpush2.bf16.msra.mxu1 %v20552_v53  ;;  %v20585_v52 = vld [vmem:[#allocation7 + $0x1ae8] ss:$84 sps:$4 sm:$0xff]  }
 0x178   :  { %12135 = vmatprep.subr.bf16.mxu0 %v20557_v58  ;;  %12188 = vmatprep.subr.bf16.mxu1 %v20560_v59  ;;  %v20588_v53 = vld [vmem:[#allocation7 + $0x2568] ss:$84 sps:$4 sm:$0xff]   ;;  %v902_v58 = vadd.f32 %v23863_v16, %v277_v38  ;;  %v1092_v59 = vmax.f32 %v959_v44, 0.0  ;;  %v969_v44 = vadd.f32 %v23888_v24, %v285_v28 }
 0x179   :  { %v23909_v16 = vld [vmem:[#allocation5 + $0x8] sm:$0x7] }
 0x17b   :  { %12136 = vmatpush2.bf16.msra.mxu0 %v20555_v60  ;;  %12189 = vmatpush2.bf16.msra.mxu1 %v20558_v61  ;;  %v20596_v60 = vld [vmem:[#allocation7 + $0x24c4] ss:$84 sps:$4 sm:$0xff]  }
 0x17c   :  { %12137 = vmatprep.subr.bf16.mxu0 %v20563_v62  ;;  %12190 = vmatprep.subr.bf16.mxu1 %v20566_v18  ;;  %v914_v62 = vadd.f32 %v913_v21, %v23857_v12  ;;  %v967_v18 = vadd.f32 %v966_v11, %v23861_v13  ;;  %v20599_v11 = vld [vmem:[#allocation7 + $0x2e9c] ss:$84 sps:$4 sm:$0xff]  }
 0x17d   :  { %v20602_v21 = vld [vmem:[#allocation7 + $0x367c] ss:$84 sps:$4 sm:$0xff]  }
 0x17f   :  { %12138 = vmatpush2.bf16.msra.mxu0 %v20561_v49  ;;  %12191 = vmatpush2.bf16.msra.mxu1 %v20564_v2  ;;  %v20591_v49 = vld [vmem:[#allocation7 + $0x1a40] ss:$84 sps:$4 sm:$0xff]  }
 0x180   :  { %12139 = vmatprep.subr.bf16.mxu0 %v20569_v4  ;;  %12192 = vmatprep.subr.bf16.mxu1 %v20572_v5  ;;  %v20594_v2 = vld [vmem:[#allocation7 + $0x24c0] ss:$84 sps:$4 sm:$0xff]   ;;  %v918_v4 = vadd.f32 %v917_v42, %v23857_v12  ;;  %v971_v5 = vadd.f32 %v970_v37, %v23861_v13  ;;  %v23917_v12 = vrot.slane %v23909_v16, %v23806_v48  ;;  %v1102_v13 = vmax.f32 %v914_v62, 0.0 }
 0x181   :  { %v965_v37 = vadd.f32 %v23881_v3, %v285_v28  ;;  %v20603_v3 = vld [vmem:[#allocation7 + $0x2df0] ss:$84 sps:$4 sm:$0xff]   ;;  %v20614_v62 = vld [vmem:[#allocation7 + $0x352c] ss:$84 sps:$4 sm:$0xff]  }
 0x183   :  { %12140 = vmatpush2.bf16.msra.mxu0 %v20567_v7  ;;  %12193 = vmatpush2.bf16.msra.mxu1 %v20570_v10  ;;  %v1079_v10 = vmax.f32 %v902_v58, 0.0  ;;  %v301_v58 = vrot.slane %v23909_v16, %v23798_v45 }
 0x184   :  { %12141 = vmatprep.subr.bf16.mxu0 %v20575_v14  ;;  %12194 = vmatprep.subr.bf16.mxu1 %v20578_v15  ;;  %v1090_v14 = vmax.f32 %v906_v47, 0.0  ;;  %v23913_v15 = vpack.c.bf16 %v1092_v59, %v1081_v19  ;;  %v1103_v19 = vmax.f32 %v965_v37, 0.0  ;;  %v1112_v59 = vmax.f32 %v916_v39, 0.0  ;;  %v20621_v37 = vld [vmem:[#allocation7 + $0x2bf8] ss:$84 sps:$4 sm:$0xff]  }
 0x185   :  { %v20624_v39 = vld [vmem:[#allocation7 + $0x4a0] ss:$84 sps:$4 sm:$0xff]  }
 0x187   :  { %12142 = vmatpush2.bf16.msra.mxu0 %v20573_v22  ;;  %12195 = vmatpush2.bf16.msra.mxu1 %v20576_v23  ;;  %v1104_v22 = vmax.f32 %v967_v18, 0.0  ;;  %v1113_v23 = vmax.f32 %v918_v4, 0.0 }
 0x188   :  { %12143 = vmatprep.subr.bf16.mxu0 %v20581_v30  ;;  %12196 = vmatprep.subr.bf16.mxu1 %v20584_v33  ;;  %v23901_v51 = vpop.f32.mrf.mxu1  ;;  %v1115_v30 = vmax.f32 %v971_v5, 0.0  ;;  %v20597_v33 = vld [vmem:[#allocation7 + $0x2e98] ss:$84 sps:$4 sm:$0xff]  }
 0x189   :  { %v23926_v47 = vpack.c.bf16 %v1113_v23, %v1102_v13  ;;  %v20620_v13 = vld [vmem:[#allocation7 + $0x3484] ss:$84 sps:$4 sm:$0xff]  }
 0x18a   :  { %v23899_v55 = vpop.f32.mrf.mxu0  ;;  %v1060_v7 = vpop.f32.mrf.mxu1 }
 0x18b   :  { %12144 = vmatpush2.bf16.msra.mxu0 %v20579_v35  ;;  %12197 = vmatpush2.bf16.msra.mxu1 %v20582_v36  ;;  %v20600_v35 = vld [vmem:[#allocation7 + $0x3678] ss:$84 sps:$4 sm:$0xff]   ;;  %v912_v36 = vadd.f32 %v23883_v6, %v277_v38  ;;  %v23928_v6 = vpack.c.bf16 %v1115_v30, %v1104_v22  ;;  %v20615_v22 = vld [vmem:[#allocation7 + $0x2ca0] ss:$84 sps:$4 sm:$0xff]  }
 0x18c   :  { %12145 = vmatprep.subr.bf16.mxu0 %v20587_v40  ;;  %12198 = vmatprep.subr.bf16.mxu1 %v20590_v41  ;;  %v1009_v61 = vpop.f32.mrf.mxu0  ;;  %v20605_v40 = vld [vmem:[#allocation7 + $0x2df4] ss:$84 sps:$4 sm:$0xff]  }
 0x18d   :  { %v20608_v41 = vld [vmem:[#allocation7 + $0x35d4] ss:$84 sps:$4 sm:$0xff]   ;;  %v1010_v24 = vadd.f32 %v1009_v61, %v23917_v12  ;;  %v1101_v38 = vmax.f32 %v912_v36, 0.0  ;;  %v20626_v36 = vld [vmem:[#allocation7 + $0x4a4] ss:$84 sps:$4 sm:$0xff]  }
 0x18e   :  { %v23911_v31 = vpop.f32.mrf.mxu0  ;;  %v20609_v61 = vld [vmem:[#allocation7 + $0x2d48] ss:$84 sps:$4 sm:$0xff]  }
 0x18f   :  { %12146 = vmatpush2.bf16.msra.mxu0 %v20585_v52  ;;  %12199 = vmatpush2.bf16.msra.mxu1 %v20588_v53  ;;  %v20207_v52 = vpop.f32.mrf.mxu1  ;;  %v23922_v53 = vpack.c.bf16 %v1090_v14, %v1079_v10  ;;  %v23936_v5 = vpack.c.bf16 %v1112_v59, %v1101_v38  ;;  %v1061_v14 = vadd.f32 %v1060_v7, %v301_v58  ;;  %v20623_v7 = vld [vmem:[#allocation7 + $0x2bfc] ss:$84 sps:$4 sm:$0xff]   ;;  %v20630_v38 = vld [vmem:[#allocation7 + $0x3f8] ss:$84 sps:$4 sm:$0xff]  }
 0x190   :  { %12147 = vmatprep.subr.bf16.mxu0 %v20593_v32  ;;  %12200 = vmatprep.subr.bf16.mxu1 %v20596_v60  ;;  %v1013_v42 = vpop.f32.mrf.mxu0  ;;  %v1114_v32 = vmax.f32 %v969_v44, 0.0  ;;  %v20611_v60 = vld [vmem:[#allocation7 + $0x2d4c] ss:$84 sps:$4 sm:$0xff]   ;;  %v1069_v44 = vadd.f32 %v23901_v51, %v301_v58 }
 0x191   :  { %v1014_v28 = vadd.f32 %v1013_v42, %v23917_v12  ;;  %v1063_v18 = vpop.f32.mrf.mxu1  ;;  %v1085_v30 = vmax.f32 %v1061_v14, 0.0  ;;  %v20629_v42 = vld [vmem:[#allocation7 + $0x2b54] ss:$84 sps:$4 sm:$0xff]   ;;  %v20635_v51 = vld [vmem:[#allocation7 + $0x2aac] ss:$84 sps:$4 sm:$0xff]  }
 0x192   :  { %v23938_v10 = vpack.c.bf16 %v1114_v32, %v1103_v19  ;;  %v20636_v19 = vld [vmem:[#allocation7 + $0x350] ss:$84 sps:$4 sm:$0xff]   ;;  %v20653_v14 = vld [vmem:[#allocation7 + $0x3334] ss:$84 sps:$4 sm:$0xff]  }
 0x193   :  { %12148 = vmatpush2.bf16.msra.mxu0 %v20591_v49  ;;  %12201 = vmatpush2.bf16.msra.mxu1 %v20594_v2  ;;  %v20612_v49 = vld [vmem:[#allocation7 + $0x3528] ss:$84 sps:$4 sm:$0xff]   ;;  %v1084_v2 = vmax.f32 %v1010_v24, 0.0  ;;  %v1095_v4 = vmax.f32 %v1014_v28, 0.0  ;;  %v1107_v24 = vmax.f32 %v1069_v44, 0.0  ;;  %v1017_v44 = vpop.f32.mrf.mxu0 }
 0x194   :  { %12223 = vmatprep.subr.bf16.mxu0 %v20599_v11  ;;  %12284 = vmatprep.subr.bf16.mxu1 %v20602_v21  ;;  %v1064_v11 = vadd.f32 %v1063_v18, %v301_v58  ;;  %v20617_v21 = vld [vmem:[#allocation7 + $0x2ca4] ss:$84 sps:$4 sm:$0xff]   ;;  %v20642_v18 = vld [vmem:[#allocation7 + $0x2a8] ss:$84 sps:$4 sm:$0xff]  }
 0x195   :  { %v23940_v23 = vpack.c.bf16 %v1095_v4, %v1084_v2  ;;  %v20641_v32 = vld [vmem:[#allocation7 + $0x2a04] ss:$84 sps:$4 sm:$0xff]   ;;  %v20648_v4 = vld [vmem:[#allocation7 + $0x200] ss:$84 sps:$4 sm:$0xff]  }
 0x196   :  { %12150 = vmatmul.mubr.bf16.vlgmr.msra.gmra.mxu0 %v23922_v53  ;;  %12203 = vmatmul.mubr.bf16.vlgmr.msra.gmra.mxu1 %v23913_v15  ;;  %v20645_v2 = vld [vmem:[#allocation7 + $0x33d8] ss:$84 sps:$4 sm:$0xff]  }
 0x197   :  { %12224 = vmatpush1.bf16.msra.mxu0 %v20597_v33  ;;  %12285 = vmatpush1.bf16.msra.mxu1 %v20600_v35  ;;  %v1096_v33 = vmax.f32 %v1064_v11, 0.0  ;;  %v20618_v35 = vld [vmem:[#allocation7 + $0x3480] ss:$84 sps:$4 sm:$0xff]   ;;  %v20656_v11 = vld [vmem:[#allocation7 + $0x15c] ss:$84 sps:$4 sm:$0xff]  }
 0x198   :  { %12225 = vmatprep.subr.bf16.mxu0 %v20605_v40  ;;  %12286 = vmatprep.subr.bf16.mxu1 %v20608_v41  ;;  %v1072_v40 = vadd.f32 %v20207_v52, %v301_v58  ;;  %v20638_v52 = vld [vmem:[#allocation7 + $0x354] ss:$84 sps:$4 sm:$0xff]  }
 0x199   :  { %12159 = vmatprep.mubr.bf16.mxu0 %v23926_v47  ;;  %12212 = vmatprep.mubr.bf16.mxu1 %v23928_v6  ;;  %v23947_v41 = vpack.c.bf16 %v1096_v33, %v1085_v30  ;;  %v20633_v58 = vld [vmem:[#allocation7 + $0x2aa8] ss:$84 sps:$4 sm:$0xff]  }
 0x19a   :  { %v1118_v28 = vmax.f32 %v1072_v40, 0.0  ;;  %v20662_v30 = vld [vmem:[#allocation7 + $0xb4] ss:$84 sps:$4 sm:$0xff]   ;;  %v20671_v40 = vld [vmem:[#allocation7 + $0x313c] ss:$84 sps:$4 sm:$0xff]  }
 0x19b   :  { %12226 = vmatpush1.bf16.msra.mxu0 %v20603_v3  ;;  %12287 = vmatpush1.bf16.msra.mxu1 %v20606_v34  ;;  %v20632_v3 = vld [vmem:[#allocation7 + $0x3fc] ss:$84 sps:$4 sm:$0xff]  }
 0x19c   :  { %12227 = vmatprep.subr.bf16.mxu0 %v20611_v60  ;;  %12288 = vmatprep.subr.bf16.mxu1 %v20614_v62  ;;  %v20627_v34 = vld [vmem:[#allocation7 + $0x2b50] ss:$84 sps:$4 sm:$0xff]   ;;  %v23952_v59 = vpack.c.bf16 %v1118_v28, %v1107_v24  ;;  %v20644_v60 = vld [vmem:[#allocation7 + $0x2ac] ss:$84 sps:$4 sm:$0xff]   ;;  %v20657_v33 = vld [vmem:[#allocation7 + $0x3288] ss:$84 sps:$4 sm:$0xff]   ;;  %v1019_v24 = vpop.f32.mrf.mxu0 }
 0x19d   :  { %v20639_v62 = vld [vmem:[#allocation7 + $0x2a00] ss:$84 sps:$4 sm:$0xff]  }
 0x19e   :  { %12160 = vmatmul.mubr.bf16.gmra.mxu0 %v23936_v5  ;;  %12213 = vmatmul.mubr.bf16.gmra.mxu1 %v23938_v10  ;;  %v20677_v28 = vld [vmem:[#allocation7 + $0x3094] ss:$84 sps:$4 sm:$0xff]  }
 0x19f   :  { %12228 = vmatpush1.bf16.msra.mxu0 %v20609_v61  ;;  %12289 = vmatpush1.bf16.msra.mxu1 %v20612_v49  ;;  %v20647_v61 = vld [vmem:[#allocation7 + $0x33dc] ss:$84 sps:$4 sm:$0xff]   ;;  %v20650_v49 = vld [vmem:[#allocation7 + $0x204] ss:$84 sps:$4 sm:$0xff]  }
 0x1a0   :  { %12229 = vmatprep.subr.bf16.mxu0 %v20617_v21  ;;  %12290 = vmatprep.subr.bf16.mxu1 %v20620_v13  ;;  %v20651_v21 = vld [vmem:[#allocation7 + $0x3330] ss:$84 sps:$4 sm:$0xff]   ;;  %v20654_v13 = vld [vmem:[#allocation7 + $0x158] ss:$84 sps:$4 sm:$0xff]  }
 0x1a1   :  { %12308 = vmatprep.mubr.bf16.mxu1 %v25423_v0  ;;  %12255 = vmatprep.mubr.bf16.mxu0 %v23940_v23 }
 0x1a3   :  { %12230 = vmatpush1.bf16.msra.mxu0 %v20615_v22  ;;  %12291 = vmatpush1.bf16.msra.mxu1 %v20618_v35  ;;  %v20659_v22 = vld [vmem:[#allocation7 + $0x328c] ss:$84 sps:$4 sm:$0xff]   ;;  %v20660_v35 = vld [vmem:[#allocation7 + $0xb0] ss:$84 sps:$4 sm:$0xff]  }
 0x1a4   :  { %12231 = vmatprep.subr.bf16.mxu0 %v20623_v7  ;;  %12329 = vmatprep.subr.bf16.mxu1 %v20626_v36  ;;  %v20665_v7 = vld [vmem:[#allocation7 + $0x31e4] ss:$84 sps:$4 sm:$0xff]   ;;  %v20668_v36 = vld [vmem:[#allocation7 + $0xc] ss:$84 sps:$4 sm:$0xff]  }
 0x1a6   :  { %19532 = vmatmul.mubr.msk.bf16.vlgmr.msra.gmra.mxu1 %vm12004_vm8, %v23947_v41 }
 0x1a7   :  { %12232 = vmatpush1.bf16.msra.mxu0 %v20621_v37  ;;  %12330 = vmatpush1.bf16.msra.mxu1 %v20624_v39  ;;  %v20663_v37 = vld [vmem:[#allocation7 + $0x31e0] ss:$84 sps:$4 sm:$0xff]   ;;  %v20666_v39 = vld [vmem:[#allocation7 + $0x8] ss:$84 sps:$4 sm:$0xff]  }
 0x1a8   :  { %12233 = vmatprep.subr.bf16.mxu0 %v20629_v42  ;;  %12331 = vmatprep.subr.bf16.mxu1 %v20632_v3  ;;  %v20674_v42 = vld [vmem:[#allocation7 + $0x9e4] ss:$84 sps:$4 sm:$0xff]  }
 0x1a9   :  { %12318 = vmatprep.mubr.bf16.mxu1 %v25423_v0  ;;  %v20669_v3 = vld [vmem:[#allocation7 + $0x3138] ss:$84 sps:$4 sm:$0xff]  }
 0x1ab   :  { %12234 = vmatpush1.bf16.msra.mxu0 %v20627_v34  ;;  %12332 = vmatpush1.bf16.msra.mxu1 %v20630_v38  ;;  %v20672_v34 = vld [vmem:[#allocation7 + $0x9e0] ss:$84 sps:$4 sm:$0xff]   ;;  %v20680_v38 = vld [vmem:[#allocation7 + $0x93c] ss:$84 sps:$4 sm:$0xff]  }
 0x1ac   :  { %12235 = vmatprep.subr.bf16.mxu0 %v20635_v51  ;;  %12333 = vmatprep.subr.bf16.mxu1 %v20638_v52  ;;  %v20675_v51 = vld [vmem:[#allocation7 + $0x3090] ss:$84 sps:$4 sm:$0xff]   ;;  %v20678_v52 = vld [vmem:[#allocation7 + $0x938] ss:$84 sps:$4 sm:$0xff]  }
 0x1ae   :  { %19533 = vmatmul.mubr.msk.bf16.gmra.mxu1 %vm12004_vm8, %v23952_v59 }
 0x1af   :  { %12236 = vmatpush1.bf16.msra.mxu0 %v20633_v58  ;;  %12334 = vmatpush1.bf16.msra.mxu1 %v20636_v19  ;;  %v1021_v58 = vpop.f32.mrf.mxu0  ;;  %v293_v19 = vrot.slane %v23909_v16, %v23809_v50  ;;  %v20687_v16 = vld [vmem:[#allocation7 + $0x2f40] ss:$84 sps:$4 sm:$0xff]  }
 0x1b0   :  { %12361 = vmatprep.mubr.bf16.mxu1 %v23825_v25  ;;  %12237 = vmatprep.subr.bf16.mxu0 %v20641_v32  ;;  %v20683_v32 = vld [vmem:[#allocation7 + $0x2fec] ss:$84 sps:$4 sm:$0xff]  }
 0x1b1   :  { %12335 = vmatprep.subr.bf16.mxu1 %v20644_v60  ;;  %v20686_v60 = vld [vmem:[#allocation7 + $0x894] ss:$84 sps:$4 sm:$0xff]  }
 0x1b3   :  { %12238 = vmatpush1.bf16.msra.mxu0 %v20639_v62  ;;  %12336 = vmatpush1.bf16.msra.mxu1 %v20642_v18  ;;  %v20681_v62 = vld [vmem:[#allocation7 + $0x2fe8] ss:$84 sps:$4 sm:$0xff]   ;;  %v20684_v18 = vld [vmem:[#allocation7 + $0x890] ss:$84 sps:$4 sm:$0xff]  }
 0x1b4   :  { %12239 = vmatprep.subr.bf16.mxu0 %v20647_v61  ;;  %12337 = vmatprep.subr.bf16.mxu1 %v20650_v49  ;;  %v1023_v61 = vpop.f32.mrf.mxu0  ;;  %v1008_v49 = vadd.f32 %v23899_v55, %v293_v19  ;;  %v20698_v55 = vld [vmem:[#allocation7 + $0xf24] ss:$84 sps:$4 sm:$0xff]  }
 0x1b7   :  { %12240 = vmatpush2.bf16.msra.mxu0 %v20645_v2  ;;  %12338 = vmatpush1.bf16.msra.mxu1 %v20648_v4  ;;  %v1012_v2 = vadd.f32 %v23911_v31, %v293_v19  ;;  %v20689_v4 = vld [vmem:[#allocation7 + $0x2f44] ss:$84 sps:$4 sm:$0xff]  }
 0x1b8   :  { %12241 = vmatprep.subr.bf16.mxu0 %v20653_v14  ;;  %12339 = vmatprep.subr.bf16.mxu1 %v20656_v11  ;;  %v20692_v14 = vld [vmem:[#allocation7 + $0x7ec] ss:$84 sps:$4 sm:$0xff]   ;;  %v1020_v11 = vadd.f32 %v1019_v24, %v23917_v12 }
 0x1b9   :  { %v20702_v24 = vld [vmem:[#allocation7 + $0xe78] ss:$84 sps:$4 sm:$0xff]  }
 0x1bb   :  { %12242 = vmatpush2.bf16.msra.mxu0 %v20651_v21  ;;  %12340 = vmatpush1.bf16.msra.mxu1 %v20654_v13  ;;  %v20690_v21 = vld [vmem:[#allocation7 + $0x7e8] ss:$84 sps:$4 sm:$0xff]   ;;  %v1024_v13 = vadd.f32 %v1023_v61, %v23917_v12  ;;  %v20719_v61 = vld [vmem:[#allocation7 + $0xc84] ss:$84 sps:$4 sm:$0xff]  }
 0x1bc   :  { %12243 = vmatprep.subr.bf16.mxu0 %v20659_v22  ;;  %12341 = vmatprep.subr.bf16.mxu1 %v20662_v30  ;;  %v1083_v22 = vmax.f32 %v1008_v49, 0.0  ;;  %v1094_v30 = vmax.f32 %v1012_v2, 0.0  ;;  %v20722_v49 = vld [vmem:[#allocation7 + $0x19a4] ss:$84 sps:$4 sm:$0xff]   ;;  %v20717_v2 = vld [vmem:[#allocation7 + $0xc80] ss:$84 sps:$4 sm:$0xff]  }
 0x1bd   :  { %v1117_v31 = vmax.f32 %v1024_v13, 0.0  ;;  %v20731_v13 = vld [vmem:[#allocation7 + $0xb34] ss:$84 sps:$4 sm:$0xff]  }
 0x1bf   :  { %12244 = vmatpush2.bf16.msra.mxu0 %v20657_v33  ;;  %12342 = vmatpush1.bf16.msra.mxu1 %v20660_v35  ;;  %v20695_v33 = vld [vmem:[#allocation7 + $0x744] ss:$84 sps:$4 sm:$0xff]   ;;  %v1106_v35 = vmax.f32 %v1020_v11, 0.0  ;;  %v20728_v11 = vld [vmem:[#allocation7 + $0x18fc] ss:$84 sps:$4 sm:$0xff]  }
 0x1c0   :  { %12245 = vmatprep.subr.bf16.mxu0 %v20665_v7  ;;  %12343 = vmatprep.subr.bf16.mxu1 %v20668_v36  ;;  %v20693_v7 = vld [vmem:[#allocation7 + $0x740] ss:$84 sps:$4 sm:$0xff]  }
 0x1c1   :  { %v20696_v36 = vld [vmem:[#allocation7 + $0xf20] ss:$84 sps:$4 sm:$0xff]   ;;  %v23965_v12 = vpack.c.bf16 %v1117_v31, %v1106_v35  ;;  %v20735_v35 = vld [vmem:[#allocation7 + $0xa88] ss:$84 sps:$4 sm:$0xff]  }
 0x1c2   :  { %v20740_v31 = vld [vmem:[#allocation7 + $0x17ac] ss:$84 sps:$4 sm:$0xff]  }
 0x1c3   :  { %12246 = vmatpush2.bf16.msra.mxu0 %v20663_v37  ;;  %12344 = vmatpush1.bf16.msra.mxu1 %v20666_v39  ;;  %v1018_v37 = vadd.f32 %v1017_v44, %v293_v19  ;;  %v1022_v39 = vadd.f32 %v1021_v58, %v293_v19  ;;  %v20705_v44 = vld [vmem:[#allocation7 + $0x5f0] ss:$84 sps:$4 sm:$0xff]  }
 0x1c4   :  { %12247 = vmatprep.subr.bf16.mxu0 %v20671_v40  ;;  %12345 = vmatprep.subr.bf16.mxu1 %v20674_v42  ;;  %v20701_v40 = vld [vmem:[#allocation7 + $0x69c] ss:$84 sps:$4 sm:$0xff]  }
 0x1c5   :  { %v20704_v42 = vld [vmem:[#allocation7 + $0xe7c] ss:$84 sps:$4 sm:$0xff]  }
 0x1c6   :  { %v20708_v19 = vld [vmem:[#allocation7 + $0xdd0] ss:$84 sps:$4 sm:$0xff]  }
 0x1c7   :  { %12248 = vmatpush2.bf16.msra.mxu0 %v20669_v3  ;;  %12346 = vmatpush2.bf16.msra.mxu1 %v20672_v34  ;;  %v23963_v3 = vpack.c.bf16 %v1094_v30, %v1083_v22  ;;  %v20699_v34 = vld [vmem:[#allocation7 + $0x698] ss:$84 sps:$4 sm:$0xff]   ;;  %v20729_v22 = vld [vmem:[#allocation7 + $0xb30] ss:$84 sps:$4 sm:$0xff]   ;;  %v20734_v30 = vld [vmem:[#allocation7 + $0x1854] ss:$84 sps:$4 sm:$0xff]  }
 0x1c8   :  { %12249 = vmatprep.subr.bf16.mxu0 %v20677_v28  ;;  %12347 = vmatprep.subr.bf16.mxu1 %v20680_v38  ;;  %v1105_v28 = vmax.f32 %v1018_v37, 0.0  ;;  %v1116_v38 = vmax.f32 %v1022_v39, 0.0  ;;  %v20746_v37 = vld [vmem:[#allocation7 + $0x1704] ss:$84 sps:$4 sm:$0xff]   ;;  %v20741_v39 = vld [vmem:[#allocation7 + $0x1460] ss:$84 sps:$4 sm:$0xff]  }
 0x1ca   :  { %v23969_v58 = vpack.c.bf16 %v1116_v38, %v1105_v28  ;;  %v20750_v28 = vld [vmem:[#allocation7 + $0x1658] ss:$84 sps:$4 sm:$0xff]   ;;  %v20755_v38 = vld [vmem:[#allocation7 + $0x1314] ss:$84 sps:$4 sm:$0xff]  }
 0x1cb   :  { %12250 = vmatpush2.bf16.msra.mxu0 %v20675_v51  ;;  %12348 = vmatpush2.bf16.msra.mxu1 %v20678_v52  ;;  %v20707_v51 = vld [vmem:[#allocation7 + $0x5f4] ss:$84 sps:$4 sm:$0xff]  }
 0x1cc   :  { %12251 = vmatprep.subr.bf16.mxu0 %v20683_v32  ;;  %12349 = vmatprep.subr.bf16.mxu1 %v20686_v60  ;;  %v20710_v52 = vld [vmem:[#allocation7 + $0xdd4] ss:$84 sps:$4 sm:$0xff]   ;;  %v20713_v32 = vld [vmem:[#allocation7 + $0x54c] ss:$84 sps:$4 sm:$0xff]  }
 0x1cd   :  { %v20711_v60 = vld [vmem:[#allocation7 + $0x548] ss:$84 sps:$4 sm:$0xff]  }
 0x1cf   :  { %12252 = vmatpush2.bf16.msra.mxu0 %v20681_v62  ;;  %12350 = vmatpush2.bf16.msra.mxu1 %v20684_v18  ;;  %v20714_v62 = vld [vmem:[#allocation7 + $0xd28] ss:$84 sps:$4 sm:$0xff]   ;;  %v20716_v18 = vld [vmem:[#allocation7 + $0xd2c] ss:$84 sps:$4 sm:$0xff]  }
 0x1d0   :  { %12253 = vmatprep.subr.bf16.mxu0 %v20689_v4  ;;  %12351 = vmatprep.subr.bf16.mxu1 %v20692_v14  ;;  %v20720_v4 = vld [vmem:[#allocation7 + $0x19a0] ss:$84 sps:$4 sm:$0xff]   ;;  %v20725_v14 = vld [vmem:[#allocation7 + $0xbdc] ss:$84 sps:$4 sm:$0xff]  }
 0x1d3   :  { %12254 = vmatpush2.bf16.msra.mxu0 %v20687_v16  ;;  %12352 = vmatpush2.bf16.msra.mxu1 %v20690_v21  ;;  %v20723_v16 = vld [vmem:[#allocation7 + $0xbd8] ss:$84 sps:$4 sm:$0xff]  }
 0x1d4   :  { %12353 = vmatprep.subr.bf16.mxu1 %v20695_v33  ;;  %12382 = vmatprep.subr.bf16.mxu0 %v20698_v55  ;;  %v20726_v21 = vld [vmem:[#allocation7 + $0x18f8] ss:$84 sps:$4 sm:$0xff]   ;;  %v20732_v33 = vld [vmem:[#allocation7 + $0x1850] ss:$84 sps:$4 sm:$0xff]  }
 0x1d5   :  { %v20737_v55 = vld [vmem:[#allocation7 + $0xa8c] ss:$84 sps:$4 sm:$0xff]  }
 0x1d6   :  { %12256 = vmatmul.mubr.bf16.vlgmr.msra.gmra.mxu0 %v23963_v3 }
 0x1d7   :  { %12354 = vmatpush2.bf16.msra.mxu1 %v20693_v7  ;;  %12383 = vmatpush1.bf16.msra.mxu0 %v20696_v36  ;;  %v20738_v7 = vld [vmem:[#allocation7 + $0x17a8] ss:$84 sps:$4 sm:$0xff]   ;;  %v20743_v36 = vld [vmem:[#allocation7 + $0x1464] ss:$84 sps:$4 sm:$0xff]  }
 0x1d8   :  { %12355 = vmatprep.subr.bf16.mxu1 %v20701_v40  ;;  %12384 = vmatprep.subr.bf16.mxu0 %v20704_v42  ;;  %v20744_v40 = vld [vmem:[#allocation7 + $0x1700] ss:$84 sps:$4 sm:$0xff]   ;;  %v20749_v42 = vld [vmem:[#allocation7 + $0x13bc] ss:$84 sps:$4 sm:$0xff]  }
 0x1d9   :  { %12265 = vmatprep.mubr.bf16.mxu0 %v23965_v12 }
 0x1db   :  { %12356 = vmatpush2.bf16.msra.mxu1 %v20699_v34  ;;  %12385 = vmatpush1.bf16.msra.mxu0 %v20702_v24  ;;  %v20747_v34 = vld [vmem:[#allocation7 + $0x13b8] ss:$84 sps:$4 sm:$0xff]   ;;  %v20752_v24 = vld [vmem:[#allocation7 + $0x165c] ss:$84 sps:$4 sm:$0xff]  }
 0x1dc   :  { %12357 = vmatprep.subr.bf16.mxu1 %v20707_v51  ;;  %12386 = vmatprep.subr.bf16.mxu0 %v20710_v52  ;;  %v20753_v51 = vld [vmem:[#allocation7 + $0x1310] ss:$84 sps:$4 sm:$0xff]   ;;  %v20758_v52 = vld [vmem:[#allocation7 + $0x15b4] ss:$84 sps:$4 sm:$0xff]  }
 0x1de   :  { %12266 = vmatmul.mubr.bf16.gmra.mxu0 %v23969_v58 }
 0x1df   :  { %12358 = vmatpush2.bf16.msra.mxu1 %v20705_v44  ;;  %12387 = vmatpush1.bf16.msra.mxu0 %v20708_v19  ;;  %v20756_v44 = vld [vmem:[#allocation7 + $0x15b0] ss:$84 sps:$4 sm:$0xff]   ;;  %v20761_v19 = vld [vmem:[#allocation7 + $0x126c] ss:$84 sps:$4 sm:$0xff]  }
 0x1e0   :  { %12414 = vmatprep.mubr.bf16.mxu0 %v23827_v26  ;;  %12359 = vmatprep.subr.bf16.mxu1 %v20713_v32  ;;  %v20759_v32 = vld [vmem:[#allocation7 + $0x1268] ss:$84 sps:$4 sm:$0xff]  }
 0x1e1   :  { %12388 = vmatprep.subr.bf16.mxu0 %v20716_v18  ;;  %v20767_v18 = vld [vmem:[#allocation7 + $0x11c4] ss:$84 sps:$4 sm:$0xff]  }
 0x1e3   :  { %12360 = vmatpush2.bf16.msra.mxu1 %v20711_v60  ;;  %12389 = vmatpush1.bf16.msra.mxu0 %v20714_v62  ;;  %v20764_v60 = vld [vmem:[#allocation7 + $0x150c] ss:$84 sps:$4 sm:$0xff]   ;;  %v20762_v62 = vld [vmem:[#allocation7 + $0x1508] ss:$84 sps:$4 sm:$0xff]  }
 0x1e4   :  { %12390 = vmatprep.subr.bf16.mxu0 %v20719_v61  ;;  %12435 = vmatprep.subr.bf16.mxu1 %v20722_v49  ;;  %v20765_v61 = vld [vmem:[#allocation7 + $0x11c0] ss:$84 sps:$4 sm:$0xff]   ;;  %v20770_v49 = vld [vmem:[#allocation7 + $0x1ee4] ss:$84 sps:$4 sm:$0xff]  }
 0x1e6   :  { %12362 = vmatmul.mubr.bf16.vlgmr.msra.gmra.mxu1 %v23830_v29 }
 0x1e7   :  { %12371 = vmatprep.mubr.bf16.mxu1 %v23841_v54  ;;  %12391 = vmatpush1.bf16.msra.mxu0 %v20717_v2  ;;  %v20768_v2 = vld [vmem:[#allocation7 + $0x1ee0] ss:$84 sps:$4 sm:$0xff]  }
 0x1e8   :  { %12436 = vmatpush1.bf16.msra.mxu1 %v20720_v4  ;;  %12392 = vmatprep.subr.bf16.mxu0 %v20725_v14  ;;  %v20773_v4 = vld [vmem:[#allocation7 + $0x111c] ss:$84 sps:$4 sm:$0xff]   ;;  %v20771_v14 = vld [vmem:[#allocation7 + $0x1118] ss:$84 sps:$4 sm:$0xff]  }
 0x1e9   :  { %12437 = vmatprep.subr.bf16.mxu1 %v20728_v11  ;;  %v20776_v11 = vld [vmem:[#allocation7 + $0x1e3c] ss:$84 sps:$4 sm:$0xff]  }
 0x1eb   :  { %12393 = vmatpush1.bf16.msra.mxu0 %v20723_v16  ;;  %v20774_v16 = vld [vmem:[#allocation7 + $0x1e38] ss:$84 sps:$4 sm:$0xff]  }
 0x1ec   :  { %12438 = vmatpush1.bf16.msra.mxu1 %v20726_v21  ;;  %12394 = vmatprep.subr.bf16.mxu0 %v20731_v13  ;;  %v20779_v21 = vld [vmem:[#allocation7 + $0x1074] ss:$84 sps:$4 sm:$0xff]   ;;  %v20777_v13 = vld [vmem:[#allocation7 + $0x1070] ss:$84 sps:$4 sm:$0xff]  }
 0x1ed   :  { %12439 = vmatprep.subr.bf16.mxu1 %v20734_v30  ;;  %v20780_v30 = vld [vmem:[#allocation7 + $0x1d90] ss:$84 sps:$4 sm:$0xff]  }
 0x1ee   :  { %12372 = vmatmul.mubr.bf16.gmra.mxu1 %v23837_v63 }
 0x1ef   :  { %12395 = vmatpush1.bf16.msra.mxu0 %v20729_v22  ;;  %12467 = vmatprep.mubr.bf16.mxu1 %v23875_v56  ;;  %v20782_v22 = vld [vmem:[#allocation7 + $0x1d94] ss:$84 sps:$4 sm:$0xff]  }
 0x1f0   :  { %12440 = vmatpush1.bf16.msra.mxu1 %v20732_v33  ;;  %12396 = vmatprep.subr.bf16.mxu0 %v20737_v55  ;;  %v20785_v33 = vld [vmem:[#allocation7 + $0xfcc] ss:$84 sps:$4 sm:$0xff]   ;;  %v20783_v55 = vld [vmem:[#allocation7 + $0xfc8] ss:$84 sps:$4 sm:$0xff]  }
 0x1f1   :  { %12441 = vmatprep.subr.bf16.mxu1 %v20740_v31  ;;  %v20786_v31 = vld [vmem:[#allocation7 + $0x1ce8] ss:$84 sps:$4 sm:$0xff]  }
 0x1f3   :  { %12397 = vmatpush1.bf16.msra.mxu0 %v20735_v35  ;;  %v20788_v35 = vld [vmem:[#allocation7 + $0x1cec] ss:$84 sps:$4 sm:$0xff]  }
 0x1f4   :  { %12442 = vmatpush1.bf16.msra.mxu1 %v20738_v7  ;;  %12398 = vmatprep.subr.bf16.mxu0 %v20743_v36  ;;  %v20791_v7 = vld [vmem:[#allocation7 + $0x1c44] ss:$84 sps:$4 sm:$0xff]  }
 0x1f5   :  { %12443 = vmatprep.subr.bf16.mxu1 %v20746_v37  ;;  %v20794_v36 = vld [vmem:[#allocation7 + $0x2424] ss:$84 sps:$4 sm:$0xff]  }
 0x1f6   :  { %v2989_v37 = vld [vmem:[#allocation8] sm:$0xff] }
 0x1f7   :  { %12399 = vmatpush2.bf16.msra.mxu0 %v20741_v39  ;;  %v20792_v39 = vld [vmem:[#allocation7 + $0x2420] ss:$84 sps:$4 sm:$0xff]  }
 0x1f8   :  { %12444 = vmatpush1.bf16.msra.mxu1 %v20744_v40  ;;  %12400 = vmatprep.subr.bf16.mxu0 %v20749_v42  ;;  %v20789_v40 = vld [vmem:[#allocation7 + $0x1c40] ss:$84 sps:$4 sm:$0xff]   ;;  %v20800_v42 = vld [vmem:[#allocation7 + $0x237c] ss:$84 sps:$4 sm:$0xff]  }
 0x1f9   :  { %12445 = vmatprep.subr.bf16.mxu1 %v20752_v24  ;;  %v20797_v24 = vld [vmem:[#allocation7 + $0x1b9c] ss:$84 sps:$4 sm:$0xff]  }
 0x1fb   :  { %12401 = vmatpush2.bf16.msra.mxu0 %v20747_v34  ;;  %v2998_v34 = vrot.slane %v2989_v37, %v23809_v50 }
 0x1fc   :  { %12446 = vmatpush1.bf16.msra.mxu1 %v20750_v28  ;;  %12402 = vmatprep.subr.bf16.mxu0 %v20755_v38  ;;  %v23979_v28 = vrot.slane %v2989_v37, %v23806_v48  ;;  %v20815_v37 = vld [vmem:[#allocation7 + $0x2184] ss:$84 sps:$4 sm:$0xff]  }
 0x1fd   :  { %12447 = vmatprep.subr.bf16.mxu1 %v20758_v52  ;;  %v20795_v52 = vld [vmem:[#allocation7 + $0x1b98] ss:$84 sps:$4 sm:$0xff]  }
 0x1ff   :  { %12403 = vmatpush2.bf16.msra.mxu0 %v20753_v51 }
 0x200   :  { %12448 = vmatpush1.bf16.msra.mxu1 %v20756_v44  ;;  %12404 = vmatprep.subr.bf16.mxu0 %v20761_v19  ;;  %v20798_v44 = vld [vmem:[#allocation7 + $0x2378] ss:$84 sps:$4 sm:$0xff]  }
 0x201   :  { %12449 = vmatprep.subr.bf16.mxu1 %v20764_v60  ;;  %v20806_v60 = vld [vmem:[#allocation7 + $0x22d4] ss:$84 sps:$4 sm:$0xff]  }
 0x203   :  { %12405 = vmatpush2.bf16.msra.mxu0 %v20759_v32  ;;  %v20803_v32 = vld [vmem:[#allocation7 + $0x1af4] ss:$84 sps:$4 sm:$0xff]  }
 0x204   :  { %12450 = vmatpush1.bf16.msra.mxu1 %v20762_v62  ;;  %12406 = vmatprep.subr.bf16.mxu0 %v20767_v18 }
 0x205   :  { %12451 = vmatprep.subr.bf16.mxu1 %v20770_v49 }
 0x207   :  { %12407 = vmatpush2.bf16.msra.mxu0 %v20765_v61 }
 0x208   :  { %12452 = vmatpush2.bf16.msra.mxu1 %v20768_v2  ;;  %12408 = vmatprep.subr.bf16.mxu0 %v20773_v4 }
 0x209   :  { %12453 = vmatprep.subr.bf16.mxu1 %v20776_v11  ;;  %v20804_v11 = vld [vmem:[#allocation7 + $0x22d0] ss:$84 sps:$4 sm:$0xff]  }
 0x20b   :  { %12409 = vmatpush2.bf16.msra.mxu0 %v20771_v14  ;;  %v20801_v14 = vld [vmem:[#allocation7 + $0x1af0] ss:$84 sps:$4 sm:$0xff]  }
 0x20c   :  { %12454 = vmatpush2.bf16.msra.mxu1 %v20774_v16  ;;  %12410 = vmatprep.subr.bf16.mxu0 %v20779_v21 }
 0x20d   :  { %12455 = vmatprep.subr.bf16.mxu1 %v20782_v22  ;;  %v20812_v22 = vld [vmem:[#allocation7 + $0x222c] ss:$84 sps:$4 sm:$0xff]  }
 0x20f   :  { %12411 = vmatpush2.bf16.msra.mxu0 %v20777_v13  ;;  %v20809_v13 = vld [vmem:[#allocation7 + $0x1a4c] ss:$84 sps:$4 sm:$0xff]  }
 0x210   :  { %12456 = vmatpush2.bf16.msra.mxu1 %v20780_v30  ;;  %12412 = vmatprep.subr.bf16.mxu0 %v20785_v33 }
 0x211   :  { %12457 = vmatprep.subr.bf16.mxu1 %v20788_v35  ;;  %v20807_v35 = vld [vmem:[#allocation7 + $0x1a48] ss:$84 sps:$4 sm:$0xff]  }
 0x213   :  { %12413 = vmatpush2.bf16.msra.mxu0 %v20783_v55 }
 0x214   :  { %12458 = vmatpush2.bf16.msra.mxu1 %v20786_v31  ;;  %12488 = vmatprep.subr.bf16.mxu0 %v20794_v36  ;;  %v20810_v31 = vld [vmem:[#allocation7 + $0x2228] ss:$84 sps:$4 sm:$0xff]  }
 0x215   :  { %12459 = vmatprep.subr.bf16.mxu1 %v20791_v7 }
 0x216   :  { %12415 = vmatmul.mubr.bf16.vlgmr.msra.gmra.mxu0 %v23823_v17  ;;  %v12045_v38 = vpop.f32.mrf.mxu0  ;;  %v12098_v51 = vpop.f32.mrf.mxu1 }
 0x217   :  { %v12046_v19 = vadd.f32 %v12045_v38, %v2998_v34  ;;  %12424 = vmatprep.mubr.bf16.mxu0 %v23843_v57  ;;  %12489 = vmatpush1.bf16.msra.mxu0 %v20792_v39  ;;  %v20818_v39 = vld [vmem:[#allocation7 + $0x2ea4] ss:$84 sps:$4 sm:$0xff]  }
 0x218   :  { %12460 = vmatpush2.bf16.msra.mxu1 %v20789_v40  ;;  %v12047_v62 = vpop.f32.mrf.mxu0  ;;  %12490 = vmatprep.subr.bf16.mxu0 %v20800_v42  ;;  %v12100_v18 = vpop.f32.mrf.mxu1 }
 0x219   :  { %v12048_v61 = vadd.f32 %v12047_v62, %v23979_v28  ;;  %v23984_v49 = vadd.f32 %v12098_v51, %v12046_v19  ;;  %12461 = vmatprep.subr.bf16.mxu1 %v20797_v24 }
 0x21a   :  { %v12049_v2 = vpop.f32.mrf.mxu0  ;;  %v12102_v4 = vpop.f32.mrf.mxu1 }
 0x21b   :  { %v12050_v16 = vadd.f32 %v12049_v2, %v2998_v34  ;;  %v23986_v21 = vadd.f32 %v12100_v18, %v12048_v61  ;;  %12491 = vmatpush1.bf16.msra.mxu0 %v20798_v44  ;;  %v20816_v44 = vld [vmem:[#allocation7 + $0x2ea0] ss:$84 sps:$4 sm:$0xff]  }
 0x21c   :  { %12462 = vmatpush2.bf16.msra.mxu1 %v20795_v52  ;;  %v23988_v30 = vpop.f32.mrf.mxu0  ;;  %12492 = vmatprep.subr.bf16.mxu0 %v20806_v60  ;;  %v23990_v33 = vpop.f32.mrf.mxu1  ;;  %v20813_v52 = vld [vmem:[#allocation7 + $0x2180] ss:$84 sps:$4 sm:$0xff]   ;;  %v20824_v60 = vld [vmem:[#allocation7 + $0x2dfc] ss:$84 sps:$4 sm:$0xff]  }
 0x21d   :  { %v23992_v55 = vadd.f32 %v12102_v4, %v12050_v16  ;;  %12463 = vmatprep.subr.bf16.mxu1 %v20803_v32  ;;  %v20821_v32 = vld [vmem:[#allocation7 + $0x20dc] ss:$84 sps:$4 sm:$0xff]   ;;  %v20819_v4 = vld [vmem:[#allocation7 + $0x20d8] ss:$84 sps:$4 sm:$0xff]   ;;  %v20830_v16 = vld [vmem:[#allocation7 + $0x2d54] ss:$84 sps:$4 sm:$0xff]  }
 0x21e   :  { %12425 = vmatmul.mubr.bf16.gmra.mxu0 %v23839_v1  ;;  %v12055_v7 = vpop.f32.mrf.mxu0  ;;  %v12108_v36 = vpop.f32.mrf.mxu1 }
 0x21f   :  { %12493 = vmatpush1.bf16.msra.mxu0 %v20804_v11  ;;  %12520 = vmatprep.mubr.bf16.mxu0 %v23877_v43  ;;  %v12056_v40 = vadd.f32 %v12055_v7, %v2998_v34  ;;  %v20827_v11 = vld [vmem:[#allocation7 + $0x2034] ss:$84 sps:$4 sm:$0xff]  }
 0x220   :  { %12464 = vmatpush2.bf16.msra.mxu1 %v20801_v14  ;;  %12494 = vmatprep.subr.bf16.mxu0 %v20812_v22  ;;  %v12057_v42 = vpop.f32.mrf.mxu0  ;;  %v12110_v24 = vpop.f32.mrf.mxu1  ;;  %v20822_v14 = vld [vmem:[#allocation7 + $0x2df8] ss:$84 sps:$4 sm:$0xff]   ;;  %v20834_v7 = vld [vmem:[#allocation7 + $0x2ca8] ss:$84 sps:$4 sm:$0xff]  }
 0x221   :  { %12465 = vmatprep.subr.bf16.mxu1 %v20809_v13  ;;  %v12058_v38 = vadd.f32 %v12057_v42, %v23979_v28  ;;  %v23997_v51 = vadd.f32 %v12108_v36, %v12056_v40  ;;  %v20828_v13 = vld [vmem:[#allocation7 + $0x2d50] ss:$84 sps:$4 sm:$0xff]   ;;  %v20833_v22 = vld [vmem:[#allocation7 + $0x1f8c] ss:$84 sps:$4 sm:$0xff]  }
 0x222   :  { %v12059_v19 = vpop.f32.mrf.mxu0  ;;  %v12112_v61 = vpop.f32.mrf.mxu1  ;;  %v20839_v36 = vld [vmem:[#allocation7 + $0x2964] ss:$84 sps:$4 sm:$0xff]   ;;  %v20840_v40 = vld [vmem:[#allocation7 + $0x2c00] ss:$84 sps:$4 sm:$0xff]   ;;  %v20845_v42 = vld [vmem:[#allocation7 + $0x28bc] ss:$84 sps:$4 sm:$0xff]  }
 0x223   :  { %12495 = vmatpush1.bf16.msra.mxu0 %v20810_v31  ;;  %v12060_v62 = vadd.f32 %v12059_v19, %v2998_v34  ;;  %v23999_v18 = vadd.f32 %v12110_v24, %v12058_v38  ;;  %v20825_v34 = vld [vmem:[#allocation7 + $0x2030] ss:$84 sps:$4 sm:$0xff]   ;;  %v20831_v31 = vld [vmem:[#allocation7 + $0x1f88] ss:$84 sps:$4 sm:$0xff]   ;;  %v20843_v24 = vld [vmem:[#allocation7 + $0x28b8] ss:$84 sps:$4 sm:$0xff]  }
 0x224   :  { %12466 = vmatpush2.bf16.msra.mxu1 %v20807_v35  ;;  %12496 = vmatprep.subr.bf16.mxu0 %v20815_v37  ;;  %v20836_v35 = vld [vmem:[#allocation7 + $0x2cac] ss:$84 sps:$4 sm:$0xff]   ;;  %v20842_v37 = vld [vmem:[#allocation7 + $0x2c04] ss:$84 sps:$4 sm:$0xff]   ;;  %v20848_v38 = vld [vmem:[#allocation7 + $0x2b5c] ss:$84 sps:$4 sm:$0xff]  }
 0x225   :  { %12541 = vmatprep.subr.bf16.mxu1 %v20818_v39  ;;  %v24001_v2 = vadd.f32 %v12112_v61, %v12060_v62  ;;  %v20837_v39 = vld [vmem:[#allocation7 + $0x2960] ss:$84 sps:$4 sm:$0xff]   ;;  %v20849_v19 = vld [vmem:[#allocation7 + $0x2810] ss:$84 sps:$4 sm:$0xff]   ;;  %v20855_v61 = vld [vmem:[#allocation7 + $0x2768] ss:$84 sps:$4 sm:$0xff]  }
 0x226   :  { %v20857_v62 = vld [vmem:[#allocation7 + $0x276c] ss:$84 sps:$4 sm:$0xff]  }
 0x227   :  { %12468 = vmatmul.mubr.bf16.vlgmr.msra.gmra.mxu1 %v23922_v53  ;;  %12497 = vmatpush1.bf16.msra.mxu0 %v20813_v52  ;;  %v20846_v52 = vld [vmem:[#allocation7 + $0x2b58] ss:$84 sps:$4 sm:$0xff]  }
 0x228   :  { %12477 = vmatprep.mubr.bf16.mxu1 %v23926_v47  ;;  %12542 = vmatpush1.bf16.msra.mxu1 %v20816_v44  ;;  %v20851_v44 = vld [vmem:[#allocation7 + $0x2814] ss:$84 sps:$4 sm:$0xff]  }
 0x229   :  { %12498 = vmatprep.subr.bf16.mxu0 %v20821_v32  ;;  %12543 = vmatprep.subr.bf16.mxu1 %v20824_v60  ;;  %v20854_v32 = vld [vmem:[#allocation7 + $0x2ab4] ss:$84 sps:$4 sm:$0xff]   ;;  %v20852_v60 = vld [vmem:[#allocation7 + $0x2ab0] ss:$84 sps:$4 sm:$0xff]  }
 0x22b   :  { %12499 = vmatpush1.bf16.msra.mxu0 %v20819_v4  ;;  %v20860_v4 = vld [vmem:[#allocation7 + $0x2a0c] ss:$84 sps:$4 sm:$0xff]  }
 0x22c   :  { %12544 = vmatpush1.bf16.msra.mxu1 %v20822_v14  ;;  %12500 = vmatprep.subr.bf16.mxu0 %v20827_v11  ;;  %v20858_v14 = vld [vmem:[#allocation7 + $0x2a08] ss:$84 sps:$4 sm:$0xff]   ;;  %v20863_v11 = vld [vmem:[#allocation7 + $0x26c4] ss:$84 sps:$4 sm:$0xff]  }
 0x22d   :  { %12545 = vmatprep.subr.bf16.mxu1 %v20830_v16  ;;  %v20861_v16 = vld [vmem:[#allocation7 + $0x26c0] ss:$84 sps:$4 sm:$0xff]  }
 0x22f   :  { %12478 = vmatmul.mubr.bf16.gmra.mxu1 %v23936_v5  ;;  %12501 = vmatpush1.bf16.msra.mxu0 %v20825_v34  ;;  %v20866_v34 = vld [vmem:[#allocation7 + $0x33e4] ss:$84 sps:$4 sm:$0xff]  }
 0x230   :  { %12546 = vmatpush1.bf16.msra.mxu1 %v20828_v13  ;;  %12573 = vmatprep.mubr.bf16.mxu1 %v23940_v23  ;;  %v20864_v13 = vld [vmem:[#allocation7 + $0x33e0] ss:$84 sps:$4 sm:$0xff]  }
 0x231   :  { %12502 = vmatprep.subr.bf16.mxu0 %v20833_v22  ;;  %12547 = vmatprep.subr.bf16.mxu1 %v20836_v35  ;;  %v20869_v22 = vld [vmem:[#allocation7 + $0x261c] ss:$84 sps:$4 sm:$0xff]   ;;  %v20867_v35 = vld [vmem:[#allocation7 + $0x2618] ss:$84 sps:$4 sm:$0xff]  }
 0x233   :  { %12503 = vmatpush1.bf16.msra.mxu0 %v20831_v31  ;;  %v20872_v31 = vld [vmem:[#allocation7 + $0x333c] ss:$84 sps:$4 sm:$0xff]  }
 0x234   :  { %12548 = vmatpush1.bf16.msra.mxu1 %v20834_v7  ;;  %12504 = vmatprep.subr.bf16.mxu0 %v20839_v36  ;;  %v20870_v7 = vld [vmem:[#allocation7 + $0x3338] ss:$84 sps:$4 sm:$0xff]   ;;  %v20875_v36 = vld [vmem:[#allocation7 + $0x2574] ss:$84 sps:$4 sm:$0xff]  }
 0x235   :  { %12549 = vmatprep.subr.bf16.mxu1 %v20842_v37  ;;  %v20873_v37 = vld [vmem:[#allocation7 + $0x2570] ss:$84 sps:$4 sm:$0xff]  }
 0x237   :  { %12505 = vmatpush2.bf16.msra.mxu0 %v20837_v39  ;;  %v20878_v39 = vld [vmem:[#allocation7 + $0x3294] ss:$84 sps:$4 sm:$0xff]  }
 0x238   :  { %12550 = vmatpush1.bf16.msra.mxu1 %v20840_v40  ;;  %12506 = vmatprep.subr.bf16.mxu0 %v20845_v42  ;;  %v20876_v40 = vld [vmem:[#allocation7 + $0x3290] ss:$84 sps:$4 sm:$0xff]   ;;  %v20881_v42 = vld [vmem:[#allocation7 + $0x24cc] ss:$84 sps:$4 sm:$0xff]  }
 0x239   :  { %12551 = vmatprep.subr.bf16.mxu1 %v20848_v38  ;;  %v20884_v38 = vld [vmem:[#allocation7 + $0x31ec] ss:$84 sps:$4 sm:$0xff]  }
 0x23b   :  { %12507 = vmatpush2.bf16.msra.mxu0 %v20843_v24  ;;  %v20879_v24 = vld [vmem:[#allocation7 + $0x24c8] ss:$84 sps:$4 sm:$0xff]  }
 0x23c   :  { %12552 = vmatpush1.bf16.msra.mxu1 %v20846_v52  ;;  %12508 = vmatprep.subr.bf16.mxu0 %v20851_v44  ;;  %v20882_v52 = vld [vmem:[#allocation7 + $0x31e8] ss:$84 sps:$4 sm:$0xff]   ;;  %v20890_v44 = vld [vmem:[#allocation7 + $0x3684] ss:$84 sps:$4 sm:$0xff]  }
 0x23d   :  { %12553 = vmatprep.subr.bf16.mxu1 %v20854_v32  ;;  %v20888_v32 = vld [vmem:[#allocation7 + $0x3680] ss:$84 sps:$4 sm:$0xff]  }
 0x23f   :  { %12509 = vmatpush2.bf16.msra.mxu0 %v20849_v19  ;;  %v20887_v19 = vld [vmem:[#allocation7 + $0x3144] ss:$84 sps:$4 sm:$0xff]  }
 0x240   :  { %12554 = vmatpush1.bf16.msra.mxu1 %v20852_v60  ;;  %12510 = vmatprep.subr.bf16.mxu0 %v20857_v62  ;;  %v20885_v60 = vld [vmem:[#allocation7 + $0x3140] ss:$84 sps:$4 sm:$0xff]   ;;  %v20896_v62 = vld [vmem:[#allocation7 + $0x35dc] ss:$84 sps:$4 sm:$0xff]  }
 0x241   :  { %12555 = vmatprep.subr.bf16.mxu1 %v20860_v4  ;;  %v24007_v4 = vpop.f32.mrf.mxu0 }
 0x242   :  { %25445 = vst [vmem:[#allocation26_spill] sm:$0xff] %v24007_v4 }
 0x243   :  { %12511 = vmatpush2.bf16.msra.mxu0 %v20855_v61  ;;  %v20893_v61 = vld [vmem:[#allocation7 + $0x309c] ss:$84 sps:$4 sm:$0xff]  }
 0x244   :  { %12556 = vmatpush1.bf16.msra.mxu1 %v20858_v14  ;;  %12512 = vmatprep.subr.bf16.mxu0 %v20863_v11  ;;  %v24009_v14 = vpop.f32.mrf.mxu1 }
 0x245   :  { %12557 = vmatprep.subr.bf16.mxu1 %v20866_v34  ;;  %25446 = vst [vmem:[#allocation27_spill] sm:$0xff] %v24009_v14  ;;  %v20891_v34 = vld [vmem:[#allocation7 + $0x3098] ss:$84 sps:$4 sm:$0xff]  }
 0x247   :  { %12513 = vmatpush2.bf16.msra.mxu0 %v20861_v16 }
 0x248   :  { %12558 = vmatpush2.bf16.msra.mxu1 %v20864_v13  ;;  %12514 = vmatprep.subr.bf16.mxu0 %v20869_v22  ;;  %v20894_v13 = vld [vmem:[#allocation7 + $0x35d8] ss:$84 sps:$4 sm:$0xff]  }
 0x249   :  { %12559 = vmatprep.subr.bf16.mxu1 %v20872_v31  ;;  %v20902_v31 = vld [vmem:[#allocation7 + $0x3534] ss:$84 sps:$4 sm:$0xff]  }
 0x24b   :  { %12515 = vmatpush2.bf16.msra.mxu0 %v20867_v35  ;;  %v20899_v35 = vld [vmem:[#allocation7 + $0x2ff4] ss:$84 sps:$4 sm:$0xff]  }
 0x24c   :  { %12560 = vmatpush2.bf16.msra.mxu1 %v20870_v7  ;;  %12516 = vmatprep.subr.bf16.mxu0 %v20875_v36 }
 0x24d   :  { %12561 = vmatprep.subr.bf16.mxu1 %v20878_v39 }
 0x24f   :  { %12517 = vmatpush2.bf16.msra.mxu0 %v20873_v37 }
 0x250   :  { %12562 = vmatpush2.bf16.msra.mxu1 %v20876_v40  ;;  %12518 = vmatprep.subr.bf16.mxu0 %v20881_v42 }
 0x251   :  { %12563 = vmatprep.subr.bf16.mxu1 %v20884_v38  ;;  %v20900_v38 = vld [vmem:[#allocation7 + $0x3530] ss:$84 sps:$4 sm:$0xff]  }
 0x253   :  { %12519 = vmatpush2.bf16.msra.mxu0 %v20879_v24  ;;  %v20897_v24 = vld [vmem:[#allocation7 + $0x2ff0] ss:$84 sps:$4 sm:$0xff]  }
 0x254   :  { %12564 = vmatpush2.bf16.msra.mxu1 %v20882_v52  ;;  %12602 = vmatprep.subr.bf16.mxu0 %v20890_v44  ;;  %v20905_v44 = vld [vmem:[#allocation7 + $0x2f4c] ss:$84 sps:$4 sm:$0xff]  }
 0x255   :  { %12565 = vmatprep.subr.bf16.mxu1 %v20887_v19  ;;  %v20908_v19 = vld [vmem:[#allocation7 + $0x348c] ss:$84 sps:$4 sm:$0xff]  }
 0x256   :  { %v12151_v11 = vpop.f32.mrf.mxu0  ;;  %v12204_v16 = vpop.f32.mrf.mxu1  ;;  %12521 = vmatmul.mubr.bf16.vlgmr.msra.gmra.mxu0 %v23913_v15 }
 0x257   :  { %v12152_v22 = vadd.f32 %v12151_v11, %v23984_v49  ;;  %12530 = vmatprep.mubr.bf16.mxu0 %v23928_v6  ;;  %12603 = vmatpush1.bf16.msra.mxu0 %v20888_v32  ;;  %v20903_v11 = vld [vmem:[#allocation7 + $0x2f48] ss:$84 sps:$4 sm:$0xff]  }
 0x258   :  { %12566 = vmatpush2.bf16.msra.mxu1 %v20885_v60  ;;  %v12153_v7 = vpop.f32.mrf.mxu0  ;;  %v12206_v36 = vpop.f32.mrf.mxu1  ;;  %12604 = vmatprep.subr.bf16.mxu0 %v20896_v62 }
 0x259   :  { %v24014_v37 = vadd.f32 %v12204_v16, %v12152_v22  ;;  %v12154_v39 = vadd.f32 %v12153_v7, %v23986_v21  ;;  %12567 = vmatprep.subr.bf16.mxu1 %v20893_v61  ;;  %v20906_v16 = vld [vmem:[#allocation7 + $0x3488] ss:$84 sps:$4 sm:$0xff]  }
 0x25a   :  { %v12155_v40 = vpop.f32.mrf.mxu0  ;;  %v12208_v42 = vpop.f32.mrf.mxu1 }
 0x25b   :  { %v24017_v52 = vadd.f32 %v12206_v36, %v12154_v39  ;;  %v12156_v49 = vadd.f32 %v12155_v40, %v23992_v55  ;;  %12605 = vmatpush1.bf16.msra.mxu0 %v20894_v13  ;;  %v20914_v13 = vld [vmem:[#allocation7 + $0xf2c] ss:$84 sps:$4 sm:$0xff]   ;;  %v20909_v40 = vld [vmem:[#allocation7 + $0x4a8] ss:$84 sps:$4 sm:$0xff]  }
 0x25c   :  { %12568 = vmatpush2.bf16.msra.mxu1 %v20891_v34  ;;  %v24020_v32 = vpop.f32.mrf.mxu0  ;;  %v24022_v60 = vpop.f32.mrf.mxu1  ;;  %12606 = vmatprep.subr.bf16.mxu0 %v20902_v31  ;;  %v20911_v34 = vld [vmem:[#allocation7 + $0x4ac] ss:$84 sps:$4 sm:$0xff]  }
 0x25d   :  { %v24024_v62 = vadd.f32 %v12208_v42, %v12156_v49  ;;  %12569 = vmatprep.subr.bf16.mxu1 %v20899_v35  ;;  %v20912_v42 = vld [vmem:[#allocation7 + $0xf28] ss:$84 sps:$4 sm:$0xff]   ;;  %v20917_v49 = vld [vmem:[#allocation7 + $0x404] ss:$84 sps:$4 sm:$0xff]  }
 0x25e   :  { %v12161_v21 = vpop.f32.mrf.mxu0  ;;  %12531 = vmatmul.mubr.bf16.gmra.mxu0 %v23938_v10  ;;  %v12214_v61 = vpop.f32.mrf.mxu1 }
 0x25f   :  { %v12162_v55 = vadd.f32 %v12161_v21, %v23997_v51  ;;  %12607 = vmatpush1.bf16.msra.mxu0 %v20900_v38  ;;  %12626 = vmatprep.mubr.bf16.mxu0 %v25423_v0  ;;  %v20920_v21 = vld [vmem:[#allocation7 + $0xe84] ss:$84 sps:$4 sm:$0xff]  }
 0x260   :  { %12570 = vmatpush2.bf16.msra.mxu1 %v20897_v24  ;;  %v12163_v22 = vpop.f32.mrf.mxu0  ;;  %v12216_v7 = vpop.f32.mrf.mxu1  ;;  %12608 = vmatprep.subr.bf16.mxu0 %v20908_v19  ;;  %v20923_v19 = vld [vmem:[#allocation7 + $0x35c] ss:$84 sps:$4 sm:$0xff]  }
 0x261   :  { %v12164_v31 = vadd.f32 %v12163_v22, %v23999_v18  ;;  %v24030_v35 = vadd.f32 %v12214_v61, %v12162_v55  ;;  %12571 = vmatprep.subr.bf16.mxu1 %v20905_v44  ;;  %v20915_v18 = vld [vmem:[#allocation7 + $0x400] ss:$84 sps:$4 sm:$0xff]   ;;  %v20921_v61 = vld [vmem:[#allocation7 + $0x358] ss:$84 sps:$4 sm:$0xff]  }
 0x262   :  { %v12165_v36 = vpop.f32.mrf.mxu0  ;;  %v12218_v39 = vpop.f32.mrf.mxu1  ;;  %v20918_v44 = vld [vmem:[#allocation7 + $0xe80] ss:$84 sps:$4 sm:$0xff]  }
 0x263   :  { %v12166_v51 = vadd.f32 %v12165_v36, %v24001_v2  ;;  %v24033_v38 = vadd.f32 %v12216_v7, %v12164_v31  ;;  %12609 = vmatpush1.bf16.msra.mxu0 %v20906_v16  ;;  %v20926_v2 = vld [vmem:[#allocation7 + $0xddc] ss:$84 sps:$4 sm:$0xff]   ;;  %v20929_v16 = vld [vmem:[#allocation7 + $0x2b4] ss:$84 sps:$4 sm:$0xff]   ;;  %v20935_v22 = vld [vmem:[#allocation7 + $0x20c] ss:$84 sps:$4 sm:$0xff]  }
 0x264   :  { %12572 = vmatpush2.bf16.msra.mxu1 %v20903_v11  ;;  %12647 = vmatprep.subr.bf16.mxu0 %v20911_v34  ;;  %v20924_v11 = vld [vmem:[#allocation7 + $0xdd8] ss:$84 sps:$4 sm:$0xff]   ;;  %v20932_v55 = vld [vmem:[#allocation7 + $0xd34] ss:$84 sps:$4 sm:$0xff]   ;;  %v20927_v34 = vld [vmem:[#allocation7 + $0x2b0] ss:$84 sps:$4 sm:$0xff]  }
 0x265   :  { %v24035_v24 = vadd.f32 %v12218_v39, %v12166_v51  ;;  %12700 = vmatprep.subr.bf16.mxu1 %v20914_v13  ;;  %v20930_v13 = vld [vmem:[#allocation7 + $0xd30] ss:$84 sps:$4 sm:$0xff]   ;;  %v20938_v7 = vld [vmem:[#allocation7 + $0xc8c] ss:$84 sps:$4 sm:$0xff]   ;;  %v20933_v31 = vld [vmem:[#allocation7 + $0x208] ss:$84 sps:$4 sm:$0xff]  }
 0x266   :  { %19534 = vmatmul.mubr.msk.bf16.vlgmr.msra.gmra.mxu0 %vm12004_vm8, %v23947_v41  ;;  %v20936_v36 = vld [vmem:[#allocation7 + $0xc88] ss:$84 sps:$4 sm:$0xff]   ;;  %v20941_v39 = vld [vmem:[#allocation7 + $0x164] ss:$84 sps:$4 sm:$0xff]   ;;  %v20942_v51 = vld [vmem:[#allocation7 + $0xbe0] ss:$84 sps:$4 sm:$0xff]  }
 0x267   :  { %12574 = vmatmul.mubr.bf16.vlgmr.msra.gmra.mxu1 %v23963_v3  ;;  %12648 = vmatpush1.bf16.msra.mxu0 %v20909_v40  ;;  %v20944_v40 = vld [vmem:[#allocation7 + $0xbe4] ss:$84 sps:$4 sm:$0xff]  }
 0x268   :  { %12583 = vmatprep.mubr.bf16.mxu1 %v23965_v12  ;;  %12701 = vmatpush1.bf16.msra.mxu1 %v20912_v42  ;;  %v20939_v42 = vld [vmem:[#allocation7 + $0x160] ss:$84 sps:$4 sm:$0xff]  }
 0x269   :  { %12649 = vmatprep.subr.bf16.mxu0 %v20917_v49  ;;  %12702 = vmatprep.subr.bf16.mxu1 %v20920_v21  ;;  %v20947_v49 = vld [vmem:[#allocation7 + $0xbc] ss:$84 sps:$4 sm:$0xff]  }
 0x26a   :  { %12636 = vmatprep.mubr.bf16.mxu0 %v25423_v0  ;;  %v20950_v21 = vld [vmem:[#allocation7 + $0xb3c] ss:$84 sps:$4 sm:$0xff]  }
 0x26b   :  { %12650 = vmatpush1.bf16.msra.mxu0 %v20915_v18  ;;  %v20945_v18 = vld [vmem:[#allocation7 + $0xb8] ss:$84 sps:$4 sm:$0xff]  }
 0x26c   :  { %12703 = vmatpush1.bf16.msra.mxu1 %v20918_v44  ;;  %12651 = vmatprep.subr.bf16.mxu0 %v20923_v19  ;;  %v20948_v44 = vld [vmem:[#allocation7 + $0xb38] ss:$84 sps:$4 sm:$0xff]   ;;  %v20953_v19 = vld [vmem:[#allocation7 + $0x14] ss:$84 sps:$4 sm:$0xff]  }
 0x26d   :  { %12704 = vmatprep.subr.bf16.mxu1 %v20926_v2  ;;  %v20956_v2 = vld [vmem:[#allocation7 + $0xa94] ss:$84 sps:$4 sm:$0xff]  }
 0x26e   :  { %19535 = vmatmul.mubr.msk.bf16.gmra.mxu0 %vm12004_vm8, %v23952_v59 }
 0x26f   :  { %12584 = vmatmul.mubr.bf16.gmra.mxu1 %v23969_v58  ;;  %12652 = vmatpush1.bf16.msra.mxu0 %v20921_v61  ;;  %v20951_v61 = vld [vmem:[#allocation7 + $0x10] ss:$84 sps:$4 sm:$0xff]  }
 0x270   :  { %12679 = vmatprep.mubr.bf16.mxu0 %v23825_v25  ;;  %12705 = vmatpush1.bf16.msra.mxu1 %v20924_v11  ;;  %v20954_v11 = vld [vmem:[#allocation7 + $0xa90] ss:$84 sps:$4 sm:$0xff]  }
 0x271   :  { %12732 = vmatprep.mubr.bf16.mxu1 %v23827_v26  ;;  %12653 = vmatprep.subr.bf16.mxu0 %v20929_v16  ;;  %v20959_v16 = vld [vmem:[#allocation7 + $0x9ec] ss:$84 sps:$4 sm:$0xff]  }
 0x272   :  { %12706 = vmatprep.subr.bf16.mxu1 %v20932_v55  ;;  %v20962_v55 = vld [vmem:[#allocation7 + $0x146c] ss:$84 sps:$4 sm:$0xff]  }
 0x273   :  { %12654 = vmatpush1.bf16.msra.mxu0 %v20927_v34  ;;  %v20957_v34 = vld [vmem:[#allocation7 + $0x9e8] ss:$84 sps:$4 sm:$0xff]  }
 0x274   :  { %12707 = vmatpush1.bf16.msra.mxu1 %v20930_v13  ;;  %12655 = vmatprep.subr.bf16.mxu0 %v20935_v22  ;;  %v20960_v13 = vld [vmem:[#allocation7 + $0x1468] ss:$84 sps:$4 sm:$0xff]   ;;  %v20965_v22 = vld [vmem:[#allocation7 + $0x944] ss:$84 sps:$4 sm:$0xff]  }
 0x275   :  { %12708 = vmatprep.subr.bf16.mxu1 %v20938_v7  ;;  %v20968_v7 = vld [vmem:[#allocation7 + $0x13c4] ss:$84 sps:$4 sm:$0xff]  }
 0x277   :  { %12656 = vmatpush1.bf16.msra.mxu0 %v20933_v31  ;;  %v20963_v31 = vld [vmem:[#allocation7 + $0x940] ss:$84 sps:$4 sm:$0xff]  }
 0x278   :  { %12709 = vmatpush1.bf16.msra.mxu1 %v20936_v36  ;;  %12657 = vmatprep.subr.bf16.mxu0 %v20941_v39  ;;  %v20966_v36 = vld [vmem:[#allocation7 + $0x13c0] ss:$84 sps:$4 sm:$0xff]   ;;  %v20971_v39 = vld [vmem:[#allocation7 + $0x89c] ss:$84 sps:$4 sm:$0xff]  }
 0x279   :  { %12710 = vmatprep.subr.bf16.mxu1 %v20944_v40  ;;  %v20974_v40 = vld [vmem:[#allocation7 + $0x131c] ss:$84 sps:$4 sm:$0xff]  }
 0x27b   :  { %12658 = vmatpush1.bf16.msra.mxu0 %v20939_v42  ;;  %v24047_v42 = vpop.f32.mrf.mxu1 }
 0x27c   :  { %12711 = vmatpush1.bf16.msra.mxu1 %v20942_v51  ;;  %12659 = vmatprep.subr.bf16.mxu0 %v20947_v49  ;;  %25447 = vst [vmem:[#allocation28_spill] sm:$0xff] %v24047_v42  ;;  %v20969_v51 = vld [vmem:[#allocation7 + $0x898] ss:$84 sps:$4 sm:$0xff]  }
 0x27d   :  { %12712 = vmatprep.subr.bf16.mxu1 %v20950_v21  ;;  %v20972_v49 = vld [vmem:[#allocation7 + $0x1318] ss:$84 sps:$4 sm:$0xff]   ;;  %v20977_v21 = vld [vmem:[#allocation7 + $0x7f4] ss:$84 sps:$4 sm:$0xff]  }
 0x27f   :  { %12660 = vmatpush1.bf16.msra.mxu0 %v20945_v18  ;;  %v20980_v18 = vld [vmem:[#allocation7 + $0x1274] ss:$84 sps:$4 sm:$0xff]  }
 0x280   :  { %12713 = vmatpush1.bf16.msra.mxu1 %v20948_v44  ;;  %12661 = vmatprep.subr.bf16.mxu0 %v20953_v19  ;;  %v12310_v44 = vpop.f32.mrf.mxu1  ;;  %v20975_v19 = vld [vmem:[#allocation7 + $0x7f0] ss:$84 sps:$4 sm:$0xff]  }
 0x281   :  { %12714 = vmatprep.subr.bf16.mxu1 %v20956_v2  ;;  %v20978_v2 = vld [vmem:[#allocation7 + $0x1270] ss:$84 sps:$4 sm:$0xff]  }
 0x283   :  { %12662 = vmatpush1.bf16.msra.mxu0 %v20951_v61  ;;  %v20983_v61 = vld [vmem:[#allocation7 + $0x74c] ss:$84 sps:$4 sm:$0xff]  }
 0x284   :  { %12715 = vmatpush1.bf16.msra.mxu1 %v20954_v11  ;;  %12663 = vmatprep.subr.bf16.mxu0 %v20959_v16  ;;  %v20986_v11 = vld [vmem:[#allocation7 + $0x11cc] ss:$84 sps:$4 sm:$0xff]   ;;  %v12312_v16 = vpop.f32.mrf.mxu1 }
 0x285   :  { %12716 = vmatprep.subr.bf16.mxu1 %v20962_v55  ;;  %v20981_v55 = vld [vmem:[#allocation7 + $0x748] ss:$84 sps:$4 sm:$0xff]  }
 0x287   :  { %12664 = vmatpush2.bf16.msra.mxu0 %v20957_v34  ;;  %v20984_v34 = vld [vmem:[#allocation7 + $0x11c8] ss:$84 sps:$4 sm:$0xff]  }
 0x288   :  { %12717 = vmatpush2.bf16.msra.mxu1 %v20960_v13  ;;  %12665 = vmatprep.subr.bf16.mxu0 %v20965_v22  ;;  %v20989_v13 = vld [vmem:[#allocation7 + $0x6a4] ss:$84 sps:$4 sm:$0xff]  }
 0x289   :  { %12718 = vmatprep.subr.bf16.mxu1 %v20968_v7  ;;  %v20992_v22 = vld [vmem:[#allocation7 + $0x1124] ss:$84 sps:$4 sm:$0xff]   ;;  %v24049_v7 = vpop.f32.mrf.mxu0 }
 0x28a   :  { %25448 = vst [vmem:[#allocation29_spill] sm:$0xff] %v24049_v7 }
 0x28b   :  { %12666 = vmatpush2.bf16.msra.mxu0 %v20963_v31  ;;  %v12314_v31 = vpop.f32.mrf.mxu1 }
 0x28c   :  { %12719 = vmatpush2.bf16.msra.mxu1 %v20966_v36  ;;  %12667 = vmatprep.subr.bf16.mxu0 %v20971_v39 }
 0x28d   :  { %12720 = vmatprep.subr.bf16.mxu1 %v20974_v40  ;;  %v20987_v40 = vld [vmem:[#allocation7 + $0x6a0] ss:$84 sps:$4 sm:$0xff]  }
 0x28f   :  { %12668 = vmatpush2.bf16.msra.mxu0 %v20969_v51  ;;  %v20990_v51 = vld [vmem:[#allocation7 + $0x1120] ss:$84 sps:$4 sm:$0xff]  }
 0x290   :  { %12721 = vmatpush2.bf16.msra.mxu1 %v20972_v49  ;;  %12669 = vmatprep.subr.bf16.mxu0 %v20977_v21  ;;  %v20995_v49 = vld [vmem:[#allocation7 + $0x5fc] ss:$84 sps:$4 sm:$0xff]   ;;  %v24052_v21 = vpop.f32.mrf.mxu1 }
 0x291   :  { %12722 = vmatprep.subr.bf16.mxu1 %v20980_v18  ;;  %25449 = vst [vmem:[#allocation30_spill] sm:$0xff] %v24052_v21 }
 0x293   :  { %12670 = vmatpush2.bf16.msra.mxu0 %v20975_v19  ;;  %v20998_v19 = vld [vmem:[#allocation7 + $0x107c] ss:$84 sps:$4 sm:$0xff]  }
 0x294   :  { %12723 = vmatpush2.bf16.msra.mxu1 %v20978_v2  ;;  %12671 = vmatprep.subr.bf16.mxu0 %v20983_v61 }
 0x295   :  { %12724 = vmatprep.subr.bf16.mxu1 %v20986_v11 }
 0x296   :  { %v12257_v36 = vpop.f32.mrf.mxu0 }
 0x297   :  { %v12258_v39 = vadd.f32 %v12257_v36, %v24014_v37  ;;  %12672 = vmatpush2.bf16.msra.mxu0 %v20981_v55  ;;  %v20993_v37 = vld [vmem:[#allocation7 + $0x5f8] ss:$84 sps:$4 sm:$0xff]   ;;  %v12320_v36 = vpop.f32.mrf.mxu1 }
 0x298   :  { %12725 = vmatpush2.bf16.msra.mxu1 %v20984_v34  ;;  %v12259_v18 = vpop.f32.mrf.mxu0  ;;  %12673 = vmatprep.subr.bf16.mxu0 %v20989_v13  ;;  %v20996_v55 = vld [vmem:[#allocation7 + $0x1078] ss:$84 sps:$4 sm:$0xff]   ;;  %v21001_v34 = vld [vmem:[#allocation7 + $0x554] ss:$84 sps:$4 sm:$0xff]  }
 0x299   :  { %v12311_v0 = vadd.f32 %v12310_v44, %v12258_v39  ;;  %v12260_v42 = vadd.f32 %v12259_v18, %v24017_v52  ;;  %12726 = vmatprep.subr.bf16.mxu1 %v20992_v22  ;;  %v21004_v13 = vld [vmem:[#allocation7 + $0xfd4] ss:$84 sps:$4 sm:$0xff]   ;;  %v20999_v44 = vld [vmem:[#allocation7 + $0x550] ss:$84 sps:$4 sm:$0xff]   ;;  %v21010_v18 = vld [vmem:[#allocation7 + $0x242c] ss:$84 sps:$4 sm:$0xff]  }
 0x29a   :  { %v12261_v2 = vpop.f32.mrf.mxu0 }
 0x29b   :  { %v24055_v61 = vadd.f32 %v12312_v16, %v12260_v42  ;;  %v12262_v11 = vadd.f32 %v12261_v2, %v24024_v62  ;;  %12674 = vmatpush2.bf16.msra.mxu0 %v20987_v40  ;;  %v15485_v22 = vmax.f32 %v12311_v0, 0.0  ;;  %v21002_v62 = vld [vmem:[#allocation7 + $0xfd0] ss:$84 sps:$4 sm:$0xff]   ;;  %v12322_v16 = vpop.f32.mrf.mxu1 }
 0x29c   :  { %12727 = vmatpush2.bf16.msra.mxu1 %v20990_v51  ;;  %v24058_v7 = vpop.f32.mrf.mxu0  ;;  %12675 = vmatprep.subr.bf16.mxu0 %v20995_v49  ;;  %v21007_v51 = vld [vmem:[#allocation7 + $0x19ac] ss:$84 sps:$4 sm:$0xff]  }
 0x29d   :  { %25450 = vst [vmem:[#allocation31_spill] sm:$0xff] %v24055_v61  ;;  %25451 = vst [vmem:[#allocation32_spill] sm:$0xff] %v24058_v7  ;;  %v12315_v14 = vadd.f32 %v12314_v31, %v12262_v11  ;;  %12728 = vmatprep.subr.bf16.mxu1 %v20998_v19 }
 0x29e   :  { %v12267_v52 = vpop.f32.mrf.mxu0 }
 0x29f   :  { %v15506_v39 = vmax.f32 %v12315_v14, 0.0  ;;  %v12268_v42 = vadd.f32 %v12267_v52, %v24030_v35  ;;  %12676 = vmatpush2.bf16.msra.mxu0 %v20993_v37  ;;  %v21005_v14 = vld [vmem:[#allocation7 + $0x19a8] ss:$84 sps:$4 sm:$0xff]   ;;  %v12324_v37 = vpop.f32.mrf.mxu1 }
 0x2a0   :  { %12729 = vmatpush2.bf16.msra.mxu1 %v20996_v55  ;;  %v12269_v40 = vpop.f32.mrf.mxu0  ;;  %12677 = vmatprep.subr.bf16.mxu0 %v21001_v34  ;;  %v21008_v35 = vld [vmem:[#allocation7 + $0x2428] ss:$84 sps:$4 sm:$0xff]   ;;  %v21013_v55 = vld [vmem:[#allocation7 + $0x1904] ss:$84 sps:$4 sm:$0xff]  }
 0x2a1   :  { %v24061_v2 = vpack.c.bf16 %v15506_v39, %v15485_v22  ;;  %v12321_v49 = vadd.f32 %v12320_v36, %v12268_v42  ;;  %v12270_v31 = vadd.f32 %v12269_v40, %v24033_v38  ;;  %12730 = vmatprep.subr.bf16.mxu1 %v21004_v13  ;;  %v21016_v34 = vld [vmem:[#allocation7 + $0x2384] ss:$84 sps:$4 sm:$0xff]   ;;  %v21011_v36 = vld [vmem:[#allocation7 + $0x1900] ss:$84 sps:$4 sm:$0xff]   ;;  %v21022_v22 = vld [vmem:[#allocation7 + $0x22dc] ss:$84 sps:$4 sm:$0xff]  }
 0x2a2   :  { %v12271_v19 = vpop.f32.mrf.mxu0  ;;  %v21017_v42 = vld [vmem:[#allocation7 + $0x1858] ss:$84 sps:$4 sm:$0xff]   ;;  %v21028_v40 = vld [vmem:[#allocation7 + $0x2234] ss:$84 sps:$4 sm:$0xff]  }
 0x2a3   :  { %25452 = vst [vmem:[#allocation33_spill] sm:$0xff] %v24061_v2  ;;  %v24064_v11 = vadd.f32 %v12322_v16, %v12270_v31  ;;  %v12272_v0 = vadd.f32 %v12271_v19, %v24035_v24  ;;  %12678 = vmatpush2.bf16.msra.mxu0 %v20999_v44  ;;  %v15527_v38 = vmax.f32 %v12321_v49, 0.0  ;;  %v21014_v24 = vld [vmem:[#allocation7 + $0x2380] ss:$84 sps:$4 sm:$0xff]   ;;  %v21019_v44 = vld [vmem:[#allocation7 + $0x185c] ss:$84 sps:$4 sm:$0xff]  }
 0x2a4   :  { %12731 = vmatpush2.bf16.msra.mxu1 %v21002_v62  ;;  %12753 = vmatprep.subr.bf16.mxu0 %v21007_v51  ;;  %v21020_v62 = vld [vmem:[#allocation7 + $0x22d8] ss:$84 sps:$4 sm:$0xff]   ;;  %v21025_v16 = vld [vmem:[#allocation7 + $0x17b4] ss:$84 sps:$4 sm:$0xff]   ;;  %v21023_v51 = vld [vmem:[#allocation7 + $0x17b0] ss:$84 sps:$4 sm:$0xff]  }
 0x2a5   :  { %25453 = vst [vmem:[#allocation34_spill] sm:$0xff] %v24064_v11  ;;  %v12325_v52 = vadd.f32 %v12324_v37, %v12272_v0  ;;  %12806 = vmatprep.subr.bf16.mxu1 %v21010_v18  ;;  %v21026_v18 = vld [vmem:[#allocation7 + $0x2230] ss:$84 sps:$4 sm:$0xff]   ;;  %v21031_v49 = vld [vmem:[#allocation7 + $0x170c] ss:$84 sps:$4 sm:$0xff]  }
 0x2a6   :  { %12680 = vmatmul.mubr.bf16.vlgmr.msra.gmra.mxu0 %v23830_v29  ;;  %v21034_v31 = vld [vmem:[#allocation7 + $0x218c] ss:$84 sps:$4 sm:$0xff]   ;;  %v21029_v19 = vld [vmem:[#allocation7 + $0x1708] ss:$84 sps:$4 sm:$0xff]  }
 0x2a7   :  { %v15548_v13 = vmax.f32 %v12325_v52, 0.0  ;;  %12733 = vmatmul.mubr.bf16.vlgmr.msra.gmra.mxu1 %v23823_v17  ;;  %12689 = vmatprep.mubr.bf16.mxu0 %v23841_v54  ;;  %v21032_v0 = vld [vmem:[#allocation7 + $0x2188] ss:$84 sps:$4 sm:$0xff]   ;;  %v21035_v37 = vld [vmem:[#allocation7 + $0x1660] ss:$84 sps:$4 sm:$0xff]  }
 0x2a8   :  { %12742 = vmatprep.mubr.bf16.mxu1 %v23843_v57  ;;  %12754 = vmatpush1.bf16.msra.mxu0 %v21005_v14  ;;  %v21037_v14 = vld [vmem:[#allocation7 + $0x1664] ss:$84 sps:$4 sm:$0xff]   ;;  %v21086_v2 = vld [vmem:[#allocation7 + $0x2620] ss:$84 sps:$4 sm:$0xff]   ;;  %v21091_v11 = vld [vmem:[#allocation7 + $0x1afc] ss:$84 sps:$4 sm:$0xff]  }
 0x2a9   :  { %v24071_v39 = vpack.c.bf16 %v15548_v13, %v15527_v38  ;;  %12807 = vmatpush1.bf16.msra.mxu1 %v21008_v35  ;;  %12755 = vmatprep.subr.bf16.mxu0 %v21013_v55  ;;  %v21040_v35 = vld [vmem:[#allocation7 + $0x20e4] ss:$84 sps:$4 sm:$0xff]   ;;  %v21038_v55 = vld [vmem:[#allocation7 + $0x20e0] ss:$84 sps:$4 sm:$0xff]  }
 0x2aa   :  { %12808 = vmatprep.subr.bf16.mxu1 %v21016_v34  ;;  %v21043_v34 = vld [vmem:[#allocation7 + $0x15bc] ss:$84 sps:$4 sm:$0xff]   ;;  %v21041_v52 = vld [vmem:[#allocation7 + $0x15b8] ss:$84 sps:$4 sm:$0xff]   ;;  %v21049_v13 = vld [vmem:[#allocation7 + $0x1514] ss:$84 sps:$4 sm:$0xff]  }
 0x2ab   :  { %25454 = vst [vmem:[#allocation35_spill] sm:$0xff] %v24071_v39  ;;  %v21044_v38 = vld [vmem:[#allocation7 + $0x2038] ss:$84 sps:$4 sm:$0xff]  }
 0x2ac   :  { %12756 = vmatpush1.bf16.msra.mxu0 %v21011_v36  ;;  %v21046_v36 = vld [vmem:[#allocation7 + $0x203c] ss:$84 sps:$4 sm:$0xff]  }
 0x2ad   :  { %12809 = vmatpush1.bf16.msra.mxu1 %v21014_v24  ;;  %12757 = vmatprep.subr.bf16.mxu0 %v21019_v44  ;;  %v21052_v24 = vld [vmem:[#allocation7 + $0x1f94] ss:$84 sps:$4 sm:$0xff]   ;;  %v21047_v44 = vld [vmem:[#allocation7 + $0x1510] ss:$84 sps:$4 sm:$0xff]  }
 0x2ae   :  { %12690 = vmatmul.mubr.bf16.gmra.mxu0 %v23837_v63  ;;  %12810 = vmatprep.subr.bf16.mxu1 %v21022_v22  ;;  %v21050_v22 = vld [vmem:[#allocation7 + $0x1f90] ss:$84 sps:$4 sm:$0xff]  }
 0x2af   :  { %12743 = vmatmul.mubr.bf16.gmra.mxu1 %v23839_v1  ;;  %12785 = vmatprep.mubr.bf16.mxu0 %v23875_v56 }
 0x2b0   :  { %12758 = vmatpush1.bf16.msra.mxu0 %v21017_v42  ;;  %12838 = vmatprep.mubr.bf16.mxu1 %v23877_v43  ;;  %v21055_v42 = vld [vmem:[#allocation7 + $0x1eec] ss:$84 sps:$4 sm:$0xff]  }
 0x2b1   :  { %12811 = vmatpush1.bf16.msra.mxu1 %v21020_v62  ;;  %12759 = vmatprep.subr.bf16.mxu0 %v21025_v16  ;;  %v21053_v62 = vld [vmem:[#allocation7 + $0x1ee8] ss:$84 sps:$4 sm:$0xff]   ;;  %v21058_v16 = vld [vmem:[#allocation7 + $0x296c] ss:$84 sps:$4 sm:$0xff]  }
 0x2b2   :  { %12812 = vmatprep.subr.bf16.mxu1 %v21028_v40  ;;  %v21056_v40 = vld [vmem:[#allocation7 + $0x2968] ss:$84 sps:$4 sm:$0xff]  }
 0x2b4   :  { %12760 = vmatpush1.bf16.msra.mxu0 %v21023_v51  ;;  %v21061_v51 = vld [vmem:[#allocation7 + $0x1e44] ss:$84 sps:$4 sm:$0xff]  }
 0x2b5   :  { %12813 = vmatpush1.bf16.msra.mxu1 %v21026_v18  ;;  %12761 = vmatprep.subr.bf16.mxu0 %v21031_v49  ;;  %v24077_v18 = vpop.f32.mrf.mxu1 }
 0x2b6   :  { %12814 = vmatprep.subr.bf16.mxu1 %v21034_v31  ;;  %25455 = vst [vmem:[#allocation36_spill] sm:$0xff] %v24077_v18  ;;  %v21059_v31 = vld [vmem:[#allocation7 + $0x1e40] ss:$84 sps:$4 sm:$0xff]  }
 0x2b7   :  { %v12363_v49 = vpop.f32.mrf.mxu1 }
 0x2b8   :  { %12762 = vmatpush1.bf16.msra.mxu0 %v21029_v19  ;;  %v21064_v19 = vld [vmem:[#allocation7 + $0x28c4] ss:$84 sps:$4 sm:$0xff]  }
 0x2b9   :  { %12815 = vmatpush1.bf16.msra.mxu1 %v21032_v0  ;;  %12763 = vmatprep.subr.bf16.mxu0 %v21037_v14  ;;  %v21062_v0 = vld [vmem:[#allocation7 + $0x28c0] ss:$84 sps:$4 sm:$0xff]   ;;  %v21067_v14 = vld [vmem:[#allocation7 + $0x1d9c] ss:$84 sps:$4 sm:$0xff]  }
 0x2ba   :  { %12816 = vmatprep.subr.bf16.mxu1 %v21040_v35  ;;  %v12365_v35 = vpop.f32.mrf.mxu1 }
 0x2bc   :  { %12764 = vmatpush1.bf16.msra.mxu0 %v21035_v37  ;;  %v21065_v37 = vld [vmem:[#allocation7 + $0x1d98] ss:$84 sps:$4 sm:$0xff]  }
 0x2bd   :  { %12817 = vmatpush1.bf16.msra.mxu1 %v21038_v55  ;;  %12765 = vmatprep.subr.bf16.mxu0 %v21043_v34  ;;  %v21070_v55 = vld [vmem:[#allocation7 + $0x281c] ss:$84 sps:$4 sm:$0xff]   ;;  %v21068_v34 = vld [vmem:[#allocation7 + $0x2818] ss:$84 sps:$4 sm:$0xff]  }
 0x2be   :  { %12818 = vmatprep.subr.bf16.mxu1 %v21046_v36  ;;  %v12367_v36 = vpop.f32.mrf.mxu1 }
 0x2c0   :  { %12766 = vmatpush1.bf16.msra.mxu0 %v21041_v52  ;;  %v21073_v52 = vld [vmem:[#allocation7 + $0x1cf4] ss:$84 sps:$4 sm:$0xff]  }
 0x2c1   :  { %12819 = vmatpush1.bf16.msra.mxu1 %v21044_v38  ;;  %12767 = vmatprep.subr.bf16.mxu0 %v21049_v13  ;;  %v21071_v38 = vld [vmem:[#allocation7 + $0x1cf0] ss:$84 sps:$4 sm:$0xff]   ;;  %v21076_v13 = vld [vmem:[#allocation7 + $0x2774] ss:$84 sps:$4 sm:$0xff]  }
 0x2c2   :  { %12820 = vmatprep.subr.bf16.mxu1 %v21052_v24  ;;  %v21074_v24 = vld [vmem:[#allocation7 + $0x2770] ss:$84 sps:$4 sm:$0xff]  }
 0x2c4   :  { %12768 = vmatpush1.bf16.msra.mxu0 %v21047_v44  ;;  %v21079_v44 = vld [vmem:[#allocation7 + $0x1c4c] ss:$84 sps:$4 sm:$0xff]  }
 0x2c5   :  { %12821 = vmatpush1.bf16.msra.mxu1 %v21050_v22  ;;  %12769 = vmatprep.subr.bf16.mxu0 %v21055_v42  ;;  %v23185_v22 = vld [vmem:[#allocation8] sm:$0xff] }
 0x2c6   :  { %12822 = vmatprep.subr.bf16.mxu1 %v21058_v16  ;;  %v3006_v42 = vrot.slane %v23185_v22, %v23798_v45  ;;  %v21077_v16 = vld [vmem:[#allocation7 + $0x1c48] ss:$84 sps:$4 sm:$0xff]  }
 0x2c8   :  { %12770 = vmatpush2.bf16.msra.mxu0 %v21053_v62  ;;  %v24080_v62 = vpop.f32.mrf.mxu1  ;;  %v12368_v18 = vadd.f32 %v12367_v36, %v3006_v42  ;;  %v21095_v36 = vld [vmem:[#allocation7 + $0x1a50] ss:$84 sps:$4 sm:$0xff]  }
 0x2c9   :  { %12823 = vmatpush2.bf16.msra.mxu1 %v21056_v40  ;;  %12771 = vmatprep.subr.bf16.mxu0 %v21061_v51  ;;  %25456 = vst [vmem:[#allocation37_spill] sm:$0xff] %v24080_v62  ;;  %v21082_v40 = vld [vmem:[#allocation7 + $0x26cc] ss:$84 sps:$4 sm:$0xff]   ;;  %v24083_v51 = vrot.slane %v23185_v22, %v23801_v46  ;;  %v21097_v62 = vld [vmem:[#allocation7 + $0x1a54] ss:$84 sps:$4 sm:$0xff]  }
 0x2ca   :  { %12824 = vmatprep.subr.bf16.mxu1 %v21064_v19  ;;  %v21085_v19 = vld [vmem:[#allocation7 + $0x1ba4] ss:$84 sps:$4 sm:$0xff]  }
 0x2cb   :  { %25457 = vst [vmem:[#allocation38_spill] sm:$0xff] %v24083_v51 }
 0x2cc   :  { %12772 = vmatpush2.bf16.msra.mxu0 %v21059_v31  ;;  %v21080_v31 = vld [vmem:[#allocation7 + $0x26c8] ss:$84 sps:$4 sm:$0xff]  }
 0x2cd   :  { %12825 = vmatpush2.bf16.msra.mxu1 %v21062_v0  ;;  %12773 = vmatprep.subr.bf16.mxu0 %v21067_v14  ;;  %v24085_v0 = vpop.f32.mrf.mxu0  ;;  %v12364_v14 = vadd.f32 %v12363_v49, %v3006_v42 }
 0x2ce   :  { %12826 = vmatprep.subr.bf16.mxu1 %v21070_v55  ;;  %25458 = vst [vmem:[#allocation39_spill] sm:$0xff] %v24085_v0 }
 0x2d0   :  { %12774 = vmatpush2.bf16.msra.mxu0 %v21065_v37  ;;  %v12373_v37 = vpop.f32.mrf.mxu1 }
 0x2d1   :  { %12827 = vmatpush2.bf16.msra.mxu1 %v21068_v34  ;;  %12775 = vmatprep.subr.bf16.mxu0 %v21073_v52  ;;  %v21083_v34 = vld [vmem:[#allocation7 + $0x1ba0] ss:$84 sps:$4 sm:$0xff]   ;;  %v21088_v52 = vld [vmem:[#allocation7 + $0x2624] ss:$84 sps:$4 sm:$0xff]  }
 0x2d2   :  { %12828 = vmatprep.subr.bf16.mxu1 %v21076_v13  ;;  %v12366_v13 = vadd.f32 %v12365_v35, %v24083_v51  ;;  %v12374_v35 = vadd.f32 %v12373_v37, %v3006_v42  ;;  %v21101_v37 = vld [vmem:[#allocation7 + $0x2ea8] ss:$84 sps:$4 sm:$0xff]  }
 0x2d4   :  { %12776 = vmatpush2.bf16.msra.mxu0 %v21071_v38  ;;  %v12375_v38 = vpop.f32.mrf.mxu1 }
 0x2d5   :  { %12829 = vmatpush2.bf16.msra.mxu1 %v21074_v24  ;;  %12777 = vmatprep.subr.bf16.mxu0 %v21079_v44  ;;  %v21089_v24 = vld [vmem:[#allocation7 + $0x1af8] ss:$84 sps:$4 sm:$0xff]   ;;  %v21094_v44 = vld [vmem:[#allocation7 + $0x257c] ss:$84 sps:$4 sm:$0xff]  }
 0x2d6   :  { %v12416_v55 = vpop.f32.mrf.mxu0  ;;  %12830 = vmatprep.subr.bf16.mxu1 %v21082_v40  ;;  %v21092_v40 = vld [vmem:[#allocation7 + $0x2578] ss:$84 sps:$4 sm:$0xff]  }
 0x2d7   :  { %v12417_v39 = vadd.f32 %v12416_v55, %v12364_v14 }
 0x2d8   :  { %12778 = vmatpush2.bf16.msra.mxu0 %v21077_v16  ;;  %v12418_v22 = vpop.f32.mrf.mxu0  ;;  %v12377_v16 = vpop.f32.mrf.mxu1 }
 0x2d9   :  { %12831 = vmatpush2.bf16.msra.mxu1 %v21080_v31  ;;  %v12419_v4 = vadd.f32 %v12418_v22, %v12366_v13  ;;  %12779 = vmatprep.subr.bf16.mxu0 %v21085_v19  ;;  %v21100_v31 = vld [vmem:[#allocation7 + $0x24d4] ss:$84 sps:$4 sm:$0xff]   ;;  %v12376_v19 = vadd.f32 %v12375_v38, %v24083_v51  ;;  %v21103_v13 = vld [vmem:[#allocation7 + $0x2eac] ss:$84 sps:$4 sm:$0xff]   ;;  %v12378_v22 = vadd.f32 %v12377_v16, %v3006_v42  ;;  %v21220_v51 = vld [vmem:[#allocation7 + $0xd3c] ss:$84 sps:$4 sm:$0xff]  }
 0x2da   :  { %v12420_v49 = vpop.f32.mrf.mxu0  ;;  %12832 = vmatprep.subr.bf16.mxu1 %v21088_v52  ;;  %v21098_v52 = vld [vmem:[#allocation7 + $0x24d0] ss:$84 sps:$4 sm:$0xff]   ;;  %v24091_v21 = vpop.f32.mrf.mxu1  ;;  %v21107_v42 = vld [vmem:[#allocation7 + $0x2e00] ss:$84 sps:$4 sm:$0xff]  }
 0x2db   :  { %v12421_v0 = vadd.f32 %v12420_v49, %v12368_v18  ;;  %25460 = vst [vmem:[#allocation41_spill] sm:$0xff] %v24091_v21 }
 0x2dc   :  { %12780 = vmatpush2.bf16.msra.mxu0 %v21083_v34  ;;  %v24088_v61 = vpop.f32.mrf.mxu0 }
 0x2dd   :  { %25459 = vst [vmem:[#allocation40_spill] sm:$0xff] %v24088_v61  ;;  %12833 = vmatpush2.bf16.msra.mxu1 %v21086_v2  ;;  %12781 = vmatprep.subr.bf16.mxu0 %v21091_v11  ;;  %v21106_v2 = vld [vmem:[#allocation7 + $0x368c] ss:$84 sps:$4 sm:$0xff]   ;;  %v21109_v61 = vld [vmem:[#allocation7 + $0x2e04] ss:$84 sps:$4 sm:$0xff]  }
 0x2de   :  { %v12426_v14 = vpop.f32.mrf.mxu0  ;;  %12834 = vmatprep.subr.bf16.mxu1 %v21094_v44  ;;  %v21104_v44 = vld [vmem:[#allocation7 + $0x3688] ss:$84 sps:$4 sm:$0xff]  }
 0x2df   :  { %v12427_v55 = vadd.f32 %v12426_v14, %v12374_v35  ;;  %v21115_v35 = vld [vmem:[#allocation7 + $0x2d5c] ss:$84 sps:$4 sm:$0xff]  }
 0x2e0   :  { %12782 = vmatpush2.bf16.msra.mxu0 %v21089_v24  ;;  %v12428_v18 = vpop.f32.mrf.mxu0  ;;  %v21112_v24 = vld [vmem:[#allocation7 + $0x35e4] ss:$84 sps:$4 sm:$0xff]  }
 0x2e1   :  { %12835 = vmatpush2.bf16.msra.mxu1 %v21092_v40  ;;  %v12429_v34 = vadd.f32 %v12428_v18, %v12376_v19  ;;  %12783 = vmatprep.subr.bf16.mxu0 %v21097_v62  ;;  %v21110_v62 = vld [vmem:[#allocation7 + $0x35e0] ss:$84 sps:$4 sm:$0xff]   ;;  %v21118_v19 = vld [vmem:[#allocation7 + $0x353c] ss:$84 sps:$4 sm:$0xff]  }
 0x2e2   :  { %v12430_v49 = vpop.f32.mrf.mxu0  ;;  %12836 = vmatprep.subr.bf16.mxu1 %v21100_v31  ;;  %v21113_v31 = vld [vmem:[#allocation7 + $0x2d58] ss:$84 sps:$4 sm:$0xff]  }
 0x2e3   :  { %v12431_v11 = vadd.f32 %v12430_v49, %v12378_v22  ;;  %v21124_v49 = vld [vmem:[#allocation7 + $0x3494] ss:$84 sps:$4 sm:$0xff]  }
 0x2e4   :  { %12784 = vmatpush2.bf16.msra.mxu0 %v21095_v36 }
 0x2e5   :  { %12837 = vmatpush2.bf16.msra.mxu1 %v21098_v52  ;;  %12859 = vmatprep.subr.bf16.mxu0 %v21103_v13  ;;  %v21116_v52 = vld [vmem:[#allocation7 + $0x3538] ss:$84 sps:$4 sm:$0xff]   ;;  %v21121_v13 = vld [vmem:[#allocation7 + $0x2cb4] ss:$84 sps:$4 sm:$0xff]  }
 0x2e6   :  { %12920 = vmatprep.subr.bf16.mxu1 %v21106_v2  ;;  %v21127_v2 = vld [vmem:[#allocation7 + $0x2c0c] ss:$84 sps:$4 sm:$0xff]  }
 0x2e7   :  { %v12469_v38 = vpop.f32.mrf.mxu1  ;;  %12786 = vmatmul.mubr.bf16.vlgmr.msra.gmra.mxu0 %v23922_v53 }
 0x2e8   :  { %v24094_v40 = vadd.f32 %v12469_v38, %v12417_v39  ;;  %12839 = vmatmul.mubr.bf16.vlgmr.msra.gmra.mxu1 %v23913_v15  ;;  %12795 = vmatprep.mubr.bf16.mxu0 %v23926_v47 }
 0x2e9   :  { %12848 = vmatprep.mubr.bf16.mxu1 %v23928_v6  ;;  %12860 = vmatpush1.bf16.msra.mxu0 %v21101_v37  ;;  %v12471_v16 = vpop.f32.mrf.mxu1 }
 0x2ea   :  { %12921 = vmatpush1.bf16.msra.mxu1 %v21104_v44  ;;  %v24099_v14 = vadd.f32 %v12471_v16, %v12419_v4  ;;  %12861 = vmatprep.subr.bf16.mxu0 %v21109_v61  ;;  %v21119_v4 = vld [vmem:[#allocation7 + $0x2cb0] ss:$84 sps:$4 sm:$0xff]   ;;  %v25462_v44 = vmov 0  }
 0x2eb   :  { %v12473_v36 = vpop.f32.mrf.mxu1  ;;  %12922 = vmatprep.subr.bf16.mxu1 %v21112_v24  ;;  %v21125_v24 = vld [vmem:[#allocation7 + $0x2c08] ss:$84 sps:$4 sm:$0xff]   ;;  %v21133_v16 = vld [vmem:[#allocation7 + $0x2b64] ss:$84 sps:$4 sm:$0xff]  }
 0x2ec   :  { %v24101_v39 = vadd.f32 %v12473_v36, %v12421_v0  ;;  %v21122_v0 = vld [vmem:[#allocation7 + $0x3490] ss:$84 sps:$4 sm:$0xff]   ;;  %v21136_v36 = vld [vmem:[#allocation7 + $0x40c] ss:$84 sps:$4 sm:$0xff]  }
 0x2ed   :  { %12862 = vmatpush1.bf16.msra.mxu0 %v21107_v42  ;;  %v24103_v18 = vpop.f32.mrf.mxu1 }
 0x2ee   :  { %25461 = vst [vmem:[#allocation42_spill] sm:$0xff] %v24103_v18  ;;  %12923 = vmatpush1.bf16.msra.mxu1 %v21110_v62  ;;  %12863 = vmatprep.subr.bf16.mxu0 %v21115_v35  ;;  %v21130_v62 = vld [vmem:[#allocation7 + $0x4b4] ss:$84 sps:$4 sm:$0xff]   ;;  %v21128_v35 = vld [vmem:[#allocation7 + $0x4b0] ss:$84 sps:$4 sm:$0xff]  }
 0x2ef   :  { %v12479_v22 = vpop.f32.mrf.mxu1  ;;  %12796 = vmatmul.mubr.bf16.gmra.mxu0 %v23936_v5  ;;  %12924 = vmatprep.subr.bf16.mxu1 %v21118_v19  ;;  %v21139_v19 = vld [vmem:[#allocation7 + $0x2abc] ss:$84 sps:$4 sm:$0xff]   ;;  %v21212_v18 = vld [vmem:[#allocation7 + $0xde0] ss:$84 sps:$4 sm:$0xff]  }
 0x2f0   :  { %v24106_v61 = vadd.f32 %v12479_v22, %v12427_v55  ;;  %12849 = vmatmul.mubr.bf16.gmra.mxu1 %v23938_v10  ;;  %12891 = vmatprep.mubr.bf16.mxu0 %v23940_v23  ;;  %v21145_v22 = vld [vmem:[#allocation7 + $0x2a14] ss:$84 sps:$4 sm:$0xff]  }
 0x2f1   :  { %12864 = vmatpush1.bf16.msra.mxu0 %v21113_v31  ;;  %v12481_v37 = vpop.f32.mrf.mxu1  ;;  %12944 = vmatprep.mubr.bf16.mxu1 %v25462_v44  ;;  %v21131_v31 = vld [vmem:[#allocation7 + $0x2b60] ss:$84 sps:$4 sm:$0xff]  }
 0x2f2   :  { %12925 = vmatpush1.bf16.msra.mxu1 %v21116_v52  ;;  %v24111_v38 = vadd.f32 %v12481_v37, %v12429_v34  ;;  %12865 = vmatprep.subr.bf16.mxu0 %v21121_v13  ;;  %v21134_v34 = vld [vmem:[#allocation7 + $0x408] ss:$84 sps:$4 sm:$0xff]   ;;  %v21142_v52 = vld [vmem:[#allocation7 + $0x364] ss:$84 sps:$4 sm:$0xff]   ;;  %v21140_v13 = vld [vmem:[#allocation7 + $0x360] ss:$84 sps:$4 sm:$0xff]  }
 0x2f3   :  { %v12483_v42 = vpop.f32.mrf.mxu1  ;;  %12926 = vmatprep.subr.bf16.mxu1 %v21124_v49  ;;  %v21143_v49 = vld [vmem:[#allocation7 + $0x2a10] ss:$84 sps:$4 sm:$0xff]   ;;  %v21149_v37 = vld [vmem:[#allocation7 + $0x33e8] ss:$84 sps:$4 sm:$0xff]  }
 0x2f4   :  { %v24113_v55 = vadd.f32 %v12483_v42, %v12431_v11  ;;  %v21137_v11 = vld [vmem:[#allocation7 + $0x2ab8] ss:$84 sps:$4 sm:$0xff]   ;;  %v21154_v42 = vld [vmem:[#allocation7 + $0x214] ss:$84 sps:$4 sm:$0xff]  }
 0x2f5   :  { %12866 = vmatpush1.bf16.msra.mxu0 %v21119_v4  ;;  %v21148_v4 = vld [vmem:[#allocation7 + $0x2bc] ss:$84 sps:$4 sm:$0xff]  }
 0x2f6   :  { %12927 = vmatpush1.bf16.msra.mxu1 %v21122_v0  ;;  %12867 = vmatprep.subr.bf16.mxu0 %v21127_v2  ;;  %v21146_v0 = vld [vmem:[#allocation7 + $0x2b8] ss:$84 sps:$4 sm:$0xff]  }
 0x2f7   :  { %12965 = vmatprep.subr.bf16.mxu1 %v21130_v62  ;;  %v21151_v2 = vld [vmem:[#allocation7 + $0x33ec] ss:$84 sps:$4 sm:$0xff]   ;;  %v21157_v62 = vld [vmem:[#allocation7 + $0x3344] ss:$84 sps:$4 sm:$0xff]  }
 0x2f9   :  { %19536 = vmatmul.mubr.msk.bf16.vlgmr.msra.gmra.mxu1 %vm12004_vm8, %v23947_v41  ;;  %12868 = vmatpush1.bf16.msra.mxu0 %v21125_v24  ;;  %v21152_v24 = vld [vmem:[#allocation7 + $0x210] ss:$84 sps:$4 sm:$0xff]  }
 0x2fa   :  { %12966 = vmatpush1.bf16.msra.mxu1 %v21128_v35  ;;  %12869 = vmatprep.subr.bf16.mxu0 %v21133_v16  ;;  %v21155_v35 = vld [vmem:[#allocation7 + $0x3340] ss:$84 sps:$4 sm:$0xff]  }
 0x2fb   :  { %12967 = vmatprep.subr.bf16.mxu1 %v21136_v36  ;;  %12954 = vmatprep.mubr.bf16.mxu1 %v25462_v44  ;;  %v21160_v16 = vld [vmem:[#allocation7 + $0x16c] ss:$84 sps:$4 sm:$0xff]   ;;  %v21158_v36 = vld [vmem:[#allocation7 + $0x168] ss:$84 sps:$4 sm:$0xff]  }
 0x2fd   :  { %12870 = vmatpush1.bf16.msra.mxu0 %v21131_v31  ;;  %v21163_v31 = vld [vmem:[#allocation7 + $0x329c] ss:$84 sps:$4 sm:$0xff]  }
 0x2fe   :  { %12968 = vmatpush1.bf16.msra.mxu1 %v21134_v34  ;;  %12871 = vmatprep.subr.bf16.mxu0 %v21139_v19  ;;  %v21161_v34 = vld [vmem:[#allocation7 + $0x3298] ss:$84 sps:$4 sm:$0xff]  }
 0x2ff   :  { %12969 = vmatprep.subr.bf16.mxu1 %v21142_v52  ;;  %v21166_v19 = vld [vmem:[#allocation7 + $0xc4] ss:$84 sps:$4 sm:$0xff]   ;;  %v21169_v52 = vld [vmem:[#allocation7 + $0x31f4] ss:$84 sps:$4 sm:$0xff]  }
 0x301   :  { %19537 = vmatmul.mubr.msk.bf16.gmra.mxu1 %vm12004_vm8, %v23952_v59  ;;  %12872 = vmatpush1.bf16.msra.mxu0 %v21137_v11  ;;  %v21164_v11 = vld [vmem:[#allocation7 + $0xc0] ss:$84 sps:$4 sm:$0xff]  }
 0x302   :  { %12970 = vmatpush1.bf16.msra.mxu1 %v21140_v13  ;;  %12997 = vmatprep.mubr.bf16.mxu1 %v23825_v25  ;;  %v21167_v13 = vld [vmem:[#allocation7 + $0x31f0] ss:$84 sps:$4 sm:$0xff]  }
 0x303   :  { %12873 = vmatprep.subr.bf16.mxu0 %v21145_v22  ;;  %12971 = vmatprep.subr.bf16.mxu1 %v21148_v4  ;;  %v21172_v22 = vld [vmem:[#allocation7 + $0x1c] ss:$84 sps:$4 sm:$0xff]   ;;  %v21170_v4 = vld [vmem:[#allocation7 + $0x18] ss:$84 sps:$4 sm:$0xff]  }
 0x305   :  { %12874 = vmatpush1.bf16.msra.mxu0 %v21143_v49  ;;  %v21175_v49 = vld [vmem:[#allocation7 + $0x314c] ss:$84 sps:$4 sm:$0xff]  }
 0x306   :  { %12972 = vmatpush1.bf16.msra.mxu1 %v21146_v0  ;;  %12875 = vmatprep.subr.bf16.mxu0 %v21151_v2  ;;  %v21173_v0 = vld [vmem:[#allocation7 + $0x3148] ss:$84 sps:$4 sm:$0xff]  }
 0x307   :  { %12973 = vmatprep.subr.bf16.mxu1 %v21154_v42  ;;  %v21178_v2 = vld [vmem:[#allocation7 + $0x9f4] ss:$84 sps:$4 sm:$0xff]  }
 0x309   :  { %12876 = vmatpush2.bf16.msra.mxu0 %v21149_v37  ;;  %v24121_v37 = vpop.f32.mrf.mxu0 }
 0x30a   :  { %12974 = vmatpush1.bf16.msra.mxu1 %v21152_v24  ;;  %12877 = vmatprep.subr.bf16.mxu0 %v21157_v62  ;;  %25463 = vst [vmem:[#allocation43_spill] sm:$0xff] %v24121_v37  ;;  %v21176_v24 = vld [vmem:[#allocation7 + $0x9f0] ss:$84 sps:$4 sm:$0xff]   ;;  %v24137_v37 = vpop.f32.mrf.mxu1 }
 0x30b   :  { %12975 = vmatprep.subr.bf16.mxu1 %v21160_v16  ;;  %v21181_v62 = vld [vmem:[#allocation7 + $0x30a4] ss:$84 sps:$4 sm:$0xff]   ;;  %v21179_v16 = vld [vmem:[#allocation7 + $0x30a0] ss:$84 sps:$4 sm:$0xff]   ;;  %25466 = vst [vmem:[#allocation46_spill] sm:$0xff] %v24137_v37 }
 0x30d   :  { %12878 = vmatpush2.bf16.msra.mxu0 %v21155_v35 }
 0x30e   :  { %12976 = vmatpush1.bf16.msra.mxu1 %v21158_v36  ;;  %12879 = vmatprep.subr.bf16.mxu0 %v21163_v31  ;;  %v21184_v36 = vld [vmem:[#allocation7 + $0x94c] ss:$84 sps:$4 sm:$0xff]  }
 0x30f   :  { %12977 = vmatprep.subr.bf16.mxu1 %v21166_v19 }
 0x311   :  { %12880 = vmatpush2.bf16.msra.mxu0 %v21161_v34 }
 0x312   :  { %12978 = vmatpush1.bf16.msra.mxu1 %v21164_v11  ;;  %12881 = vmatprep.subr.bf16.mxu0 %v21169_v52  ;;  %v21182_v11 = vld [vmem:[#allocation7 + $0x948] ss:$84 sps:$4 sm:$0xff]  }
 0x313   :  { %12979 = vmatprep.subr.bf16.mxu1 %v21172_v22  ;;  %v21187_v52 = vld [vmem:[#allocation7 + $0x2ffc] ss:$84 sps:$4 sm:$0xff]   ;;  %v21185_v22 = vld [vmem:[#allocation7 + $0x2ff8] ss:$84 sps:$4 sm:$0xff]  }
 0x315   :  { %12882 = vmatpush2.bf16.msra.mxu0 %v21167_v13 }
 0x316   :  { %12980 = vmatpush1.bf16.msra.mxu1 %v21170_v4  ;;  %v12522_v42 = vpop.f32.mrf.mxu0  ;;  %12883 = vmatprep.subr.bf16.mxu0 %v21175_v49  ;;  %v21190_v4 = vld [vmem:[#allocation7 + $0x8a4] ss:$84 sps:$4 sm:$0xff]  }
 0x317   :  { %v12523_v35 = vadd.f32 %v12522_v42, %v24094_v40  ;;  %12981 = vmatprep.subr.bf16.mxu1 %v21178_v2  ;;  %v21188_v2 = vld [vmem:[#allocation7 + $0x8a0] ss:$84 sps:$4 sm:$0xff]   ;;  %v21191_v42 = vld [vmem:[#allocation7 + $0x2f50] ss:$84 sps:$4 sm:$0xff]  }
 0x318   :  { %v12524_v31 = vpop.f32.mrf.mxu0 }
 0x319   :  { %12884 = vmatpush2.bf16.msra.mxu0 %v21173_v0  ;;  %v12525_v34 = vadd.f32 %v12524_v31, %v24099_v14  ;;  %v21193_v0 = vld [vmem:[#allocation7 + $0x2f54] ss:$84 sps:$4 sm:$0xff]   ;;  %v21194_v31 = vld [vmem:[#allocation7 + $0x7f8] ss:$84 sps:$4 sm:$0xff]  }
 0x31a   :  { %12982 = vmatpush2.bf16.msra.mxu1 %v21176_v24  ;;  %v12526_v19 = vpop.f32.mrf.mxu0  ;;  %12885 = vmatprep.subr.bf16.mxu0 %v21181_v62  ;;  %v21196_v24 = vld [vmem:[#allocation7 + $0x7fc] ss:$84 sps:$4 sm:$0xff]  }
 0x31b   :  { %v12527_v13 = vadd.f32 %v12526_v19, %v24101_v39  ;;  %12983 = vmatprep.subr.bf16.mxu1 %v21184_v36  ;;  %v21202_v19 = vld [vmem:[#allocation7 + $0xf34] ss:$84 sps:$4 sm:$0xff]  }
 0x31c   :  { %v24126_v49 = vpop.f32.mrf.mxu0 }
 0x31d   :  { %25464 = vst [vmem:[#allocation44_spill] sm:$0xff] %v24126_v49  ;;  %12886 = vmatpush2.bf16.msra.mxu0 %v21179_v16  ;;  %v21199_v16 = vld [vmem:[#allocation7 + $0x754] ss:$84 sps:$4 sm:$0xff]  }
 0x31e   :  { %12984 = vmatpush2.bf16.msra.mxu1 %v21182_v11  ;;  %v12532_v40 = vpop.f32.mrf.mxu0  ;;  %12887 = vmatprep.subr.bf16.mxu0 %v21187_v52  ;;  %v21200_v52 = vld [vmem:[#allocation7 + $0xf30] ss:$84 sps:$4 sm:$0xff]   ;;  %v21209_v49 = vld [vmem:[#allocation7 + $0x600] ss:$84 sps:$4 sm:$0xff]  }
 0x31f   :  { %v12533_v14 = vadd.f32 %v12532_v40, %v24106_v61  ;;  %12985 = vmatprep.subr.bf16.mxu1 %v21190_v4  ;;  %v21197_v4 = vld [vmem:[#allocation7 + $0x750] ss:$84 sps:$4 sm:$0xff]   ;;  %v21208_v40 = vld [vmem:[#allocation7 + $0xe8c] ss:$84 sps:$4 sm:$0xff]  }
 0x320   :  { %v12534_v62 = vpop.f32.mrf.mxu0 }
 0x321   :  { %12888 = vmatpush2.bf16.msra.mxu0 %v21185_v22  ;;  %v24130_v39 = vadd.f32 %v12534_v62, %v24111_v38  ;;  %v21203_v62 = vld [vmem:[#allocation7 + $0x6a8] ss:$84 sps:$4 sm:$0xff]  }
 0x322   :  { %12986 = vmatpush2.bf16.msra.mxu1 %v21188_v2  ;;  %v12536_v36 = vpop.f32.mrf.mxu0  ;;  %12889 = vmatprep.subr.bf16.mxu0 %v21193_v0  ;;  %v21205_v2 = vld [vmem:[#allocation7 + $0x6ac] ss:$84 sps:$4 sm:$0xff]  }
 0x323   :  { %v24133_v11 = vadd.f32 %v12536_v36, %v24113_v55  ;;  %12987 = vmatprep.subr.bf16.mxu1 %v21196_v24  ;;  %v21206_v24 = vld [vmem:[#allocation7 + $0xe88] ss:$84 sps:$4 sm:$0xff]   ;;  %v21214_v36 = vld [vmem:[#allocation7 + $0xde4] ss:$84 sps:$4 sm:$0xff]  }
 0x324   :  { %v24135_v61 = vpop.f32.mrf.mxu0 }
 0x325   :  { %25465 = vst [vmem:[#allocation45_spill] sm:$0xff] %v24135_v61  ;;  %12890 = vmatpush2.bf16.msra.mxu0 %v21191_v42 }
 0x326   :  { %12988 = vmatpush2.bf16.msra.mxu1 %v21194_v31  ;;  %v12628_v38 = vpop.f32.mrf.mxu0  ;;  %13018 = vmatprep.subr.bf16.mxu0 %v21202_v19 }
 0x327   :  { %v12575_v22 = vpop.f32.mrf.mxu1  ;;  %12989 = vmatprep.subr.bf16.mxu1 %v21199_v16  ;;  %v21211_v16 = vld [vmem:[#allocation7 + $0x604] ss:$84 sps:$4 sm:$0xff]  }
 0x328   :  { %v12576_v0 = vadd.f32 %v12575_v22, %v12523_v35  ;;  %12892 = vmatmul.mubr.bf16.vlgmr.msra.gmra.mxu0 %v23963_v3  ;;  %v12630_v55 = vpop.f32.mrf.mxu0 }
 0x329   :  { %12901 = vmatprep.mubr.bf16.mxu0 %v23965_v12  ;;  %13019 = vmatpush1.bf16.msra.mxu0 %v21200_v52  ;;  %v12577_v61 = vpop.f32.mrf.mxu1 }
 0x32a   :  { %v12629_v21 = vadd.f32 %v12628_v38, %v12576_v0  ;;  %12990 = vmatpush2.bf16.msra.mxu1 %v21197_v4  ;;  %v12578_v42 = vadd.f32 %v12577_v61, %v12525_v34  ;;  %v12632_v31 = vpop.f32.mrf.mxu0  ;;  %13020 = vmatprep.subr.bf16.mxu0 %v21208_v40  ;;  %v21217_v61 = vld [vmem:[#allocation7 + $0x55c] ss:$84 sps:$4 sm:$0xff]   ;;  %v21218_v40 = vld [vmem:[#allocation7 + $0xd38] ss:$84 sps:$4 sm:$0xff]  }
 0x32b   :  { %v12579_v19 = vpop.f32.mrf.mxu1  ;;  %12991 = vmatprep.subr.bf16.mxu1 %v21205_v2 }
 0x32c   :  { %v24141_v37 = vadd.f32 %v12630_v55, %v12578_v42  ;;  %v12580_v35 = vadd.f32 %v12579_v19, %v12527_v13  ;;  %v24143_v22 = vpop.f32.mrf.mxu0  ;;  %v15487_v38 = vmax.f32 %v12629_v21, 0.0  ;;  %v21215_v13 = vld [vmem:[#allocation7 + $0x558] ss:$84 sps:$4 sm:$0xff]   ;;  %v21223_v55 = vld [vmem:[#allocation7 + $0xc94] ss:$84 sps:$4 sm:$0xff]  }
 0x32d   :  { %25468 = vst [vmem:[#allocation48_spill] sm:$0xff] %v24143_v22  ;;  %13021 = vmatpush1.bf16.msra.mxu0 %v21206_v24  ;;  %v24145_v7 = vpop.f32.mrf.mxu1  ;;  %v21226_v21 = vld [vmem:[#allocation7 + $0x19b4] ss:$84 sps:$4 sm:$0xff]  }
 0x32e   :  { %25467 = vst [vmem:[#allocation47_spill] sm:$0xff] %v24141_v37  ;;  %v12633_v52 = vadd.f32 %v12632_v31, %v12580_v35  ;;  %12992 = vmatpush2.bf16.msra.mxu1 %v21203_v62  ;;  %v12638_v4 = vpop.f32.mrf.mxu0  ;;  %13022 = vmatprep.subr.bf16.mxu0 %v21214_v36  ;;  %v21221_v35 = vld [vmem:[#allocation7 + $0xc90] ss:$84 sps:$4 sm:$0xff]  }
 0x32f   :  { %v12585_v34 = vpop.f32.mrf.mxu1  ;;  %12993 = vmatprep.subr.bf16.mxu1 %v21211_v16  ;;  %v21317_v37 = vld [vmem:[#allocation7 + $0x2190] ss:$84 sps:$4 sm:$0xff]  }
 0x330   :  { %v15508_v2 = vmax.f32 %v12633_v52, 0.0  ;;  %v12586_v0 = vadd.f32 %v12585_v34, %v12533_v14  ;;  %12902 = vmatmul.mubr.bf16.gmra.mxu0 %v23969_v58  ;;  %v12640_v42 = vpop.f32.mrf.mxu0 }
 0x331   :  { %13023 = vmatpush1.bf16.msra.mxu0 %v21212_v18  ;;  %13050 = vmatprep.mubr.bf16.mxu0 %v23827_v26  ;;  %v12587_v24 = vpop.f32.mrf.mxu1  ;;  %v21224_v18 = vld [vmem:[#allocation7 + $0x19b0] ss:$84 sps:$4 sm:$0xff]  }
 0x332   :  { %v24149_v31 = vpack.c.bf16 %v15508_v2, %v15487_v38  ;;  %v12639_v62 = vadd.f32 %v12638_v4, %v12586_v0  ;;  %12994 = vmatpush2.bf16.msra.mxu1 %v21209_v49  ;;  %v12588_v36 = vadd.f32 %v12587_v24, %v24130_v39  ;;  %13024 = vmatprep.subr.bf16.mxu0 %v21220_v51  ;;  %v12642_v52 = vpop.f32.mrf.mxu0  ;;  %v21227_v4 = vld [vmem:[#allocation7 + $0xbe8] ss:$84 sps:$4 sm:$0xff]   ;;  %v21229_v49 = vld [vmem:[#allocation7 + $0xbec] ss:$84 sps:$4 sm:$0xff]  }
 0x333   :  { %v12589_v19 = vpop.f32.mrf.mxu1  ;;  %12995 = vmatprep.subr.bf16.mxu1 %v21217_v61  ;;  %v21232_v38 = vld [vmem:[#allocation7 + $0x190c] ss:$84 sps:$4 sm:$0xff]   ;;  %v21230_v2 = vld [vmem:[#allocation7 + $0x1908] ss:$84 sps:$4 sm:$0xff]   ;;  %v21235_v61 = vld [vmem:[#allocation7 + $0xb44] ss:$84 sps:$4 sm:$0xff]  }
 0x334   :  { %25469 = vst [vmem:[#allocation49_spill] sm:$0xff] %v24149_v31  ;;  %v24152_v14 = vadd.f32 %v12640_v42, %v12588_v36  ;;  %v12590_v16 = vadd.f32 %v12589_v19, %v24133_v11  ;;  %v15529_v39 = vmax.f32 %v12639_v62, 0.0  ;;  %v21238_v11 = vld [vmem:[#allocation7 + $0x1864] ss:$84 sps:$4 sm:$0xff]   ;;  %v21241_v24 = vld [vmem:[#allocation7 + $0xa9c] ss:$84 sps:$4 sm:$0xff]  }
 0x335   :  { %13025 = vmatpush1.bf16.msra.mxu0 %v21218_v40  ;;  %v21233_v40 = vld [vmem:[#allocation7 + $0xb40] ss:$84 sps:$4 sm:$0xff]   ;;  %v21244_v42 = vld [vmem:[#allocation7 + $0x17bc] ss:$84 sps:$4 sm:$0xff]   ;;  %v21242_v62 = vld [vmem:[#allocation7 + $0x17b8] ss:$84 sps:$4 sm:$0xff]  }
 0x336   :  { %25470 = vst [vmem:[#allocation50_spill] sm:$0xff] %v24152_v14  ;;  %v12643_v34 = vadd.f32 %v12642_v52, %v12590_v16  ;;  %12996 = vmatpush2.bf16.msra.mxu1 %v21215_v13  ;;  %13026 = vmatprep.subr.bf16.mxu0 %v21223_v55  ;;  %v21236_v13 = vld [vmem:[#allocation7 + $0x1860] ss:$84 sps:$4 sm:$0xff]   ;;  %v21239_v55 = vld [vmem:[#allocation7 + $0xa98] ss:$84 sps:$4 sm:$0xff]  }
 0x337   :  { %13071 = vmatprep.subr.bf16.mxu1 %v21226_v21  ;;  %v21247_v36 = vld [vmem:[#allocation7 + $0x1474] ss:$84 sps:$4 sm:$0xff]   ;;  %v21245_v21 = vld [vmem:[#allocation7 + $0x1470] ss:$84 sps:$4 sm:$0xff]  }
 0x338   :  { %v15550_v51 = vmax.f32 %v12643_v34, 0.0  ;;  %v21250_v19 = vld [vmem:[#allocation7 + $0x1714] ss:$84 sps:$4 sm:$0xff]   ;;  %v21248_v16 = vld [vmem:[#allocation7 + $0x1710] ss:$84 sps:$4 sm:$0xff]  }
 0x339   :  { %12998 = vmatmul.mubr.bf16.vlgmr.msra.gmra.mxu1 %v23830_v29  ;;  %13027 = vmatpush1.bf16.msra.mxu0 %v21221_v35  ;;  %v21253_v35 = vld [vmem:[#allocation7 + $0x13cc] ss:$84 sps:$4 sm:$0xff]   ;;  %v21251_v52 = vld [vmem:[#allocation7 + $0x13c8] ss:$84 sps:$4 sm:$0xff]  }
 0x33a   :  { %v24156_v0 = vpack.c.bf16 %v15550_v51, %v15529_v39  ;;  %13007 = vmatprep.mubr.bf16.mxu1 %v23841_v54  ;;  %13072 = vmatpush1.bf16.msra.mxu1 %v21224_v18  ;;  %v21256_v18 = vld [vmem:[#allocation7 + $0x166c] ss:$84 sps:$4 sm:$0xff]   ;;  %v21254_v34 = vld [vmem:[#allocation7 + $0x1668] ss:$84 sps:$4 sm:$0xff]  }
 0x33b   :  { %13028 = vmatprep.subr.bf16.mxu0 %v21229_v49  ;;  %13073 = vmatprep.subr.bf16.mxu1 %v21232_v38  ;;  %v21257_v49 = vld [vmem:[#allocation7 + $0x1320] ss:$84 sps:$4 sm:$0xff]   ;;  %v21262_v38 = vld [vmem:[#allocation7 + $0x15c4] ss:$84 sps:$4 sm:$0xff]   ;;  %v21265_v51 = vld [vmem:[#allocation7 + $0x127c] ss:$84 sps:$4 sm:$0xff]  }
 0x33c   :  { %25471 = vst [vmem:[#allocation51_spill] sm:$0xff] %v24156_v0  ;;  %v21260_v39 = vld [vmem:[#allocation7 + $0x15c0] ss:$84 sps:$4 sm:$0xff]   ;;  %v21316_v14 = vld [vmem:[#allocation7 + $0x223c] ss:$84 sps:$4 sm:$0xff]  }
 0x33d   :  { %13029 = vmatpush1.bf16.msra.mxu0 %v21227_v4  ;;  %v21259_v4 = vld [vmem:[#allocation7 + $0x1324] ss:$84 sps:$4 sm:$0xff]  }
 0x33e   :  { %13074 = vmatpush1.bf16.msra.mxu1 %v21230_v2  ;;  %13030 = vmatprep.subr.bf16.mxu0 %v21235_v61  ;;  %v21263_v2 = vld [vmem:[#allocation7 + $0x1278] ss:$84 sps:$4 sm:$0xff]   ;;  %v21268_v61 = vld [vmem:[#allocation7 + $0x151c] ss:$84 sps:$4 sm:$0xff]  }
 0x33f   :  { %13075 = vmatprep.subr.bf16.mxu1 %v21238_v11  ;;  %v21266_v11 = vld [vmem:[#allocation7 + $0x1518] ss:$84 sps:$4 sm:$0xff]  }
 0x341   :  { %13008 = vmatmul.mubr.bf16.gmra.mxu1 %v23837_v63  ;;  %13031 = vmatpush1.bf16.msra.mxu0 %v21233_v40  ;;  %v21271_v40 = vld [vmem:[#allocation7 + $0x11d4] ss:$84 sps:$4 sm:$0xff]  }
 0x342   :  { %13076 = vmatpush1.bf16.msra.mxu1 %v21236_v13  ;;  %13103 = vmatprep.mubr.bf16.mxu1 %v23875_v56  ;;  %v21269_v13 = vld [vmem:[#allocation7 + $0x11d0] ss:$84 sps:$4 sm:$0xff]  }
 0x343   :  { %13032 = vmatprep.subr.bf16.mxu0 %v21241_v24  ;;  %13077 = vmatprep.subr.bf16.mxu1 %v21244_v42  ;;  %v21272_v24 = vld [vmem:[#allocation7 + $0x1ef0] ss:$84 sps:$4 sm:$0xff]   ;;  %v21277_v42 = vld [vmem:[#allocation7 + $0x112c] ss:$84 sps:$4 sm:$0xff]  }
 0x345   :  { %13033 = vmatpush1.bf16.msra.mxu0 %v21239_v55  ;;  %v21274_v55 = vld [vmem:[#allocation7 + $0x1ef4] ss:$84 sps:$4 sm:$0xff]  }
 0x346   :  { %13078 = vmatpush1.bf16.msra.mxu1 %v21242_v62  ;;  %13034 = vmatprep.subr.bf16.mxu0 %v21247_v36  ;;  %v21275_v62 = vld [vmem:[#allocation7 + $0x1128] ss:$84 sps:$4 sm:$0xff]   ;;  %v21280_v36 = vld [vmem:[#allocation7 + $0x1e4c] ss:$84 sps:$4 sm:$0xff]  }
 0x347   :  { %13079 = vmatprep.subr.bf16.mxu1 %v21250_v19  ;;  %v21278_v19 = vld [vmem:[#allocation7 + $0x1e48] ss:$84 sps:$4 sm:$0xff]  }
 0x349   :  { %13035 = vmatpush2.bf16.msra.mxu0 %v21245_v21  ;;  %v21283_v21 = vld [vmem:[#allocation7 + $0x1084] ss:$84 sps:$4 sm:$0xff]  }
 0x34a   :  { %13080 = vmatpush1.bf16.msra.mxu1 %v21248_v16  ;;  %13036 = vmatprep.subr.bf16.mxu0 %v21253_v35  ;;  %v21281_v16 = vld [vmem:[#allocation7 + $0x1080] ss:$84 sps:$4 sm:$0xff]   ;;  %v21286_v35 = vld [vmem:[#allocation7 + $0x1da4] ss:$84 sps:$4 sm:$0xff]  }
 0x34b   :  { %13081 = vmatprep.subr.bf16.mxu1 %v21256_v18  ;;  %v21284_v18 = vld [vmem:[#allocation7 + $0x1da0] ss:$84 sps:$4 sm:$0xff]  }
 0x34d   :  { %13037 = vmatpush2.bf16.msra.mxu0 %v21251_v52  ;;  %v21289_v52 = vld [vmem:[#allocation7 + $0xfdc] ss:$84 sps:$4 sm:$0xff]  }
 0x34e   :  { %13082 = vmatpush1.bf16.msra.mxu1 %v21254_v34  ;;  %13038 = vmatprep.subr.bf16.mxu0 %v21259_v4  ;;  %v21287_v34 = vld [vmem:[#allocation7 + $0xfd8] ss:$84 sps:$4 sm:$0xff]   ;;  %v21292_v4 = vld [vmem:[#allocation7 + $0x1cfc] ss:$84 sps:$4 sm:$0xff]  }
 0x34f   :  { %13083 = vmatprep.subr.bf16.mxu1 %v21262_v38  ;;  %v21295_v38 = vld [vmem:[#allocation7 + $0x1c54] ss:$84 sps:$4 sm:$0xff]  }
 0x351   :  { %13039 = vmatpush2.bf16.msra.mxu0 %v21257_v49  ;;  %v21290_v49 = vld [vmem:[#allocation7 + $0x1cf8] ss:$84 sps:$4 sm:$0xff]  }
 0x352   :  { %13084 = vmatpush1.bf16.msra.mxu1 %v21260_v39  ;;  %13040 = vmatprep.subr.bf16.mxu0 %v21265_v51  ;;  %v21298_v39 = vld [vmem:[#allocation7 + $0x2434] ss:$84 sps:$4 sm:$0xff]   ;;  %v23186_v51 = vld [vmem:[#allocation8] sm:$0xff] }
 0x353   :  { %13085 = vmatprep.subr.bf16.mxu1 %v21268_v61  ;;  %v21296_v61 = vld [vmem:[#allocation7 + $0x2430] ss:$84 sps:$4 sm:$0xff]  }
 0x355   :  { %13041 = vmatpush2.bf16.msra.mxu0 %v21263_v2  ;;  %v3014_v2 = vrot.slane %v23186_v51, %v23891_v27 }
 0x356   :  { %13086 = vmatpush1.bf16.msra.mxu1 %v21266_v11  ;;  %13042 = vmatprep.subr.bf16.mxu0 %v21271_v40  ;;  %v24162_v11 = vpop.f32.mrf.mxu0  ;;  %v21293_v40 = vld [vmem:[#allocation7 + $0x1c50] ss:$84 sps:$4 sm:$0xff]  }
 0x357   :  { %13087 = vmatprep.subr.bf16.mxu1 %v21274_v55  ;;  %25472 = vst [vmem:[#allocation52_spill] sm:$0xff] %v24162_v11  ;;  %v24164_v55 = vpop.f32.mrf.mxu1 }
 0x358   :  { %25473 = vst [vmem:[#allocation53_spill] sm:$0xff] %v24164_v55 }
 0x359   :  { %13043 = vmatpush2.bf16.msra.mxu0 %v21269_v13  ;;  %v21304_v13 = vld [vmem:[#allocation7 + $0x238c] ss:$84 sps:$4 sm:$0xff]  }
 0x35a   :  { %13088 = vmatpush2.bf16.msra.mxu1 %v21272_v24  ;;  %13044 = vmatprep.subr.bf16.mxu0 %v21277_v42  ;;  %v24167_v24 = vrot.slane %v23186_v51, %v23850_v8  ;;  %v21301_v42 = vld [vmem:[#allocation7 + $0x1bac] ss:$84 sps:$4 sm:$0xff]  }
 0x35b   :  { %13089 = vmatprep.subr.bf16.mxu1 %v21280_v36 }
 0x35c   :  { %25474 = vst [vmem:[#allocation54_spill] sm:$0xff] %v24167_v24 }
 0x35d   :  { %13045 = vmatpush2.bf16.msra.mxu0 %v21275_v62 }
 0x35e   :  { %13090 = vmatpush2.bf16.msra.mxu1 %v21278_v19  ;;  %13046 = vmatprep.subr.bf16.mxu0 %v21283_v21 }
 0x35f   :  { %13091 = vmatprep.subr.bf16.mxu1 %v21286_v35  ;;  %v21302_v35 = vld [vmem:[#allocation7 + $0x2388] ss:$84 sps:$4 sm:$0xff]  }
 0x361   :  { %13047 = vmatpush2.bf16.msra.mxu0 %v21281_v16  ;;  %v21299_v16 = vld [vmem:[#allocation7 + $0x1ba8] ss:$84 sps:$4 sm:$0xff]  }
 0x362   :  { %13092 = vmatpush2.bf16.msra.mxu1 %v21284_v18  ;;  %13048 = vmatprep.subr.bf16.mxu0 %v21289_v52 }
 0x363   :  { %13093 = vmatprep.subr.bf16.mxu1 %v21292_v4  ;;  %v21307_v4 = vld [vmem:[#allocation7 + $0x1b04] ss:$84 sps:$4 sm:$0xff]  }
 0x365   :  { %13049 = vmatpush2.bf16.msra.mxu0 %v21287_v34 }
 0x366   :  { %13094 = vmatpush2.bf16.msra.mxu1 %v21290_v49  ;;  %v12681_v62 = vpop.f32.mrf.mxu0  ;;  %13124 = vmatprep.subr.bf16.mxu0 %v21298_v39  ;;  %v21310_v49 = vld [vmem:[#allocation7 + $0x22e4] ss:$84 sps:$4 sm:$0xff]  }
 0x367   :  { %v12682_v36 = vadd.f32 %v12681_v62, %v3014_v2  ;;  %v12734_v19 = vpop.f32.mrf.mxu1  ;;  %13095 = vmatprep.subr.bf16.mxu1 %v21295_v38 }
 0x368   :  { %13051 = vmatmul.mubr.bf16.vlgmr.msra.gmra.mxu0 %v23823_v17  ;;  %v12683_v21 = vpop.f32.mrf.mxu0 }
 0x369   :  { %v24170_v18 = vadd.f32 %v12734_v19, %v12682_v36  ;;  %13060 = vmatprep.mubr.bf16.mxu0 %v23843_v57  ;;  %13125 = vmatpush1.bf16.msra.mxu0 %v21296_v61  ;;  %v12684_v52 = vadd.f32 %v12683_v21, %v24167_v24  ;;  %v12736_v34 = vpop.f32.mrf.mxu1  ;;  %v21305_v36 = vld [vmem:[#allocation7 + $0x1b00] ss:$84 sps:$4 sm:$0xff]   ;;  %v21313_v21 = vld [vmem:[#allocation7 + $0x1a5c] ss:$84 sps:$4 sm:$0xff]  }
 0x36a   :  { %13096 = vmatpush2.bf16.msra.mxu1 %v21293_v40  ;;  %v12685_v39 = vpop.f32.mrf.mxu0  ;;  %13126 = vmatprep.subr.bf16.mxu0 %v21304_v13  ;;  %v21308_v19 = vld [vmem:[#allocation7 + $0x22e0] ss:$84 sps:$4 sm:$0xff]  }
 0x36b   :  { %v24174_v51 = vadd.f32 %v12736_v34, %v12684_v52  ;;  %v12686_v38 = vadd.f32 %v12685_v39, %v3014_v2  ;;  %v12738_v62 = vpop.f32.mrf.mxu1  ;;  %13097 = vmatprep.subr.bf16.mxu1 %v21301_v42  ;;  %v21311_v34 = vld [vmem:[#allocation7 + $0x1a58] ss:$84 sps:$4 sm:$0xff]  }
 0x36c   :  { %v24176_v0 = vpop.f32.mrf.mxu0  ;;  %v21314_v39 = vld [vmem:[#allocation7 + $0x2238] ss:$84 sps:$4 sm:$0xff]  }
 0x36d   :  { %25475 = vst [vmem:[#allocation55_spill] sm:$0xff] %v24176_v0  ;;  %v24178_v31 = vadd.f32 %v12738_v62, %v12686_v38  ;;  %13127 = vmatpush1.bf16.msra.mxu0 %v21302_v35  ;;  %v24180_v61 = vpop.f32.mrf.mxu1  ;;  %v21319_v62 = vld [vmem:[#allocation7 + $0x2194] ss:$84 sps:$4 sm:$0xff]  }
 0x36e   :  { %25476 = vst [vmem:[#allocation56_spill] sm:$0xff] %v24180_v61  ;;  %13098 = vmatpush2.bf16.msra.mxu1 %v21299_v16  ;;  %v12691_v40 = vpop.f32.mrf.mxu0  ;;  %13128 = vmatprep.subr.bf16.mxu0 %v21310_v49  ;;  %v21322_v16 = vld [vmem:[#allocation7 + $0x2eb4] ss:$84 sps:$4 sm:$0xff]   ;;  %v21320_v61 = vld [vmem:[#allocation7 + $0x2eb0] ss:$84 sps:$4 sm:$0xff]  }
 0x36f   :  { %v12692_v13 = vadd.f32 %v12691_v40, %v3014_v2  ;;  %v12744_v52 = vpop.f32.mrf.mxu1  ;;  %13099 = vmatprep.subr.bf16.mxu1 %v21307_v4  ;;  %v21326_v0 = vld [vmem:[#allocation7 + $0x2e08] ss:$84 sps:$4 sm:$0xff]  }
 0x370   :  { %13061 = vmatmul.mubr.bf16.gmra.mxu0 %v23839_v1  ;;  %v12693_v42 = vpop.f32.mrf.mxu0 }
 0x371   :  { %v24183_v11 = vadd.f32 %v12744_v52, %v12692_v13  ;;  %13129 = vmatpush1.bf16.msra.mxu0 %v21308_v19  ;;  %13156 = vmatprep.mubr.bf16.mxu0 %v23877_v43  ;;  %v12694_v35 = vadd.f32 %v12693_v42, %v24167_v24  ;;  %v12746_v38 = vpop.f32.mrf.mxu1  ;;  %v21325_v19 = vld [vmem:[#allocation7 + $0x20ec] ss:$84 sps:$4 sm:$0xff]   ;;  %v21323_v42 = vld [vmem:[#allocation7 + $0x20e8] ss:$84 sps:$4 sm:$0xff]  }
 0x372   :  { %13100 = vmatpush2.bf16.msra.mxu1 %v21305_v36  ;;  %v12695_v49 = vpop.f32.mrf.mxu0  ;;  %13130 = vmatprep.subr.bf16.mxu0 %v21316_v14  ;;  %v21328_v52 = vld [vmem:[#allocation7 + $0x2e0c] ss:$84 sps:$4 sm:$0xff]   ;;  %v21331_v14 = vld [vmem:[#allocation7 + $0x2044] ss:$84 sps:$4 sm:$0xff]   ;;  %v21409_v24 = vld [vmem:[#allocation7 + $0x2f5c] ss:$84 sps:$4 sm:$0xff]  }
 0x373   :  { %v24187_v40 = vadd.f32 %v12746_v38, %v12694_v35  ;;  %v12696_v4 = vadd.f32 %v12695_v49, %v3014_v2  ;;  %13101 = vmatprep.subr.bf16.mxu1 %v21313_v21  ;;  %v12748_v55 = vpop.f32.mrf.mxu1  ;;  %v21334_v36 = vld [vmem:[#allocation7 + $0x2d64] ss:$84 sps:$4 sm:$0xff]   ;;  %v21329_v2 = vld [vmem:[#allocation7 + $0x2040] ss:$84 sps:$4 sm:$0xff]   ;;  %v21337_v21 = vld [vmem:[#allocation7 + $0x1f9c] ss:$84 sps:$4 sm:$0xff]  }
 0x374   :  { %v21338_v35 = vld [vmem:[#allocation7 + $0x2cb8] ss:$84 sps:$4 sm:$0xff]   ;;  %v21346_v38 = vld [vmem:[#allocation7 + $0x2c14] ss:$84 sps:$4 sm:$0xff]  }
 0x375   :  { %v24189_v13 = vadd.f32 %v12748_v55, %v12696_v4  ;;  %13131 = vmatpush1.bf16.msra.mxu0 %v21314_v39  ;;  %v21332_v55 = vld [vmem:[#allocation7 + $0x2d60] ss:$84 sps:$4 sm:$0xff]   ;;  %v21340_v39 = vld [vmem:[#allocation7 + $0x2cbc] ss:$84 sps:$4 sm:$0xff]  }
 0x376   :  { %13102 = vmatpush2.bf16.msra.mxu1 %v21311_v34  ;;  %13132 = vmatprep.subr.bf16.mxu0 %v21319_v62  ;;  %v21335_v34 = vld [vmem:[#allocation7 + $0x1f98] ss:$84 sps:$4 sm:$0xff]   ;;  %v21344_v62 = vld [vmem:[#allocation7 + $0x2c10] ss:$84 sps:$4 sm:$0xff]   ;;  %v21350_v4 = vld [vmem:[#allocation7 + $0x2b68] ss:$84 sps:$4 sm:$0xff]  }
 0x377   :  { %13177 = vmatprep.subr.bf16.mxu1 %v21322_v16  ;;  %v21349_v16 = vld [vmem:[#allocation7 + $0x28cc] ss:$84 sps:$4 sm:$0xff]  }
 0x378   :  { %v21352_v49 = vld [vmem:[#allocation7 + $0x2b6c] ss:$84 sps:$4 sm:$0xff]  }
 0x379   :  { %13104 = vmatmul.mubr.bf16.vlgmr.msra.gmra.mxu1 %v23922_v53  ;;  %13133 = vmatpush1.bf16.msra.mxu0 %v21317_v37  ;;  %v21343_v37 = vld [vmem:[#allocation7 + $0x2974] ss:$84 sps:$4 sm:$0xff]  }
 0x37a   :  { %13113 = vmatprep.mubr.bf16.mxu1 %v23926_v47  ;;  %13178 = vmatpush1.bf16.msra.mxu1 %v21320_v61  ;;  %v21341_v61 = vld [vmem:[#allocation7 + $0x2970] ss:$84 sps:$4 sm:$0xff]  }
 0x37b   :  { %13134 = vmatprep.subr.bf16.mxu0 %v21325_v19  ;;  %13179 = vmatprep.subr.bf16.mxu1 %v21328_v52  ;;  %v21355_v19 = vld [vmem:[#allocation7 + $0x2824] ss:$84 sps:$4 sm:$0xff]   ;;  %v21353_v52 = vld [vmem:[#allocation7 + $0x2820] ss:$84 sps:$4 sm:$0xff]  }
 0x37d   :  { %13135 = vmatpush1.bf16.msra.mxu0 %v21323_v42  ;;  %v21358_v42 = vld [vmem:[#allocation7 + $0x2ac4] ss:$84 sps:$4 sm:$0xff]  }
 0x37e   :  { %13180 = vmatpush1.bf16.msra.mxu1 %v21326_v0  ;;  %13136 = vmatprep.subr.bf16.mxu0 %v21331_v14  ;;  %v21347_v0 = vld [vmem:[#allocation7 + $0x28c8] ss:$84 sps:$4 sm:$0xff]   ;;  %v21356_v14 = vld [vmem:[#allocation7 + $0x2ac0] ss:$84 sps:$4 sm:$0xff]  }
 0x37f   :  { %13181 = vmatprep.subr.bf16.mxu1 %v21334_v36  ;;  %v21361_v36 = vld [vmem:[#allocation7 + $0x277c] ss:$84 sps:$4 sm:$0xff]  }
 0x381   :  { %13114 = vmatmul.mubr.bf16.gmra.mxu1 %v23936_v5  ;;  %13137 = vmatpush1.bf16.msra.mxu0 %v21329_v2  ;;  %v21359_v2 = vld [vmem:[#allocation7 + $0x2778] ss:$84 sps:$4 sm:$0xff]  }
 0x382   :  { %13182 = vmatpush1.bf16.msra.mxu1 %v21332_v55  ;;  %13209 = vmatprep.mubr.bf16.mxu1 %v23940_v23  ;;  %v21364_v55 = vld [vmem:[#allocation7 + $0x2a1c] ss:$84 sps:$4 sm:$0xff]  }
 0x383   :  { %13138 = vmatprep.subr.bf16.mxu0 %v21337_v21  ;;  %13183 = vmatprep.subr.bf16.mxu1 %v21340_v39  ;;  %v21362_v21 = vld [vmem:[#allocation7 + $0x2a18] ss:$84 sps:$4 sm:$0xff]   ;;  %v21367_v39 = vld [vmem:[#allocation7 + $0x26d4] ss:$84 sps:$4 sm:$0xff]  }
 0x385   :  { %13139 = vmatpush1.bf16.msra.mxu0 %v21335_v34  ;;  %v21365_v34 = vld [vmem:[#allocation7 + $0x26d0] ss:$84 sps:$4 sm:$0xff]  }
 0x386   :  { %13184 = vmatpush1.bf16.msra.mxu1 %v21338_v35  ;;  %13140 = vmatprep.subr.bf16.mxu0 %v21343_v37  ;;  %v21370_v35 = vld [vmem:[#allocation7 + $0x33f4] ss:$84 sps:$4 sm:$0xff]   ;;  %v21368_v37 = vld [vmem:[#allocation7 + $0x33f0] ss:$84 sps:$4 sm:$0xff]  }
 0x387   :  { %13185 = vmatprep.subr.bf16.mxu1 %v21346_v38  ;;  %v21373_v38 = vld [vmem:[#allocation7 + $0x262c] ss:$84 sps:$4 sm:$0xff]  }
 0x389   :  { %13141 = vmatpush2.bf16.msra.mxu0 %v21341_v61  ;;  %v21371_v61 = vld [vmem:[#allocation7 + $0x2628] ss:$84 sps:$4 sm:$0xff]  }
 0x38a   :  { %13186 = vmatpush1.bf16.msra.mxu1 %v21344_v62  ;;  %13142 = vmatprep.subr.bf16.mxu0 %v21349_v16  ;;  %v21376_v62 = vld [vmem:[#allocation7 + $0x334c] ss:$84 sps:$4 sm:$0xff]   ;;  %v21374_v16 = vld [vmem:[#allocation7 + $0x3348] ss:$84 sps:$4 sm:$0xff]  }
 0x38b   :  { %13187 = vmatprep.subr.bf16.mxu1 %v21352_v49  ;;  %v21379_v49 = vld [vmem:[#allocation7 + $0x2584] ss:$84 sps:$4 sm:$0xff]  }
 0x38d   :  { %13143 = vmatpush2.bf16.msra.mxu0 %v21347_v0  ;;  %v21377_v0 = vld [vmem:[#allocation7 + $0x2580] ss:$84 sps:$4 sm:$0xff]  }
 0x38e   :  { %13188 = vmatpush1.bf16.msra.mxu1 %v21350_v4  ;;  %13144 = vmatprep.subr.bf16.mxu0 %v21355_v19  ;;  %v21382_v4 = vld [vmem:[#allocation7 + $0x32a4] ss:$84 sps:$4 sm:$0xff]   ;;  %v21380_v19 = vld [vmem:[#allocation7 + $0x32a0] ss:$84 sps:$4 sm:$0xff]  }
 0x38f   :  { %13189 = vmatprep.subr.bf16.mxu1 %v21358_v42  ;;  %v21383_v42 = vld [vmem:[#allocation7 + $0x24d8] ss:$84 sps:$4 sm:$0xff]  }
 0x391   :  { %13145 = vmatpush2.bf16.msra.mxu0 %v21353_v52  ;;  %v21385_v52 = vld [vmem:[#allocation7 + $0x24dc] ss:$84 sps:$4 sm:$0xff]  }
 0x392   :  { %13190 = vmatpush1.bf16.msra.mxu1 %v21356_v14  ;;  %13146 = vmatprep.subr.bf16.mxu0 %v21361_v36  ;;  %v21388_v14 = vld [vmem:[#allocation7 + $0x31fc] ss:$84 sps:$4 sm:$0xff]   ;;  %v21386_v36 = vld [vmem:[#allocation7 + $0x31f8] ss:$84 sps:$4 sm:$0xff]  }
 0x393   :  { %13191 = vmatprep.subr.bf16.mxu1 %v21364_v55  ;;  %v21391_v55 = vld [vmem:[#allocation7 + $0x3154] ss:$84 sps:$4 sm:$0xff]  }
 0x395   :  { %13147 = vmatpush2.bf16.msra.mxu0 %v21359_v2  ;;  %v21394_v2 = vld [vmem:[#allocation7 + $0x3694] ss:$84 sps:$4 sm:$0xff]  }
 0x396   :  { %13192 = vmatpush1.bf16.msra.mxu1 %v21362_v21  ;;  %13148 = vmatprep.subr.bf16.mxu0 %v21367_v39  ;;  %v21392_v21 = vld [vmem:[#allocation7 + $0x3690] ss:$84 sps:$4 sm:$0xff]  }
 0x397   :  { %13193 = vmatprep.subr.bf16.mxu1 %v21370_v35  ;;  %v21389_v39 = vld [vmem:[#allocation7 + $0x3150] ss:$84 sps:$4 sm:$0xff]   ;;  %v24195_v35 = vpop.f32.mrf.mxu0 }
 0x398   :  { %25477 = vst [vmem:[#allocation57_spill] sm:$0xff] %v24195_v35  ;;  %v21404_v35 = vld [vmem:[#allocation7 + $0x3540] ss:$84 sps:$4 sm:$0xff]  }
 0x399   :  { %13149 = vmatpush2.bf16.msra.mxu0 %v21365_v34  ;;  %v21400_v34 = vld [vmem:[#allocation7 + $0x35ec] ss:$84 sps:$4 sm:$0xff]  }
 0x39a   :  { %13194 = vmatpush2.bf16.msra.mxu1 %v21368_v37  ;;  %13150 = vmatprep.subr.bf16.mxu0 %v21373_v38  ;;  %v21397_v37 = vld [vmem:[#allocation7 + $0x30ac] ss:$84 sps:$4 sm:$0xff]   ;;  %v24197_v38 = vpop.f32.mrf.mxu1 }
 0x39b   :  { %13195 = vmatprep.subr.bf16.mxu1 %v21376_v62  ;;  %25478 = vst [vmem:[#allocation58_spill] sm:$0xff] %v24197_v38  ;;  %v21401_v38 = vld [vmem:[#allocation7 + $0x3000] ss:$84 sps:$4 sm:$0xff]  }
 0x39d   :  { %13151 = vmatpush2.bf16.msra.mxu0 %v21371_v61 }
 0x39e   :  { %13196 = vmatpush2.bf16.msra.mxu1 %v21374_v16  ;;  %13152 = vmatprep.subr.bf16.mxu0 %v21379_v49  ;;  %v21395_v49 = vld [vmem:[#allocation7 + $0x30a8] ss:$84 sps:$4 sm:$0xff]  }
 0x39f   :  { %13197 = vmatprep.subr.bf16.mxu1 %v21382_v4 }
 0x3a1   :  { %13153 = vmatpush2.bf16.msra.mxu0 %v21377_v0  ;;  %v21398_v0 = vld [vmem:[#allocation7 + $0x35e8] ss:$84 sps:$4 sm:$0xff]  }
 0x3a2   :  { %13198 = vmatpush2.bf16.msra.mxu1 %v21380_v19  ;;  %13154 = vmatprep.subr.bf16.mxu0 %v21385_v52  ;;  %v21403_v19 = vld [vmem:[#allocation7 + $0x3004] ss:$84 sps:$4 sm:$0xff]  }
 0x3a3   :  { %13199 = vmatprep.subr.bf16.mxu1 %v21388_v14  ;;  %v21406_v52 = vld [vmem:[#allocation7 + $0x3544] ss:$84 sps:$4 sm:$0xff]  }
 0x3a5   :  { %13155 = vmatpush2.bf16.msra.mxu0 %v21383_v42 }
 0x3a6   :  { %13200 = vmatpush2.bf16.msra.mxu1 %v21386_v36  ;;  %13238 = vmatprep.subr.bf16.mxu0 %v21394_v2 }
 0x3a7   :  { %v12787_v61 = vpop.f32.mrf.mxu0  ;;  %13201 = vmatprep.subr.bf16.mxu1 %v21391_v55 }
 0x3a8   :  { %v12788_v62 = vadd.f32 %v12787_v61, %v24170_v18  ;;  %v12840_v16 = vpop.f32.mrf.mxu1  ;;  %13157 = vmatmul.mubr.bf16.vlgmr.msra.gmra.mxu0 %v23913_v15 }
 0x3a9   :  { %13166 = vmatprep.mubr.bf16.mxu0 %v23928_v6  ;;  %13239 = vmatpush1.bf16.msra.mxu0 %v21392_v21  ;;  %v12789_v4 = vpop.f32.mrf.mxu0 }
 0x3aa   :  { %v24202_v42 = vadd.f32 %v12840_v16, %v12788_v62  ;;  %13202 = vmatpush2.bf16.msra.mxu1 %v21389_v39  ;;  %v12790_v14 = vadd.f32 %v12789_v4, %v24174_v51  ;;  %v12842_v36 = vpop.f32.mrf.mxu1  ;;  %13240 = vmatprep.subr.bf16.mxu0 %v21400_v34  ;;  %v21412_v62 = vld [vmem:[#allocation7 + $0x349c] ss:$84 sps:$4 sm:$0xff]   ;;  %v21410_v4 = vld [vmem:[#allocation7 + $0x3498] ss:$84 sps:$4 sm:$0xff]  }
 0x3ab   :  { %v12791_v2 = vpop.f32.mrf.mxu0  ;;  %13203 = vmatprep.subr.bf16.mxu1 %v21397_v37 }
 0x3ac   :  { %v24205_v18 = vadd.f32 %v12842_v36, %v12790_v14  ;;  %v12792_v55 = vadd.f32 %v12791_v2, %v24178_v31  ;;  %v12844_v61 = vpop.f32.mrf.mxu1  ;;  %v21407_v31 = vld [vmem:[#allocation7 + $0x2f58] ss:$84 sps:$4 sm:$0xff]   ;;  %v21415_v14 = vld [vmem:[#allocation7 + $0x4bc] ss:$84 sps:$4 sm:$0xff]  }
 0x3ad   :  { %13241 = vmatpush1.bf16.msra.mxu0 %v21398_v0  ;;  %v24208_v21 = vpop.f32.mrf.mxu0  ;;  %v21418_v36 = vld [vmem:[#allocation7 + $0xf3c] ss:$84 sps:$4 sm:$0xff]  }
 0x3ae   :  { %25479 = vst [vmem:[#allocation59_spill] sm:$0xff] %v24208_v21  ;;  %v24210_v16 = vadd.f32 %v12844_v61, %v12792_v55  ;;  %13204 = vmatpush2.bf16.msra.mxu1 %v21395_v49  ;;  %v24212_v51 = vpop.f32.mrf.mxu1  ;;  %13242 = vmatprep.subr.bf16.mxu0 %v21406_v52  ;;  %v21413_v61 = vld [vmem:[#allocation7 + $0x4b8] ss:$84 sps:$4 sm:$0xff]   ;;  %v21424_v21 = vld [vmem:[#allocation7 + $0xe94] ss:$84 sps:$4 sm:$0xff]  }
 0x3af   :  { %25480 = vst [vmem:[#allocation60_spill] sm:$0xff] %v24212_v51  ;;  %v12797_v39 = vpop.f32.mrf.mxu0  ;;  %13205 = vmatprep.subr.bf16.mxu1 %v21403_v19  ;;  %v21421_v51 = vld [vmem:[#allocation7 + $0x414] ss:$84 sps:$4 sm:$0xff]  }
 0x3b0   :  { %v12798_v34 = vadd.f32 %v12797_v39, %v24183_v11  ;;  %v12850_v37 = vpop.f32.mrf.mxu1  ;;  %13167 = vmatmul.mubr.bf16.gmra.mxu0 %v23938_v10 }
 0x3b1   :  { %13243 = vmatpush1.bf16.msra.mxu0 %v21404_v35  ;;  %v12799_v0 = vpop.f32.mrf.mxu0  ;;  %13262 = vmatprep.mubr.bf16.mxu0 %v25462_v44  ;;  %v21416_v35 = vld [vmem:[#allocation7 + $0xf38] ss:$84 sps:$4 sm:$0xff]  }
 0x3b2   :  { %v24217_v2 = vadd.f32 %v12850_v37, %v12798_v34  ;;  %13206 = vmatpush2.bf16.msra.mxu1 %v21401_v38  ;;  %v12800_v49 = vadd.f32 %v12799_v0, %v24187_v40  ;;  %v12852_v52 = vpop.f32.mrf.mxu1  ;;  %13244 = vmatprep.subr.bf16.mxu0 %v21412_v62  ;;  %v21419_v40 = vld [vmem:[#allocation7 + $0x410] ss:$84 sps:$4 sm:$0xff]   ;;  %v21430_v38 = vld [vmem:[#allocation7 + $0xdec] ss:$84 sps:$4 sm:$0xff]   ;;  %v21425_v62 = vld [vmem:[#allocation7 + $0x368] ss:$84 sps:$4 sm:$0xff]  }
 0x3b3   :  { %v12801_v19 = vpop.f32.mrf.mxu0  ;;  %13207 = vmatprep.subr.bf16.mxu1 %v21409_v24  ;;  %v21422_v24 = vld [vmem:[#allocation7 + $0xe90] ss:$84 sps:$4 sm:$0xff]   ;;  %v21428_v34 = vld [vmem:[#allocation7 + $0xde8] ss:$84 sps:$4 sm:$0xff]   ;;  %v21434_v0 = vld [vmem:[#allocation7 + $0xd40] ss:$84 sps:$4 sm:$0xff]  }
 0x3b4   :  { %v24220_v11 = vadd.f32 %v12852_v52, %v12800_v49  ;;  %v12802_v55 = vadd.f32 %v12801_v19, %v24189_v13  ;;  %v12854_v39 = vpop.f32.mrf.mxu1  ;;  %v21427_v13 = vld [vmem:[#allocation7 + $0x36c] ss:$84 sps:$4 sm:$0xff]   ;;  %v21433_v37 = vld [vmem:[#allocation7 + $0x2c4] ss:$84 sps:$4 sm:$0xff]   ;;  %v21445_v49 = vld [vmem:[#allocation7 + $0x174] ss:$84 sps:$4 sm:$0xff]  }
 0x3b5   :  { %13245 = vmatpush1.bf16.msra.mxu0 %v21410_v4  ;;  %v21431_v4 = vld [vmem:[#allocation7 + $0x2c0] ss:$84 sps:$4 sm:$0xff]   ;;  %v21443_v19 = vld [vmem:[#allocation7 + $0x170] ss:$84 sps:$4 sm:$0xff]  }
 0x3b6   :  { %v24223_v22 = vadd.f32 %v12854_v39, %v12802_v55  ;;  %13208 = vmatpush2.bf16.msra.mxu1 %v21407_v31  ;;  %13283 = vmatprep.subr.bf16.mxu0 %v21415_v14  ;;  %v21436_v31 = vld [vmem:[#allocation7 + $0xd44] ss:$84 sps:$4 sm:$0xff]   ;;  %v21448_v52 = vld [vmem:[#allocation7 + $0xbf4] ss:$84 sps:$4 sm:$0xff]  }
 0x3b7   :  { %13336 = vmatprep.subr.bf16.mxu1 %v21418_v36  ;;  %v21437_v14 = vld [vmem:[#allocation7 + $0x218] ss:$84 sps:$4 sm:$0xff]   ;;  %v21446_v55 = vld [vmem:[#allocation7 + $0xbf0] ss:$84 sps:$4 sm:$0xff]   ;;  %v21449_v39 = vld [vmem:[#allocation7 + $0xc8] ss:$84 sps:$4 sm:$0xff]  }
 0x3b8   :  { %19538 = vmatmul.mubr.msk.bf16.vlgmr.msra.gmra.mxu0 %vm12004_vm8, %v23947_v41  ;;  %v21440_v36 = vld [vmem:[#allocation7 + $0xc98] ss:$84 sps:$4 sm:$0xff]  }
 0x3b9   :  { %13210 = vmatmul.mubr.bf16.vlgmr.msra.gmra.mxu1 %v23963_v3  ;;  %13284 = vmatpush1.bf16.msra.mxu0 %v21413_v61  ;;  %v21451_v61 = vld [vmem:[#allocation7 + $0xcc] ss:$84 sps:$4 sm:$0xff]  }
 0x3ba   :  { %13219 = vmatprep.mubr.bf16.mxu1 %v23965_v12  ;;  %13337 = vmatpush1.bf16.msra.mxu1 %v21416_v35  ;;  %v21454_v35 = vld [vmem:[#allocation7 + $0xb4c] ss:$84 sps:$4 sm:$0xff]  }
 0x3bb   :  { %13285 = vmatprep.subr.bf16.mxu0 %v21421_v51  ;;  %13338 = vmatprep.subr.bf16.mxu1 %v21424_v21  ;;  %v21439_v21 = vld [vmem:[#allocation7 + $0x21c] ss:$84 sps:$4 sm:$0xff]  }
 0x3bc   :  { %13272 = vmatprep.mubr.bf16.mxu0 %v25462_v44  ;;  %v21442_v51 = vld [vmem:[#allocation7 + $0xc9c] ss:$84 sps:$4 sm:$0xff]  }
 0x3bd   :  { %13286 = vmatpush1.bf16.msra.mxu0 %v21419_v40  ;;  %v21452_v40 = vld [vmem:[#allocation7 + $0xb48] ss:$84 sps:$4 sm:$0xff]  }
 0x3be   :  { %13339 = vmatpush1.bf16.msra.mxu1 %v21422_v24  ;;  %13287 = vmatprep.subr.bf16.mxu0 %v21427_v13  ;;  %v21457_v24 = vld [vmem:[#allocation7 + $0x24] ss:$84 sps:$4 sm:$0xff]  }
 0x3bf   :  { %13340 = vmatprep.subr.bf16.mxu1 %v21430_v38  ;;  %v21460_v13 = vld [vmem:[#allocation7 + $0xaa4] ss:$84 sps:$4 sm:$0xff]   ;;  %v21455_v38 = vld [vmem:[#allocation7 + $0x20] ss:$84 sps:$4 sm:$0xff]  }
 0x3c0   :  { %19539 = vmatmul.mubr.msk.bf16.gmra.mxu0 %vm12004_vm8, %v23952_v59 }
 0x3c1   :  { %13220 = vmatmul.mubr.bf16.gmra.mxu1 %v23969_v58  ;;  %13288 = vmatpush1.bf16.msra.mxu0 %v21425_v62  ;;  %v21458_v62 = vld [vmem:[#allocation7 + $0xaa0] ss:$84 sps:$4 sm:$0xff]  }
 0x3c2   :  { %13315 = vmatprep.mubr.bf16.mxu0 %v23825_v25  ;;  %13341 = vmatpush1.bf16.msra.mxu1 %v21428_v34  ;;  %v21463_v34 = vld [vmem:[#allocation7 + $0x9fc] ss:$84 sps:$4 sm:$0xff]  }
 0x3c3   :  { %13368 = vmatprep.mubr.bf16.mxu1 %v23827_v26  ;;  %13289 = vmatprep.subr.bf16.mxu0 %v21433_v37  ;;  %v21466_v37 = vld [vmem:[#allocation7 + $0x147c] ss:$84 sps:$4 sm:$0xff]  }
 0x3c4   :  { %13342 = vmatprep.subr.bf16.mxu1 %v21436_v31  ;;  %v21461_v31 = vld [vmem:[#allocation7 + $0x9f8] ss:$84 sps:$4 sm:$0xff]  }
 0x3c5   :  { %13290 = vmatpush1.bf16.msra.mxu0 %v21431_v4  ;;  %v21464_v4 = vld [vmem:[#allocation7 + $0x1478] ss:$84 sps:$4 sm:$0xff]  }
 0x3c6   :  { %13343 = vmatpush1.bf16.msra.mxu1 %v21434_v0  ;;  %13291 = vmatprep.subr.bf16.mxu0 %v21439_v21  ;;  %v21469_v0 = vld [vmem:[#allocation7 + $0x954] ss:$84 sps:$4 sm:$0xff]  }
 0x3c7   :  { %13344 = vmatprep.subr.bf16.mxu1 %v21442_v51  ;;  %v21472_v21 = vld [vmem:[#allocation7 + $0x13d4] ss:$84 sps:$4 sm:$0xff]   ;;  %v21467_v51 = vld [vmem:[#allocation7 + $0x950] ss:$84 sps:$4 sm:$0xff]  }
 0x3c9   :  { %13292 = vmatpush1.bf16.msra.mxu0 %v21437_v14  ;;  %v21470_v14 = vld [vmem:[#allocation7 + $0x13d0] ss:$84 sps:$4 sm:$0xff]  }
 0x3ca   :  { %13345 = vmatpush1.bf16.msra.mxu1 %v21440_v36  ;;  %13293 = vmatprep.subr.bf16.mxu0 %v21445_v49  ;;  %v21475_v36 = vld [vmem:[#allocation7 + $0x8ac] ss:$84 sps:$4 sm:$0xff]  }
 0x3cb   :  { %13346 = vmatprep.subr.bf16.mxu1 %v21448_v52  ;;  %v21478_v49 = vld [vmem:[#allocation7 + $0x132c] ss:$84 sps:$4 sm:$0xff]   ;;  %v24235_v52 = vpop.f32.mrf.mxu1 }
 0x3cc   :  { %25481 = vst [vmem:[#allocation61_spill] sm:$0xff] %v24235_v52 }
 0x3cd   :  { %13294 = vmatpush1.bf16.msra.mxu0 %v21443_v19  ;;  %v21473_v19 = vld [vmem:[#allocation7 + $0x8a8] ss:$84 sps:$4 sm:$0xff]  }
 0x3ce   :  { %13347 = vmatpush1.bf16.msra.mxu1 %v21446_v55  ;;  %13295 = vmatprep.subr.bf16.mxu0 %v21451_v61  ;;  %v21476_v55 = vld [vmem:[#allocation7 + $0x1328] ss:$84 sps:$4 sm:$0xff]   ;;  %v21481_v61 = vld [vmem:[#allocation7 + $0x804] ss:$84 sps:$4 sm:$0xff]  }
 0x3cf   :  { %13348 = vmatprep.subr.bf16.mxu1 %v21454_v35  ;;  %v21484_v35 = vld [vmem:[#allocation7 + $0x1284] ss:$84 sps:$4 sm:$0xff]  }
 0x3d1   :  { %13296 = vmatpush1.bf16.msra.mxu0 %v21449_v39  ;;  %v12946_v39 = vpop.f32.mrf.mxu1 }
 0x3d2   :  { %13349 = vmatpush1.bf16.msra.mxu1 %v21452_v40  ;;  %13297 = vmatprep.subr.bf16.mxu0 %v21457_v24  ;;  %v21479_v40 = vld [vmem:[#allocation7 + $0x800] ss:$84 sps:$4 sm:$0xff]  }
 0x3d3   :  { %13350 = vmatprep.subr.bf16.mxu1 %v21460_v13  ;;  %v21482_v24 = vld [vmem:[#allocation7 + $0x1280] ss:$84 sps:$4 sm:$0xff]   ;;  %v21487_v13 = vld [vmem:[#allocation7 + $0x75c] ss:$84 sps:$4 sm:$0xff]  }
 0x3d5   :  { %13298 = vmatpush1.bf16.msra.mxu0 %v21455_v38  ;;  %v21490_v38 = vld [vmem:[#allocation7 + $0x11dc] ss:$84 sps:$4 sm:$0xff]  }
 0x3d6   :  { %13351 = vmatpush1.bf16.msra.mxu1 %v21458_v62  ;;  %13299 = vmatprep.subr.bf16.mxu0 %v21463_v34  ;;  %v12948_v62 = vpop.f32.mrf.mxu1  ;;  %v21485_v34 = vld [vmem:[#allocation7 + $0x758] ss:$84 sps:$4 sm:$0xff]  }
 0x3d7   :  { %13352 = vmatprep.subr.bf16.mxu1 %v21466_v37  ;;  %v21488_v37 = vld [vmem:[#allocation7 + $0x11d8] ss:$84 sps:$4 sm:$0xff]  }
 0x3d9   :  { %13300 = vmatpush2.bf16.msra.mxu0 %v21461_v31  ;;  %v21493_v31 = vld [vmem:[#allocation7 + $0x6b4] ss:$84 sps:$4 sm:$0xff]  }
 0x3da   :  { %13353 = vmatpush2.bf16.msra.mxu1 %v21464_v4  ;;  %13301 = vmatprep.subr.bf16.mxu0 %v21469_v0  ;;  %v21496_v4 = vld [vmem:[#allocation7 + $0x1134] ss:$84 sps:$4 sm:$0xff]   ;;  %v24237_v0 = vpop.f32.mrf.mxu0 }
 0x3db   :  { %13354 = vmatprep.subr.bf16.mxu1 %v21472_v21  ;;  %25482 = vst [vmem:[#allocation62_spill] sm:$0xff] %v24237_v0  ;;  %v12950_v21 = vpop.f32.mrf.mxu1 }
 0x3dd   :  { %13302 = vmatpush2.bf16.msra.mxu0 %v21467_v51 }
 0x3de   :  { %13355 = vmatpush2.bf16.msra.mxu1 %v21470_v14  ;;  %13303 = vmatprep.subr.bf16.mxu0 %v21475_v36  ;;  %v21491_v36 = vld [vmem:[#allocation7 + $0x6b0] ss:$84 sps:$4 sm:$0xff]  }
 0x3df   :  { %13356 = vmatprep.subr.bf16.mxu1 %v21478_v49  ;;  %v21494_v49 = vld [vmem:[#allocation7 + $0x1130] ss:$84 sps:$4 sm:$0xff]  }
 0x3e1   :  { %13304 = vmatpush2.bf16.msra.mxu0 %v21473_v19  ;;  %v21499_v19 = vld [vmem:[#allocation7 + $0x60c] ss:$84 sps:$4 sm:$0xff]  }
 0x3e2   :  { %13357 = vmatpush2.bf16.msra.mxu1 %v21476_v55  ;;  %13305 = vmatprep.subr.bf16.mxu0 %v21481_v61  ;;  %v24240_v55 = vpop.f32.mrf.mxu1 }
 0x3e3   :  { %13358 = vmatprep.subr.bf16.mxu1 %v21484_v35  ;;  %25483 = vst [vmem:[#allocation63_spill] sm:$0xff] %v24240_v55  ;;  %v21502_v35 = vld [vmem:[#allocation7 + $0x108c] ss:$84 sps:$4 sm:$0xff]  }
 0x3e5   :  { %13306 = vmatpush2.bf16.msra.mxu0 %v21479_v40 }
 0x3e6   :  { %13359 = vmatpush2.bf16.msra.mxu1 %v21482_v24  ;;  %13307 = vmatprep.subr.bf16.mxu0 %v21487_v13 }
 0x3e7   :  { %13360 = vmatprep.subr.bf16.mxu1 %v21490_v38 }
 0x3e8   :  { %v12893_v51 = vpop.f32.mrf.mxu0 }
 0x3e9   :  { %v12894_v14 = vadd.f32 %v12893_v51, %v24202_v42  ;;  %13308 = vmatpush2.bf16.msra.mxu0 %v21485_v34  ;;  %v21497_v42 = vld [vmem:[#allocation7 + $0x608] ss:$84 sps:$4 sm:$0xff]   ;;  %v12956_v51 = vpop.f32.mrf.mxu1 }
 0x3ea   :  { %13361 = vmatpush2.bf16.msra.mxu1 %v21488_v37  ;;  %v12895_v61 = vpop.f32.mrf.mxu0  ;;  %13309 = vmatprep.subr.bf16.mxu0 %v21493_v31  ;;  %v21500_v34 = vld [vmem:[#allocation7 + $0x1088] ss:$84 sps:$4 sm:$0xff]   ;;  %v21505_v37 = vld [vmem:[#allocation7 + $0x564] ss:$84 sps:$4 sm:$0xff]  }
 0x3eb   :  { %v12947_v40 = vadd.f32 %v12946_v39, %v12894_v14  ;;  %v12896_v52 = vadd.f32 %v12895_v61, %v24205_v18  ;;  %13362 = vmatprep.subr.bf16.mxu1 %v21496_v4  ;;  %v21508_v31 = vld [vmem:[#allocation7 + $0xfe4] ss:$84 sps:$4 sm:$0xff]   ;;  %v21503_v39 = vld [vmem:[#allocation7 + $0x560] ss:$84 sps:$4 sm:$0xff]   ;;  %v21514_v61 = vld [vmem:[#allocation7 + $0x243c] ss:$84 sps:$4 sm:$0xff]  }
 0x3ec   :  { %v12897_v24 = vpop.f32.mrf.mxu0 }
 0x3ed   :  { %v24243_v13 = vadd.f32 %v12948_v62, %v12896_v52  ;;  %v12898_v38 = vadd.f32 %v12897_v24, %v24210_v16  ;;  %13310 = vmatpush2.bf16.msra.mxu0 %v21491_v36  ;;  %v15489_v4 = vmax.f32 %v12947_v40, 0.0  ;;  %v21506_v16 = vld [vmem:[#allocation7 + $0xfe0] ss:$84 sps:$4 sm:$0xff]   ;;  %v12958_v62 = vpop.f32.mrf.mxu1 }
 0x3ee   :  { %13363 = vmatpush2.bf16.msra.mxu1 %v21494_v49  ;;  %v24246_v0 = vpop.f32.mrf.mxu0  ;;  %13311 = vmatprep.subr.bf16.mxu0 %v21499_v19  ;;  %v21511_v49 = vld [vmem:[#allocation7 + $0x19bc] ss:$84 sps:$4 sm:$0xff]  }
 0x3ef   :  { %25484 = vst [vmem:[#allocation64_spill] sm:$0xff] %v24243_v13  ;;  %25485 = vst [vmem:[#allocation65_spill] sm:$0xff] %v24246_v0  ;;  %v12951_v55 = vadd.f32 %v12950_v21, %v12898_v38  ;;  %13364 = vmatprep.subr.bf16.mxu1 %v21502_v35  ;;  %v12960_v40 = vpop.f32.mrf.mxu1 }
 0x3f0   :  { %v12903_v18 = vpop.f32.mrf.mxu0 }
 0x3f1   :  { %v15510_v14 = vmax.f32 %v12951_v55, 0.0  ;;  %v12904_v52 = vadd.f32 %v12903_v18, %v24217_v2  ;;  %13312 = vmatpush2.bf16.msra.mxu0 %v21497_v42  ;;  %v21509_v2 = vld [vmem:[#allocation7 + $0x19b8] ss:$84 sps:$4 sm:$0xff]   ;;  %v21520_v18 = vld [vmem:[#allocation7 + $0x2394] ss:$84 sps:$4 sm:$0xff]  }
 0x3f2   :  { %13365 = vmatpush2.bf16.msra.mxu1 %v21500_v34  ;;  %v12905_v36 = vpop.f32.mrf.mxu0  ;;  %13313 = vmatprep.subr.bf16.mxu0 %v21505_v37  ;;  %v21512_v42 = vld [vmem:[#allocation7 + $0x2438] ss:$84 sps:$4 sm:$0xff]   ;;  %v21517_v34 = vld [vmem:[#allocation7 + $0x1914] ss:$84 sps:$4 sm:$0xff]  }
 0x3f3   :  { %v24249_v24 = vpack.c.bf16 %v15510_v14, %v15489_v4  ;;  %v12957_v19 = vadd.f32 %v12956_v51, %v12904_v52  ;;  %v12906_v21 = vadd.f32 %v12905_v36, %v24220_v11  ;;  %13366 = vmatprep.subr.bf16.mxu1 %v21508_v31  ;;  %v21515_v31 = vld [vmem:[#allocation7 + $0x1910] ss:$84 sps:$4 sm:$0xff]   ;;  %v21526_v14 = vld [vmem:[#allocation7 + $0x22ec] ss:$84 sps:$4 sm:$0xff]   ;;  %v21521_v52 = vld [vmem:[#allocation7 + $0x1868] ss:$84 sps:$4 sm:$0xff]  }
 0x3f4   :  { %v12907_v35 = vpop.f32.mrf.mxu0  ;;  %v21532_v36 = vld [vmem:[#allocation7 + $0x2244] ss:$84 sps:$4 sm:$0xff]  }
 0x3f5   :  { %25486 = vst [vmem:[#allocation66_spill] sm:$0xff] %v24249_v24  ;;  %v24252_v38 = vadd.f32 %v12958_v62, %v12906_v21  ;;  %v12908_v55 = vadd.f32 %v12907_v35, %v24223_v22  ;;  %13314 = vmatpush2.bf16.msra.mxu0 %v21503_v39  ;;  %v15531_v51 = vmax.f32 %v12957_v19, 0.0  ;;  %v21518_v22 = vld [vmem:[#allocation7 + $0x2390] ss:$84 sps:$4 sm:$0xff]   ;;  %v21523_v39 = vld [vmem:[#allocation7 + $0x186c] ss:$84 sps:$4 sm:$0xff]  }
 0x3f6   :  { %13367 = vmatpush2.bf16.msra.mxu1 %v21506_v16  ;;  %13389 = vmatprep.subr.bf16.mxu0 %v21511_v49  ;;  %v21524_v16 = vld [vmem:[#allocation7 + $0x22e8] ss:$84 sps:$4 sm:$0xff]   ;;  %v21529_v62 = vld [vmem:[#allocation7 + $0x17c4] ss:$84 sps:$4 sm:$0xff]   ;;  %v21527_v49 = vld [vmem:[#allocation7 + $0x17c0] ss:$84 sps:$4 sm:$0xff]  }
 0x3f7   :  { %25487 = vst [vmem:[#allocation67_spill] sm:$0xff] %v24252_v38  ;;  %v12961_v37 = vadd.f32 %v12960_v40, %v12908_v55  ;;  %13442 = vmatprep.subr.bf16.mxu1 %v21514_v61  ;;  %v21530_v61 = vld [vmem:[#allocation7 + $0x2240] ss:$84 sps:$4 sm:$0xff]   ;;  %v21535_v19 = vld [vmem:[#allocation7 + $0x171c] ss:$84 sps:$4 sm:$0xff]  }
 0x3f8   :  { %13316 = vmatmul.mubr.bf16.vlgmr.msra.gmra.mxu0 %v23830_v29  ;;  %v21538_v21 = vld [vmem:[#allocation7 + $0x219c] ss:$84 sps:$4 sm:$0xff]   ;;  %v21533_v35 = vld [vmem:[#allocation7 + $0x1718] ss:$84 sps:$4 sm:$0xff]   ;;  %v21544_v40 = vld [vmem:[#allocation7 + $0x20f4] ss:$84 sps:$4 sm:$0xff]  }
 0x3f9   :  { %v15552_v11 = vmax.f32 %v12961_v37, 0.0  ;;  %13369 = vmatmul.mubr.bf16.vlgmr.msra.gmra.mxu1 %v23823_v17  ;;  %13325 = vmatprep.mubr.bf16.mxu0 %v23841_v54  ;;  %v21536_v55 = vld [vmem:[#allocation7 + $0x2198] ss:$84 sps:$4 sm:$0xff]   ;;  %v21590_v24 = vld [vmem:[#allocation7 + $0x2630] ss:$84 sps:$4 sm:$0xff]  }
 0x3fa   :  { %13378 = vmatprep.mubr.bf16.mxu1 %v23843_v57  ;;  %13390 = vmatpush1.bf16.msra.mxu0 %v21509_v2  ;;  %v21541_v2 = vld [vmem:[#allocation7 + $0x1674] ss:$84 sps:$4 sm:$0xff]   ;;  %v21547_v37 = vld [vmem:[#allocation7 + $0x15cc] ss:$84 sps:$4 sm:$0xff]  }
 0x3fb   :  { %v24259_v4 = vpack.c.bf16 %v15552_v11, %v15531_v51  ;;  %13443 = vmatpush1.bf16.msra.mxu1 %v21512_v42  ;;  %13391 = vmatprep.subr.bf16.mxu0 %v21517_v34  ;;  %v21539_v42 = vld [vmem:[#allocation7 + $0x1670] ss:$84 sps:$4 sm:$0xff]   ;;  %v21550_v51 = vld [vmem:[#allocation7 + $0x204c] ss:$84 sps:$4 sm:$0xff]   ;;  %v21548_v11 = vld [vmem:[#allocation7 + $0x2048] ss:$84 sps:$4 sm:$0xff]  }
 0x3fc   :  { %13444 = vmatprep.subr.bf16.mxu1 %v21520_v18  ;;  %v21542_v34 = vld [vmem:[#allocation7 + $0x20f0] ss:$84 sps:$4 sm:$0xff]   ;;  %v21545_v18 = vld [vmem:[#allocation7 + $0x15c8] ss:$84 sps:$4 sm:$0xff]   ;;  %v21595_v38 = vld [vmem:[#allocation7 + $0x1b0c] ss:$84 sps:$4 sm:$0xff]  }
 0x3fd   :  { %25488 = vst [vmem:[#allocation68_spill] sm:$0xff] %v24259_v4 }
 0x3fe   :  { %13392 = vmatpush1.bf16.msra.mxu0 %v21515_v31  ;;  %v21553_v31 = vld [vmem:[#allocation7 + $0x1524] ss:$84 sps:$4 sm:$0xff]  }
 0x3ff   :  { %13445 = vmatpush1.bf16.msra.mxu1 %v21518_v22  ;;  %13393 = vmatprep.subr.bf16.mxu0 %v21523_v39  ;;  %v21556_v22 = vld [vmem:[#allocation7 + $0x1fa4] ss:$84 sps:$4 sm:$0xff]   ;;  %v21551_v39 = vld [vmem:[#allocation7 + $0x1520] ss:$84 sps:$4 sm:$0xff]  }
 0x400   :  { %13326 = vmatmul.mubr.bf16.gmra.mxu0 %v23837_v63  ;;  %13446 = vmatprep.subr.bf16.mxu1 %v21526_v14  ;;  %v21554_v14 = vld [vmem:[#allocation7 + $0x1fa0] ss:$84 sps:$4 sm:$0xff]  }
 0x401   :  { %13379 = vmatmul.mubr.bf16.gmra.mxu1 %v23839_v1  ;;  %13421 = vmatprep.mubr.bf16.mxu0 %v23875_v56 }
 0x402   :  { %13394 = vmatpush1.bf16.msra.mxu0 %v21521_v52  ;;  %13474 = vmatprep.mubr.bf16.mxu1 %v23877_v43  ;;  %v21559_v52 = vld [vmem:[#allocation7 + $0x1efc] ss:$84 sps:$4 sm:$0xff]  }
 0x403   :  { %13447 = vmatpush1.bf16.msra.mxu1 %v21524_v16  ;;  %13395 = vmatprep.subr.bf16.mxu0 %v21529_v62  ;;  %v21557_v16 = vld [vmem:[#allocation7 + $0x1ef8] ss:$84 sps:$4 sm:$0xff]   ;;  %v21562_v62 = vld [vmem:[#allocation7 + $0x297c] ss:$84 sps:$4 sm:$0xff]  }
 0x404   :  { %13448 = vmatprep.subr.bf16.mxu1 %v21532_v36  ;;  %v21560_v36 = vld [vmem:[#allocation7 + $0x2978] ss:$84 sps:$4 sm:$0xff]  }
 0x406   :  { %13396 = vmatpush1.bf16.msra.mxu0 %v21527_v49  ;;  %v21565_v49 = vld [vmem:[#allocation7 + $0x1e54] ss:$84 sps:$4 sm:$0xff]  }
 0x407   :  { %13449 = vmatpush1.bf16.msra.mxu1 %v21530_v61  ;;  %13397 = vmatprep.subr.bf16.mxu0 %v21535_v19  ;;  %v24265_v61 = vpop.f32.mrf.mxu1 }
 0x408   :  { %13450 = vmatprep.subr.bf16.mxu1 %v21538_v21  ;;  %25489 = vst [vmem:[#allocation69_spill] sm:$0xff] %v24265_v61  ;;  %v21563_v21 = vld [vmem:[#allocation7 + $0x1e50] ss:$84 sps:$4 sm:$0xff]  }
 0x409   :  { %v12999_v19 = vpop.f32.mrf.mxu1 }
 0x40a   :  { %13398 = vmatpush1.bf16.msra.mxu0 %v21533_v35  ;;  %v21568_v35 = vld [vmem:[#allocation7 + $0x28d4] ss:$84 sps:$4 sm:$0xff]  }
 0x40b   :  { %13451 = vmatpush1.bf16.msra.mxu1 %v21536_v55  ;;  %13399 = vmatprep.subr.bf16.mxu0 %v21541_v2  ;;  %v21566_v55 = vld [vmem:[#allocation7 + $0x28d0] ss:$84 sps:$4 sm:$0xff]   ;;  %v21571_v2 = vld [vmem:[#allocation7 + $0x1dac] ss:$84 sps:$4 sm:$0xff]  }
 0x40c   :  { %13452 = vmatprep.subr.bf16.mxu1 %v21544_v40  ;;  %v13001_v40 = vpop.f32.mrf.mxu1 }
 0x40e   :  { %13400 = vmatpush1.bf16.msra.mxu0 %v21539_v42  ;;  %v21569_v42 = vld [vmem:[#allocation7 + $0x1da8] ss:$84 sps:$4 sm:$0xff]  }
 0x40f   :  { %13453 = vmatpush1.bf16.msra.mxu1 %v21542_v34  ;;  %13401 = vmatprep.subr.bf16.mxu0 %v21547_v37  ;;  %v21574_v34 = vld [vmem:[#allocation7 + $0x282c] ss:$84 sps:$4 sm:$0xff]   ;;  %v21572_v37 = vld [vmem:[#allocation7 + $0x2828] ss:$84 sps:$4 sm:$0xff]  }
 0x410   :  { %13454 = vmatprep.subr.bf16.mxu1 %v21550_v51  ;;  %v13003_v51 = vpop.f32.mrf.mxu1 }
 0x412   :  { %13402 = vmatpush1.bf16.msra.mxu0 %v21545_v18  ;;  %v21577_v18 = vld [vmem:[#allocation7 + $0x1d04] ss:$84 sps:$4 sm:$0xff]  }
 0x413   :  { %13455 = vmatpush1.bf16.msra.mxu1 %v21548_v11  ;;  %13403 = vmatprep.subr.bf16.mxu0 %v21553_v31  ;;  %v21575_v11 = vld [vmem:[#allocation7 + $0x1d00] ss:$84 sps:$4 sm:$0xff]   ;;  %v21580_v31 = vld [vmem:[#allocation7 + $0x2784] ss:$84 sps:$4 sm:$0xff]  }
 0x414   :  { %13456 = vmatprep.subr.bf16.mxu1 %v21556_v22  ;;  %v21578_v22 = vld [vmem:[#allocation7 + $0x2780] ss:$84 sps:$4 sm:$0xff]  }
 0x416   :  { %13404 = vmatpush1.bf16.msra.mxu0 %v21551_v39  ;;  %v21583_v39 = vld [vmem:[#allocation7 + $0x1c5c] ss:$84 sps:$4 sm:$0xff]  }
 0x417   :  { %13457 = vmatpush1.bf16.msra.mxu1 %v21554_v14  ;;  %13405 = vmatprep.subr.bf16.mxu0 %v21559_v52  ;;  %v23187_v14 = vld [vmem:[#allocation8] sm:$0xff] }
 0x418   :  { %13458 = vmatprep.subr.bf16.mxu1 %v21562_v62  ;;  %v3022_v52 = vrot.slane %v23187_v14, %v23886_v20  ;;  %v21581_v62 = vld [vmem:[#allocation7 + $0x1c58] ss:$84 sps:$4 sm:$0xff]  }
 0x41a   :  { %13406 = vmatpush2.bf16.msra.mxu0 %v21557_v16  ;;  %v24268_v16 = vpop.f32.mrf.mxu1  ;;  %v13004_v61 = vadd.f32 %v13003_v51, %v3022_v52  ;;  %v21599_v51 = vld [vmem:[#allocation7 + $0x1a60] ss:$84 sps:$4 sm:$0xff]  }
 0x41b   :  { %13459 = vmatpush2.bf16.msra.mxu1 %v21560_v36  ;;  %13407 = vmatprep.subr.bf16.mxu0 %v21565_v49  ;;  %25490 = vst [vmem:[#allocation70_spill] sm:$0xff] %v24268_v16  ;;  %v21586_v36 = vld [vmem:[#allocation7 + $0x26dc] ss:$84 sps:$4 sm:$0xff]   ;;  %v24271_v49 = vrot.slane %v23187_v14, %v23853_v9  ;;  %v21601_v16 = vld [vmem:[#allocation7 + $0x1a64] ss:$84 sps:$4 sm:$0xff]  }
 0x41c   :  { %13460 = vmatprep.subr.bf16.mxu1 %v21568_v35  ;;  %v21589_v35 = vld [vmem:[#allocation7 + $0x1bb4] ss:$84 sps:$4 sm:$0xff]  }
 0x41d   :  { %25491 = vst [vmem:[#allocation71_spill] sm:$0xff] %v24271_v49 }
 0x41e   :  { %13408 = vmatpush2.bf16.msra.mxu0 %v21563_v21  ;;  %v21584_v21 = vld [vmem:[#allocation7 + $0x26d8] ss:$84 sps:$4 sm:$0xff]  }
 0x41f   :  { %13461 = vmatpush2.bf16.msra.mxu1 %v21566_v55  ;;  %13409 = vmatprep.subr.bf16.mxu0 %v21571_v2  ;;  %v24273_v55 = vpop.f32.mrf.mxu0  ;;  %v13000_v2 = vadd.f32 %v12999_v19, %v3022_v52 }
 0x420   :  { %13462 = vmatprep.subr.bf16.mxu1 %v21574_v34  ;;  %25492 = vst [vmem:[#allocation72_spill] sm:$0xff] %v24273_v55 }
 0x422   :  { %13410 = vmatpush2.bf16.msra.mxu0 %v21569_v42  ;;  %v13009_v42 = vpop.f32.mrf.mxu1 }
 0x423   :  { %13463 = vmatpush2.bf16.msra.mxu1 %v21572_v37  ;;  %13411 = vmatprep.subr.bf16.mxu0 %v21577_v18  ;;  %v21587_v37 = vld [vmem:[#allocation7 + $0x1bb0] ss:$84 sps:$4 sm:$0xff]   ;;  %v21592_v18 = vld [vmem:[#allocation7 + $0x2634] ss:$84 sps:$4 sm:$0xff]  }
 0x424   :  { %13464 = vmatprep.subr.bf16.mxu1 %v21580_v31  ;;  %v13002_v31 = vadd.f32 %v13001_v40, %v24271_v49  ;;  %v13010_v40 = vadd.f32 %v13009_v42, %v3022_v52  ;;  %v21605_v42 = vld [vmem:[#allocation7 + $0x2eb8] ss:$84 sps:$4 sm:$0xff]  }
 0x426   :  { %13412 = vmatpush2.bf16.msra.mxu0 %v21575_v11  ;;  %v13011_v11 = vpop.f32.mrf.mxu1 }
 0x427   :  { %13465 = vmatpush2.bf16.msra.mxu1 %v21578_v22  ;;  %13413 = vmatprep.subr.bf16.mxu0 %v21583_v39  ;;  %v21593_v22 = vld [vmem:[#allocation7 + $0x1b08] ss:$84 sps:$4 sm:$0xff]   ;;  %v21598_v39 = vld [vmem:[#allocation7 + $0x258c] ss:$84 sps:$4 sm:$0xff]  }
 0x428   :  { %v13052_v34 = vpop.f32.mrf.mxu0  ;;  %13466 = vmatprep.subr.bf16.mxu1 %v21586_v36  ;;  %v21596_v36 = vld [vmem:[#allocation7 + $0x2588] ss:$84 sps:$4 sm:$0xff]  }
 0x429   :  { %v13053_v4 = vadd.f32 %v13052_v34, %v13000_v2 }
 0x42a   :  { %13414 = vmatpush2.bf16.msra.mxu0 %v21581_v62  ;;  %v13054_v14 = vpop.f32.mrf.mxu0  ;;  %v13013_v62 = vpop.f32.mrf.mxu1 }
 0x42b   :  { %13467 = vmatpush2.bf16.msra.mxu1 %v21584_v21  ;;  %v13055_v13 = vadd.f32 %v13054_v14, %v13002_v31  ;;  %13415 = vmatprep.subr.bf16.mxu0 %v21589_v35  ;;  %v21604_v21 = vld [vmem:[#allocation7 + $0x24e4] ss:$84 sps:$4 sm:$0xff]   ;;  %v13012_v35 = vadd.f32 %v13011_v11, %v24271_v49  ;;  %v21607_v31 = vld [vmem:[#allocation7 + $0x2ebc] ss:$84 sps:$4 sm:$0xff]   ;;  %v13014_v14 = vadd.f32 %v13013_v62, %v3022_v52  ;;  %v21613_v11 = vld [vmem:[#allocation7 + $0x2e14] ss:$84 sps:$4 sm:$0xff]  }
 0x42c   :  { %v13056_v19 = vpop.f32.mrf.mxu0  ;;  %13468 = vmatprep.subr.bf16.mxu1 %v21592_v18  ;;  %v21602_v18 = vld [vmem:[#allocation7 + $0x24e0] ss:$84 sps:$4 sm:$0xff]   ;;  %v21611_v52 = vld [vmem:[#allocation7 + $0x2e10] ss:$84 sps:$4 sm:$0xff]  }
 0x42d   :  { %v13057_v55 = vadd.f32 %v13056_v19, %v13004_v61  ;;  %v21619_v62 = vld [vmem:[#allocation7 + $0x2d6c] ss:$84 sps:$4 sm:$0xff]  }
 0x42e   :  { %13416 = vmatpush2.bf16.msra.mxu0 %v21587_v37  ;;  %v24276_v0 = vpop.f32.mrf.mxu0 }
 0x42f   :  { %25493 = vst [vmem:[#allocation73_spill] sm:$0xff] %v24276_v0  ;;  %13469 = vmatpush2.bf16.msra.mxu1 %v21590_v24  ;;  %13417 = vmatprep.subr.bf16.mxu0 %v21595_v38  ;;  %v21610_v24 = vld [vmem:[#allocation7 + $0x369c] ss:$84 sps:$4 sm:$0xff]   ;;  %v24279_v0 = vpop.f32.mrf.mxu1 }
 0x430   :  { %v13062_v2 = vpop.f32.mrf.mxu0  ;;  %13470 = vmatprep.subr.bf16.mxu1 %v21598_v39  ;;  %v21608_v39 = vld [vmem:[#allocation7 + $0x3698] ss:$84 sps:$4 sm:$0xff]   ;;  %25494 = vst [vmem:[#allocation74_spill] sm:$0xff] %v24279_v0 }
 0x431   :  { %v13063_v34 = vadd.f32 %v13062_v2, %v13010_v40 }
 0x432   :  { %13418 = vmatpush2.bf16.msra.mxu0 %v21593_v22  ;;  %v13064_v61 = vpop.f32.mrf.mxu0  ;;  %v21616_v22 = vld [vmem:[#allocation7 + $0x35f4] ss:$84 sps:$4 sm:$0xff]  }
 0x433   :  { %13471 = vmatpush2.bf16.msra.mxu1 %v21596_v36  ;;  %v13065_v37 = vadd.f32 %v13064_v61, %v13012_v35  ;;  %13419 = vmatprep.subr.bf16.mxu0 %v21601_v16  ;;  %v21614_v16 = vld [vmem:[#allocation7 + $0x35f0] ss:$84 sps:$4 sm:$0xff]   ;;  %v21617_v35 = vld [vmem:[#allocation7 + $0x2d68] ss:$84 sps:$4 sm:$0xff]  }
 0x434   :  { %v13066_v19 = vpop.f32.mrf.mxu0  ;;  %13472 = vmatprep.subr.bf16.mxu1 %v21604_v21  ;;  %v21625_v61 = vld [vmem:[#allocation7 + $0x2cc4] ss:$84 sps:$4 sm:$0xff]  }
 0x435   :  { %v13067_v38 = vadd.f32 %v13066_v19, %v13014_v14 }
 0x436   :  { %13420 = vmatpush2.bf16.msra.mxu0 %v21599_v51 }
 0x437   :  { %13473 = vmatpush2.bf16.msra.mxu1 %v21602_v18  ;;  %13495 = vmatprep.subr.bf16.mxu0 %v21607_v31  ;;  %v21622_v18 = vld [vmem:[#allocation7 + $0x354c] ss:$84 sps:$4 sm:$0xff]   ;;  %v21620_v31 = vld [vmem:[#allocation7 + $0x3548] ss:$84 sps:$4 sm:$0xff]  }
 0x438   :  { %13556 = vmatprep.subr.bf16.mxu1 %v21610_v24  ;;  %v21628_v24 = vld [vmem:[#allocation7 + $0x34a4] ss:$84 sps:$4 sm:$0xff]  }
 0x439   :  { %v13105_v40 = vpop.f32.mrf.mxu1  ;;  %13422 = vmatmul.mubr.bf16.vlgmr.msra.gmra.mxu0 %v23922_v53 }
 0x43a   :  { %v24282_v36 = vadd.f32 %v13105_v40, %v13053_v4  ;;  %13475 = vmatmul.mubr.bf16.vlgmr.msra.gmra.mxu1 %v23913_v15  ;;  %13431 = vmatprep.mubr.bf16.mxu0 %v23926_v47 }
 0x43b   :  { %13484 = vmatprep.mubr.bf16.mxu1 %v23928_v6  ;;  %13496 = vmatpush1.bf16.msra.mxu0 %v21605_v42  ;;  %v13107_v2 = vpop.f32.mrf.mxu1 }
 0x43c   :  { %13557 = vmatpush1.bf16.msra.mxu1 %v21608_v39  ;;  %v24287_v51 = vadd.f32 %v13107_v2, %v13055_v13  ;;  %13497 = vmatprep.subr.bf16.mxu0 %v21613_v11  ;;  %v21623_v13 = vld [vmem:[#allocation7 + $0x2cc0] ss:$84 sps:$4 sm:$0xff]   ;;  %v21631_v39 = vld [vmem:[#allocation7 + $0x2c1c] ss:$84 sps:$4 sm:$0xff]  }
 0x43d   :  { %v13109_v21 = vpop.f32.mrf.mxu1  ;;  %13558 = vmatprep.subr.bf16.mxu1 %v21616_v22  ;;  %v21629_v22 = vld [vmem:[#allocation7 + $0x2c18] ss:$84 sps:$4 sm:$0xff]   ;;  %v21637_v2 = vld [vmem:[#allocation7 + $0x2b74] ss:$84 sps:$4 sm:$0xff]  }
 0x43e   :  { %v24289_v4 = vadd.f32 %v13109_v21, %v13057_v55  ;;  %v21626_v55 = vld [vmem:[#allocation7 + $0x34a0] ss:$84 sps:$4 sm:$0xff]   ;;  %v21640_v21 = vld [vmem:[#allocation7 + $0x41c] ss:$84 sps:$4 sm:$0xff]  }
 0x43f   :  { %13498 = vmatpush1.bf16.msra.mxu0 %v21611_v52  ;;  %v24291_v14 = vpop.f32.mrf.mxu1 }
 0x440   :  { %25495 = vst [vmem:[#allocation75_spill] sm:$0xff] %v24291_v14  ;;  %13559 = vmatpush1.bf16.msra.mxu1 %v21614_v16  ;;  %13499 = vmatprep.subr.bf16.mxu0 %v21619_v62  ;;  %v21634_v16 = vld [vmem:[#allocation7 + $0x4c4] ss:$84 sps:$4 sm:$0xff]   ;;  %v21632_v62 = vld [vmem:[#allocation7 + $0x4c0] ss:$84 sps:$4 sm:$0xff]  }
 0x441   :  { %v13115_v19 = vpop.f32.mrf.mxu1  ;;  %13432 = vmatmul.mubr.bf16.gmra.mxu0 %v23936_v5  ;;  %13560 = vmatprep.subr.bf16.mxu1 %v21622_v18  ;;  %v21643_v18 = vld [vmem:[#allocation7 + $0x2acc] ss:$84 sps:$4 sm:$0xff]   ;;  %v21716_v14 = vld [vmem:[#allocation7 + $0xdf0] ss:$84 sps:$4 sm:$0xff]  }
 0x442   :  { %v24294_v42 = vadd.f32 %v13115_v19, %v13063_v34  ;;  %13485 = vmatmul.mubr.bf16.gmra.mxu1 %v23938_v10  ;;  %13527 = vmatprep.mubr.bf16.mxu0 %v23940_v23  ;;  %v21649_v19 = vld [vmem:[#allocation7 + $0x2a24] ss:$84 sps:$4 sm:$0xff]  }
 0x443   :  { %13500 = vmatpush1.bf16.msra.mxu0 %v21617_v35  ;;  %v13117_v11 = vpop.f32.mrf.mxu1  ;;  %13580 = vmatprep.mubr.bf16.mxu1 %v25462_v44  ;;  %v21635_v35 = vld [vmem:[#allocation7 + $0x2b70] ss:$84 sps:$4 sm:$0xff]  }
 0x444   :  { %13561 = vmatpush1.bf16.msra.mxu1 %v21620_v31  ;;  %v24299_v40 = vadd.f32 %v13117_v11, %v13065_v37  ;;  %13501 = vmatprep.subr.bf16.mxu0 %v21625_v61  ;;  %v21638_v37 = vld [vmem:[#allocation7 + $0x418] ss:$84 sps:$4 sm:$0xff]   ;;  %v21646_v31 = vld [vmem:[#allocation7 + $0x374] ss:$84 sps:$4 sm:$0xff]   ;;  %v21644_v61 = vld [vmem:[#allocation7 + $0x370] ss:$84 sps:$4 sm:$0xff]  }
 0x445   :  { %v13119_v52 = vpop.f32.mrf.mxu1  ;;  %13562 = vmatprep.subr.bf16.mxu1 %v21628_v24  ;;  %v21647_v24 = vld [vmem:[#allocation7 + $0x2a20] ss:$84 sps:$4 sm:$0xff]   ;;  %v21653_v11 = vld [vmem:[#allocation7 + $0x33f8] ss:$84 sps:$4 sm:$0xff]  }
 0x446   :  { %v24301_v34 = vadd.f32 %v13119_v52, %v13067_v38  ;;  %v21641_v38 = vld [vmem:[#allocation7 + $0x2ac8] ss:$84 sps:$4 sm:$0xff]   ;;  %v21658_v52 = vld [vmem:[#allocation7 + $0x224] ss:$84 sps:$4 sm:$0xff]  }
 0x447   :  { %13502 = vmatpush1.bf16.msra.mxu0 %v21623_v13  ;;  %v21652_v13 = vld [vmem:[#allocation7 + $0x2cc] ss:$84 sps:$4 sm:$0xff]  }
 0x448   :  { %13563 = vmatpush1.bf16.msra.mxu1 %v21626_v55  ;;  %13503 = vmatprep.subr.bf16.mxu0 %v21631_v39  ;;  %v21650_v55 = vld [vmem:[#allocation7 + $0x2c8] ss:$84 sps:$4 sm:$0xff]  }
 0x449   :  { %13601 = vmatprep.subr.bf16.mxu1 %v21634_v16  ;;  %v21655_v39 = vld [vmem:[#allocation7 + $0x33fc] ss:$84 sps:$4 sm:$0xff]   ;;  %v21661_v16 = vld [vmem:[#allocation7 + $0x3354] ss:$84 sps:$4 sm:$0xff]  }
 0x44b   :  { %19540 = vmatmul.mubr.msk.bf16.vlgmr.msra.gmra.mxu1 %vm12004_vm8, %v23947_v41  ;;  %13504 = vmatpush1.bf16.msra.mxu0 %v21629_v22  ;;  %v21656_v22 = vld [vmem:[#allocation7 + $0x220] ss:$84 sps:$4 sm:$0xff]  }
 0x44c   :  { %13602 = vmatpush1.bf16.msra.mxu1 %v21632_v62  ;;  %13505 = vmatprep.subr.bf16.mxu0 %v21637_v2  ;;  %v21659_v62 = vld [vmem:[#allocation7 + $0x3350] ss:$84 sps:$4 sm:$0xff]  }
 0x44d   :  { %13603 = vmatprep.subr.bf16.mxu1 %v21640_v21  ;;  %13590 = vmatprep.mubr.bf16.mxu1 %v25462_v44  ;;  %v21664_v2 = vld [vmem:[#allocation7 + $0x17c] ss:$84 sps:$4 sm:$0xff]   ;;  %v21662_v21 = vld [vmem:[#allocation7 + $0x178] ss:$84 sps:$4 sm:$0xff]  }
 0x44f   :  { %13506 = vmatpush1.bf16.msra.mxu0 %v21635_v35  ;;  %v21667_v35 = vld [vmem:[#allocation7 + $0x32ac] ss:$84 sps:$4 sm:$0xff]  }
 0x450   :  { %13604 = vmatpush1.bf16.msra.mxu1 %v21638_v37  ;;  %13507 = vmatprep.subr.bf16.mxu0 %v21643_v18  ;;  %v21665_v37 = vld [vmem:[#allocation7 + $0x32a8] ss:$84 sps:$4 sm:$0xff]  }
 0x451   :  { %13605 = vmatprep.subr.bf16.mxu1 %v21646_v31  ;;  %v21670_v18 = vld [vmem:[#allocation7 + $0xd4] ss:$84 sps:$4 sm:$0xff]   ;;  %v21673_v31 = vld [vmem:[#allocation7 + $0x3204] ss:$84 sps:$4 sm:$0xff]  }
 0x453   :  { %19541 = vmatmul.mubr.msk.bf16.gmra.mxu1 %vm12004_vm8, %v23952_v59  ;;  %13508 = vmatpush1.bf16.msra.mxu0 %v21641_v38  ;;  %v21668_v38 = vld [vmem:[#allocation7 + $0xd0] ss:$84 sps:$4 sm:$0xff]  }
 0x454   :  { %13606 = vmatpush1.bf16.msra.mxu1 %v21644_v61  ;;  %13633 = vmatprep.mubr.bf16.mxu1 %v23825_v25  ;;  %v21671_v61 = vld [vmem:[#allocation7 + $0x3200] ss:$84 sps:$4 sm:$0xff]  }
 0x455   :  { %13509 = vmatprep.subr.bf16.mxu0 %v21649_v19  ;;  %13607 = vmatprep.subr.bf16.mxu1 %v21652_v13  ;;  %v21676_v19 = vld [vmem:[#allocation7 + $0x2c] ss:$84 sps:$4 sm:$0xff]   ;;  %v21674_v13 = vld [vmem:[#allocation7 + $0x28] ss:$84 sps:$4 sm:$0xff]  }
 0x457   :  { %13510 = vmatpush1.bf16.msra.mxu0 %v21647_v24  ;;  %v21679_v24 = vld [vmem:[#allocation7 + $0x315c] ss:$84 sps:$4 sm:$0xff]  }
 0x458   :  { %13608 = vmatpush1.bf16.msra.mxu1 %v21650_v55  ;;  %13511 = vmatprep.subr.bf16.mxu0 %v21655_v39  ;;  %v21677_v55 = vld [vmem:[#allocation7 + $0x3158] ss:$84 sps:$4 sm:$0xff]  }
 0x459   :  { %13609 = vmatprep.subr.bf16.mxu1 %v21658_v52  ;;  %v21682_v39 = vld [vmem:[#allocation7 + $0xa04] ss:$84 sps:$4 sm:$0xff]  }
 0x45b   :  { %13512 = vmatpush2.bf16.msra.mxu0 %v21653_v11  ;;  %v24309_v11 = vpop.f32.mrf.mxu0 }
 0x45c   :  { %13610 = vmatpush1.bf16.msra.mxu1 %v21656_v22  ;;  %13513 = vmatprep.subr.bf16.mxu0 %v21661_v16  ;;  %25496 = vst [vmem:[#allocation76_spill] sm:$0xff] %v24309_v11  ;;  %v21680_v22 = vld [vmem:[#allocation7 + $0xa00] ss:$84 sps:$4 sm:$0xff]   ;;  %v24325_v11 = vpop.f32.mrf.mxu1 }
 0x45d   :  { %13611 = vmatprep.subr.bf16.mxu1 %v21664_v2  ;;  %v21685_v16 = vld [vmem:[#allocation7 + $0x30b4] ss:$84 sps:$4 sm:$0xff]   ;;  %v21683_v2 = vld [vmem:[#allocation7 + $0x30b0] ss:$84 sps:$4 sm:$0xff]   ;;  %25499 = vst [vmem:[#allocation79_spill] sm:$0xff] %v24325_v11 }
 0x45f   :  { %13514 = vmatpush2.bf16.msra.mxu0 %v21659_v62 }
 0x460   :  { %13612 = vmatpush1.bf16.msra.mxu1 %v21662_v21  ;;  %13515 = vmatprep.subr.bf16.mxu0 %v21667_v35  ;;  %v21688_v21 = vld [vmem:[#allocation7 + $0x95c] ss:$84 sps:$4 sm:$0xff]  }
 0x461   :  { %13613 = vmatprep.subr.bf16.mxu1 %v21670_v18 }
 0x463   :  { %13516 = vmatpush2.bf16.msra.mxu0 %v21665_v37 }
 0x464   :  { %13614 = vmatpush1.bf16.msra.mxu1 %v21668_v38  ;;  %13517 = vmatprep.subr.bf16.mxu0 %v21673_v31  ;;  %v21686_v38 = vld [vmem:[#allocation7 + $0x958] ss:$84 sps:$4 sm:$0xff]  }
 0x465   :  { %13615 = vmatprep.subr.bf16.mxu1 %v21676_v19  ;;  %v21691_v31 = vld [vmem:[#allocation7 + $0x300c] ss:$84 sps:$4 sm:$0xff]   ;;  %v21689_v19 = vld [vmem:[#allocation7 + $0x3008] ss:$84 sps:$4 sm:$0xff]  }
 0x467   :  { %13518 = vmatpush2.bf16.msra.mxu0 %v21671_v61 }
 0x468   :  { %13616 = vmatpush1.bf16.msra.mxu1 %v21674_v13  ;;  %v13158_v52 = vpop.f32.mrf.mxu0  ;;  %13519 = vmatprep.subr.bf16.mxu0 %v21679_v24  ;;  %v21694_v13 = vld [vmem:[#allocation7 + $0x8b4] ss:$84 sps:$4 sm:$0xff]  }
 0x469   :  { %v13159_v62 = vadd.f32 %v13158_v52, %v24282_v36  ;;  %13617 = vmatprep.subr.bf16.mxu1 %v21682_v39  ;;  %v21692_v39 = vld [vmem:[#allocation7 + $0x8b0] ss:$84 sps:$4 sm:$0xff]   ;;  %v21695_v52 = vld [vmem:[#allocation7 + $0x2f60] ss:$84 sps:$4 sm:$0xff]  }
 0x46a   :  { %v13160_v35 = vpop.f32.mrf.mxu0 }
 0x46b   :  { %13520 = vmatpush2.bf16.msra.mxu0 %v21677_v55  ;;  %v13161_v37 = vadd.f32 %v13160_v35, %v24287_v51  ;;  %v21697_v55 = vld [vmem:[#allocation7 + $0x2f64] ss:$84 sps:$4 sm:$0xff]   ;;  %v21698_v35 = vld [vmem:[#allocation7 + $0x808] ss:$84 sps:$4 sm:$0xff]  }
 0x46c   :  { %13618 = vmatpush2.bf16.msra.mxu1 %v21680_v22  ;;  %v13162_v18 = vpop.f32.mrf.mxu0  ;;  %13521 = vmatprep.subr.bf16.mxu0 %v21685_v16  ;;  %v21700_v22 = vld [vmem:[#allocation7 + $0x80c] ss:$84 sps:$4 sm:$0xff]  }
 0x46d   :  { %v13163_v61 = vadd.f32 %v13162_v18, %v24289_v4  ;;  %13619 = vmatprep.subr.bf16.mxu1 %v21688_v21  ;;  %v21706_v18 = vld [vmem:[#allocation7 + $0xf44] ss:$84 sps:$4 sm:$0xff]  }
 0x46e   :  { %v24314_v24 = vpop.f32.mrf.mxu0 }
 0x46f   :  { %25497 = vst [vmem:[#allocation77_spill] sm:$0xff] %v24314_v24  ;;  %13522 = vmatpush2.bf16.msra.mxu0 %v21683_v2  ;;  %v21703_v2 = vld [vmem:[#allocation7 + $0x764] ss:$84 sps:$4 sm:$0xff]  }
 0x470   :  { %13620 = vmatpush2.bf16.msra.mxu1 %v21686_v38  ;;  %v13168_v36 = vpop.f32.mrf.mxu0  ;;  %13523 = vmatprep.subr.bf16.mxu0 %v21691_v31  ;;  %v21704_v31 = vld [vmem:[#allocation7 + $0xf40] ss:$84 sps:$4 sm:$0xff]   ;;  %v21713_v24 = vld [vmem:[#allocation7 + $0x610] ss:$84 sps:$4 sm:$0xff]  }
 0x471   :  { %v13169_v51 = vadd.f32 %v13168_v36, %v24294_v42  ;;  %13621 = vmatprep.subr.bf16.mxu1 %v21694_v13  ;;  %v21701_v13 = vld [vmem:[#allocation7 + $0x760] ss:$84 sps:$4 sm:$0xff]   ;;  %v21712_v36 = vld [vmem:[#allocation7 + $0xe9c] ss:$84 sps:$4 sm:$0xff]  }
 0x472   :  { %v13170_v16 = vpop.f32.mrf.mxu0 }
 0x473   :  { %13524 = vmatpush2.bf16.msra.mxu0 %v21689_v19  ;;  %v24318_v4 = vadd.f32 %v13170_v16, %v24299_v40  ;;  %v21707_v16 = vld [vmem:[#allocation7 + $0x6b8] ss:$84 sps:$4 sm:$0xff]  }
 0x474   :  { %13622 = vmatpush2.bf16.msra.mxu1 %v21692_v39  ;;  %v13172_v21 = vpop.f32.mrf.mxu0  ;;  %13525 = vmatprep.subr.bf16.mxu0 %v21697_v55  ;;  %v21709_v39 = vld [vmem:[#allocation7 + $0x6bc] ss:$84 sps:$4 sm:$0xff]  }
 0x475   :  { %v24321_v38 = vadd.f32 %v13172_v21, %v24301_v34  ;;  %13623 = vmatprep.subr.bf16.mxu1 %v21700_v22  ;;  %v21710_v22 = vld [vmem:[#allocation7 + $0xe98] ss:$84 sps:$4 sm:$0xff]   ;;  %v21718_v21 = vld [vmem:[#allocation7 + $0xdf4] ss:$84 sps:$4 sm:$0xff]  }
 0x476   :  { %v24323_v42 = vpop.f32.mrf.mxu0 }
 0x477   :  { %25498 = vst [vmem:[#allocation78_spill] sm:$0xff] %v24323_v42  ;;  %13526 = vmatpush2.bf16.msra.mxu0 %v21695_v52 }
 0x478   :  { %13624 = vmatpush2.bf16.msra.mxu1 %v21698_v35  ;;  %v13264_v40 = vpop.f32.mrf.mxu0  ;;  %13654 = vmatprep.subr.bf16.mxu0 %v21706_v18 }
 0x479   :  { %v13211_v19 = vpop.f32.mrf.mxu1  ;;  %13625 = vmatprep.subr.bf16.mxu1 %v21703_v2  ;;  %v21715_v2 = vld [vmem:[#allocation7 + $0x614] ss:$84 sps:$4 sm:$0xff]  }
 0x47a   :  { %v13212_v55 = vadd.f32 %v13211_v19, %v13159_v62  ;;  %13528 = vmatmul.mubr.bf16.vlgmr.msra.gmra.mxu0 %v23963_v3  ;;  %v13266_v34 = vpop.f32.mrf.mxu0 }
 0x47b   :  { %13537 = vmatprep.mubr.bf16.mxu0 %v23965_v12  ;;  %13655 = vmatpush1.bf16.msra.mxu0 %v21704_v31  ;;  %v13213_v42 = vpop.f32.mrf.mxu1 }
 0x47c   :  { %v13265_v0 = vadd.f32 %v13264_v40, %v13212_v55  ;;  %13626 = vmatpush2.bf16.msra.mxu1 %v21701_v13  ;;  %v13214_v52 = vadd.f32 %v13213_v42, %v13161_v37  ;;  %v13268_v35 = vpop.f32.mrf.mxu0  ;;  %13656 = vmatprep.subr.bf16.mxu0 %v21712_v36  ;;  %v21724_v37 = vld [vmem:[#allocation7 + $0xd4c] ss:$84 sps:$4 sm:$0xff]  }
 0x47d   :  { %v13215_v18 = vpop.f32.mrf.mxu1  ;;  %13627 = vmatprep.subr.bf16.mxu1 %v21709_v39  ;;  %v21721_v13 = vld [vmem:[#allocation7 + $0x56c] ss:$84 sps:$4 sm:$0xff]  }
 0x47e   :  { %v24329_v11 = vadd.f32 %v13266_v34, %v13214_v52  ;;  %v13216_v62 = vadd.f32 %v13215_v18, %v13163_v61  ;;  %v24331_v19 = vpop.f32.mrf.mxu0  ;;  %v15491_v36 = vmax.f32 %v13265_v0, 0.0  ;;  %v21719_v61 = vld [vmem:[#allocation7 + $0x568] ss:$84 sps:$4 sm:$0xff]   ;;  %v21727_v18 = vld [vmem:[#allocation7 + $0xca4] ss:$84 sps:$4 sm:$0xff]  }
 0x47f   :  { %25501 = vst [vmem:[#allocation81_spill] sm:$0xff] %v24331_v19  ;;  %13657 = vmatpush1.bf16.msra.mxu0 %v21710_v22  ;;  %v24333_v49 = vpop.f32.mrf.mxu1  ;;  %v21722_v34 = vld [vmem:[#allocation7 + $0xd48] ss:$84 sps:$4 sm:$0xff]  }
 0x480   :  { %25500 = vst [vmem:[#allocation80_spill] sm:$0xff] %v24329_v11  ;;  %v13269_v31 = vadd.f32 %v13268_v35, %v13216_v62  ;;  %13628 = vmatpush2.bf16.msra.mxu1 %v21707_v16  ;;  %v13274_v40 = vpop.f32.mrf.mxu0  ;;  %13658 = vmatprep.subr.bf16.mxu0 %v21718_v21 }
 0x481   :  { %v13221_v42 = vpop.f32.mrf.mxu1  ;;  %13629 = vmatprep.subr.bf16.mxu1 %v21715_v2 }
 0x482   :  { %v15512_v39 = vmax.f32 %v13269_v31, 0.0  ;;  %v13222_v55 = vadd.f32 %v13221_v42, %v13169_v51  ;;  %13538 = vmatmul.mubr.bf16.gmra.mxu0 %v23969_v58  ;;  %v13276_v52 = vpop.f32.mrf.mxu0  ;;  %v21730_v51 = vld [vmem:[#allocation7 + $0x19c4] ss:$84 sps:$4 sm:$0xff]  }
 0x483   :  { %13659 = vmatpush1.bf16.msra.mxu0 %v21716_v14  ;;  %13686 = vmatprep.mubr.bf16.mxu0 %v23827_v26  ;;  %v13223_v22 = vpop.f32.mrf.mxu1  ;;  %v21725_v14 = vld [vmem:[#allocation7 + $0xca0] ss:$84 sps:$4 sm:$0xff]  }
 0x484   :  { %v24337_v35 = vpack.c.bf16 %v15512_v39, %v15491_v36  ;;  %v13275_v16 = vadd.f32 %v13274_v40, %v13222_v55  ;;  %13630 = vmatpush2.bf16.msra.mxu1 %v21713_v24  ;;  %v13224_v21 = vadd.f32 %v13223_v22, %v24318_v4  ;;  %13660 = vmatprep.subr.bf16.mxu0 %v21724_v37  ;;  %v13278_v31 = vpop.f32.mrf.mxu0  ;;  %v21728_v36 = vld [vmem:[#allocation7 + $0x19c0] ss:$84 sps:$4 sm:$0xff]   ;;  %v21733_v24 = vld [vmem:[#allocation7 + $0xbfc] ss:$84 sps:$4 sm:$0xff]   ;;  %v21731_v39 = vld [vmem:[#allocation7 + $0xbf8] ss:$84 sps:$4 sm:$0xff]  }
 0x485   :  { %v13225_v0 = vpop.f32.mrf.mxu1  ;;  %13631 = vmatprep.subr.bf16.mxu1 %v21721_v13  ;;  %v21736_v40 = vld [vmem:[#allocation7 + $0x191c] ss:$84 sps:$4 sm:$0xff]   ;;  %v21734_v55 = vld [vmem:[#allocation7 + $0x1918] ss:$84 sps:$4 sm:$0xff]  }
 0x486   :  { %25502 = vst [vmem:[#allocation82_spill] sm:$0xff] %v24337_v35  ;;  %v24340_v2 = vadd.f32 %v13276_v52, %v13224_v21  ;;  %v13226_v62 = vadd.f32 %v13225_v0, %v24321_v38  ;;  %v15533_v4 = vmax.f32 %v13275_v16, 0.0  ;;  %v21739_v38 = vld [vmem:[#allocation7 + $0xb54] ss:$84 sps:$4 sm:$0xff]   ;;  %v21740_v22 = vld [vmem:[#allocation7 + $0x1870] ss:$84 sps:$4 sm:$0xff]  }
 0x487   :  { %13661 = vmatpush1.bf16.msra.mxu0 %v21722_v34  ;;  %v21737_v34 = vld [vmem:[#allocation7 + $0xb50] ss:$84 sps:$4 sm:$0xff]   ;;  %v21743_v52 = vld [vmem:[#allocation7 + $0xaa8] ss:$84 sps:$4 sm:$0xff]   ;;  %v21745_v16 = vld [vmem:[#allocation7 + $0xaac] ss:$84 sps:$4 sm:$0xff]  }
 0x488   :  { %25503 = vst [vmem:[#allocation83_spill] sm:$0xff] %v24340_v2  ;;  %v13279_v42 = vadd.f32 %v13278_v31, %v13226_v62  ;;  %13632 = vmatpush2.bf16.msra.mxu1 %v21719_v61  ;;  %13662 = vmatprep.subr.bf16.mxu0 %v21727_v18  ;;  %v21742_v61 = vld [vmem:[#allocation7 + $0x1874] ss:$84 sps:$4 sm:$0xff]   ;;  %v21748_v21 = vld [vmem:[#allocation7 + $0x17cc] ss:$84 sps:$4 sm:$0xff]  }
 0x489   :  { %13707 = vmatprep.subr.bf16.mxu1 %v21730_v51  ;;  %v21746_v18 = vld [vmem:[#allocation7 + $0x17c8] ss:$84 sps:$4 sm:$0xff]   ;;  %v21751_v0 = vld [vmem:[#allocation7 + $0x1484] ss:$84 sps:$4 sm:$0xff]   ;;  %v21749_v62 = vld [vmem:[#allocation7 + $0x1480] ss:$84 sps:$4 sm:$0xff]  }
 0x48a   :  { %v15554_v37 = vmax.f32 %v13279_v42, 0.0  ;;  %v21754_v51 = vld [vmem:[#allocation7 + $0x1724] ss:$84 sps:$4 sm:$0xff]   ;;  %v21757_v31 = vld [vmem:[#allocation7 + $0x13dc] ss:$84 sps:$4 sm:$0xff]  }
 0x48b   :  { %13634 = vmatmul.mubr.bf16.vlgmr.msra.gmra.mxu1 %v23830_v29  ;;  %13663 = vmatpush1.bf16.msra.mxu0 %v21725_v14  ;;  %v21752_v14 = vld [vmem:[#allocation7 + $0x1720] ss:$84 sps:$4 sm:$0xff]   ;;  %v21760_v42 = vld [vmem:[#allocation7 + $0x167c] ss:$84 sps:$4 sm:$0xff]  }
 0x48c   :  { %v24344_v13 = vpack.c.bf16 %v15554_v37, %v15533_v4  ;;  %13643 = vmatprep.mubr.bf16.mxu1 %v23841_v54  ;;  %13708 = vmatpush1.bf16.msra.mxu1 %v21728_v36  ;;  %v21755_v36 = vld [vmem:[#allocation7 + $0x13d8] ss:$84 sps:$4 sm:$0xff]   ;;  %v21761_v4 = vld [vmem:[#allocation7 + $0x1330] ss:$84 sps:$4 sm:$0xff]   ;;  %v21766_v37 = vld [vmem:[#allocation7 + $0x15d4] ss:$84 sps:$4 sm:$0xff]  }
 0x48d   :  { %13664 = vmatprep.subr.bf16.mxu0 %v21733_v24  ;;  %13709 = vmatprep.subr.bf16.mxu1 %v21736_v40  ;;  %v21758_v24 = vld [vmem:[#allocation7 + $0x1678] ss:$84 sps:$4 sm:$0xff]   ;;  %v21763_v40 = vld [vmem:[#allocation7 + $0x1334] ss:$84 sps:$4 sm:$0xff]  }
 0x48e   :  { %25504 = vst [vmem:[#allocation84_spill] sm:$0xff] %v24344_v13 }
 0x48f   :  { %13665 = vmatpush1.bf16.msra.mxu0 %v21731_v39  ;;  %v21764_v39 = vld [vmem:[#allocation7 + $0x15d0] ss:$84 sps:$4 sm:$0xff]  }
 0x490   :  { %13710 = vmatpush1.bf16.msra.mxu1 %v21734_v55  ;;  %13666 = vmatprep.subr.bf16.mxu0 %v21739_v38  ;;  %v21769_v55 = vld [vmem:[#allocation7 + $0x128c] ss:$84 sps:$4 sm:$0xff]   ;;  %v21767_v38 = vld [vmem:[#allocation7 + $0x1288] ss:$84 sps:$4 sm:$0xff]  }
 0x491   :  { %13711 = vmatprep.subr.bf16.mxu1 %v21742_v61  ;;  %v21772_v61 = vld [vmem:[#allocation7 + $0x152c] ss:$84 sps:$4 sm:$0xff]  }
 0x493   :  { %13644 = vmatmul.mubr.bf16.gmra.mxu1 %v23837_v63  ;;  %13667 = vmatpush1.bf16.msra.mxu0 %v21737_v34  ;;  %v21770_v34 = vld [vmem:[#allocation7 + $0x1528] ss:$84 sps:$4 sm:$0xff]  }
 0x494   :  { %13712 = vmatpush1.bf16.msra.mxu1 %v21740_v22  ;;  %13739 = vmatprep.mubr.bf16.mxu1 %v23875_v56  ;;  %v21775_v22 = vld [vmem:[#allocation7 + $0x11e4] ss:$84 sps:$4 sm:$0xff]  }
 0x495   :  { %13668 = vmatprep.subr.bf16.mxu0 %v21745_v16  ;;  %13713 = vmatprep.subr.bf16.mxu1 %v21748_v21  ;;  %v21778_v16 = vld [vmem:[#allocation7 + $0x1f04] ss:$84 sps:$4 sm:$0xff]   ;;  %v21776_v21 = vld [vmem:[#allocation7 + $0x1f00] ss:$84 sps:$4 sm:$0xff]  }
 0x497   :  { %13669 = vmatpush1.bf16.msra.mxu0 %v21743_v52  ;;  %v21773_v52 = vld [vmem:[#allocation7 + $0x11e0] ss:$84 sps:$4 sm:$0xff]  }
 0x498   :  { %13714 = vmatpush1.bf16.msra.mxu1 %v21746_v18  ;;  %13670 = vmatprep.subr.bf16.mxu0 %v21751_v0  ;;  %v21781_v18 = vld [vmem:[#allocation7 + $0x113c] ss:$84 sps:$4 sm:$0xff]   ;;  %v21779_v0 = vld [vmem:[#allocation7 + $0x1138] ss:$84 sps:$4 sm:$0xff]  }
 0x499   :  { %13715 = vmatprep.subr.bf16.mxu1 %v21754_v51  ;;  %v21784_v51 = vld [vmem:[#allocation7 + $0x1e5c] ss:$84 sps:$4 sm:$0xff]  }
 0x49b   :  { %13671 = vmatpush2.bf16.msra.mxu0 %v21749_v62  ;;  %v21782_v62 = vld [vmem:[#allocation7 + $0x1e58] ss:$84 sps:$4 sm:$0xff]  }
 0x49c   :  { %13716 = vmatpush1.bf16.msra.mxu1 %v21752_v14  ;;  %13672 = vmatprep.subr.bf16.mxu0 %v21757_v31  ;;  %v21787_v14 = vld [vmem:[#allocation7 + $0x1094] ss:$84 sps:$4 sm:$0xff]   ;;  %v21785_v31 = vld [vmem:[#allocation7 + $0x1090] ss:$84 sps:$4 sm:$0xff]  }
 0x49d   :  { %13717 = vmatprep.subr.bf16.mxu1 %v21760_v42  ;;  %v21790_v42 = vld [vmem:[#allocation7 + $0x1db4] ss:$84 sps:$4 sm:$0xff]  }
 0x49f   :  { %13673 = vmatpush2.bf16.msra.mxu0 %v21755_v36  ;;  %v21788_v36 = vld [vmem:[#allocation7 + $0x1db0] ss:$84 sps:$4 sm:$0xff]  }
 0x4a0   :  { %13718 = vmatpush1.bf16.msra.mxu1 %v21758_v24  ;;  %13674 = vmatprep.subr.bf16.mxu0 %v21763_v40  ;;  %v21793_v24 = vld [vmem:[#allocation7 + $0xfec] ss:$84 sps:$4 sm:$0xff]  }
 0x4a1   :  { %13719 = vmatprep.subr.bf16.mxu1 %v21766_v37  ;;  %v21796_v40 = vld [vmem:[#allocation7 + $0x1d0c] ss:$84 sps:$4 sm:$0xff]  }
 0x4a2   :  { %v2990_v37 = vld [vmem:[#allocation8 + $0x8] sm:$0xff] }
 0x4a3   :  { %13675 = vmatpush2.bf16.msra.mxu0 %v21761_v4  ;;  %v21791_v4 = vld [vmem:[#allocation7 + $0xfe8] ss:$84 sps:$4 sm:$0xff]  }
 0x4a4   :  { %13720 = vmatpush1.bf16.msra.mxu1 %v21764_v39  ;;  %13676 = vmatprep.subr.bf16.mxu0 %v21769_v55  ;;  %v21794_v39 = vld [vmem:[#allocation7 + $0x1d08] ss:$84 sps:$4 sm:$0xff]   ;;  %v21799_v55 = vld [vmem:[#allocation7 + $0x1c64] ss:$84 sps:$4 sm:$0xff]  }
 0x4a5   :  { %13721 = vmatprep.subr.bf16.mxu1 %v21772_v61  ;;  %v3030_v61 = vrot.slane %v2990_v37, %v23809_v50 }
 0x4a7   :  { %13677 = vmatpush2.bf16.msra.mxu0 %v21767_v38  ;;  %v21802_v38 = vld [vmem:[#allocation7 + $0x2444] ss:$84 sps:$4 sm:$0xff]  }
 0x4a8   :  { %13722 = vmatpush1.bf16.msra.mxu1 %v21770_v34  ;;  %13678 = vmatprep.subr.bf16.mxu0 %v21775_v22  ;;  %v21800_v34 = vld [vmem:[#allocation7 + $0x2440] ss:$84 sps:$4 sm:$0xff]   ;;  %v24350_v22 = vpop.f32.mrf.mxu0 }
 0x4a9   :  { %13723 = vmatprep.subr.bf16.mxu1 %v21778_v16  ;;  %25505 = vst [vmem:[#allocation85_spill] sm:$0xff] %v24350_v22  ;;  %v21808_v16 = vld [vmem:[#allocation7 + $0x239c] ss:$84 sps:$4 sm:$0xff]   ;;  %v21820_v22 = vld [vmem:[#allocation7 + $0x224c] ss:$84 sps:$4 sm:$0xff]  }
 0x4ab   :  { %13679 = vmatpush2.bf16.msra.mxu0 %v21773_v52  ;;  %v21797_v52 = vld [vmem:[#allocation7 + $0x1c60] ss:$84 sps:$4 sm:$0xff]  }
 0x4ac   :  { %13724 = vmatpush2.bf16.msra.mxu1 %v21776_v21  ;;  %13680 = vmatprep.subr.bf16.mxu0 %v21781_v18  ;;  %v24352_v21 = vpop.f32.mrf.mxu1  ;;  %v24355_v18 = vrot.slane %v2990_v37, %v23806_v48  ;;  %v21811_v37 = vld [vmem:[#allocation7 + $0x1b14] ss:$84 sps:$4 sm:$0xff]  }
 0x4ad   :  { %13725 = vmatprep.subr.bf16.mxu1 %v21784_v51  ;;  %25506 = vst [vmem:[#allocation86_spill] sm:$0xff] %v24352_v21 }
 0x4ae   :  { %25507 = vst [vmem:[#allocation87_spill] sm:$0xff] %v24355_v18 }
 0x4af   :  { %13681 = vmatpush2.bf16.msra.mxu0 %v21779_v0  ;;  %v21805_v0 = vld [vmem:[#allocation7 + $0x1bbc] ss:$84 sps:$4 sm:$0xff]  }
 0x4b0   :  { %13726 = vmatpush2.bf16.msra.mxu1 %v21782_v62  ;;  %13682 = vmatprep.subr.bf16.mxu0 %v21787_v14 }
 0x4b1   :  { %13727 = vmatprep.subr.bf16.mxu1 %v21790_v42  ;;  %v21803_v42 = vld [vmem:[#allocation7 + $0x1bb8] ss:$84 sps:$4 sm:$0xff]  }
 0x4b3   :  { %13683 = vmatpush2.bf16.msra.mxu0 %v21785_v31 }
 0x4b4   :  { %13728 = vmatpush2.bf16.msra.mxu1 %v21788_v36  ;;  %13684 = vmatprep.subr.bf16.mxu0 %v21793_v24  ;;  %v21806_v36 = vld [vmem:[#allocation7 + $0x2398] ss:$84 sps:$4 sm:$0xff]  }
 0x4b5   :  { %13729 = vmatprep.subr.bf16.mxu1 %v21796_v40 }
 0x4b7   :  { %13685 = vmatpush2.bf16.msra.mxu0 %v21791_v4 }
 0x4b8   :  { %13730 = vmatpush2.bf16.msra.mxu1 %v21794_v39  ;;  %v13317_v51 = vpop.f32.mrf.mxu0  ;;  %13760 = vmatprep.subr.bf16.mxu0 %v21802_v38  ;;  %v21814_v39 = vld [vmem:[#allocation7 + $0x22f4] ss:$84 sps:$4 sm:$0xff]  }
 0x4b9   :  { %v13318_v62 = vadd.f32 %v13317_v51, %v3030_v61  ;;  %v13370_v14 = vpop.f32.mrf.mxu1  ;;  %13731 = vmatprep.subr.bf16.mxu1 %v21799_v55 }
 0x4ba   :  { %13687 = vmatmul.mubr.bf16.vlgmr.msra.gmra.mxu0 %v23823_v17  ;;  %v13319_v31 = vpop.f32.mrf.mxu0 }
 0x4bb   :  { %v24358_v24 = vadd.f32 %v13370_v14, %v13318_v62  ;;  %13696 = vmatprep.mubr.bf16.mxu0 %v23843_v57  ;;  %13761 = vmatpush1.bf16.msra.mxu0 %v21800_v34  ;;  %v13320_v40 = vadd.f32 %v13319_v31, %v24355_v18  ;;  %v13372_v4 = vpop.f32.mrf.mxu1  ;;  %v21809_v62 = vld [vmem:[#allocation7 + $0x1b10] ss:$84 sps:$4 sm:$0xff]   ;;  %v21817_v31 = vld [vmem:[#allocation7 + $0x1a6c] ss:$84 sps:$4 sm:$0xff]  }
 0x4bc   :  { %13732 = vmatpush2.bf16.msra.mxu1 %v21797_v52  ;;  %v13321_v38 = vpop.f32.mrf.mxu0  ;;  %13762 = vmatprep.subr.bf16.mxu0 %v21808_v16  ;;  %v21812_v14 = vld [vmem:[#allocation7 + $0x22f0] ss:$84 sps:$4 sm:$0xff]  }
 0x4bd   :  { %v24362_v51 = vadd.f32 %v13372_v4, %v13320_v40  ;;  %v13322_v55 = vadd.f32 %v13321_v38, %v3030_v61  ;;  %v13374_v13 = vpop.f32.mrf.mxu1  ;;  %13733 = vmatprep.subr.bf16.mxu1 %v21805_v0  ;;  %v21815_v4 = vld [vmem:[#allocation7 + $0x1a68] ss:$84 sps:$4 sm:$0xff]  }
 0x4be   :  { %v24364_v35 = vpop.f32.mrf.mxu0  ;;  %v21818_v38 = vld [vmem:[#allocation7 + $0x2248] ss:$84 sps:$4 sm:$0xff]  }
 0x4bf   :  { %25508 = vst [vmem:[#allocation88_spill] sm:$0xff] %v24364_v35  ;;  %v24366_v2 = vadd.f32 %v13374_v13, %v13322_v55  ;;  %13763 = vmatpush1.bf16.msra.mxu0 %v21806_v36  ;;  %v24368_v34 = vpop.f32.mrf.mxu1  ;;  %v21823_v55 = vld [vmem:[#allocation7 + $0x21a4] ss:$84 sps:$4 sm:$0xff]   ;;  %v21824_v35 = vld [vmem:[#allocation7 + $0x2ec0] ss:$84 sps:$4 sm:$0xff]  }
 0x4c0   :  { %25509 = vst [vmem:[#allocation89_spill] sm:$0xff] %v24368_v34  ;;  %13734 = vmatpush2.bf16.msra.mxu1 %v21803_v42  ;;  %v13327_v52 = vpop.f32.mrf.mxu0  ;;  %13764 = vmatprep.subr.bf16.mxu0 %v21814_v39  ;;  %v21826_v42 = vld [vmem:[#allocation7 + $0x2ec4] ss:$84 sps:$4 sm:$0xff]   ;;  %v21821_v34 = vld [vmem:[#allocation7 + $0x21a0] ss:$84 sps:$4 sm:$0xff]  }
 0x4c1   :  { %v13328_v16 = vadd.f32 %v13327_v52, %v3030_v61  ;;  %v13380_v40 = vpop.f32.mrf.mxu1  ;;  %13735 = vmatprep.subr.bf16.mxu1 %v21811_v37 }
 0x4c2   :  { %13697 = vmatmul.mubr.bf16.gmra.mxu0 %v23839_v1  ;;  %v13329_v0 = vpop.f32.mrf.mxu0 }
 0x4c3   :  { %v24371_v21 = vadd.f32 %v13380_v40, %v13328_v16  ;;  %13765 = vmatpush1.bf16.msra.mxu0 %v21812_v14  ;;  %13792 = vmatprep.mubr.bf16.mxu0 %v23877_v43  ;;  %v13330_v13 = vadd.f32 %v13329_v0, %v24355_v18  ;;  %v13382_v36 = vpop.f32.mrf.mxu1  ;;  %v21829_v14 = vld [vmem:[#allocation7 + $0x20fc] ss:$84 sps:$4 sm:$0xff]   ;;  %v21827_v0 = vld [vmem:[#allocation7 + $0x20f8] ss:$84 sps:$4 sm:$0xff]  }
 0x4c4   :  { %13736 = vmatpush2.bf16.msra.mxu1 %v21809_v62  ;;  %v13331_v39 = vpop.f32.mrf.mxu0  ;;  %13766 = vmatprep.subr.bf16.mxu0 %v21820_v22  ;;  %v21832_v40 = vld [vmem:[#allocation7 + $0x2e1c] ss:$84 sps:$4 sm:$0xff]   ;;  %v21830_v18 = vld [vmem:[#allocation7 + $0x2e18] ss:$84 sps:$4 sm:$0xff]   ;;  %v21835_v22 = vld [vmem:[#allocation7 + $0x2054] ss:$84 sps:$4 sm:$0xff]  }
 0x4c5   :  { %v24375_v52 = vadd.f32 %v13382_v36, %v13330_v13  ;;  %v13332_v37 = vadd.f32 %v13331_v39, %v3030_v61  ;;  %13737 = vmatprep.subr.bf16.mxu1 %v21817_v31  ;;  %v13384_v11 = vpop.f32.mrf.mxu1  ;;  %v21838_v62 = vld [vmem:[#allocation7 + $0x2d74] ss:$84 sps:$4 sm:$0xff]   ;;  %v21836_v61 = vld [vmem:[#allocation7 + $0x2d70] ss:$84 sps:$4 sm:$0xff]   ;;  %v21841_v31 = vld [vmem:[#allocation7 + $0x1fac] ss:$84 sps:$4 sm:$0xff]  }
 0x4c6   :  { %v21842_v13 = vld [vmem:[#allocation7 + $0x2cc8] ss:$84 sps:$4 sm:$0xff]   ;;  %v21850_v36 = vld [vmem:[#allocation7 + $0x2c24] ss:$84 sps:$4 sm:$0xff]  }
 0x4c7   :  { %v24377_v16 = vadd.f32 %v13384_v11, %v13332_v37  ;;  %13767 = vmatpush1.bf16.msra.mxu0 %v21818_v38  ;;  %v21833_v11 = vld [vmem:[#allocation7 + $0x2050] ss:$84 sps:$4 sm:$0xff]   ;;  %v21844_v38 = vld [vmem:[#allocation7 + $0x2ccc] ss:$84 sps:$4 sm:$0xff]  }
 0x4c8   :  { %13738 = vmatpush2.bf16.msra.mxu1 %v21815_v4  ;;  %13768 = vmatprep.subr.bf16.mxu0 %v21823_v55  ;;  %v21839_v4 = vld [vmem:[#allocation7 + $0x1fa8] ss:$84 sps:$4 sm:$0xff]   ;;  %v21848_v55 = vld [vmem:[#allocation7 + $0x2c20] ss:$84 sps:$4 sm:$0xff]   ;;  %v21854_v37 = vld [vmem:[#allocation7 + $0x2b78] ss:$84 sps:$4 sm:$0xff]  }
 0x4c9   :  { %13813 = vmatprep.subr.bf16.mxu1 %v21826_v42  ;;  %v21853_v42 = vld [vmem:[#allocation7 + $0x28dc] ss:$84 sps:$4 sm:$0xff]  }
 0x4ca   :  { %v21856_v39 = vld [vmem:[#allocation7 + $0x2b7c] ss:$84 sps:$4 sm:$0xff]  }
 0x4cb   :  { %13740 = vmatmul.mubr.bf16.vlgmr.msra.gmra.mxu1 %v23922_v53  ;;  %13769 = vmatpush1.bf16.msra.mxu0 %v21821_v34  ;;  %v21847_v34 = vld [vmem:[#allocation7 + $0x2984] ss:$84 sps:$4 sm:$0xff]  }
 0x4cc   :  { %13749 = vmatprep.mubr.bf16.mxu1 %v23926_v47  ;;  %13814 = vmatpush1.bf16.msra.mxu1 %v21824_v35  ;;  %v21845_v35 = vld [vmem:[#allocation7 + $0x2980] ss:$84 sps:$4 sm:$0xff]  }
 0x4cd   :  { %13770 = vmatprep.subr.bf16.mxu0 %v21829_v14  ;;  %13815 = vmatprep.subr.bf16.mxu1 %v21832_v40  ;;  %v21859_v14 = vld [vmem:[#allocation7 + $0x2834] ss:$84 sps:$4 sm:$0xff]   ;;  %v21857_v40 = vld [vmem:[#allocation7 + $0x2830] ss:$84 sps:$4 sm:$0xff]  }
 0x4cf   :  { %13771 = vmatpush1.bf16.msra.mxu0 %v21827_v0  ;;  %v21862_v0 = vld [vmem:[#allocation7 + $0x2ad4] ss:$84 sps:$4 sm:$0xff]  }
 0x4d0   :  { %13816 = vmatpush1.bf16.msra.mxu1 %v21830_v18  ;;  %13772 = vmatprep.subr.bf16.mxu0 %v21835_v22  ;;  %v21851_v18 = vld [vmem:[#allocation7 + $0x28d8] ss:$84 sps:$4 sm:$0xff]   ;;  %v21860_v22 = vld [vmem:[#allocation7 + $0x2ad0] ss:$84 sps:$4 sm:$0xff]  }
 0x4d1   :  { %13817 = vmatprep.subr.bf16.mxu1 %v21838_v62  ;;  %v21865_v62 = vld [vmem:[#allocation7 + $0x278c] ss:$84 sps:$4 sm:$0xff]  }
 0x4d3   :  { %13750 = vmatmul.mubr.bf16.gmra.mxu1 %v23936_v5  ;;  %13773 = vmatpush1.bf16.msra.mxu0 %v21833_v11  ;;  %v21863_v11 = vld [vmem:[#allocation7 + $0x2788] ss:$84 sps:$4 sm:$0xff]  }
 0x4d4   :  { %13818 = vmatpush1.bf16.msra.mxu1 %v21836_v61  ;;  %13845 = vmatprep.mubr.bf16.mxu1 %v23940_v23  ;;  %v21868_v61 = vld [vmem:[#allocation7 + $0x2a2c] ss:$84 sps:$4 sm:$0xff]  }
 0x4d5   :  { %13774 = vmatprep.subr.bf16.mxu0 %v21841_v31  ;;  %13819 = vmatprep.subr.bf16.mxu1 %v21844_v38  ;;  %v21866_v31 = vld [vmem:[#allocation7 + $0x2a28] ss:$84 sps:$4 sm:$0xff]   ;;  %v21871_v38 = vld [vmem:[#allocation7 + $0x26e4] ss:$84 sps:$4 sm:$0xff]  }
 0x4d7   :  { %13775 = vmatpush1.bf16.msra.mxu0 %v21839_v4  ;;  %v21869_v4 = vld [vmem:[#allocation7 + $0x26e0] ss:$84 sps:$4 sm:$0xff]  }
 0x4d8   :  { %13820 = vmatpush1.bf16.msra.mxu1 %v21842_v13  ;;  %13776 = vmatprep.subr.bf16.mxu0 %v21847_v34  ;;  %v21874_v13 = vld [vmem:[#allocation7 + $0x3404] ss:$84 sps:$4 sm:$0xff]   ;;  %v21872_v34 = vld [vmem:[#allocation7 + $0x3400] ss:$84 sps:$4 sm:$0xff]  }
 0x4d9   :  { %13821 = vmatprep.subr.bf16.mxu1 %v21850_v36  ;;  %v21877_v36 = vld [vmem:[#allocation7 + $0x263c] ss:$84 sps:$4 sm:$0xff]  }
 0x4db   :  { %13777 = vmatpush2.bf16.msra.mxu0 %v21845_v35  ;;  %v21875_v35 = vld [vmem:[#allocation7 + $0x2638] ss:$84 sps:$4 sm:$0xff]  }
 0x4dc   :  { %13822 = vmatpush1.bf16.msra.mxu1 %v21848_v55  ;;  %13778 = vmatprep.subr.bf16.mxu0 %v21853_v42  ;;  %v21880_v55 = vld [vmem:[#allocation7 + $0x335c] ss:$84 sps:$4 sm:$0xff]   ;;  %v21878_v42 = vld [vmem:[#allocation7 + $0x3358] ss:$84 sps:$4 sm:$0xff]  }
 0x4dd   :  { %13823 = vmatprep.subr.bf16.mxu1 %v21856_v39  ;;  %v21883_v39 = vld [vmem:[#allocation7 + $0x2594] ss:$84 sps:$4 sm:$0xff]  }
 0x4df   :  { %13779 = vmatpush2.bf16.msra.mxu0 %v21851_v18  ;;  %v21881_v18 = vld [vmem:[#allocation7 + $0x2590] ss:$84 sps:$4 sm:$0xff]  }
 0x4e0   :  { %13824 = vmatpush1.bf16.msra.mxu1 %v21854_v37  ;;  %13780 = vmatprep.subr.bf16.mxu0 %v21859_v14  ;;  %v21886_v37 = vld [vmem:[#allocation7 + $0x32b4] ss:$84 sps:$4 sm:$0xff]   ;;  %v21884_v14 = vld [vmem:[#allocation7 + $0x32b0] ss:$84 sps:$4 sm:$0xff]  }
 0x4e1   :  { %13825 = vmatprep.subr.bf16.mxu1 %v21862_v0  ;;  %v21887_v0 = vld [vmem:[#allocation7 + $0x24e8] ss:$84 sps:$4 sm:$0xff]  }
 0x4e3   :  { %13781 = vmatpush2.bf16.msra.mxu0 %v21857_v40  ;;  %v21889_v40 = vld [vmem:[#allocation7 + $0x24ec] ss:$84 sps:$4 sm:$0xff]  }
 0x4e4   :  { %13826 = vmatpush1.bf16.msra.mxu1 %v21860_v22  ;;  %13782 = vmatprep.subr.bf16.mxu0 %v21865_v62  ;;  %v21892_v22 = vld [vmem:[#allocation7 + $0x320c] ss:$84 sps:$4 sm:$0xff]   ;;  %v21890_v62 = vld [vmem:[#allocation7 + $0x3208] ss:$84 sps:$4 sm:$0xff]  }
 0x4e5   :  { %13827 = vmatprep.subr.bf16.mxu1 %v21868_v61  ;;  %v21895_v61 = vld [vmem:[#allocation7 + $0x3164] ss:$84 sps:$4 sm:$0xff]  }
 0x4e7   :  { %13783 = vmatpush2.bf16.msra.mxu0 %v21863_v11  ;;  %v21898_v11 = vld [vmem:[#allocation7 + $0x36a4] ss:$84 sps:$4 sm:$0xff]  }
 0x4e8   :  { %13828 = vmatpush1.bf16.msra.mxu1 %v21866_v31  ;;  %13784 = vmatprep.subr.bf16.mxu0 %v21871_v38  ;;  %v21896_v31 = vld [vmem:[#allocation7 + $0x36a0] ss:$84 sps:$4 sm:$0xff]  }
 0x4e9   :  { %13829 = vmatprep.subr.bf16.mxu1 %v21874_v13  ;;  %v21893_v38 = vld [vmem:[#allocation7 + $0x3160] ss:$84 sps:$4 sm:$0xff]   ;;  %v24383_v13 = vpop.f32.mrf.mxu0 }
 0x4ea   :  { %25510 = vst [vmem:[#allocation90_spill] sm:$0xff] %v24383_v13 }
 0x4eb   :  { %13785 = vmatpush2.bf16.msra.mxu0 %v21869_v4  ;;  %v21904_v4 = vld [vmem:[#allocation7 + $0x35fc] ss:$84 sps:$4 sm:$0xff]  }
 0x4ec   :  { %13830 = vmatpush2.bf16.msra.mxu1 %v21872_v34  ;;  %13786 = vmatprep.subr.bf16.mxu0 %v21877_v36  ;;  %v21901_v34 = vld [vmem:[#allocation7 + $0x30bc] ss:$84 sps:$4 sm:$0xff]   ;;  %v24385_v36 = vpop.f32.mrf.mxu1 }
 0x4ed   :  { %13831 = vmatprep.subr.bf16.mxu1 %v21880_v55  ;;  %25511 = vst [vmem:[#allocation91_spill] sm:$0xff] %v24385_v36 }
 0x4ef   :  { %13787 = vmatpush2.bf16.msra.mxu0 %v21875_v35 }
 0x4f0   :  { %13832 = vmatpush2.bf16.msra.mxu1 %v21878_v42  ;;  %13788 = vmatprep.subr.bf16.mxu0 %v21883_v39  ;;  %v21899_v39 = vld [vmem:[#allocation7 + $0x30b8] ss:$84 sps:$4 sm:$0xff]  }
 0x4f1   :  { %13833 = vmatprep.subr.bf16.mxu1 %v21886_v37 }
 0x4f3   :  { %13789 = vmatpush2.bf16.msra.mxu0 %v21881_v18  ;;  %v21902_v18 = vld [vmem:[#allocation7 + $0x35f8] ss:$84 sps:$4 sm:$0xff]  }
 0x4f4   :  { %13834 = vmatpush2.bf16.msra.mxu1 %v21884_v14  ;;  %13790 = vmatprep.subr.bf16.mxu0 %v21889_v40  ;;  %v21907_v14 = vld [vmem:[#allocation7 + $0x3014] ss:$84 sps:$4 sm:$0xff]  }
 0x4f5   :  { %13835 = vmatprep.subr.bf16.mxu1 %v21892_v22  ;;  %v21910_v40 = vld [vmem:[#allocation7 + $0x3554] ss:$84 sps:$4 sm:$0xff]  }
 0x4f7   :  { %13791 = vmatpush2.bf16.msra.mxu0 %v21887_v0 }
 0x4f8   :  { %13836 = vmatpush2.bf16.msra.mxu1 %v21890_v62  ;;  %13874 = vmatprep.subr.bf16.mxu0 %v21898_v11 }
 0x4f9   :  { %v13423_v35 = vpop.f32.mrf.mxu0  ;;  %13837 = vmatprep.subr.bf16.mxu1 %v21895_v61 }
 0x4fa   :  { %v13424_v55 = vadd.f32 %v13423_v35, %v24358_v24  ;;  %v13476_v42 = vpop.f32.mrf.mxu1  ;;  %13793 = vmatmul.mubr.bf16.vlgmr.msra.gmra.mxu0 %v23913_v15 }
 0x4fb   :  { %13802 = vmatprep.mubr.bf16.mxu0 %v23928_v6  ;;  %13875 = vmatpush1.bf16.msra.mxu0 %v21896_v31  ;;  %v13425_v37 = vpop.f32.mrf.mxu0  ;;  %v21908_v31 = vld [vmem:[#allocation7 + $0x3550] ss:$84 sps:$4 sm:$0xff]  }
 0x4fc   :  { %v24390_v0 = vadd.f32 %v13476_v42, %v13424_v55  ;;  %13838 = vmatpush2.bf16.msra.mxu1 %v21893_v38  ;;  %v13426_v22 = vadd.f32 %v13425_v37, %v24362_v51  ;;  %v13478_v62 = vpop.f32.mrf.mxu1  ;;  %13876 = vmatprep.subr.bf16.mxu0 %v21904_v4  ;;  %v21905_v38 = vld [vmem:[#allocation7 + $0x3010] ss:$84 sps:$4 sm:$0xff]   ;;  %v21916_v51 = vld [vmem:[#allocation7 + $0x34ac] ss:$84 sps:$4 sm:$0xff]  }
 0x4fd   :  { %v13427_v11 = vpop.f32.mrf.mxu0  ;;  %13839 = vmatprep.subr.bf16.mxu1 %v21901_v34  ;;  %v21913_v34 = vld [vmem:[#allocation7 + $0x2f6c] ss:$84 sps:$4 sm:$0xff]  }
 0x4fe   :  { %v24393_v24 = vadd.f32 %v13478_v62, %v13426_v22  ;;  %v13428_v61 = vadd.f32 %v13427_v11, %v24366_v2  ;;  %v13480_v35 = vpop.f32.mrf.mxu1  ;;  %v21911_v62 = vld [vmem:[#allocation7 + $0x2f68] ss:$84 sps:$4 sm:$0xff]  }
 0x4ff   :  { %13877 = vmatpush1.bf16.msra.mxu0 %v21902_v18  ;;  %v24396_v36 = vpop.f32.mrf.mxu0  ;;  %v21914_v18 = vld [vmem:[#allocation7 + $0x34a8] ss:$84 sps:$4 sm:$0xff]  }
 0x500   :  { %25512 = vst [vmem:[#allocation92_spill] sm:$0xff] %v24396_v36  ;;  %v24398_v13 = vadd.f32 %v13480_v35, %v13428_v61  ;;  %13840 = vmatpush2.bf16.msra.mxu1 %v21899_v39  ;;  %v24400_v55 = vpop.f32.mrf.mxu1  ;;  %13878 = vmatprep.subr.bf16.mxu0 %v21910_v40 }
 0x501   :  { %25513 = vst [vmem:[#allocation93_spill] sm:$0xff] %v24400_v55  ;;  %v13433_v4 = vpop.f32.mrf.mxu0  ;;  %13841 = vmatprep.subr.bf16.mxu1 %v21907_v14  ;;  %v21919_v14 = vld [vmem:[#allocation7 + $0x4cc] ss:$84 sps:$4 sm:$0xff]  }
 0x502   :  { %v13434_v42 = vadd.f32 %v13433_v4, %v24371_v21  ;;  %v13486_v37 = vpop.f32.mrf.mxu1  ;;  %13803 = vmatmul.mubr.bf16.gmra.mxu0 %v23938_v10  ;;  %v21922_v21 = vld [vmem:[#allocation7 + $0xf4c] ss:$84 sps:$4 sm:$0xff]   ;;  %v21917_v4 = vld [vmem:[#allocation7 + $0x4c8] ss:$84 sps:$4 sm:$0xff]  }
 0x503   :  { %13879 = vmatpush1.bf16.msra.mxu0 %v21908_v31  ;;  %v13435_v2 = vpop.f32.mrf.mxu0  ;;  %13898 = vmatprep.mubr.bf16.mxu0 %v25462_v44 }
 0x504   :  { %v24405_v22 = vadd.f32 %v13486_v37, %v13434_v42  ;;  %13842 = vmatpush2.bf16.msra.mxu1 %v21905_v38  ;;  %v13436_v39 = vadd.f32 %v13435_v2, %v24375_v52  ;;  %v13488_v40 = vpop.f32.mrf.mxu1  ;;  %13880 = vmatprep.subr.bf16.mxu0 %v21916_v51  ;;  %v21920_v38 = vld [vmem:[#allocation7 + $0xf48] ss:$84 sps:$4 sm:$0xff]   ;;  %v21925_v52 = vld [vmem:[#allocation7 + $0x424] ss:$84 sps:$4 sm:$0xff]   ;;  %v21923_v51 = vld [vmem:[#allocation7 + $0x420] ss:$84 sps:$4 sm:$0xff]  }
 0x505   :  { %v13437_v11 = vpop.f32.mrf.mxu0  ;;  %13843 = vmatprep.subr.bf16.mxu1 %v21913_v34  ;;  %v21928_v42 = vld [vmem:[#allocation7 + $0xea4] ss:$84 sps:$4 sm:$0xff]   ;;  %v21931_v34 = vld [vmem:[#allocation7 + $0x37c] ss:$84 sps:$4 sm:$0xff]  }
 0x506   :  { %v24408_v61 = vadd.f32 %v13488_v40, %v13436_v39  ;;  %v13438_v35 = vadd.f32 %v13437_v11, %v24377_v16  ;;  %v13490_v31 = vpop.f32.mrf.mxu1  ;;  %v21926_v16 = vld [vmem:[#allocation7 + $0xea0] ss:$84 sps:$4 sm:$0xff]   ;;  %v21934_v37 = vld [vmem:[#allocation7 + $0xdfc] ss:$84 sps:$4 sm:$0xff]   ;;  %v21929_v2 = vld [vmem:[#allocation7 + $0x378] ss:$84 sps:$4 sm:$0xff]  }
 0x507   :  { %13881 = vmatpush1.bf16.msra.mxu0 %v21914_v18  ;;  %v21932_v18 = vld [vmem:[#allocation7 + $0xdf8] ss:$84 sps:$4 sm:$0xff]   ;;  %v21937_v39 = vld [vmem:[#allocation7 + $0x2d4] ss:$84 sps:$4 sm:$0xff]  }
 0x508   :  { %v24411_v55 = vadd.f32 %v13490_v31, %v13438_v35  ;;  %13844 = vmatpush2.bf16.msra.mxu1 %v21911_v62  ;;  %13919 = vmatprep.subr.bf16.mxu0 %v21919_v14  ;;  %v21940_v40 = vld [vmem:[#allocation7 + $0xd54] ss:$84 sps:$4 sm:$0xff]   ;;  %v21935_v62 = vld [vmem:[#allocation7 + $0x2d0] ss:$84 sps:$4 sm:$0xff]   ;;  %v21943_v11 = vld [vmem:[#allocation7 + $0x22c] ss:$84 sps:$4 sm:$0xff]  }
 0x509   :  { %13972 = vmatprep.subr.bf16.mxu1 %v21922_v21  ;;  %v21938_v14 = vld [vmem:[#allocation7 + $0xd50] ss:$84 sps:$4 sm:$0xff]   ;;  %v21946_v21 = vld [vmem:[#allocation7 + $0xcac] ss:$84 sps:$4 sm:$0xff]   ;;  %v21941_v35 = vld [vmem:[#allocation7 + $0x228] ss:$84 sps:$4 sm:$0xff]  }
 0x50a   :  { %19542 = vmatmul.mubr.msk.bf16.vlgmr.msra.gmra.mxu0 %vm12004_vm8, %v23947_v41  ;;  %v21944_v31 = vld [vmem:[#allocation7 + $0xca8] ss:$84 sps:$4 sm:$0xff]  }
 0x50b   :  { %13846 = vmatmul.mubr.bf16.vlgmr.msra.gmra.mxu1 %v23963_v3  ;;  %13920 = vmatpush1.bf16.msra.mxu0 %v21917_v4  ;;  %v21949_v4 = vld [vmem:[#allocation7 + $0x184] ss:$84 sps:$4 sm:$0xff]  }
 0x50c   :  { %13855 = vmatprep.mubr.bf16.mxu1 %v23965_v12  ;;  %13973 = vmatpush1.bf16.msra.mxu1 %v21920_v38  ;;  %v21952_v38 = vld [vmem:[#allocation7 + $0xc04] ss:$84 sps:$4 sm:$0xff]  }
 0x50d   :  { %13921 = vmatprep.subr.bf16.mxu0 %v21925_v52  ;;  %13974 = vmatprep.subr.bf16.mxu1 %v21928_v42  ;;  %v21947_v52 = vld [vmem:[#allocation7 + $0x180] ss:$84 sps:$4 sm:$0xff]  }
 0x50e   :  { %13908 = vmatprep.mubr.bf16.mxu0 %v25462_v44  ;;  %v21950_v42 = vld [vmem:[#allocation7 + $0xc00] ss:$84 sps:$4 sm:$0xff]  }
 0x50f   :  { %13922 = vmatpush1.bf16.msra.mxu0 %v21923_v51  ;;  %v21955_v51 = vld [vmem:[#allocation7 + $0xdc] ss:$84 sps:$4 sm:$0xff]  }
 0x510   :  { %13975 = vmatpush1.bf16.msra.mxu1 %v21926_v16  ;;  %13923 = vmatprep.subr.bf16.mxu0 %v21931_v34  ;;  %v21958_v16 = vld [vmem:[#allocation7 + $0xb5c] ss:$84 sps:$4 sm:$0xff]   ;;  %v21953_v34 = vld [vmem:[#allocation7 + $0xd8] ss:$84 sps:$4 sm:$0xff]  }
 0x511   :  { %13976 = vmatprep.subr.bf16.mxu1 %v21934_v37  ;;  %v21956_v37 = vld [vmem:[#allocation7 + $0xb58] ss:$84 sps:$4 sm:$0xff]  }
 0x512   :  { %19543 = vmatmul.mubr.msk.bf16.gmra.mxu0 %vm12004_vm8, %v23952_v59 }
 0x513   :  { %13856 = vmatmul.mubr.bf16.gmra.mxu1 %v23969_v58  ;;  %13924 = vmatpush1.bf16.msra.mxu0 %v21929_v2  ;;  %v21961_v2 = vld [vmem:[#allocation7 + $0x34] ss:$84 sps:$4 sm:$0xff]  }
 0x514   :  { %13951 = vmatprep.mubr.bf16.mxu0 %v23825_v25  ;;  %13977 = vmatpush1.bf16.msra.mxu1 %v21932_v18  ;;  %v21964_v18 = vld [vmem:[#allocation7 + $0xab4] ss:$84 sps:$4 sm:$0xff]  }
 0x515   :  { %14004 = vmatprep.mubr.bf16.mxu1 %v23827_v26  ;;  %13925 = vmatprep.subr.bf16.mxu0 %v21937_v39  ;;  %v21959_v39 = vld [vmem:[#allocation7 + $0x30] ss:$84 sps:$4 sm:$0xff]  }
 0x516   :  { %13978 = vmatprep.subr.bf16.mxu1 %v21940_v40  ;;  %v21962_v40 = vld [vmem:[#allocation7 + $0xab0] ss:$84 sps:$4 sm:$0xff]  }
 0x517   :  { %13926 = vmatpush1.bf16.msra.mxu0 %v21935_v62  ;;  %v21967_v62 = vld [vmem:[#allocation7 + $0xa0c] ss:$84 sps:$4 sm:$0xff]  }
 0x518   :  { %13979 = vmatpush1.bf16.msra.mxu1 %v21938_v14  ;;  %13927 = vmatprep.subr.bf16.mxu0 %v21943_v11  ;;  %v21970_v14 = vld [vmem:[#allocation7 + $0x148c] ss:$84 sps:$4 sm:$0xff]   ;;  %v21965_v11 = vld [vmem:[#allocation7 + $0xa08] ss:$84 sps:$4 sm:$0xff]  }
 0x519   :  { %13980 = vmatprep.subr.bf16.mxu1 %v21946_v21  ;;  %v21968_v21 = vld [vmem:[#allocation7 + $0x1488] ss:$84 sps:$4 sm:$0xff]  }
 0x51b   :  { %13928 = vmatpush1.bf16.msra.mxu0 %v21941_v35  ;;  %v21973_v35 = vld [vmem:[#allocation7 + $0x964] ss:$84 sps:$4 sm:$0xff]  }
 0x51c   :  { %13981 = vmatpush1.bf16.msra.mxu1 %v21944_v31  ;;  %13929 = vmatprep.subr.bf16.mxu0 %v21949_v4  ;;  %v21976_v31 = vld [vmem:[#allocation7 + $0x13e4] ss:$84 sps:$4 sm:$0xff]   ;;  %v21971_v4 = vld [vmem:[#allocation7 + $0x960] ss:$84 sps:$4 sm:$0xff]  }
 0x51d   :  { %13982 = vmatprep.subr.bf16.mxu1 %v21952_v38  ;;  %v24423_v38 = vpop.f32.mrf.mxu1 }
 0x51e   :  { %25514 = vst [vmem:[#allocation94_spill] sm:$0xff] %v24423_v38  ;;  %v22003_v38 = vld [vmem:[#allocation7 + $0x61c] ss:$84 sps:$4 sm:$0xff]  }
 0x51f   :  { %13930 = vmatpush1.bf16.msra.mxu0 %v21947_v52  ;;  %v21974_v52 = vld [vmem:[#allocation7 + $0x13e0] ss:$84 sps:$4 sm:$0xff]  }
 0x520   :  { %13983 = vmatpush1.bf16.msra.mxu1 %v21950_v42  ;;  %13931 = vmatprep.subr.bf16.mxu0 %v21955_v51  ;;  %v21979_v42 = vld [vmem:[#allocation7 + $0x8bc] ss:$84 sps:$4 sm:$0xff]  }
 0x521   :  { %13984 = vmatprep.subr.bf16.mxu1 %v21958_v16  ;;  %v21982_v51 = vld [vmem:[#allocation7 + $0x133c] ss:$84 sps:$4 sm:$0xff]   ;;  %v21977_v16 = vld [vmem:[#allocation7 + $0x8b8] ss:$84 sps:$4 sm:$0xff]  }
 0x523   :  { %13932 = vmatpush1.bf16.msra.mxu0 %v21953_v34  ;;  %v13582_v34 = vpop.f32.mrf.mxu1 }
 0x524   :  { %13985 = vmatpush1.bf16.msra.mxu1 %v21956_v37  ;;  %13933 = vmatprep.subr.bf16.mxu0 %v21961_v2  ;;  %v21980_v37 = vld [vmem:[#allocation7 + $0x1338] ss:$84 sps:$4 sm:$0xff]   ;;  %v21985_v2 = vld [vmem:[#allocation7 + $0x814] ss:$84 sps:$4 sm:$0xff]  }
 0x525   :  { %13986 = vmatprep.subr.bf16.mxu1 %v21964_v18  ;;  %v21988_v18 = vld [vmem:[#allocation7 + $0x1294] ss:$84 sps:$4 sm:$0xff]  }
 0x527   :  { %13934 = vmatpush1.bf16.msra.mxu0 %v21959_v39  ;;  %v21983_v39 = vld [vmem:[#allocation7 + $0x810] ss:$84 sps:$4 sm:$0xff]  }
 0x528   :  { %13987 = vmatpush1.bf16.msra.mxu1 %v21962_v40  ;;  %13935 = vmatprep.subr.bf16.mxu0 %v21967_v62  ;;  %v13584_v40 = vpop.f32.mrf.mxu1  ;;  %v21986_v62 = vld [vmem:[#allocation7 + $0x1290] ss:$84 sps:$4 sm:$0xff]  }
 0x529   :  { %13988 = vmatprep.subr.bf16.mxu1 %v21970_v14  ;;  %v21991_v14 = vld [vmem:[#allocation7 + $0x76c] ss:$84 sps:$4 sm:$0xff]  }
 0x52b   :  { %13936 = vmatpush2.bf16.msra.mxu0 %v21965_v11  ;;  %v21994_v11 = vld [vmem:[#allocation7 + $0x11ec] ss:$84 sps:$4 sm:$0xff]  }
 0x52c   :  { %13989 = vmatpush2.bf16.msra.mxu1 %v21968_v21  ;;  %13937 = vmatprep.subr.bf16.mxu0 %v21973_v35  ;;  %v21989_v21 = vld [vmem:[#allocation7 + $0x768] ss:$84 sps:$4 sm:$0xff]   ;;  %v24425_v35 = vpop.f32.mrf.mxu0 }
 0x52d   :  { %13990 = vmatprep.subr.bf16.mxu1 %v21976_v31  ;;  %25515 = vst [vmem:[#allocation95_spill] sm:$0xff] %v24425_v35  ;;  %v13586_v31 = vpop.f32.mrf.mxu1 }
 0x52f   :  { %13938 = vmatpush2.bf16.msra.mxu0 %v21971_v4  ;;  %v21992_v4 = vld [vmem:[#allocation7 + $0x11e8] ss:$84 sps:$4 sm:$0xff]  }
 0x530   :  { %13991 = vmatpush2.bf16.msra.mxu1 %v21974_v52  ;;  %13939 = vmatprep.subr.bf16.mxu0 %v21979_v42  ;;  %v21997_v52 = vld [vmem:[#allocation7 + $0x6c4] ss:$84 sps:$4 sm:$0xff]  }
 0x531   :  { %13992 = vmatprep.subr.bf16.mxu1 %v21982_v51  ;;  %v22000_v42 = vld [vmem:[#allocation7 + $0x1144] ss:$84 sps:$4 sm:$0xff]  }
 0x533   :  { %13940 = vmatpush2.bf16.msra.mxu0 %v21977_v16 }
 0x534   :  { %13993 = vmatpush2.bf16.msra.mxu1 %v21980_v37  ;;  %13941 = vmatprep.subr.bf16.mxu0 %v21985_v2  ;;  %v21995_v37 = vld [vmem:[#allocation7 + $0x6c0] ss:$84 sps:$4 sm:$0xff]   ;;  %v24428_v2 = vpop.f32.mrf.mxu1 }
 0x535   :  { %13994 = vmatprep.subr.bf16.mxu1 %v21988_v18  ;;  %25516 = vst [vmem:[#allocation96_spill] sm:$0xff] %v24428_v2 }
 0x537   :  { %13942 = vmatpush2.bf16.msra.mxu0 %v21983_v39  ;;  %v21998_v39 = vld [vmem:[#allocation7 + $0x1140] ss:$84 sps:$4 sm:$0xff]  }
 0x538   :  { %13995 = vmatpush2.bf16.msra.mxu1 %v21986_v62  ;;  %13943 = vmatprep.subr.bf16.mxu0 %v21991_v14  ;;  %v22006_v14 = vld [vmem:[#allocation7 + $0x109c] ss:$84 sps:$4 sm:$0xff]  }
 0x539   :  { %13996 = vmatprep.subr.bf16.mxu1 %v21994_v11 }
 0x53a   :  { %v13529_v51 = vpop.f32.mrf.mxu0 }
 0x53b   :  { %v13530_v16 = vadd.f32 %v13529_v51, %v24390_v0  ;;  %13944 = vmatpush2.bf16.msra.mxu0 %v21989_v21  ;;  %v22001_v0 = vld [vmem:[#allocation7 + $0x618] ss:$84 sps:$4 sm:$0xff]   ;;  %v13592_v21 = vpop.f32.mrf.mxu1 }
 0x53c   :  { %13997 = vmatpush2.bf16.msra.mxu1 %v21992_v4  ;;  %v13531_v18 = vpop.f32.mrf.mxu0  ;;  %13945 = vmatprep.subr.bf16.mxu0 %v21997_v52  ;;  %v22004_v4 = vld [vmem:[#allocation7 + $0x1098] ss:$84 sps:$4 sm:$0xff]   ;;  %v22009_v52 = vld [vmem:[#allocation7 + $0x574] ss:$84 sps:$4 sm:$0xff]  }
 0x53d   :  { %v13583_v35 = vadd.f32 %v13582_v34, %v13530_v16  ;;  %v13532_v62 = vadd.f32 %v13531_v18, %v24393_v24  ;;  %13998 = vmatprep.subr.bf16.mxu1 %v22000_v42  ;;  %v22012_v34 = vld [vmem:[#allocation7 + $0xff4] ss:$84 sps:$4 sm:$0xff]   ;;  %v22007_v18 = vld [vmem:[#allocation7 + $0x570] ss:$84 sps:$4 sm:$0xff]  }
 0x53e   :  { %v13533_v36 = vpop.f32.mrf.mxu0 }
 0x53f   :  { %v24431_v11 = vadd.f32 %v13584_v40, %v13532_v62  ;;  %v13534_v19 = vadd.f32 %v13533_v36, %v24398_v13  ;;  %13946 = vmatpush2.bf16.msra.mxu0 %v21995_v37  ;;  %v15493_v42 = vmax.f32 %v13583_v35, 0.0  ;;  %v13594_v13 = vpop.f32.mrf.mxu1  ;;  %v22010_v37 = vld [vmem:[#allocation7 + $0xff0] ss:$84 sps:$4 sm:$0xff]  }
 0x540   :  { %13999 = vmatpush2.bf16.msra.mxu1 %v21998_v39  ;;  %v24434_v51 = vpop.f32.mrf.mxu0  ;;  %13947 = vmatprep.subr.bf16.mxu0 %v22003_v38  ;;  %v22015_v39 = vld [vmem:[#allocation7 + $0x19cc] ss:$84 sps:$4 sm:$0xff]  }
 0x541   :  { %25517 = vst [vmem:[#allocation97_spill] sm:$0xff] %v24431_v11  ;;  %v13587_v2 = vadd.f32 %v13586_v31, %v13534_v19  ;;  %14000 = vmatprep.subr.bf16.mxu1 %v22006_v14  ;;  %v22018_v31 = vld [vmem:[#allocation7 + $0x244c] ss:$84 sps:$4 sm:$0xff]  }
 0x542   :  { %v13539_v24 = vpop.f32.mrf.mxu0  ;;  %v22097_v11 = vld [vmem:[#allocation7 + $0x1b18] ss:$84 sps:$4 sm:$0xff]  }
 0x543   :  { %v15514_v16 = vmax.f32 %v13587_v2, 0.0  ;;  %v13540_v40 = vadd.f32 %v13539_v24, %v24405_v22  ;;  %13948 = vmatpush2.bf16.msra.mxu0 %v22001_v0  ;;  %v13596_v2 = vpop.f32.mrf.mxu1  ;;  %v22013_v0 = vld [vmem:[#allocation7 + $0x19c8] ss:$84 sps:$4 sm:$0xff]   ;;  %v22021_v24 = vld [vmem:[#allocation7 + $0x1924] ss:$84 sps:$4 sm:$0xff]  }
 0x544   :  { %14001 = vmatpush2.bf16.msra.mxu1 %v22004_v4  ;;  %v13541_v36 = vpop.f32.mrf.mxu0  ;;  %13949 = vmatprep.subr.bf16.mxu0 %v22009_v52  ;;  %v22016_v52 = vld [vmem:[#allocation7 + $0x2448] ss:$84 sps:$4 sm:$0xff]  }
 0x545   :  { %v24437_v62 = vpack.c.bf16 %v15514_v16, %v15493_v42  ;;  %v13593_v38 = vadd.f32 %v13592_v21, %v13540_v40  ;;  %v13542_v19 = vadd.f32 %v13541_v36, %v24408_v61  ;;  %14002 = vmatprep.subr.bf16.mxu1 %v22012_v34  ;;  %v22024_v21 = vld [vmem:[#allocation7 + $0x23a4] ss:$84 sps:$4 sm:$0xff]   ;;  %v22022_v16 = vld [vmem:[#allocation7 + $0x23a0] ss:$84 sps:$4 sm:$0xff]   ;;  %v22027_v40 = vld [vmem:[#allocation7 + $0x187c] ss:$84 sps:$4 sm:$0xff]  }
 0x546   :  { %v13543_v14 = vpop.f32.mrf.mxu0  ;;  %v22028_v36 = vld [vmem:[#allocation7 + $0x22f8] ss:$84 sps:$4 sm:$0xff]  }
 0x547   :  { %25518 = vst [vmem:[#allocation98_spill] sm:$0xff] %v24437_v62  ;;  %v24440_v35 = vadd.f32 %v13594_v13, %v13542_v19  ;;  %v13544_v22 = vadd.f32 %v13543_v14, %v24411_v55  ;;  %13950 = vmatpush2.bf16.msra.mxu0 %v22007_v18  ;;  %v15535_v61 = vmax.f32 %v13593_v38, 0.0  ;;  %v22019_v55 = vld [vmem:[#allocation7 + $0x1920] ss:$84 sps:$4 sm:$0xff]   ;;  %v22030_v18 = vld [vmem:[#allocation7 + $0x22fc] ss:$84 sps:$4 sm:$0xff]  }
 0x548   :  { %14003 = vmatpush2.bf16.msra.mxu1 %v22010_v37  ;;  %14025 = vmatprep.subr.bf16.mxu0 %v22015_v39  ;;  %v22025_v13 = vld [vmem:[#allocation7 + $0x1878] ss:$84 sps:$4 sm:$0xff]   ;;  %v22033_v37 = vld [vmem:[#allocation7 + $0x17d4] ss:$84 sps:$4 sm:$0xff]   ;;  %v22031_v38 = vld [vmem:[#allocation7 + $0x17d0] ss:$84 sps:$4 sm:$0xff]  }
 0x549   :  { %25519 = vst [vmem:[#allocation99_spill] sm:$0xff] %v24440_v35  ;;  %v13597_v4 = vadd.f32 %v13596_v2, %v13544_v22  ;;  %14078 = vmatprep.subr.bf16.mxu1 %v22018_v31  ;;  %v22036_v39 = vld [vmem:[#allocation7 + $0x2254] ss:$84 sps:$4 sm:$0xff]   ;;  %v22034_v19 = vld [vmem:[#allocation7 + $0x2250] ss:$84 sps:$4 sm:$0xff]  }
 0x54a   :  { %13952 = vmatmul.mubr.bf16.vlgmr.msra.gmra.mxu0 %v23830_v29  ;;  %v22039_v31 = vld [vmem:[#allocation7 + $0x172c] ss:$84 sps:$4 sm:$0xff]   ;;  %v22037_v22 = vld [vmem:[#allocation7 + $0x1728] ss:$84 sps:$4 sm:$0xff]  }
 0x54b   :  { %v15556_v34 = vmax.f32 %v13597_v4, 0.0  ;;  %14005 = vmatmul.mubr.bf16.vlgmr.msra.gmra.mxu1 %v23823_v17  ;;  %13961 = vmatprep.mubr.bf16.mxu0 %v23841_v54  ;;  %v22042_v14 = vld [vmem:[#allocation7 + $0x21ac] ss:$84 sps:$4 sm:$0xff]   ;;  %v22040_v2 = vld [vmem:[#allocation7 + $0x21a8] ss:$84 sps:$4 sm:$0xff]  }
 0x54c   :  { %14014 = vmatprep.mubr.bf16.mxu1 %v23843_v57  ;;  %14026 = vmatpush1.bf16.msra.mxu0 %v22013_v0  ;;  %v22045_v0 = vld [vmem:[#allocation7 + $0x1684] ss:$84 sps:$4 sm:$0xff]  }
 0x54d   :  { %v24447_v42 = vpack.c.bf16 %v15556_v34, %v15535_v61  ;;  %14079 = vmatpush1.bf16.msra.mxu1 %v22016_v52  ;;  %14027 = vmatprep.subr.bf16.mxu0 %v22021_v24  ;;  %v22048_v4 = vld [vmem:[#allocation7 + $0x2104] ss:$84 sps:$4 sm:$0xff]   ;;  %v22043_v52 = vld [vmem:[#allocation7 + $0x1680] ss:$84 sps:$4 sm:$0xff]   ;;  %v22054_v61 = vld [vmem:[#allocation7 + $0x205c] ss:$84 sps:$4 sm:$0xff]  }
 0x54e   :  { %14080 = vmatprep.subr.bf16.mxu1 %v22024_v21  ;;  %v22046_v24 = vld [vmem:[#allocation7 + $0x2100] ss:$84 sps:$4 sm:$0xff]   ;;  %v22051_v21 = vld [vmem:[#allocation7 + $0x15dc] ss:$84 sps:$4 sm:$0xff]   ;;  %v22049_v34 = vld [vmem:[#allocation7 + $0x15d8] ss:$84 sps:$4 sm:$0xff]  }
 0x54f   :  { %25520 = vst [vmem:[#allocation100_spill] sm:$0xff] %v24447_v42 }
 0x550   :  { %14028 = vmatpush1.bf16.msra.mxu0 %v22019_v55  ;;  %v22052_v55 = vld [vmem:[#allocation7 + $0x2058] ss:$84 sps:$4 sm:$0xff]  }
 0x551   :  { %14081 = vmatpush1.bf16.msra.mxu1 %v22022_v16  ;;  %14029 = vmatprep.subr.bf16.mxu0 %v22027_v40  ;;  %v22057_v16 = vld [vmem:[#allocation7 + $0x1534] ss:$84 sps:$4 sm:$0xff]  }
 0x552   :  { %13962 = vmatmul.mubr.bf16.gmra.mxu0 %v23837_v63  ;;  %14082 = vmatprep.subr.bf16.mxu1 %v22030_v18  ;;  %v22060_v40 = vld [vmem:[#allocation7 + $0x1fb4] ss:$84 sps:$4 sm:$0xff]   ;;  %v22055_v18 = vld [vmem:[#allocation7 + $0x1530] ss:$84 sps:$4 sm:$0xff]  }
 0x553   :  { %14015 = vmatmul.mubr.bf16.gmra.mxu1 %v23839_v1  ;;  %14057 = vmatprep.mubr.bf16.mxu0 %v23875_v56 }
 0x554   :  { %14030 = vmatpush1.bf16.msra.mxu0 %v22025_v13  ;;  %14110 = vmatprep.mubr.bf16.mxu1 %v23877_v43  ;;  %v22058_v13 = vld [vmem:[#allocation7 + $0x1fb0] ss:$84 sps:$4 sm:$0xff]  }
 0x555   :  { %14083 = vmatpush1.bf16.msra.mxu1 %v22028_v36  ;;  %14031 = vmatprep.subr.bf16.mxu0 %v22033_v37  ;;  %v22063_v36 = vld [vmem:[#allocation7 + $0x1f0c] ss:$84 sps:$4 sm:$0xff]  }
 0x556   :  { %14084 = vmatprep.subr.bf16.mxu1 %v22036_v39  ;;  %v22066_v37 = vld [vmem:[#allocation7 + $0x298c] ss:$84 sps:$4 sm:$0xff]   ;;  %v24453_v39 = vpop.f32.mrf.mxu1 }
 0x557   :  { %25521 = vst [vmem:[#allocation101_spill] sm:$0xff] %v24453_v39  ;;  %v22102_v39 = vld [vmem:[#allocation7 + $0x259c] ss:$84 sps:$4 sm:$0xff]  }
 0x558   :  { %14032 = vmatpush1.bf16.msra.mxu0 %v22031_v38  ;;  %v22061_v38 = vld [vmem:[#allocation7 + $0x1f08] ss:$84 sps:$4 sm:$0xff]  }
 0x559   :  { %14085 = vmatpush1.bf16.msra.mxu1 %v22034_v19  ;;  %14033 = vmatprep.subr.bf16.mxu0 %v22039_v31  ;;  %v22064_v19 = vld [vmem:[#allocation7 + $0x2988] ss:$84 sps:$4 sm:$0xff]   ;;  %v22069_v31 = vld [vmem:[#allocation7 + $0x1e64] ss:$84 sps:$4 sm:$0xff]  }
 0x55a   :  { %14086 = vmatprep.subr.bf16.mxu1 %v22042_v14  ;;  %v13635_v14 = vpop.f32.mrf.mxu1 }
 0x55c   :  { %14034 = vmatpush1.bf16.msra.mxu0 %v22037_v22  ;;  %v22072_v22 = vld [vmem:[#allocation7 + $0x28e4] ss:$84 sps:$4 sm:$0xff]  }
 0x55d   :  { %14087 = vmatpush1.bf16.msra.mxu1 %v22040_v2  ;;  %14035 = vmatprep.subr.bf16.mxu0 %v22045_v0  ;;  %v22067_v2 = vld [vmem:[#allocation7 + $0x1e60] ss:$84 sps:$4 sm:$0xff]  }
 0x55e   :  { %14088 = vmatprep.subr.bf16.mxu1 %v22048_v4  ;;  %v22070_v0 = vld [vmem:[#allocation7 + $0x28e0] ss:$84 sps:$4 sm:$0xff]   ;;  %v22075_v4 = vld [vmem:[#allocation7 + $0x1dbc] ss:$84 sps:$4 sm:$0xff]  }
 0x560   :  { %14036 = vmatpush1.bf16.msra.mxu0 %v22043_v52  ;;  %v13637_v52 = vpop.f32.mrf.mxu1 }
 0x561   :  { %14089 = vmatpush1.bf16.msra.mxu1 %v22046_v24  ;;  %14037 = vmatprep.subr.bf16.mxu0 %v22051_v21  ;;  %v22078_v24 = vld [vmem:[#allocation7 + $0x283c] ss:$84 sps:$4 sm:$0xff]   ;;  %v22073_v21 = vld [vmem:[#allocation7 + $0x1db8] ss:$84 sps:$4 sm:$0xff]  }
 0x562   :  { %14090 = vmatprep.subr.bf16.mxu1 %v22054_v61  ;;  %v22076_v61 = vld [vmem:[#allocation7 + $0x2838] ss:$84 sps:$4 sm:$0xff]  }
 0x564   :  { %14038 = vmatpush1.bf16.msra.mxu0 %v22049_v34  ;;  %v22081_v34 = vld [vmem:[#allocation7 + $0x1d14] ss:$84 sps:$4 sm:$0xff]  }
 0x565   :  { %14091 = vmatpush1.bf16.msra.mxu1 %v22052_v55  ;;  %14039 = vmatprep.subr.bf16.mxu0 %v22057_v16  ;;  %v13639_v55 = vpop.f32.mrf.mxu1  ;;  %v22084_v16 = vld [vmem:[#allocation7 + $0x2794] ss:$84 sps:$4 sm:$0xff]  }
 0x566   :  { %14092 = vmatprep.subr.bf16.mxu1 %v22060_v40  ;;  %v22079_v40 = vld [vmem:[#allocation7 + $0x1d10] ss:$84 sps:$4 sm:$0xff]  }
 0x568   :  { %14040 = vmatpush1.bf16.msra.mxu0 %v22055_v18  ;;  %v24455_v18 = vld [vmem:[#allocation8 + $0x8] sm:$0xff] }
 0x569   :  { %14093 = vmatpush1.bf16.msra.mxu1 %v22058_v13  ;;  %14041 = vmatprep.subr.bf16.mxu0 %v22063_v36  ;;  %v3038_v13 = vrot.slane %v24455_v18, %v23798_v45  ;;  %v22082_v36 = vld [vmem:[#allocation7 + $0x2790] ss:$84 sps:$4 sm:$0xff]  }
 0x56a   :  { %14094 = vmatprep.subr.bf16.mxu1 %v22066_v37  ;;  %v22087_v37 = vld [vmem:[#allocation7 + $0x1c6c] ss:$84 sps:$4 sm:$0xff]  }
 0x56b   :  { %v13640_v62 = vadd.f32 %v13639_v55, %v3038_v13 }
 0x56c   :  { %14042 = vmatpush2.bf16.msra.mxu0 %v22061_v38  ;;  %v24459_v38 = vpop.f32.mrf.mxu1 }
 0x56d   :  { %14095 = vmatpush2.bf16.msra.mxu1 %v22064_v19  ;;  %14043 = vmatprep.subr.bf16.mxu0 %v22069_v31  ;;  %25522 = vst [vmem:[#allocation102_spill] sm:$0xff] %v24459_v38  ;;  %v22090_v19 = vld [vmem:[#allocation7 + $0x26ec] ss:$84 sps:$4 sm:$0xff]   ;;  %v24463_v31 = vrot.slane %v24455_v18, %v23801_v46 }
 0x56e   :  { %14096 = vmatprep.subr.bf16.mxu1 %v22072_v22  ;;  %v24465_v22 = vpop.f32.mrf.mxu0  ;;  %v22091_v46 = vld [vmem:[#allocation7 + $0x1bc0] ss:$84 sps:$4 sm:$0xff]  }
 0x56f   :  { %25523 = vst [vmem:[#allocation103_spill] sm:$0xff] %v24463_v31  ;;  %25524 = vst [vmem:[#allocation104_spill] sm:$0xff] %v24465_v22 }
 0x570   :  { %14044 = vmatpush2.bf16.msra.mxu0 %v22067_v2  ;;  %v22085_v2 = vld [vmem:[#allocation7 + $0x1c68] ss:$84 sps:$4 sm:$0xff]  }
 0x571   :  { %14097 = vmatpush2.bf16.msra.mxu1 %v22070_v0  ;;  %14045 = vmatprep.subr.bf16.mxu0 %v22075_v4  ;;  %v13636_v0 = vadd.f32 %v13635_v14, %v3038_v13  ;;  %v22088_v4 = vld [vmem:[#allocation7 + $0x26e8] ss:$84 sps:$4 sm:$0xff]  }
 0x572   :  { %14098 = vmatprep.subr.bf16.mxu1 %v22078_v24  ;;  %v22093_v24 = vld [vmem:[#allocation7 + $0x1bc4] ss:$84 sps:$4 sm:$0xff]   ;;  %v22099_v14 = vld [vmem:[#allocation7 + $0x1b1c] ss:$84 sps:$4 sm:$0xff]  }
 0x574   :  { %14046 = vmatpush2.bf16.msra.mxu0 %v22073_v21  ;;  %v13645_v21 = vpop.f32.mrf.mxu1 }
 0x575   :  { %14099 = vmatpush2.bf16.msra.mxu1 %v22076_v61  ;;  %14047 = vmatprep.subr.bf16.mxu0 %v22081_v34  ;;  %v22096_v34 = vld [vmem:[#allocation7 + $0x2644] ss:$84 sps:$4 sm:$0xff]  }
 0x576   :  { %14100 = vmatprep.subr.bf16.mxu1 %v22084_v16  ;;  %v13638_v16 = vadd.f32 %v13637_v52, %v24463_v31  ;;  %v13646_v52 = vadd.f32 %v13645_v21, %v3038_v13  ;;  %v22111_v21 = vld [vmem:[#allocation7 + $0x2ecc] ss:$84 sps:$4 sm:$0xff]  }
 0x578   :  { %14048 = vmatpush2.bf16.msra.mxu0 %v22079_v40  ;;  %v22094_v40 = vld [vmem:[#allocation7 + $0x2640] ss:$84 sps:$4 sm:$0xff]  }
 0x579   :  { %14101 = vmatpush2.bf16.msra.mxu1 %v22082_v36  ;;  %14049 = vmatprep.subr.bf16.mxu0 %v22087_v37  ;;  %v13647_v36 = vpop.f32.mrf.mxu1 }
 0x57a   :  { %v13688_v61 = vpop.f32.mrf.mxu0  ;;  %14102 = vmatprep.subr.bf16.mxu1 %v22090_v19 }
 0x57b   :  { %v13689_v45 = vadd.f32 %v13688_v61, %v13636_v0  ;;  %v22105_v0 = vld [vmem:[#allocation7 + $0x1a74] ss:$84 sps:$4 sm:$0xff]   ;;  %v13649_v55 = vpop.f32.mrf.mxu1 }
 0x57c   :  { %14050 = vmatpush2.bf16.msra.mxu0 %v22085_v2  ;;  %v13690_v42 = vpop.f32.mrf.mxu0  ;;  %v22100_v2 = vld [vmem:[#allocation7 + $0x2598] ss:$84 sps:$4 sm:$0xff]  }
 0x57d   :  { %14103 = vmatpush2.bf16.msra.mxu1 %v22088_v4  ;;  %v13691_v35 = vadd.f32 %v13690_v42, %v13638_v16  ;;  %14051 = vmatprep.subr.bf16.mxu0 %v22093_v24  ;;  %v22108_v42 = vld [vmem:[#allocation7 + $0x24f4] ss:$84 sps:$4 sm:$0xff]   ;;  %v13648_v24 = vadd.f32 %v13647_v36, %v24463_v31  ;;  %v22103_v16 = vld [vmem:[#allocation7 + $0x1a70] ss:$84 sps:$4 sm:$0xff]   ;;  %v24471_v38 = vpop.f32.mrf.mxu1 }
 0x57e   :  { %v13692_v37 = vpop.f32.mrf.mxu0  ;;  %14104 = vmatprep.subr.bf16.mxu1 %v22096_v34  ;;  %25526 = vst [vmem:[#allocation106_spill] sm:$0xff] %v24471_v38  ;;  %v22112_v36 = vld [vmem:[#allocation7 + $0x36a8] ss:$84 sps:$4 sm:$0xff]  }
 0x57f   :  { %v13693_v22 = vadd.f32 %v13692_v37, %v13640_v62  ;;  %v13650_v62 = vadd.f32 %v13649_v55, %v3038_v13  ;;  %v22106_v37 = vld [vmem:[#allocation7 + $0x24f0] ss:$84 sps:$4 sm:$0xff]   ;;  %v22115_v55 = vld [vmem:[#allocation7 + $0x2e20] ss:$84 sps:$4 sm:$0xff]  }
 0x580   :  { %14052 = vmatpush2.bf16.msra.mxu0 %v22091_v46  ;;  %v24468_v19 = vpop.f32.mrf.mxu0  ;;  %v22120_v13 = vld [vmem:[#allocation7 + $0x3604] ss:$84 sps:$4 sm:$0xff]  }
 0x581   :  { %25525 = vst [vmem:[#allocation105_spill] sm:$0xff] %v24468_v19  ;;  %14105 = vmatpush2.bf16.msra.mxu1 %v22094_v40  ;;  %14053 = vmatprep.subr.bf16.mxu0 %v22099_v14  ;;  %v22114_v14 = vld [vmem:[#allocation7 + $0x36ac] ss:$84 sps:$4 sm:$0xff]  }
 0x582   :  { %v13698_v4 = vpop.f32.mrf.mxu0  ;;  %14106 = vmatprep.subr.bf16.mxu1 %v22102_v39  ;;  %v22109_v39 = vld [vmem:[#allocation7 + $0x2ec8] ss:$84 sps:$4 sm:$0xff]  }
 0x583   :  { %v13699_v61 = vadd.f32 %v13698_v4, %v13646_v52 }
 0x584   :  { %14054 = vmatpush2.bf16.msra.mxu0 %v22097_v11  ;;  %v13700_v34 = vpop.f32.mrf.mxu0  ;;  %v22117_v11 = vld [vmem:[#allocation7 + $0x2e24] ss:$84 sps:$4 sm:$0xff]  }
 0x585   :  { %14107 = vmatpush2.bf16.msra.mxu1 %v22100_v2  ;;  %v13701_v46 = vadd.f32 %v13700_v34, %v13648_v24  ;;  %14055 = vmatprep.subr.bf16.mxu0 %v22105_v0  ;;  %v22123_v24 = vld [vmem:[#allocation7 + $0x2d7c] ss:$84 sps:$4 sm:$0xff]  }
 0x586   :  { %v13702_v40 = vpop.f32.mrf.mxu0  ;;  %14108 = vmatprep.subr.bf16.mxu1 %v22108_v42  ;;  %v22118_v42 = vld [vmem:[#allocation7 + $0x3600] ss:$84 sps:$4 sm:$0xff]  }
 0x587   :  { %v13703_v19 = vadd.f32 %v13702_v40, %v13650_v62  ;;  %v22129_v40 = vld [vmem:[#allocation7 + $0x2cd4] ss:$84 sps:$4 sm:$0xff]  }
 0x588   :  { %14056 = vmatpush2.bf16.msra.mxu0 %v22103_v16  ;;  %v22126_v16 = vld [vmem:[#allocation7 + $0x355c] ss:$84 sps:$4 sm:$0xff]  }
 0x589   :  { %14109 = vmatpush2.bf16.msra.mxu1 %v22106_v37  ;;  %14131 = vmatprep.subr.bf16.mxu0 %v22111_v21  ;;  %v22121_v37 = vld [vmem:[#allocation7 + $0x2d78] ss:$84 sps:$4 sm:$0xff]  }
 0x58a   :  { %14192 = vmatprep.subr.bf16.mxu1 %v22114_v14  ;;  %v22124_v21 = vld [vmem:[#allocation7 + $0x3558] ss:$84 sps:$4 sm:$0xff]  }
 0x58b   :  { %v13741_v52 = vpop.f32.mrf.mxu1  ;;  %14058 = vmatmul.mubr.bf16.vlgmr.msra.gmra.mxu0 %v23922_v53 }
 0x58c   :  { %v24474_v2 = vadd.f32 %v13741_v52, %v13689_v45  ;;  %14111 = vmatmul.mubr.bf16.vlgmr.msra.gmra.mxu1 %v23913_v15  ;;  %14067 = vmatprep.mubr.bf16.mxu0 %v23926_v47  ;;  %v22130_v52 = vld [vmem:[#allocation7 + $0x34b0] ss:$84 sps:$4 sm:$0xff]  }
 0x58d   :  { %14120 = vmatprep.mubr.bf16.mxu1 %v23928_v6  ;;  %14132 = vmatpush1.bf16.msra.mxu0 %v22109_v39  ;;  %v13743_v0 = vpop.f32.mrf.mxu1 }
 0x58e   :  { %14193 = vmatpush1.bf16.msra.mxu1 %v22112_v36  ;;  %v24479_v4 = vadd.f32 %v13743_v0, %v13691_v35  ;;  %14133 = vmatprep.subr.bf16.mxu0 %v22117_v11  ;;  %v22132_v35 = vld [vmem:[#allocation7 + $0x34b4] ss:$84 sps:$4 sm:$0xff]   ;;  %v22127_v36 = vld [vmem:[#allocation7 + $0x2cd0] ss:$84 sps:$4 sm:$0xff]  }
 0x58f   :  { %v13745_v34 = vpop.f32.mrf.mxu1  ;;  %14194 = vmatprep.subr.bf16.mxu1 %v22120_v13  ;;  %v22135_v13 = vld [vmem:[#allocation7 + $0x2c2c] ss:$84 sps:$4 sm:$0xff]  }
 0x590   :  { %v24481_v45 = vadd.f32 %v13745_v34, %v13693_v22  ;;  %v22141_v34 = vld [vmem:[#allocation7 + $0x2b84] ss:$84 sps:$4 sm:$0xff]  }
 0x591   :  { %14134 = vmatpush1.bf16.msra.mxu0 %v22115_v55  ;;  %v24483_v62 = vpop.f32.mrf.mxu1  ;;  %v22138_v55 = vld [vmem:[#allocation7 + $0x4d4] ss:$84 sps:$4 sm:$0xff]  }
 0x592   :  { %25527 = vst [vmem:[#allocation107_spill] sm:$0xff] %v24483_v62  ;;  %14195 = vmatpush1.bf16.msra.mxu1 %v22118_v42  ;;  %14135 = vmatprep.subr.bf16.mxu0 %v22123_v24  ;;  %v22133_v42 = vld [vmem:[#allocation7 + $0x2c28] ss:$84 sps:$4 sm:$0xff]   ;;  %v22136_v24 = vld [vmem:[#allocation7 + $0x4d0] ss:$84 sps:$4 sm:$0xff]  }
 0x593   :  { %v13751_v14 = vpop.f32.mrf.mxu1  ;;  %14068 = vmatmul.mubr.bf16.gmra.mxu0 %v23936_v5  ;;  %14196 = vmatprep.subr.bf16.mxu1 %v22126_v16  ;;  %v22144_v16 = vld [vmem:[#allocation7 + $0x42c] ss:$84 sps:$4 sm:$0xff]  }
 0x594   :  { %v24486_v39 = vadd.f32 %v13751_v14, %v13699_v61  ;;  %14121 = vmatmul.mubr.bf16.gmra.mxu1 %v23938_v10  ;;  %14163 = vmatprep.mubr.bf16.mxu0 %v23940_v23  ;;  %v22148_v14 = vld [vmem:[#allocation7 + $0x380] ss:$84 sps:$4 sm:$0xff]  }
 0x595   :  { %14136 = vmatpush1.bf16.msra.mxu0 %v22121_v37  ;;  %v13753_v22 = vpop.f32.mrf.mxu1  ;;  %14216 = vmatprep.mubr.bf16.mxu1 %v25462_v44  ;;  %v22142_v37 = vld [vmem:[#allocation7 + $0x428] ss:$84 sps:$4 sm:$0xff]  }
 0x596   :  { %14197 = vmatpush1.bf16.msra.mxu1 %v22124_v21  ;;  %v24491_v11 = vadd.f32 %v13753_v22, %v13701_v46  ;;  %14137 = vmatprep.subr.bf16.mxu0 %v22129_v40  ;;  %v22139_v46 = vld [vmem:[#allocation7 + $0x2b80] ss:$84 sps:$4 sm:$0xff]   ;;  %v22147_v21 = vld [vmem:[#allocation7 + $0x2adc] ss:$84 sps:$4 sm:$0xff]   ;;  %v22145_v40 = vld [vmem:[#allocation7 + $0x2ad8] ss:$84 sps:$4 sm:$0xff]  }
 0x597   :  { %v13755_v0 = vpop.f32.mrf.mxu1  ;;  %14198 = vmatprep.subr.bf16.mxu1 %v22132_v35  ;;  %v22153_v35 = vld [vmem:[#allocation7 + $0x2a34] ss:$84 sps:$4 sm:$0xff]   ;;  %v22156_v22 = vld [vmem:[#allocation7 + $0x2dc] ss:$84 sps:$4 sm:$0xff]  }
 0x598   :  { %v24493_v61 = vadd.f32 %v13755_v0, %v13703_v19  ;;  %v22150_v19 = vld [vmem:[#allocation7 + $0x384] ss:$84 sps:$4 sm:$0xff]   ;;  %v22162_v0 = vld [vmem:[#allocation7 + $0x234] ss:$84 sps:$4 sm:$0xff]  }
 0x599   :  { %14138 = vmatpush1.bf16.msra.mxu0 %v22127_v36  ;;  %v22151_v36 = vld [vmem:[#allocation7 + $0x2a30] ss:$84 sps:$4 sm:$0xff]  }
 0x59a   :  { %14199 = vmatpush1.bf16.msra.mxu1 %v22130_v52  ;;  %14139 = vmatprep.subr.bf16.mxu0 %v22135_v13  ;;  %v22154_v52 = vld [vmem:[#allocation7 + $0x2d8] ss:$84 sps:$4 sm:$0xff]  }
 0x59b   :  { %14237 = vmatprep.subr.bf16.mxu1 %v22138_v55  ;;  %v22159_v13 = vld [vmem:[#allocation7 + $0x340c] ss:$84 sps:$4 sm:$0xff]   ;;  %v22157_v55 = vld [vmem:[#allocation7 + $0x3408] ss:$84 sps:$4 sm:$0xff]  }
 0x59d   :  { %19544 = vmatmul.mubr.msk.bf16.vlgmr.msra.gmra.mxu1 %vm12004_vm8, %v23947_v41  ;;  %14140 = vmatpush1.bf16.msra.mxu0 %v22133_v42  ;;  %v22160_v42 = vld [vmem:[#allocation7 + $0x230] ss:$84 sps:$4 sm:$0xff]  }
 0x59e   :  { %14238 = vmatpush1.bf16.msra.mxu1 %v22136_v24  ;;  %14141 = vmatprep.subr.bf16.mxu0 %v22141_v34  ;;  %v22165_v24 = vld [vmem:[#allocation7 + $0x3364] ss:$84 sps:$4 sm:$0xff]   ;;  %v22168_v34 = vld [vmem:[#allocation7 + $0x18c] ss:$84 sps:$4 sm:$0xff]  }
 0x59f   :  { %14239 = vmatprep.subr.bf16.mxu1 %v22144_v16  ;;  %14226 = vmatprep.mubr.bf16.mxu1 %v25462_v44  ;;  %v22163_v16 = vld [vmem:[#allocation7 + $0x3360] ss:$84 sps:$4 sm:$0xff]  }
 0x5a1   :  { %14142 = vmatpush1.bf16.msra.mxu0 %v22139_v46  ;;  %v22166_v46 = vld [vmem:[#allocation7 + $0x188] ss:$84 sps:$4 sm:$0xff]  }
 0x5a2   :  { %14240 = vmatpush1.bf16.msra.mxu1 %v22142_v37  ;;  %14143 = vmatprep.subr.bf16.mxu0 %v22147_v21  ;;  %v22171_v37 = vld [vmem:[#allocation7 + $0x32bc] ss:$84 sps:$4 sm:$0xff]   ;;  %v22174_v21 = vld [vmem:[#allocation7 + $0xe4] ss:$84 sps:$4 sm:$0xff]  }
 0x5a3   :  { %14241 = vmatprep.subr.bf16.mxu1 %v22150_v19  ;;  %v22169_v19 = vld [vmem:[#allocation7 + $0x32b8] ss:$84 sps:$4 sm:$0xff]  }
 0x5a5   :  { %19545 = vmatmul.mubr.msk.bf16.gmra.mxu1 %vm12004_vm8, %v23952_v59  ;;  %14144 = vmatpush1.bf16.msra.mxu0 %v22145_v40  ;;  %v22172_v40 = vld [vmem:[#allocation7 + $0xe0] ss:$84 sps:$4 sm:$0xff]  }
 0x5a6   :  { %14242 = vmatpush1.bf16.msra.mxu1 %v22148_v14  ;;  %14269 = vmatprep.mubr.bf16.mxu1 %v23825_v25  ;;  %v22177_v14 = vld [vmem:[#allocation7 + $0x3214] ss:$84 sps:$4 sm:$0xff]  }
 0x5a7   :  { %14145 = vmatprep.subr.bf16.mxu0 %v22153_v35  ;;  %14243 = vmatprep.subr.bf16.mxu1 %v22156_v22  ;;  %v22180_v35 = vld [vmem:[#allocation7 + $0x3c] ss:$84 sps:$4 sm:$0xff]  }
 0x5a8   :  { %v22175_v22 = vld [vmem:[#allocation7 + $0x3210] ss:$84 sps:$4 sm:$0xff]  }
 0x5a9   :  { %14146 = vmatpush1.bf16.msra.mxu0 %v22151_v36  ;;  %v22178_v36 = vld [vmem:[#allocation7 + $0x38] ss:$84 sps:$4 sm:$0xff]  }
 0x5aa   :  { %14244 = vmatpush1.bf16.msra.mxu1 %v22154_v52  ;;  %14147 = vmatprep.subr.bf16.mxu0 %v22159_v13  ;;  %v22183_v52 = vld [vmem:[#allocation7 + $0x316c] ss:$84 sps:$4 sm:$0xff]   ;;  %v22186_v13 = vld [vmem:[#allocation7 + $0xa14] ss:$84 sps:$4 sm:$0xff]  }
 0x5ab   :  { %14245 = vmatprep.subr.bf16.mxu1 %v22162_v0  ;;  %v24501_v0 = vpop.f32.mrf.mxu0 }
 0x5ac   :  { %25528 = vst [vmem:[#allocation108_spill] sm:$0xff] %v24501_v0 }
 0x5ad   :  { %14148 = vmatpush2.bf16.msra.mxu0 %v22157_v55  ;;  %v22181_v55 = vld [vmem:[#allocation7 + $0x3168] ss:$84 sps:$4 sm:$0xff]  }
 0x5ae   :  { %14246 = vmatpush1.bf16.msra.mxu1 %v22160_v42  ;;  %14149 = vmatprep.subr.bf16.mxu0 %v22165_v24  ;;  %v22184_v24 = vld [vmem:[#allocation7 + $0xa10] ss:$84 sps:$4 sm:$0xff]  }
 0x5af   :  { %14247 = vmatprep.subr.bf16.mxu1 %v22168_v34  ;;  %v22189_v34 = vld [vmem:[#allocation7 + $0x30c4] ss:$84 sps:$4 sm:$0xff]  }
 0x5b1   :  { %14150 = vmatpush2.bf16.msra.mxu0 %v22163_v16 }
 0x5b2   :  { %14248 = vmatpush1.bf16.msra.mxu1 %v22166_v46  ;;  %14151 = vmatprep.subr.bf16.mxu0 %v22171_v37  ;;  %v22192_v46 = vld [vmem:[#allocation7 + $0x96c] ss:$84 sps:$4 sm:$0xff]  }
 0x5b3   :  { %14249 = vmatprep.subr.bf16.mxu1 %v22174_v21 }
 0x5b5   :  { %14152 = vmatpush2.bf16.msra.mxu0 %v22169_v19  ;;  %v22187_v19 = vld [vmem:[#allocation7 + $0x30c0] ss:$84 sps:$4 sm:$0xff]  }
 0x5b6   :  { %14250 = vmatpush1.bf16.msra.mxu1 %v22172_v40  ;;  %14153 = vmatprep.subr.bf16.mxu0 %v22177_v14  ;;  %v22190_v14 = vld [vmem:[#allocation7 + $0x968] ss:$84 sps:$4 sm:$0xff]  }
 0x5b7   :  { %14251 = vmatprep.subr.bf16.mxu1 %v22180_v35  ;;  %v22195_v35 = vld [vmem:[#allocation7 + $0x301c] ss:$84 sps:$4 sm:$0xff]  }
 0x5b9   :  { %14154 = vmatpush2.bf16.msra.mxu0 %v22175_v22 }
 0x5ba   :  { %14252 = vmatpush1.bf16.msra.mxu1 %v22178_v36  ;;  %v13794_v42 = vpop.f32.mrf.mxu0  ;;  %14155 = vmatprep.subr.bf16.mxu0 %v22183_v52  ;;  %v22198_v36 = vld [vmem:[#allocation7 + $0x8c4] ss:$84 sps:$4 sm:$0xff]  }
 0x5bb   :  { %v13795_v16 = vadd.f32 %v13794_v42, %v24474_v2  ;;  %14253 = vmatprep.subr.bf16.mxu1 %v22186_v13  ;;  %v22193_v2 = vld [vmem:[#allocation7 + $0x3018] ss:$84 sps:$4 sm:$0xff]   ;;  %v22201_v42 = vld [vmem:[#allocation7 + $0x2f74] ss:$84 sps:$4 sm:$0xff]  }
 0x5bc   :  { %v13796_v37 = vpop.f32.mrf.mxu0 }
 0x5bd   :  { %14156 = vmatpush2.bf16.msra.mxu0 %v22181_v55  ;;  %v13797_v21 = vadd.f32 %v13796_v37, %v24479_v4  ;;  %v22196_v55 = vld [vmem:[#allocation7 + $0x8c0] ss:$84 sps:$4 sm:$0xff]  }
 0x5be   :  { %14254 = vmatpush2.bf16.msra.mxu1 %v22184_v24  ;;  %v13798_v40 = vpop.f32.mrf.mxu0  ;;  %14157 = vmatprep.subr.bf16.mxu0 %v22189_v34  ;;  %v22204_v24 = vld [vmem:[#allocation7 + $0x81c] ss:$84 sps:$4 sm:$0xff]  }
 0x5bf   :  { %v13799_v22 = vadd.f32 %v13798_v40, %v24481_v45  ;;  %14255 = vmatprep.subr.bf16.mxu1 %v22192_v46  ;;  %v22199_v45 = vld [vmem:[#allocation7 + $0x2f70] ss:$84 sps:$4 sm:$0xff]   ;;  %v22210_v40 = vld [vmem:[#allocation7 + $0xf54] ss:$84 sps:$4 sm:$0xff]  }
 0x5c0   :  { %v24506_v52 = vpop.f32.mrf.mxu0 }
 0x5c1   :  { %25529 = vst [vmem:[#allocation109_spill] sm:$0xff] %v24506_v52  ;;  %14158 = vmatpush2.bf16.msra.mxu0 %v22187_v19  ;;  %v22202_v19 = vld [vmem:[#allocation7 + $0x818] ss:$84 sps:$4 sm:$0xff]  }
 0x5c2   :  { %14256 = vmatpush2.bf16.msra.mxu1 %v22190_v14  ;;  %v13804_v13 = vpop.f32.mrf.mxu0  ;;  %14159 = vmatprep.subr.bf16.mxu0 %v22195_v35  ;;  %v22207_v35 = vld [vmem:[#allocation7 + $0x774] ss:$84 sps:$4 sm:$0xff]  }
 0x5c3   :  { %v13805_v4 = vadd.f32 %v13804_v13, %v24486_v39  ;;  %14257 = vmatprep.subr.bf16.mxu1 %v22198_v36  ;;  %v24517_v39 = vpop.f32.mrf.mxu1  ;;  %v22208_v36 = vld [vmem:[#allocation7 + $0xf50] ss:$84 sps:$4 sm:$0xff]   ;;  %v22216_v13 = vld [vmem:[#allocation7 + $0xeac] ss:$84 sps:$4 sm:$0xff]  }
 0x5c4   :  { %v13806_v34 = vpop.f32.mrf.mxu0  ;;  %25531 = vst [vmem:[#allocation111_spill] sm:$0xff] %v24517_v39  ;;  %v22211_v39 = vld [vmem:[#allocation7 + $0x6c8] ss:$84 sps:$4 sm:$0xff]  }
 0x5c5   :  { %14160 = vmatpush2.bf16.msra.mxu0 %v22193_v2  ;;  %v24510_v37 = vadd.f32 %v13806_v34, %v24491_v11  ;;  %v22205_v2 = vld [vmem:[#allocation7 + $0x770] ss:$84 sps:$4 sm:$0xff]  }
 0x5c6   :  { %14258 = vmatpush2.bf16.msra.mxu1 %v22196_v55  ;;  %v13808_v46 = vpop.f32.mrf.mxu0  ;;  %14161 = vmatprep.subr.bf16.mxu0 %v22201_v42  ;;  %v22213_v42 = vld [vmem:[#allocation7 + $0x6cc] ss:$84 sps:$4 sm:$0xff]  }
 0x5c7   :  { %v24513_v14 = vadd.f32 %v13808_v46, %v24493_v61  ;;  %14259 = vmatprep.subr.bf16.mxu1 %v22204_v24  ;;  %v22214_v46 = vld [vmem:[#allocation7 + $0xea8] ss:$84 sps:$4 sm:$0xff]  }
 0x5c8   :  { %v24515_v0 = vpop.f32.mrf.mxu0 }
 0x5c9   :  { %25530 = vst [vmem:[#allocation110_spill] sm:$0xff] %v24515_v0  ;;  %14162 = vmatpush2.bf16.msra.mxu0 %v22199_v45 }
 0x5ca   :  { %14260 = vmatpush2.bf16.msra.mxu1 %v22202_v19  ;;  %v13900_v11 = vpop.f32.mrf.mxu0  ;;  %14290 = vmatprep.subr.bf16.mxu0 %v22210_v40  ;;  %v22222_v40 = vld [vmem:[#allocation7 + $0xe04] ss:$84 sps:$4 sm:$0xff]  }
 0x5cb   :  { %v13847_v55 = vpop.f32.mrf.mxu1  ;;  %14261 = vmatprep.subr.bf16.mxu1 %v22207_v35  ;;  %v22219_v35 = vld [vmem:[#allocation7 + $0x624] ss:$84 sps:$4 sm:$0xff]  }
 0x5cc   :  { %v13848_v34 = vadd.f32 %v13847_v55, %v13795_v16  ;;  %14164 = vmatmul.mubr.bf16.vlgmr.msra.gmra.mxu0 %v23963_v3  ;;  %v13902_v61 = vpop.f32.mrf.mxu0 }
 0x5cd   :  { %14173 = vmatprep.mubr.bf16.mxu0 %v23965_v12  ;;  %14291 = vmatpush1.bf16.msra.mxu0 %v22208_v36  ;;  %v13849_v24 = vpop.f32.mrf.mxu1  ;;  %v22220_v36 = vld [vmem:[#allocation7 + $0xe00] ss:$84 sps:$4 sm:$0xff]  }
 0x5ce   :  { %v13901_v0 = vadd.f32 %v13900_v11, %v13848_v34  ;;  %14262 = vmatpush2.bf16.msra.mxu1 %v22205_v2  ;;  %v13850_v45 = vadd.f32 %v13849_v24, %v13797_v21  ;;  %v13904_v19 = vpop.f32.mrf.mxu0  ;;  %14292 = vmatprep.subr.bf16.mxu0 %v22216_v13  ;;  %v22217_v21 = vld [vmem:[#allocation7 + $0x620] ss:$84 sps:$4 sm:$0xff]   ;;  %v22228_v2 = vld [vmem:[#allocation7 + $0xd5c] ss:$84 sps:$4 sm:$0xff]  }
 0x5cf   :  { %v13851_v38 = vpop.f32.mrf.mxu1  ;;  %14263 = vmatprep.subr.bf16.mxu1 %v22213_v42  ;;  %v22225_v34 = vld [vmem:[#allocation7 + $0x57c] ss:$84 sps:$4 sm:$0xff]  }
 0x5d0   :  { %v24521_v52 = vadd.f32 %v13902_v61, %v13850_v45  ;;  %v13852_v16 = vadd.f32 %v13851_v38, %v13799_v22  ;;  %v24523_v55 = vpop.f32.mrf.mxu0  ;;  %v15495_v42 = vmax.f32 %v13901_v0, 0.0 }
 0x5d1   :  { %14293 = vmatpush1.bf16.msra.mxu0 %v22214_v46  ;;  %v24525_v62 = vpop.f32.mrf.mxu1  ;;  %v22226_v46 = vld [vmem:[#allocation7 + $0xd58] ss:$84 sps:$4 sm:$0xff]  }
 0x5d2   :  { %25532 = vst [vmem:[#allocation112_spill] sm:$0xff] %v24521_v52  ;;  %v13905_v31 = vadd.f32 %v13904_v19, %v13852_v16  ;;  %14264 = vmatpush2.bf16.msra.mxu1 %v22211_v39  ;;  %v13910_v11 = vpop.f32.mrf.mxu0  ;;  %14294 = vmatprep.subr.bf16.mxu0 %v22222_v40  ;;  %v22223_v40 = vld [vmem:[#allocation7 + $0x578] ss:$84 sps:$4 sm:$0xff]  }
 0x5d3   :  { %v13857_v13 = vpop.f32.mrf.mxu1  ;;  %14265 = vmatprep.subr.bf16.mxu1 %v22219_v35  ;;  %v22231_v35 = vld [vmem:[#allocation7 + $0xcb4] ss:$84 sps:$4 sm:$0xff]  }
 0x5d4   :  { %v15516_v24 = vmax.f32 %v13905_v31, 0.0  ;;  %v13858_v61 = vadd.f32 %v13857_v13, %v13805_v4  ;;  %14174 = vmatmul.mubr.bf16.gmra.mxu0 %v23969_v58  ;;  %v13912_v22 = vpop.f32.mrf.mxu0  ;;  %v22234_v31 = vld [vmem:[#allocation7 + $0x19d4] ss:$84 sps:$4 sm:$0xff]   ;;  %v22229_v13 = vld [vmem:[#allocation7 + $0xcb0] ss:$84 sps:$4 sm:$0xff]  }
 0x5d5   :  { %14295 = vmatpush1.bf16.msra.mxu0 %v22220_v36  ;;  %14322 = vmatprep.mubr.bf16.mxu0 %v23827_v26  ;;  %v13859_v38 = vpop.f32.mrf.mxu1 }
 0x5d6   :  { %v24529_v45 = vpack.c.bf16 %v15516_v24, %v15495_v42  ;;  %v13911_v39 = vadd.f32 %v13910_v11, %v13858_v61  ;;  %14266 = vmatpush2.bf16.msra.mxu1 %v22217_v21  ;;  %v13860_v19 = vadd.f32 %v13859_v38, %v24510_v37  ;;  %14296 = vmatprep.subr.bf16.mxu0 %v22228_v2  ;;  %v13914_v36 = vpop.f32.mrf.mxu0  ;;  %v22232_v11 = vld [vmem:[#allocation7 + $0x19d0] ss:$84 sps:$4 sm:$0xff]   ;;  %v22237_v21 = vld [vmem:[#allocation7 + $0xc0c] ss:$84 sps:$4 sm:$0xff]  }
 0x5d7   :  { %v13861_v0 = vpop.f32.mrf.mxu1  ;;  %14267 = vmatprep.subr.bf16.mxu1 %v22225_v34  ;;  %v22240_v37 = vld [vmem:[#allocation7 + $0x192c] ss:$84 sps:$4 sm:$0xff]   ;;  %v22235_v34 = vld [vmem:[#allocation7 + $0xc08] ss:$84 sps:$4 sm:$0xff]   ;;  %v22243_v61 = vld [vmem:[#allocation7 + $0xb64] ss:$84 sps:$4 sm:$0xff]  }
 0x5d8   :  { %25533 = vst [vmem:[#allocation113_spill] sm:$0xff] %v24529_v45  ;;  %v24532_v4 = vadd.f32 %v13912_v22, %v13860_v19  ;;  %v13862_v16 = vadd.f32 %v13861_v0, %v24513_v14  ;;  %v15537_v42 = vmax.f32 %v13911_v39, 0.0  ;;  %v22238_v14 = vld [vmem:[#allocation7 + $0x1928] ss:$84 sps:$4 sm:$0xff]   ;;  %v22246_v38 = vld [vmem:[#allocation7 + $0x1884] ss:$84 sps:$4 sm:$0xff]  }
 0x5d9   :  { %14297 = vmatpush1.bf16.msra.mxu0 %v22226_v46  ;;  %v22241_v22 = vld [vmem:[#allocation7 + $0xb60] ss:$84 sps:$4 sm:$0xff]   ;;  %v22252_v39 = vld [vmem:[#allocation7 + $0x17dc] ss:$84 sps:$4 sm:$0xff]   ;;  %v22247_v19 = vld [vmem:[#allocation7 + $0xab8] ss:$84 sps:$4 sm:$0xff]  }
 0x5da   :  { %25534 = vst [vmem:[#allocation114_spill] sm:$0xff] %v24532_v4  ;;  %v13915_v52 = vadd.f32 %v13914_v36, %v13862_v16  ;;  %14268 = vmatpush2.bf16.msra.mxu1 %v22223_v40  ;;  %14298 = vmatprep.subr.bf16.mxu0 %v22231_v35  ;;  %v22244_v46 = vld [vmem:[#allocation7 + $0x1880] ss:$84 sps:$4 sm:$0xff]   ;;  %v22250_v40 = vld [vmem:[#allocation7 + $0x17d8] ss:$84 sps:$4 sm:$0xff]  }
 0x5db   :  { %14343 = vmatprep.subr.bf16.mxu1 %v22234_v31  ;;  %v22255_v35 = vld [vmem:[#allocation7 + $0x1494] ss:$84 sps:$4 sm:$0xff]   ;;  %v22253_v31 = vld [vmem:[#allocation7 + $0x1490] ss:$84 sps:$4 sm:$0xff]   ;;  %v22261_v36 = vld [vmem:[#allocation7 + $0x13ec] ss:$84 sps:$4 sm:$0xff]  }
 0x5dc   :  { %v15558_v2 = vmax.f32 %v13915_v52, 0.0  ;;  %v22249_v52 = vld [vmem:[#allocation7 + $0xabc] ss:$84 sps:$4 sm:$0xff]   ;;  %v22258_v0 = vld [vmem:[#allocation7 + $0x1734] ss:$84 sps:$4 sm:$0xff]  }
 0x5dd   :  { %14270 = vmatmul.mubr.bf16.vlgmr.msra.gmra.mxu1 %v23830_v29  ;;  %14299 = vmatpush1.bf16.msra.mxu0 %v22229_v13  ;;  %v22256_v16 = vld [vmem:[#allocation7 + $0x1730] ss:$84 sps:$4 sm:$0xff]   ;;  %v22264_v13 = vld [vmem:[#allocation7 + $0x168c] ss:$84 sps:$4 sm:$0xff]   ;;  %v22330_v45 = vld [vmem:[#allocation7 + $0x2ed4] ss:$84 sps:$4 sm:$0xff]  }
 0x5de   :  { %v24536_v24 = vpack.c.bf16 %v15558_v2, %v15537_v42  ;;  %14279 = vmatprep.mubr.bf16.mxu1 %v23841_v54  ;;  %14344 = vmatpush1.bf16.msra.mxu1 %v22232_v11  ;;  %v22259_v11 = vld [vmem:[#allocation7 + $0x13e8] ss:$84 sps:$4 sm:$0xff]   ;;  %v22270_v42 = vld [vmem:[#allocation7 + $0x15e4] ss:$84 sps:$4 sm:$0xff]   ;;  %v22265_v2 = vld [vmem:[#allocation7 + $0x1340] ss:$84 sps:$4 sm:$0xff]  }
 0x5df   :  { %14300 = vmatprep.subr.bf16.mxu0 %v22237_v21  ;;  %14345 = vmatprep.subr.bf16.mxu1 %v22240_v37  ;;  %v22262_v21 = vld [vmem:[#allocation7 + $0x1688] ss:$84 sps:$4 sm:$0xff]   ;;  %v22267_v37 = vld [vmem:[#allocation7 + $0x1344] ss:$84 sps:$4 sm:$0xff]  }
 0x5e0   :  { %25535 = vst [vmem:[#allocation115_spill] sm:$0xff] %v24536_v24 }
 0x5e1   :  { %14301 = vmatpush1.bf16.msra.mxu0 %v22235_v34  ;;  %v22268_v34 = vld [vmem:[#allocation7 + $0x15e0] ss:$84 sps:$4 sm:$0xff]  }
 0x5e2   :  { %14346 = vmatpush1.bf16.msra.mxu1 %v22238_v14  ;;  %14302 = vmatprep.subr.bf16.mxu0 %v22243_v61  ;;  %v22273_v14 = vld [vmem:[#allocation7 + $0x129c] ss:$84 sps:$4 sm:$0xff]  }
 0x5e3   :  { %14347 = vmatprep.subr.bf16.mxu1 %v22246_v38  ;;  %v22276_v61 = vld [vmem:[#allocation7 + $0x153c] ss:$84 sps:$4 sm:$0xff]   ;;  %v22271_v38 = vld [vmem:[#allocation7 + $0x1298] ss:$84 sps:$4 sm:$0xff]  }
 0x5e5   :  { %14280 = vmatmul.mubr.bf16.gmra.mxu1 %v23837_v63  ;;  %14303 = vmatpush1.bf16.msra.mxu0 %v22241_v22  ;;  %v22274_v22 = vld [vmem:[#allocation7 + $0x1538] ss:$84 sps:$4 sm:$0xff]  }
 0x5e6   :  { %14348 = vmatpush1.bf16.msra.mxu1 %v22244_v46  ;;  %14375 = vmatprep.mubr.bf16.mxu1 %v23875_v56  ;;  %v22279_v46 = vld [vmem:[#allocation7 + $0x11f4] ss:$84 sps:$4 sm:$0xff]  }
 0x5e7   :  { %14304 = vmatprep.subr.bf16.mxu0 %v22249_v52  ;;  %14349 = vmatprep.subr.bf16.mxu1 %v22252_v39  ;;  %v22282_v52 = vld [vmem:[#allocation7 + $0x1f14] ss:$84 sps:$4 sm:$0xff]   ;;  %v22277_v39 = vld [vmem:[#allocation7 + $0x11f0] ss:$84 sps:$4 sm:$0xff]  }
 0x5e9   :  { %14305 = vmatpush1.bf16.msra.mxu0 %v22247_v19  ;;  %v22280_v19 = vld [vmem:[#allocation7 + $0x1f10] ss:$84 sps:$4 sm:$0xff]  }
 0x5ea   :  { %14350 = vmatpush1.bf16.msra.mxu1 %v22250_v40  ;;  %14306 = vmatprep.subr.bf16.mxu0 %v22255_v35  ;;  %v22285_v40 = vld [vmem:[#allocation7 + $0x114c] ss:$84 sps:$4 sm:$0xff]  }
 0x5eb   :  { %14351 = vmatprep.subr.bf16.mxu1 %v22258_v0  ;;  %v22288_v35 = vld [vmem:[#allocation7 + $0x1e6c] ss:$84 sps:$4 sm:$0xff]   ;;  %v22283_v0 = vld [vmem:[#allocation7 + $0x1148] ss:$84 sps:$4 sm:$0xff]  }
 0x5ed   :  { %14307 = vmatpush2.bf16.msra.mxu0 %v22253_v31  ;;  %v22286_v31 = vld [vmem:[#allocation7 + $0x1e68] ss:$84 sps:$4 sm:$0xff]  }
 0x5ee   :  { %14352 = vmatpush1.bf16.msra.mxu1 %v22256_v16  ;;  %14308 = vmatprep.subr.bf16.mxu0 %v22261_v36  ;;  %v22291_v16 = vld [vmem:[#allocation7 + $0x10a4] ss:$84 sps:$4 sm:$0xff]  }
 0x5ef   :  { %14353 = vmatprep.subr.bf16.mxu1 %v22264_v13  ;;  %v22294_v36 = vld [vmem:[#allocation7 + $0x1dc4] ss:$84 sps:$4 sm:$0xff]   ;;  %v22289_v13 = vld [vmem:[#allocation7 + $0x10a0] ss:$84 sps:$4 sm:$0xff]  }
 0x5f1   :  { %14309 = vmatpush2.bf16.msra.mxu0 %v22259_v11  ;;  %v22292_v11 = vld [vmem:[#allocation7 + $0x1dc0] ss:$84 sps:$4 sm:$0xff]  }
 0x5f2   :  { %14354 = vmatpush1.bf16.msra.mxu1 %v22262_v21  ;;  %14310 = vmatprep.subr.bf16.mxu0 %v22267_v37  ;;  %v22297_v21 = vld [vmem:[#allocation7 + $0xffc] ss:$84 sps:$4 sm:$0xff]  }
 0x5f3   :  { %14355 = vmatprep.subr.bf16.mxu1 %v22270_v42  ;;  %v22300_v37 = vld [vmem:[#allocation7 + $0x1d1c] ss:$84 sps:$4 sm:$0xff]   ;;  %v22295_v42 = vld [vmem:[#allocation7 + $0xff8] ss:$84 sps:$4 sm:$0xff]  }
 0x5f5   :  { %14311 = vmatpush2.bf16.msra.mxu0 %v22265_v2  ;;  %v22298_v2 = vld [vmem:[#allocation7 + $0x1d18] ss:$84 sps:$4 sm:$0xff]  }
 0x5f6   :  { %14356 = vmatpush1.bf16.msra.mxu1 %v22268_v34  ;;  %14312 = vmatprep.subr.bf16.mxu0 %v22273_v14  ;;  %v22306_v34 = vld [vmem:[#allocation7 + $0x2454] ss:$84 sps:$4 sm:$0xff]   ;;  %v3046_v14 = vrot.slane %v24455_v18, %v23891_v27 }
 0x5f7   :  { %14357 = vmatprep.subr.bf16.mxu1 %v22276_v61  ;;  %v22303_v61 = vld [vmem:[#allocation7 + $0x1c74] ss:$84 sps:$4 sm:$0xff]  }
 0x5f9   :  { %14313 = vmatpush2.bf16.msra.mxu0 %v22271_v38  ;;  %v24543_v38 = vpop.f32.mrf.mxu0 }
 0x5fa   :  { %14358 = vmatpush1.bf16.msra.mxu1 %v22274_v22  ;;  %14314 = vmatprep.subr.bf16.mxu0 %v22279_v46  ;;  %25536 = vst [vmem:[#allocation116_spill] sm:$0xff] %v24543_v38  ;;  %v24545_v22 = vpop.f32.mrf.mxu1  ;;  %v22304_v46 = vld [vmem:[#allocation7 + $0x2450] ss:$84 sps:$4 sm:$0xff]  }
 0x5fb   :  { %14359 = vmatprep.subr.bf16.mxu1 %v22282_v52  ;;  %25537 = vst [vmem:[#allocation117_spill] sm:$0xff] %v24545_v22  ;;  %v24549_v52 = vrot.slane %v24455_v18, %v23850_v8 }
 0x5fd   :  { %14315 = vmatpush2.bf16.msra.mxu0 %v22277_v39 }
 0x5fe   :  { %14360 = vmatpush2.bf16.msra.mxu1 %v22280_v19  ;;  %14316 = vmatprep.subr.bf16.mxu0 %v22285_v40  ;;  %v22301_v19 = vld [vmem:[#allocation7 + $0x1c70] ss:$84 sps:$4 sm:$0xff]   ;;  %v22312_v40 = vld [vmem:[#allocation7 + $0x23ac] ss:$84 sps:$4 sm:$0xff]  }
 0x5ff   :  { %14361 = vmatprep.subr.bf16.mxu1 %v22288_v35 }
 0x601   :  { %14317 = vmatpush2.bf16.msra.mxu0 %v22283_v0 }
 0x602   :  { %14362 = vmatpush2.bf16.msra.mxu1 %v22286_v31  ;;  %14318 = vmatprep.subr.bf16.mxu0 %v22291_v16  ;;  %v22309_v31 = vld [vmem:[#allocation7 + $0x1bcc] ss:$84 sps:$4 sm:$0xff]  }
 0x603   :  { %14363 = vmatprep.subr.bf16.mxu1 %v22294_v36 }
 0x605   :  { %14319 = vmatpush2.bf16.msra.mxu0 %v22289_v13  ;;  %v22310_v13 = vld [vmem:[#allocation7 + $0x23a8] ss:$84 sps:$4 sm:$0xff]  }
 0x606   :  { %14364 = vmatpush2.bf16.msra.mxu1 %v22292_v11  ;;  %14320 = vmatprep.subr.bf16.mxu0 %v22297_v21  ;;  %v22307_v21 = vld [vmem:[#allocation7 + $0x1bc8] ss:$84 sps:$4 sm:$0xff]  }
 0x607   :  { %14365 = vmatprep.subr.bf16.mxu1 %v22300_v37  ;;  %v22318_v37 = vld [vmem:[#allocation7 + $0x2304] ss:$84 sps:$4 sm:$0xff]  }
 0x609   :  { %14321 = vmatpush2.bf16.msra.mxu0 %v22295_v42 }
 0x60a   :  { %14366 = vmatpush2.bf16.msra.mxu1 %v22298_v2  ;;  %v13953_v39 = vpop.f32.mrf.mxu0  ;;  %14396 = vmatprep.subr.bf16.mxu0 %v22306_v34 }
 0x60b   :  { %v13954_v35 = vadd.f32 %v13953_v39, %v3046_v14  ;;  %v14006_v0 = vpop.f32.mrf.mxu1  ;;  %14367 = vmatprep.subr.bf16.mxu1 %v22303_v61  ;;  %v22315_v61 = vld [vmem:[#allocation7 + $0x1b24] ss:$84 sps:$4 sm:$0xff]  }
 0x60c   :  { %14323 = vmatmul.mubr.bf16.vlgmr.msra.gmra.mxu0 %v23823_v17  ;;  %v13955_v16 = vpop.f32.mrf.mxu0 }
 0x60d   :  { %v24552_v36 = vadd.f32 %v14006_v0, %v13954_v35  ;;  %14332 = vmatprep.mubr.bf16.mxu0 %v23843_v57  ;;  %14397 = vmatpush1.bf16.msra.mxu0 %v22304_v46  ;;  %v13956_v8 = vadd.f32 %v13955_v16, %v24549_v52  ;;  %v14008_v18 = vpop.f32.mrf.mxu1  ;;  %v22316_v0 = vld [vmem:[#allocation7 + $0x2300] ss:$84 sps:$4 sm:$0xff]  }
 0x60e   :  { %14368 = vmatpush2.bf16.msra.mxu1 %v22301_v19  ;;  %v13957_v11 = vpop.f32.mrf.mxu0  ;;  %14398 = vmatprep.subr.bf16.mxu0 %v22312_v40  ;;  %v22313_v16 = vld [vmem:[#allocation7 + $0x1b20] ss:$84 sps:$4 sm:$0xff]   ;;  %v22324_v40 = vld [vmem:[#allocation7 + $0x225c] ss:$84 sps:$4 sm:$0xff]  }
 0x60f   :  { %v24556_v42 = vadd.f32 %v14008_v18, %v13956_v8  ;;  %v13958_v2 = vadd.f32 %v13957_v11, %v3046_v14  ;;  %v14010_v34 = vpop.f32.mrf.mxu1  ;;  %14369 = vmatprep.subr.bf16.mxu1 %v22309_v31  ;;  %v22321_v18 = vld [vmem:[#allocation7 + $0x1a7c] ss:$84 sps:$4 sm:$0xff]  }
 0x610   :  { %v24558_v39 = vpop.f32.mrf.mxu0 }
 0x611   :  { %25538 = vst [vmem:[#allocation118_spill] sm:$0xff] %v24558_v39  ;;  %v24560_v35 = vadd.f32 %v14010_v34, %v13958_v2  ;;  %14399 = vmatpush1.bf16.msra.mxu0 %v22310_v13  ;;  %v24562_v46 = vpop.f32.mrf.mxu1 }
 0x612   :  { %25539 = vst [vmem:[#allocation119_spill] sm:$0xff] %v24562_v46  ;;  %14370 = vmatpush2.bf16.msra.mxu1 %v22307_v21  ;;  %v13963_v19 = vpop.f32.mrf.mxu0  ;;  %14400 = vmatprep.subr.bf16.mxu0 %v22318_v37  ;;  %v22322_v21 = vld [vmem:[#allocation7 + $0x2258] ss:$84 sps:$4 sm:$0xff]  }
 0x613   :  { %v13964_v27 = vadd.f32 %v13963_v19, %v3046_v14  ;;  %v14016_v8 = vpop.f32.mrf.mxu1  ;;  %14371 = vmatprep.subr.bf16.mxu1 %v22315_v61  ;;  %v22319_v37 = vld [vmem:[#allocation7 + $0x1a78] ss:$84 sps:$4 sm:$0xff]   ;;  %v22327_v19 = vld [vmem:[#allocation7 + $0x21b4] ss:$84 sps:$4 sm:$0xff]  }
 0x614   :  { %14333 = vmatmul.mubr.bf16.gmra.mxu0 %v23839_v1  ;;  %v13965_v31 = vpop.f32.mrf.mxu0 }
 0x615   :  { %v24565_v11 = vadd.f32 %v14016_v8, %v13964_v27  ;;  %14401 = vmatpush1.bf16.msra.mxu0 %v22316_v0  ;;  %14428 = vmatprep.mubr.bf16.mxu0 %v23877_v43  ;;  %v13966_v13 = vadd.f32 %v13965_v31, %v24549_v52  ;;  %v14018_v2 = vpop.f32.mrf.mxu1  ;;  %v22325_v0 = vld [vmem:[#allocation7 + $0x21b0] ss:$84 sps:$4 sm:$0xff]   ;;  %v22333_v31 = vld [vmem:[#allocation7 + $0x210c] ss:$84 sps:$4 sm:$0xff]  }
 0x616   :  { %14372 = vmatpush2.bf16.msra.mxu1 %v22313_v16  ;;  %v13967_v34 = vpop.f32.mrf.mxu0  ;;  %14402 = vmatprep.subr.bf16.mxu0 %v22324_v40  ;;  %v22328_v8 = vld [vmem:[#allocation7 + $0x2ed0] ss:$84 sps:$4 sm:$0xff]   ;;  %v22336_v16 = vld [vmem:[#allocation7 + $0x2e2c] ss:$84 sps:$4 sm:$0xff]   ;;  %v22331_v40 = vld [vmem:[#allocation7 + $0x2108] ss:$84 sps:$4 sm:$0xff]  }
 0x617   :  { %v24569_v24 = vadd.f32 %v14018_v2, %v13966_v13  ;;  %v13968_v61 = vadd.f32 %v13967_v34, %v3046_v14  ;;  %14373 = vmatprep.subr.bf16.mxu1 %v22321_v18  ;;  %v14020_v4 = vpop.f32.mrf.mxu1  ;;  %v22334_v14 = vld [vmem:[#allocation7 + $0x2e28] ss:$84 sps:$4 sm:$0xff]   ;;  %v22339_v18 = vld [vmem:[#allocation7 + $0x2064] ss:$84 sps:$4 sm:$0xff]   ;;  %v22337_v13 = vld [vmem:[#allocation7 + $0x2060] ss:$84 sps:$4 sm:$0xff]  }
 0x618   :  { %v22340_v2 = vld [vmem:[#allocation7 + $0x2d80] ss:$84 sps:$4 sm:$0xff]   ;;  %v22343_v34 = vld [vmem:[#allocation7 + $0x1fb8] ss:$84 sps:$4 sm:$0xff]  }
 0x619   :  { %v24571_v27 = vadd.f32 %v14020_v4, %v13968_v61  ;;  %14403 = vmatpush1.bf16.msra.mxu0 %v22322_v21  ;;  %v22342_v4 = vld [vmem:[#allocation7 + $0x2d84] ss:$84 sps:$4 sm:$0xff]   ;;  %v22348_v21 = vld [vmem:[#allocation7 + $0x2cdc] ss:$84 sps:$4 sm:$0xff]   ;;  %v22354_v61 = vld [vmem:[#allocation7 + $0x2c34] ss:$84 sps:$4 sm:$0xff]  }
 0x61a   :  { %14374 = vmatpush2.bf16.msra.mxu1 %v22319_v37  ;;  %14404 = vmatprep.subr.bf16.mxu0 %v22327_v19  ;;  %v22346_v37 = vld [vmem:[#allocation7 + $0x2cd8] ss:$84 sps:$4 sm:$0xff]   ;;  %v22351_v19 = vld [vmem:[#allocation7 + $0x2994] ss:$84 sps:$4 sm:$0xff]  }
 0x61b   :  { %14449 = vmatprep.subr.bf16.mxu1 %v22330_v45  ;;  %v22345_v45 = vld [vmem:[#allocation7 + $0x1fbc] ss:$84 sps:$4 sm:$0xff]  }
 0x61d   :  { %14376 = vmatmul.mubr.bf16.vlgmr.msra.gmra.mxu1 %v23922_v53  ;;  %14405 = vmatpush1.bf16.msra.mxu0 %v22325_v0  ;;  %v22349_v0 = vld [vmem:[#allocation7 + $0x2990] ss:$84 sps:$4 sm:$0xff]  }
 0x61e   :  { %14385 = vmatprep.mubr.bf16.mxu1 %v23926_v47  ;;  %14450 = vmatpush1.bf16.msra.mxu1 %v22328_v8  ;;  %v22352_v8 = vld [vmem:[#allocation7 + $0x2c30] ss:$84 sps:$4 sm:$0xff]  }
 0x61f   :  { %14406 = vmatprep.subr.bf16.mxu0 %v22333_v31  ;;  %14451 = vmatprep.subr.bf16.mxu1 %v22336_v16  ;;  %v22357_v31 = vld [vmem:[#allocation7 + $0x28ec] ss:$84 sps:$4 sm:$0xff]  }
 0x620   :  { %v22360_v16 = vld [vmem:[#allocation7 + $0x2b8c] ss:$84 sps:$4 sm:$0xff]  }
 0x621   :  { %14407 = vmatpush1.bf16.msra.mxu0 %v22331_v40  ;;  %v22355_v40 = vld [vmem:[#allocation7 + $0x28e8] ss:$84 sps:$4 sm:$0xff]  }
 0x622   :  { %14452 = vmatpush1.bf16.msra.mxu1 %v22334_v14  ;;  %14408 = vmatprep.subr.bf16.mxu0 %v22339_v18  ;;  %v22358_v14 = vld [vmem:[#allocation7 + $0x2b88] ss:$84 sps:$4 sm:$0xff]   ;;  %v22363_v18 = vld [vmem:[#allocation7 + $0x2844] ss:$84 sps:$4 sm:$0xff]  }
 0x623   :  { %14453 = vmatprep.subr.bf16.mxu1 %v22342_v4  ;;  %v22366_v4 = vld [vmem:[#allocation7 + $0x2ae4] ss:$84 sps:$4 sm:$0xff]  }
 0x625   :  { %14386 = vmatmul.mubr.bf16.gmra.mxu1 %v23936_v5  ;;  %14409 = vmatpush1.bf16.msra.mxu0 %v22337_v13  ;;  %v22361_v13 = vld [vmem:[#allocation7 + $0x2840] ss:$84 sps:$4 sm:$0xff]  }
 0x626   :  { %14454 = vmatpush1.bf16.msra.mxu1 %v22340_v2  ;;  %14481 = vmatprep.mubr.bf16.mxu1 %v23940_v23  ;;  %v22364_v2 = vld [vmem:[#allocation7 + $0x2ae0] ss:$84 sps:$4 sm:$0xff]  }
 0x627   :  { %14410 = vmatprep.subr.bf16.mxu0 %v22345_v45  ;;  %14455 = vmatprep.subr.bf16.mxu1 %v22348_v21  ;;  %v22369_v45 = vld [vmem:[#allocation7 + $0x279c] ss:$84 sps:$4 sm:$0xff]  }
 0x628   :  { %v22372_v21 = vld [vmem:[#allocation7 + $0x2a3c] ss:$84 sps:$4 sm:$0xff]  }
 0x629   :  { %14411 = vmatpush1.bf16.msra.mxu0 %v22343_v34  ;;  %v22367_v34 = vld [vmem:[#allocation7 + $0x2798] ss:$84 sps:$4 sm:$0xff]  }
 0x62a   :  { %14456 = vmatpush1.bf16.msra.mxu1 %v22346_v37  ;;  %14412 = vmatprep.subr.bf16.mxu0 %v22351_v19  ;;  %v22370_v37 = vld [vmem:[#allocation7 + $0x2a38] ss:$84 sps:$4 sm:$0xff]   ;;  %v22375_v19 = vld [vmem:[#allocation7 + $0x26f4] ss:$84 sps:$4 sm:$0xff]  }
 0x62b   :  { %14457 = vmatprep.subr.bf16.mxu1 %v22354_v61  ;;  %v22378_v61 = vld [vmem:[#allocation7 + $0x3414] ss:$84 sps:$4 sm:$0xff]  }
 0x62d   :  { %14413 = vmatpush2.bf16.msra.mxu0 %v22349_v0  ;;  %v22373_v0 = vld [vmem:[#allocation7 + $0x26f0] ss:$84 sps:$4 sm:$0xff]  }
 0x62e   :  { %14458 = vmatpush1.bf16.msra.mxu1 %v22352_v8  ;;  %14414 = vmatprep.subr.bf16.mxu0 %v22357_v31  ;;  %v22376_v8 = vld [vmem:[#allocation7 + $0x3410] ss:$84 sps:$4 sm:$0xff]   ;;  %v22381_v31 = vld [vmem:[#allocation7 + $0x264c] ss:$84 sps:$4 sm:$0xff]  }
 0x62f   :  { %14459 = vmatprep.subr.bf16.mxu1 %v22360_v16  ;;  %v22384_v16 = vld [vmem:[#allocation7 + $0x336c] ss:$84 sps:$4 sm:$0xff]  }
 0x631   :  { %14415 = vmatpush2.bf16.msra.mxu0 %v22355_v40  ;;  %v22379_v40 = vld [vmem:[#allocation7 + $0x2648] ss:$84 sps:$4 sm:$0xff]  }
 0x632   :  { %14460 = vmatpush1.bf16.msra.mxu1 %v22358_v14  ;;  %14416 = vmatprep.subr.bf16.mxu0 %v22363_v18  ;;  %v22382_v14 = vld [vmem:[#allocation7 + $0x3368] ss:$84 sps:$4 sm:$0xff]   ;;  %v22387_v18 = vld [vmem:[#allocation7 + $0x25a4] ss:$84 sps:$4 sm:$0xff]  }
 0x633   :  { %14461 = vmatprep.subr.bf16.mxu1 %v22366_v4  ;;  %v22390_v4 = vld [vmem:[#allocation7 + $0x32c4] ss:$84 sps:$4 sm:$0xff]  }
 0x635   :  { %14417 = vmatpush2.bf16.msra.mxu0 %v22361_v13  ;;  %v22385_v13 = vld [vmem:[#allocation7 + $0x25a0] ss:$84 sps:$4 sm:$0xff]  }
 0x636   :  { %14462 = vmatpush1.bf16.msra.mxu1 %v22364_v2  ;;  %14418 = vmatprep.subr.bf16.mxu0 %v22369_v45  ;;  %v22388_v2 = vld [vmem:[#allocation7 + $0x32c0] ss:$84 sps:$4 sm:$0xff]   ;;  %v22393_v45 = vld [vmem:[#allocation7 + $0x24fc] ss:$84 sps:$4 sm:$0xff]  }
 0x637   :  { %14463 = vmatprep.subr.bf16.mxu1 %v22372_v21  ;;  %v22396_v21 = vld [vmem:[#allocation7 + $0x321c] ss:$84 sps:$4 sm:$0xff]  }
 0x639   :  { %14419 = vmatpush2.bf16.msra.mxu0 %v22367_v34  ;;  %v22391_v34 = vld [vmem:[#allocation7 + $0x24f8] ss:$84 sps:$4 sm:$0xff]  }
 0x63a   :  { %14464 = vmatpush1.bf16.msra.mxu1 %v22370_v37  ;;  %14420 = vmatprep.subr.bf16.mxu0 %v22375_v19  ;;  %v22394_v37 = vld [vmem:[#allocation7 + $0x3218] ss:$84 sps:$4 sm:$0xff]   ;;  %v22402_v19 = vld [vmem:[#allocation7 + $0x36b4] ss:$84 sps:$4 sm:$0xff]  }
 0x63b   :  { %14465 = vmatprep.subr.bf16.mxu1 %v22378_v61  ;;  %v22399_v61 = vld [vmem:[#allocation7 + $0x3174] ss:$84 sps:$4 sm:$0xff]  }
 0x63d   :  { %14421 = vmatpush2.bf16.msra.mxu0 %v22373_v0  ;;  %v24577_v0 = vpop.f32.mrf.mxu0 }
 0x63e   :  { %14466 = vmatpush2.bf16.msra.mxu1 %v22376_v8  ;;  %14422 = vmatprep.subr.bf16.mxu0 %v22381_v31  ;;  %25540 = vst [vmem:[#allocation120_spill] sm:$0xff] %v24577_v0  ;;  %v22400_v8 = vld [vmem:[#allocation7 + $0x36b0] ss:$84 sps:$4 sm:$0xff]   ;;  %v24579_v31 = vpop.f32.mrf.mxu1 }
 0x63f   :  { %14467 = vmatprep.subr.bf16.mxu1 %v22384_v16  ;;  %25541 = vst [vmem:[#allocation121_spill] sm:$0xff] %v24579_v31  ;;  %v22397_v16 = vld [vmem:[#allocation7 + $0x3170] ss:$84 sps:$4 sm:$0xff]  }
 0x641   :  { %14423 = vmatpush2.bf16.msra.mxu0 %v22379_v40  ;;  %v22408_v40 = vld [vmem:[#allocation7 + $0x360c] ss:$84 sps:$4 sm:$0xff]  }
 0x642   :  { %14468 = vmatpush2.bf16.msra.mxu1 %v22382_v14  ;;  %14424 = vmatprep.subr.bf16.mxu0 %v22387_v18  ;;  %v22405_v18 = vld [vmem:[#allocation7 + $0x30cc] ss:$84 sps:$4 sm:$0xff]  }
 0x643   :  { %14469 = vmatprep.subr.bf16.mxu1 %v22390_v4 }
 0x645   :  { %14425 = vmatpush2.bf16.msra.mxu0 %v22385_v13 }
 0x646   :  { %14470 = vmatpush2.bf16.msra.mxu1 %v22388_v2  ;;  %14426 = vmatprep.subr.bf16.mxu0 %v22393_v45  ;;  %v22406_v45 = vld [vmem:[#allocation7 + $0x3608] ss:$84 sps:$4 sm:$0xff]  }
 0x647   :  { %14471 = vmatprep.subr.bf16.mxu1 %v22396_v21 }
 0x649   :  { %14427 = vmatpush2.bf16.msra.mxu0 %v22391_v34 }
 0x64a   :  { %14472 = vmatpush2.bf16.msra.mxu1 %v22394_v37  ;;  %14510 = vmatprep.subr.bf16.mxu0 %v22402_v19  ;;  %v22403_v19 = vld [vmem:[#allocation7 + $0x30c8] ss:$84 sps:$4 sm:$0xff]  }
 0x64b   :  { %v14059_v14 = vpop.f32.mrf.mxu0  ;;  %14473 = vmatprep.subr.bf16.mxu1 %v22399_v61  ;;  %v22414_v61 = vld [vmem:[#allocation7 + $0x3564] ss:$84 sps:$4 sm:$0xff]  }
 0x64c   :  { %v14060_v4 = vadd.f32 %v14059_v14, %v24552_v36  ;;  %v14112_v13 = vpop.f32.mrf.mxu1  ;;  %14429 = vmatmul.mubr.bf16.vlgmr.msra.gmra.mxu0 %v23913_v15  ;;  %v22411_v36 = vld [vmem:[#allocation7 + $0x3024] ss:$84 sps:$4 sm:$0xff]  }
 0x64d   :  { %14438 = vmatprep.mubr.bf16.mxu0 %v23928_v6  ;;  %14511 = vmatpush1.bf16.msra.mxu0 %v22400_v8  ;;  %v14061_v2 = vpop.f32.mrf.mxu0 }
 0x64e   :  { %v24584_v21 = vadd.f32 %v14112_v13, %v14060_v4  ;;  %14474 = vmatpush2.bf16.msra.mxu1 %v22397_v16  ;;  %v14062_v34 = vadd.f32 %v14061_v2, %v24556_v42  ;;  %v14114_v37 = vpop.f32.mrf.mxu1  ;;  %14512 = vmatprep.subr.bf16.mxu0 %v22408_v40  ;;  %v22412_v4 = vld [vmem:[#allocation7 + $0x3560] ss:$84 sps:$4 sm:$0xff]   ;;  %v22420_v40 = vld [vmem:[#allocation7 + $0x34bc] ss:$84 sps:$4 sm:$0xff]  }
 0x64f   :  { %v14063_v31 = vpop.f32.mrf.mxu0  ;;  %14475 = vmatprep.subr.bf16.mxu1 %v22405_v18  ;;  %v22409_v16 = vld [vmem:[#allocation7 + $0x3020] ss:$84 sps:$4 sm:$0xff]   ;;  %v22417_v18 = vld [vmem:[#allocation7 + $0x2f7c] ss:$84 sps:$4 sm:$0xff]  }
 0x650   :  { %v24587_v14 = vadd.f32 %v14114_v37, %v14062_v34  ;;  %v14064_v0 = vadd.f32 %v14063_v31, %v24560_v35  ;;  %v14116_v38 = vpop.f32.mrf.mxu1  ;;  %v22418_v31 = vld [vmem:[#allocation7 + $0x34b8] ss:$84 sps:$4 sm:$0xff]  }
 0x651   :  { %14513 = vmatpush1.bf16.msra.mxu0 %v22406_v45  ;;  %v24590_v8 = vpop.f32.mrf.mxu0 }
 0x652   :  { %25542 = vst [vmem:[#allocation122_spill] sm:$0xff] %v24590_v8  ;;  %v24592_v13 = vadd.f32 %v14116_v38, %v14064_v0  ;;  %14476 = vmatpush2.bf16.msra.mxu1 %v22403_v19  ;;  %v24594_v42 = vpop.f32.mrf.mxu1  ;;  %14514 = vmatprep.subr.bf16.mxu0 %v22414_v61  ;;  %v22415_v19 = vld [vmem:[#allocation7 + $0x2f78] ss:$84 sps:$4 sm:$0xff]   ;;  %v22423_v61 = vld [vmem:[#allocation7 + $0x4dc] ss:$84 sps:$4 sm:$0xff]  }
 0x653   :  { %25543 = vst [vmem:[#allocation123_spill] sm:$0xff] %v24594_v42  ;;  %v14069_v2 = vpop.f32.mrf.mxu0  ;;  %14477 = vmatprep.subr.bf16.mxu1 %v22411_v36  ;;  %v22421_v42 = vld [vmem:[#allocation7 + $0x4d8] ss:$84 sps:$4 sm:$0xff]  }
 0x654   :  { %v14070_v34 = vadd.f32 %v14069_v2, %v24565_v11  ;;  %v14122_v37 = vpop.f32.mrf.mxu1  ;;  %14439 = vmatmul.mubr.bf16.gmra.mxu0 %v23938_v10  ;;  %v22426_v11 = vld [vmem:[#allocation7 + $0xf5c] ss:$84 sps:$4 sm:$0xff]  }
 0x655   :  { %14515 = vmatpush1.bf16.msra.mxu0 %v22412_v4  ;;  %v14071_v35 = vpop.f32.mrf.mxu0  ;;  %14534 = vmatprep.mubr.bf16.mxu0 %v25462_v44 }
 0x656   :  { %v24599_v38 = vadd.f32 %v14122_v37, %v14070_v34  ;;  %14478 = vmatpush2.bf16.msra.mxu1 %v22409_v16  ;;  %v14072_v0 = vadd.f32 %v14071_v35, %v24569_v24  ;;  %v14124_v45 = vpop.f32.mrf.mxu1  ;;  %14516 = vmatprep.subr.bf16.mxu0 %v22420_v40  ;;  %v22424_v16 = vld [vmem:[#allocation7 + $0xf58] ss:$84 sps:$4 sm:$0xff]   ;;  %v22429_v24 = vld [vmem:[#allocation7 + $0x434] ss:$84 sps:$4 sm:$0xff]   ;;  %v22427_v40 = vld [vmem:[#allocation7 + $0x430] ss:$84 sps:$4 sm:$0xff]  }
 0x657   :  { %v14073_v36 = vpop.f32.mrf.mxu0  ;;  %14479 = vmatprep.subr.bf16.mxu1 %v22417_v18  ;;  %v22432_v34 = vld [vmem:[#allocation7 + $0xeb4] ss:$84 sps:$4 sm:$0xff]   ;;  %v22435_v18 = vld [vmem:[#allocation7 + $0x38c] ss:$84 sps:$4 sm:$0xff]  }
 0x658   :  { %v24602_v2 = vadd.f32 %v14124_v45, %v14072_v0  ;;  %v14074_v4 = vadd.f32 %v14073_v36, %v24571_v27  ;;  %v14126_v22 = vpop.f32.mrf.mxu1  ;;  %v22430_v27 = vld [vmem:[#allocation7 + $0xeb0] ss:$84 sps:$4 sm:$0xff]   ;;  %v22433_v37 = vld [vmem:[#allocation7 + $0x388] ss:$84 sps:$4 sm:$0xff]   ;;  %v22439_v0 = vld [vmem:[#allocation7 + $0x2e0] ss:$84 sps:$4 sm:$0xff]  }
 0x659   :  { %14517 = vmatpush1.bf16.msra.mxu0 %v22418_v31  ;;  %v22436_v35 = vld [vmem:[#allocation7 + $0xe08] ss:$84 sps:$4 sm:$0xff]   ;;  %v22441_v31 = vld [vmem:[#allocation7 + $0x2e4] ss:$84 sps:$4 sm:$0xff]   ;;  %v22442_v45 = vld [vmem:[#allocation7 + $0xd60] ss:$84 sps:$4 sm:$0xff]  }
 0x65a   :  { %v24605_v8 = vadd.f32 %v14126_v22, %v14074_v4  ;;  %14480 = vmatpush2.bf16.msra.mxu1 %v22415_v19  ;;  %14555 = vmatprep.subr.bf16.mxu0 %v22423_v61  ;;  %v22438_v22 = vld [vmem:[#allocation7 + $0xe0c] ss:$84 sps:$4 sm:$0xff]   ;;  %v22447_v19 = vld [vmem:[#allocation7 + $0x23c] ss:$84 sps:$4 sm:$0xff]   ;;  %v22453_v4 = vld [vmem:[#allocation7 + $0x194] ss:$84 sps:$4 sm:$0xff]  }
 0x65b   :  { %14608 = vmatprep.subr.bf16.mxu1 %v22426_v11  ;;  %v22450_v61 = vld [vmem:[#allocation7 + $0xcbc] ss:$84 sps:$4 sm:$0xff]   ;;  %v22445_v36 = vld [vmem:[#allocation7 + $0x238] ss:$84 sps:$4 sm:$0xff]  }
 0x65c   :  { %19546 = vmatmul.mubr.msk.bf16.vlgmr.msra.gmra.mxu0 %vm12004_vm8, %v23947_v41  ;;  %v22448_v11 = vld [vmem:[#allocation7 + $0xcb8] ss:$84 sps:$4 sm:$0xff]  }
 0x65d   :  { %14482 = vmatmul.mubr.bf16.vlgmr.msra.gmra.mxu1 %v23963_v3  ;;  %14556 = vmatpush1.bf16.msra.mxu0 %v22421_v42  ;;  %v22444_v42 = vld [vmem:[#allocation7 + $0xd64] ss:$84 sps:$4 sm:$0xff]  }
 0x65e   :  { %14491 = vmatprep.mubr.bf16.mxu1 %v23965_v12  ;;  %14609 = vmatpush1.bf16.msra.mxu1 %v22424_v16  ;;  %v22456_v16 = vld [vmem:[#allocation7 + $0xc14] ss:$84 sps:$4 sm:$0xff]  }
 0x65f   :  { %14557 = vmatprep.subr.bf16.mxu0 %v22429_v24  ;;  %14610 = vmatprep.subr.bf16.mxu1 %v22432_v34  ;;  %v22451_v24 = vld [vmem:[#allocation7 + $0x190] ss:$84 sps:$4 sm:$0xff]  }
 0x660   :  { %14544 = vmatprep.mubr.bf16.mxu0 %v25462_v44  ;;  %v22454_v34 = vld [vmem:[#allocation7 + $0xc10] ss:$84 sps:$4 sm:$0xff]  }
 0x661   :  { %14558 = vmatpush1.bf16.msra.mxu0 %v22427_v40  ;;  %v22459_v40 = vld [vmem:[#allocation7 + $0xec] ss:$84 sps:$4 sm:$0xff]  }
 0x662   :  { %14611 = vmatpush1.bf16.msra.mxu1 %v22430_v27  ;;  %14559 = vmatprep.subr.bf16.mxu0 %v22435_v18  ;;  %v22462_v27 = vld [vmem:[#allocation7 + $0xb6c] ss:$84 sps:$4 sm:$0xff]   ;;  %v22457_v18 = vld [vmem:[#allocation7 + $0xe8] ss:$84 sps:$4 sm:$0xff]  }
 0x663   :  { %14612 = vmatprep.subr.bf16.mxu1 %v22438_v22  ;;  %v22460_v22 = vld [vmem:[#allocation7 + $0xb68] ss:$84 sps:$4 sm:$0xff]  }
 0x664   :  { %19547 = vmatmul.mubr.msk.bf16.gmra.mxu0 %vm12004_vm8, %v23952_v59 }
 0x665   :  { %14492 = vmatmul.mubr.bf16.gmra.mxu1 %v23969_v58  ;;  %14560 = vmatpush1.bf16.msra.mxu0 %v22433_v37  ;;  %v22465_v37 = vld [vmem:[#allocation7 + $0x44] ss:$84 sps:$4 sm:$0xff]  }
 0x666   :  { %14587 = vmatprep.mubr.bf16.mxu0 %v23825_v25  ;;  %14613 = vmatpush1.bf16.msra.mxu1 %v22436_v35  ;;  %v22468_v35 = vld [vmem:[#allocation7 + $0xac4] ss:$84 sps:$4 sm:$0xff]  }
 0x667   :  { %14640 = vmatprep.mubr.bf16.mxu1 %v23827_v26  ;;  %14561 = vmatprep.subr.bf16.mxu0 %v22441_v31  ;;  %v22463_v31 = vld [vmem:[#allocation7 + $0x40] ss:$84 sps:$4 sm:$0xff]  }
 0x668   :  { %14614 = vmatprep.subr.bf16.mxu1 %v22444_v42  ;;  %v22466_v42 = vld [vmem:[#allocation7 + $0xac0] ss:$84 sps:$4 sm:$0xff]  }
 0x669   :  { %14562 = vmatpush1.bf16.msra.mxu0 %v22439_v0  ;;  %v22471_v0 = vld [vmem:[#allocation7 + $0xa1c] ss:$84 sps:$4 sm:$0xff]  }
 0x66a   :  { %14615 = vmatpush1.bf16.msra.mxu1 %v22442_v45  ;;  %14563 = vmatprep.subr.bf16.mxu0 %v22447_v19  ;;  %v22474_v45 = vld [vmem:[#allocation7 + $0x149c] ss:$84 sps:$4 sm:$0xff]   ;;  %v22469_v19 = vld [vmem:[#allocation7 + $0xa18] ss:$84 sps:$4 sm:$0xff]  }
 0x66b   :  { %14616 = vmatprep.subr.bf16.mxu1 %v22450_v61  ;;  %v22472_v61 = vld [vmem:[#allocation7 + $0x1498] ss:$84 sps:$4 sm:$0xff]  }
 0x66d   :  { %14564 = vmatpush1.bf16.msra.mxu0 %v22445_v36  ;;  %v22477_v36 = vld [vmem:[#allocation7 + $0x974] ss:$84 sps:$4 sm:$0xff]  }
 0x66e   :  { %14617 = vmatpush1.bf16.msra.mxu1 %v22448_v11  ;;  %14565 = vmatprep.subr.bf16.mxu0 %v22453_v4  ;;  %v22480_v11 = vld [vmem:[#allocation7 + $0x13f4] ss:$84 sps:$4 sm:$0xff]   ;;  %v22475_v4 = vld [vmem:[#allocation7 + $0x970] ss:$84 sps:$4 sm:$0xff]  }
 0x66f   :  { %14618 = vmatprep.subr.bf16.mxu1 %v22456_v16  ;;  %v24617_v16 = vpop.f32.mrf.mxu1 }
 0x670   :  { %25544 = vst [vmem:[#allocation124_spill] sm:$0xff] %v24617_v16  ;;  %v22507_v16 = vld [vmem:[#allocation7 + $0x62c] ss:$84 sps:$4 sm:$0xff]  }
 0x671   :  { %14566 = vmatpush1.bf16.msra.mxu0 %v22451_v24  ;;  %v22478_v24 = vld [vmem:[#allocation7 + $0x13f0] ss:$84 sps:$4 sm:$0xff]  }
 0x672   :  { %14619 = vmatpush1.bf16.msra.mxu1 %v22454_v34  ;;  %14567 = vmatprep.subr.bf16.mxu0 %v22459_v40  ;;  %v22483_v34 = vld [vmem:[#allocation7 + $0x8cc] ss:$84 sps:$4 sm:$0xff]  }
 0x673   :  { %14620 = vmatprep.subr.bf16.mxu1 %v22462_v27  ;;  %v22486_v40 = vld [vmem:[#allocation7 + $0x134c] ss:$84 sps:$4 sm:$0xff]   ;;  %v22481_v27 = vld [vmem:[#allocation7 + $0x8c8] ss:$84 sps:$4 sm:$0xff]  }
 0x675   :  { %14568 = vmatpush1.bf16.msra.mxu0 %v22457_v18  ;;  %v14218_v18 = vpop.f32.mrf.mxu1 }
 0x676   :  { %14621 = vmatpush1.bf16.msra.mxu1 %v22460_v22  ;;  %14569 = vmatprep.subr.bf16.mxu0 %v22465_v37  ;;  %v22484_v22 = vld [vmem:[#allocation7 + $0x1348] ss:$84 sps:$4 sm:$0xff]   ;;  %v22489_v37 = vld [vmem:[#allocation7 + $0x824] ss:$84 sps:$4 sm:$0xff]  }
 0x677   :  { %14622 = vmatprep.subr.bf16.mxu1 %v22468_v35  ;;  %v22492_v35 = vld [vmem:[#allocation7 + $0x12a4] ss:$84 sps:$4 sm:$0xff]  }
 0x679   :  { %14570 = vmatpush1.bf16.msra.mxu0 %v22463_v31  ;;  %v22487_v31 = vld [vmem:[#allocation7 + $0x820] ss:$84 sps:$4 sm:$0xff]  }
 0x67a   :  { %14623 = vmatpush1.bf16.msra.mxu1 %v22466_v42  ;;  %14571 = vmatprep.subr.bf16.mxu0 %v22471_v0  ;;  %v14220_v42 = vpop.f32.mrf.mxu1  ;;  %v22490_v0 = vld [vmem:[#allocation7 + $0x12a0] ss:$84 sps:$4 sm:$0xff]  }
 0x67b   :  { %14624 = vmatprep.subr.bf16.mxu1 %v22474_v45  ;;  %v22495_v45 = vld [vmem:[#allocation7 + $0x77c] ss:$84 sps:$4 sm:$0xff]  }
 0x67d   :  { %14572 = vmatpush2.bf16.msra.mxu0 %v22469_v19  ;;  %v22498_v19 = vld [vmem:[#allocation7 + $0x11fc] ss:$84 sps:$4 sm:$0xff]  }
 0x67e   :  { %14625 = vmatpush2.bf16.msra.mxu1 %v22472_v61  ;;  %14573 = vmatprep.subr.bf16.mxu0 %v22477_v36  ;;  %v22493_v61 = vld [vmem:[#allocation7 + $0x778] ss:$84 sps:$4 sm:$0xff]   ;;  %v24619_v36 = vpop.f32.mrf.mxu0 }
 0x67f   :  { %14626 = vmatprep.subr.bf16.mxu1 %v22480_v11  ;;  %25545 = vst [vmem:[#allocation125_spill] sm:$0xff] %v24619_v36  ;;  %v14222_v11 = vpop.f32.mrf.mxu1 }
 0x681   :  { %14574 = vmatpush2.bf16.msra.mxu0 %v22475_v4  ;;  %v22496_v4 = vld [vmem:[#allocation7 + $0x11f8] ss:$84 sps:$4 sm:$0xff]  }
 0x682   :  { %14627 = vmatpush2.bf16.msra.mxu1 %v22478_v24  ;;  %14575 = vmatprep.subr.bf16.mxu0 %v22483_v34  ;;  %v22501_v24 = vld [vmem:[#allocation7 + $0x6d4] ss:$84 sps:$4 sm:$0xff]  }
 0x683   :  { %14628 = vmatprep.subr.bf16.mxu1 %v22486_v40  ;;  %v22504_v34 = vld [vmem:[#allocation7 + $0x1154] ss:$84 sps:$4 sm:$0xff]  }
 0x685   :  { %14576 = vmatpush2.bf16.msra.mxu0 %v22481_v27 }
 0x686   :  { %14629 = vmatpush2.bf16.msra.mxu1 %v22484_v22  ;;  %14577 = vmatprep.subr.bf16.mxu0 %v22489_v37  ;;  %v22499_v22 = vld [vmem:[#allocation7 + $0x6d0] ss:$84 sps:$4 sm:$0xff]   ;;  %v24622_v37 = vpop.f32.mrf.mxu1 }
 0x687   :  { %14630 = vmatprep.subr.bf16.mxu1 %v22492_v35  ;;  %25546 = vst [vmem:[#allocation126_spill] sm:$0xff] %v24622_v37 }
 0x689   :  { %14578 = vmatpush2.bf16.msra.mxu0 %v22487_v31  ;;  %v22502_v31 = vld [vmem:[#allocation7 + $0x1150] ss:$84 sps:$4 sm:$0xff]  }
 0x68a   :  { %14631 = vmatpush2.bf16.msra.mxu1 %v22490_v0  ;;  %14579 = vmatprep.subr.bf16.mxu0 %v22495_v45  ;;  %v22510_v45 = vld [vmem:[#allocation7 + $0x10ac] ss:$84 sps:$4 sm:$0xff]  }
 0x68b   :  { %14632 = vmatprep.subr.bf16.mxu1 %v22498_v19 }
 0x68c   :  { %v14165_v40 = vpop.f32.mrf.mxu0 }
 0x68d   :  { %v14166_v27 = vadd.f32 %v14165_v40, %v24584_v21  ;;  %14580 = vmatpush2.bf16.msra.mxu0 %v22493_v61  ;;  %v22505_v21 = vld [vmem:[#allocation7 + $0x628] ss:$84 sps:$4 sm:$0xff]   ;;  %v14228_v61 = vpop.f32.mrf.mxu1 }
 0x68e   :  { %14633 = vmatpush2.bf16.msra.mxu1 %v22496_v4  ;;  %v14167_v35 = vpop.f32.mrf.mxu0  ;;  %14581 = vmatprep.subr.bf16.mxu0 %v22501_v24  ;;  %v22508_v4 = vld [vmem:[#allocation7 + $0x10a8] ss:$84 sps:$4 sm:$0xff]   ;;  %v22513_v24 = vld [vmem:[#allocation7 + $0x584] ss:$84 sps:$4 sm:$0xff]  }
 0x68f   :  { %v14219_v36 = vadd.f32 %v14218_v18, %v14166_v27  ;;  %v14168_v0 = vadd.f32 %v14167_v35, %v24587_v14  ;;  %14634 = vmatprep.subr.bf16.mxu1 %v22504_v34  ;;  %v22516_v18 = vld [vmem:[#allocation7 + $0x1004] ss:$84 sps:$4 sm:$0xff]   ;;  %v22511_v35 = vld [vmem:[#allocation7 + $0x580] ss:$84 sps:$4 sm:$0xff]  }
 0x690   :  { %v14169_v46 = vpop.f32.mrf.mxu0 }
 0x691   :  { %v24625_v19 = vadd.f32 %v14220_v42, %v14168_v0  ;;  %v14170_v39 = vadd.f32 %v14169_v46, %v24592_v13  ;;  %14582 = vmatpush2.bf16.msra.mxu0 %v22499_v22  ;;  %v15497_v34 = vmax.f32 %v14219_v36, 0.0  ;;  %v14230_v46 = vpop.f32.mrf.mxu1  ;;  %v22514_v22 = vld [vmem:[#allocation7 + $0x1000] ss:$84 sps:$4 sm:$0xff]  }
 0x692   :  { %14635 = vmatpush2.bf16.msra.mxu1 %v22502_v31  ;;  %v24628_v40 = vpop.f32.mrf.mxu0  ;;  %14583 = vmatprep.subr.bf16.mxu0 %v22507_v16  ;;  %v22519_v31 = vld [vmem:[#allocation7 + $0x19dc] ss:$84 sps:$4 sm:$0xff]  }
 0x693   :  { %25547 = vst [vmem:[#allocation127_spill] sm:$0xff] %v24625_v19  ;;  %v14223_v37 = vadd.f32 %v14222_v11, %v14170_v39  ;;  %14636 = vmatprep.subr.bf16.mxu1 %v22510_v45  ;;  %v22522_v11 = vld [vmem:[#allocation7 + $0x245c] ss:$84 sps:$4 sm:$0xff]  }
 0x694   :  { %v14175_v14 = vpop.f32.mrf.mxu0 }
 0x695   :  { %v15518_v27 = vmax.f32 %v14223_v37, 0.0  ;;  %v14176_v42 = vadd.f32 %v14175_v14, %v24599_v38  ;;  %14584 = vmatpush2.bf16.msra.mxu0 %v22505_v21  ;;  %v14232_v37 = vpop.f32.mrf.mxu1  ;;  %v22517_v21 = vld [vmem:[#allocation7 + $0x19d8] ss:$84 sps:$4 sm:$0xff]   ;;  %v22525_v14 = vld [vmem:[#allocation7 + $0x1934] ss:$84 sps:$4 sm:$0xff]  }
 0x696   :  { %14637 = vmatpush2.bf16.msra.mxu1 %v22508_v4  ;;  %v14177_v13 = vpop.f32.mrf.mxu0  ;;  %14585 = vmatprep.subr.bf16.mxu0 %v22513_v24  ;;  %v22520_v24 = vld [vmem:[#allocation7 + $0x2458] ss:$84 sps:$4 sm:$0xff]  }
 0x697   :  { %v24631_v0 = vpack.c.bf16 %v15518_v27, %v15497_v34  ;;  %v14229_v16 = vadd.f32 %v14228_v61, %v14176_v42  ;;  %v14178_v39 = vadd.f32 %v14177_v13, %v24602_v2  ;;  %14638 = vmatprep.subr.bf16.mxu1 %v22516_v18  ;;  %v22528_v61 = vld [vmem:[#allocation7 + $0x23b4] ss:$84 sps:$4 sm:$0xff]   ;;  %v22526_v27 = vld [vmem:[#allocation7 + $0x23b0] ss:$84 sps:$4 sm:$0xff]   ;;  %v22531_v42 = vld [vmem:[#allocation7 + $0x188c] ss:$84 sps:$4 sm:$0xff]  }
 0x698   :  { %v14179_v45 = vpop.f32.mrf.mxu0  ;;  %v22532_v13 = vld [vmem:[#allocation7 + $0x2308] ss:$84 sps:$4 sm:$0xff]  }
 0x699   :  { %25548 = vst [vmem:[#allocation128_spill] sm:$0xff] %v24631_v0  ;;  %v24634_v36 = vadd.f32 %v14230_v46, %v14178_v39  ;;  %v14180_v38 = vadd.f32 %v14179_v45, %v24605_v8  ;;  %14586 = vmatpush2.bf16.msra.mxu0 %v22511_v35  ;;  %v15539_v2 = vmax.f32 %v14229_v16, 0.0  ;;  %v22523_v8 = vld [vmem:[#allocation7 + $0x1930] ss:$84 sps:$4 sm:$0xff]   ;;  %v22534_v35 = vld [vmem:[#allocation7 + $0x230c] ss:$84 sps:$4 sm:$0xff]  }
 0x69a   :  { %14639 = vmatpush2.bf16.msra.mxu1 %v22514_v22  ;;  %14661 = vmatprep.subr.bf16.mxu0 %v22519_v31  ;;  %v22529_v46 = vld [vmem:[#allocation7 + $0x1888] ss:$84 sps:$4 sm:$0xff]   ;;  %v22537_v22 = vld [vmem:[#allocation7 + $0x17e4] ss:$84 sps:$4 sm:$0xff]   ;;  %v22535_v16 = vld [vmem:[#allocation7 + $0x17e0] ss:$84 sps:$4 sm:$0xff]  }
 0x69b   :  { %25549 = vst [vmem:[#allocation129_spill] sm:$0xff] %v24634_v36  ;;  %v14233_v4 = vadd.f32 %v14232_v37, %v14180_v38  ;;  %14714 = vmatprep.subr.bf16.mxu1 %v22522_v11  ;;  %v22540_v31 = vld [vmem:[#allocation7 + $0x2264] ss:$84 sps:$4 sm:$0xff]   ;;  %v22538_v39 = vld [vmem:[#allocation7 + $0x2260] ss:$84 sps:$4 sm:$0xff]  }
 0x69c   :  { %14588 = vmatmul.mubr.bf16.vlgmr.msra.gmra.mxu0 %v23830_v29  ;;  %v22543_v11 = vld [vmem:[#allocation7 + $0x173c] ss:$84 sps:$4 sm:$0xff]   ;;  %v22541_v38 = vld [vmem:[#allocation7 + $0x1738] ss:$84 sps:$4 sm:$0xff]  }
 0x69d   :  { %v15560_v18 = vmax.f32 %v14233_v4, 0.0  ;;  %14641 = vmatmul.mubr.bf16.vlgmr.msra.gmra.mxu1 %v23823_v17  ;;  %14597 = vmatprep.mubr.bf16.mxu0 %v23841_v54  ;;  %v22546_v45 = vld [vmem:[#allocation7 + $0x21bc] ss:$84 sps:$4 sm:$0xff]   ;;  %v22544_v37 = vld [vmem:[#allocation7 + $0x21b8] ss:$84 sps:$4 sm:$0xff]  }
 0x69e   :  { %14650 = vmatprep.mubr.bf16.mxu1 %v23843_v57  ;;  %14662 = vmatpush1.bf16.msra.mxu0 %v22517_v21  ;;  %v22549_v21 = vld [vmem:[#allocation7 + $0x1694] ss:$84 sps:$4 sm:$0xff]   ;;  %v22606_v36 = vld [vmem:[#allocation7 + $0x25ac] ss:$84 sps:$4 sm:$0xff]  }
 0x69f   :  { %v24641_v34 = vpack.c.bf16 %v15560_v18, %v15539_v2  ;;  %14715 = vmatpush1.bf16.msra.mxu1 %v22520_v24  ;;  %14663 = vmatprep.subr.bf16.mxu0 %v22525_v14  ;;  %v22552_v4 = vld [vmem:[#allocation7 + $0x2114] ss:$84 sps:$4 sm:$0xff]   ;;  %v22547_v24 = vld [vmem:[#allocation7 + $0x1690] ss:$84 sps:$4 sm:$0xff]   ;;  %v22558_v2 = vld [vmem:[#allocation7 + $0x206c] ss:$84 sps:$4 sm:$0xff]  }
 0x6a0   :  { %14716 = vmatprep.subr.bf16.mxu1 %v22528_v61  ;;  %v22550_v14 = vld [vmem:[#allocation7 + $0x2110] ss:$84 sps:$4 sm:$0xff]   ;;  %v22555_v61 = vld [vmem:[#allocation7 + $0x15ec] ss:$84 sps:$4 sm:$0xff]   ;;  %v22553_v18 = vld [vmem:[#allocation7 + $0x15e8] ss:$84 sps:$4 sm:$0xff]  }
 0x6a1   :  { %25550 = vst [vmem:[#allocation130_spill] sm:$0xff] %v24641_v34 }
 0x6a2   :  { %14664 = vmatpush1.bf16.msra.mxu0 %v22523_v8  ;;  %v22556_v8 = vld [vmem:[#allocation7 + $0x2068] ss:$84 sps:$4 sm:$0xff]  }
 0x6a3   :  { %14717 = vmatpush1.bf16.msra.mxu1 %v22526_v27  ;;  %14665 = vmatprep.subr.bf16.mxu0 %v22531_v42  ;;  %v22561_v27 = vld [vmem:[#allocation7 + $0x1544] ss:$84 sps:$4 sm:$0xff]  }
 0x6a4   :  { %14598 = vmatmul.mubr.bf16.gmra.mxu0 %v23837_v63  ;;  %14718 = vmatprep.subr.bf16.mxu1 %v22534_v35  ;;  %v22564_v42 = vld [vmem:[#allocation7 + $0x1fc4] ss:$84 sps:$4 sm:$0xff]   ;;  %v22559_v35 = vld [vmem:[#allocation7 + $0x1540] ss:$84 sps:$4 sm:$0xff]  }
 0x6a5   :  { %14651 = vmatmul.mubr.bf16.gmra.mxu1 %v23839_v1  ;;  %14693 = vmatprep.mubr.bf16.mxu0 %v23875_v56 }
 0x6a6   :  { %14666 = vmatpush1.bf16.msra.mxu0 %v22529_v46  ;;  %14746 = vmatprep.mubr.bf16.mxu1 %v23877_v43  ;;  %v22562_v46 = vld [vmem:[#allocation7 + $0x1fc0] ss:$84 sps:$4 sm:$0xff]  }
 0x6a7   :  { %14719 = vmatpush1.bf16.msra.mxu1 %v22532_v13  ;;  %14667 = vmatprep.subr.bf16.mxu0 %v22537_v22  ;;  %v22567_v13 = vld [vmem:[#allocation7 + $0x1f1c] ss:$84 sps:$4 sm:$0xff]  }
 0x6a8   :  { %14720 = vmatprep.subr.bf16.mxu1 %v22540_v31  ;;  %v22570_v22 = vld [vmem:[#allocation7 + $0x299c] ss:$84 sps:$4 sm:$0xff]   ;;  %v24647_v31 = vpop.f32.mrf.mxu1 }
 0x6a9   :  { %25551 = vst [vmem:[#allocation131_spill] sm:$0xff] %v24647_v31 }
 0x6aa   :  { %14668 = vmatpush1.bf16.msra.mxu0 %v22535_v16  ;;  %v22565_v16 = vld [vmem:[#allocation7 + $0x1f18] ss:$84 sps:$4 sm:$0xff]  }
 0x6ab   :  { %14721 = vmatpush1.bf16.msra.mxu1 %v22538_v39  ;;  %14669 = vmatprep.subr.bf16.mxu0 %v22543_v11  ;;  %v22568_v39 = vld [vmem:[#allocation7 + $0x2998] ss:$84 sps:$4 sm:$0xff]   ;;  %v22573_v11 = vld [vmem:[#allocation7 + $0x1e74] ss:$84 sps:$4 sm:$0xff]  }
 0x6ac   :  { %14722 = vmatprep.subr.bf16.mxu1 %v22546_v45  ;;  %v14271_v45 = vpop.f32.mrf.mxu1 }
 0x6ae   :  { %14670 = vmatpush1.bf16.msra.mxu0 %v22541_v38  ;;  %v22576_v38 = vld [vmem:[#allocation7 + $0x28f4] ss:$84 sps:$4 sm:$0xff]  }
 0x6af   :  { %14723 = vmatpush1.bf16.msra.mxu1 %v22544_v37  ;;  %14671 = vmatprep.subr.bf16.mxu0 %v22549_v21  ;;  %v22571_v37 = vld [vmem:[#allocation7 + $0x1e70] ss:$84 sps:$4 sm:$0xff]  }
 0x6b0   :  { %14724 = vmatprep.subr.bf16.mxu1 %v22552_v4  ;;  %v22574_v21 = vld [vmem:[#allocation7 + $0x28f0] ss:$84 sps:$4 sm:$0xff]   ;;  %v22579_v4 = vld [vmem:[#allocation7 + $0x1dcc] ss:$84 sps:$4 sm:$0xff]  }
 0x6b2   :  { %14672 = vmatpush1.bf16.msra.mxu0 %v22547_v24  ;;  %v14273_v24 = vpop.f32.mrf.mxu1 }
 0x6b3   :  { %14725 = vmatpush1.bf16.msra.mxu1 %v22550_v14  ;;  %14673 = vmatprep.subr.bf16.mxu0 %v22555_v61  ;;  %v22582_v14 = vld [vmem:[#allocation7 + $0x284c] ss:$84 sps:$4 sm:$0xff]   ;;  %v22577_v61 = vld [vmem:[#allocation7 + $0x1dc8] ss:$84 sps:$4 sm:$0xff]  }
 0x6b4   :  { %14726 = vmatprep.subr.bf16.mxu1 %v22558_v2  ;;  %v22580_v2 = vld [vmem:[#allocation7 + $0x2848] ss:$84 sps:$4 sm:$0xff]  }
 0x6b6   :  { %14674 = vmatpush1.bf16.msra.mxu0 %v22553_v18  ;;  %v22585_v18 = vld [vmem:[#allocation7 + $0x1d24] ss:$84 sps:$4 sm:$0xff]  }
 0x6b7   :  { %14727 = vmatpush1.bf16.msra.mxu1 %v22556_v8  ;;  %14675 = vmatprep.subr.bf16.mxu0 %v22561_v27  ;;  %v14275_v8 = vpop.f32.mrf.mxu1  ;;  %v22588_v27 = vld [vmem:[#allocation7 + $0x27a4] ss:$84 sps:$4 sm:$0xff]  }
 0x6b8   :  { %14728 = vmatprep.subr.bf16.mxu1 %v22564_v42  ;;  %v22583_v42 = vld [vmem:[#allocation7 + $0x1d20] ss:$84 sps:$4 sm:$0xff]  }
 0x6ba   :  { %14676 = vmatpush1.bf16.msra.mxu0 %v22559_v35  ;;  %v23189_v35 = vld [vmem:[#allocation8 + $0x8] sm:$0xff] }
 0x6bb   :  { %14729 = vmatpush1.bf16.msra.mxu1 %v22562_v46  ;;  %14677 = vmatprep.subr.bf16.mxu0 %v22567_v13  ;;  %v3054_v46 = vrot.slane %v23189_v35, %v23886_v20  ;;  %v22586_v13 = vld [vmem:[#allocation7 + $0x27a0] ss:$84 sps:$4 sm:$0xff]  }
 0x6bc   :  { %14730 = vmatprep.subr.bf16.mxu1 %v22570_v22  ;;  %v22591_v22 = vld [vmem:[#allocation7 + $0x1c7c] ss:$84 sps:$4 sm:$0xff]   ;;  %v22597_v20 = vld [vmem:[#allocation7 + $0x1bd4] ss:$84 sps:$4 sm:$0xff]  }
 0x6be   :  { %14678 = vmatpush2.bf16.msra.mxu0 %v22565_v16  ;;  %v24650_v16 = vpop.f32.mrf.mxu1 }
 0x6bf   :  { %14731 = vmatpush2.bf16.msra.mxu1 %v22568_v39  ;;  %14679 = vmatprep.subr.bf16.mxu0 %v22573_v11  ;;  %25552 = vst [vmem:[#allocation132_spill] sm:$0xff] %v24650_v16  ;;  %v22594_v39 = vld [vmem:[#allocation7 + $0x26fc] ss:$84 sps:$4 sm:$0xff]   ;;  %v24653_v11 = vrot.slane %v23189_v35, %v23853_v9  ;;  %v14276_v35 = vadd.f32 %v14275_v8, %v3054_v46 }
 0x6c0   :  { %14732 = vmatprep.subr.bf16.mxu1 %v22576_v38  ;;  %v24655_v38 = vpop.f32.mrf.mxu0  ;;  %v22595_v9 = vld [vmem:[#allocation7 + $0x1bd0] ss:$84 sps:$4 sm:$0xff]  }
 0x6c1   :  { %25553 = vst [vmem:[#allocation133_spill] sm:$0xff] %v24655_v38  ;;  %v22601_v38 = vld [vmem:[#allocation7 + $0x1b28] ss:$84 sps:$4 sm:$0xff]  }
 0x6c2   :  { %14680 = vmatpush2.bf16.msra.mxu0 %v22571_v37  ;;  %v22589_v37 = vld [vmem:[#allocation7 + $0x1c78] ss:$84 sps:$4 sm:$0xff]  }
 0x6c3   :  { %14733 = vmatpush2.bf16.msra.mxu1 %v22574_v21  ;;  %14681 = vmatprep.subr.bf16.mxu0 %v22579_v4  ;;  %v14272_v21 = vadd.f32 %v14271_v45, %v3054_v46  ;;  %v22592_v4 = vld [vmem:[#allocation7 + $0x26f8] ss:$84 sps:$4 sm:$0xff]  }
 0x6c4   :  { %14734 = vmatprep.subr.bf16.mxu1 %v22582_v14  ;;  %v14281_v14 = vpop.f32.mrf.mxu1  ;;  %v22603_v45 = vld [vmem:[#allocation7 + $0x1b2c] ss:$84 sps:$4 sm:$0xff]  }
 0x6c6   :  { %14682 = vmatpush2.bf16.msra.mxu0 %v22577_v61 }
 0x6c7   :  { %14735 = vmatpush2.bf16.msra.mxu1 %v22580_v2  ;;  %14683 = vmatprep.subr.bf16.mxu0 %v22585_v18  ;;  %v22600_v2 = vld [vmem:[#allocation7 + $0x2654] ss:$84 sps:$4 sm:$0xff]   ;;  %v14274_v18 = vadd.f32 %v14273_v24, %v24653_v11  ;;  %v14282_v24 = vadd.f32 %v14281_v14, %v3054_v46  ;;  %v22615_v14 = vld [vmem:[#allocation7 + $0x2edc] ss:$84 sps:$4 sm:$0xff]  }
 0x6c8   :  { %14736 = vmatprep.subr.bf16.mxu1 %v22588_v27 }
 0x6ca   :  { %14684 = vmatpush2.bf16.msra.mxu0 %v22583_v42  ;;  %v22598_v42 = vld [vmem:[#allocation7 + $0x2650] ss:$84 sps:$4 sm:$0xff]  }
 0x6cb   :  { %14737 = vmatpush2.bf16.msra.mxu1 %v22586_v13  ;;  %14685 = vmatprep.subr.bf16.mxu0 %v22591_v22  ;;  %v14283_v13 = vpop.f32.mrf.mxu1 }
 0x6cc   :  { %v14324_v61 = vpop.f32.mrf.mxu0  ;;  %14738 = vmatprep.subr.bf16.mxu1 %v22594_v39 }
 0x6cd   :  { %v14325_v27 = vadd.f32 %v14324_v61, %v14272_v21  ;;  %v22609_v21 = vld [vmem:[#allocation7 + $0x1a84] ss:$84 sps:$4 sm:$0xff]   ;;  %v14285_v8 = vpop.f32.mrf.mxu1 }
 0x6ce   :  { %14686 = vmatpush2.bf16.msra.mxu0 %v22589_v37  ;;  %v14326_v34 = vpop.f32.mrf.mxu0  ;;  %v22604_v37 = vld [vmem:[#allocation7 + $0x25a8] ss:$84 sps:$4 sm:$0xff]  }
 0x6cf   :  { %14739 = vmatpush2.bf16.msra.mxu1 %v22592_v4  ;;  %v14327_v0 = vadd.f32 %v14326_v34, %v14274_v18  ;;  %14687 = vmatprep.subr.bf16.mxu0 %v22597_v20  ;;  %v22612_v34 = vld [vmem:[#allocation7 + $0x2504] ss:$84 sps:$4 sm:$0xff]   ;;  %v14284_v20 = vadd.f32 %v14283_v13, %v24653_v11  ;;  %v22607_v18 = vld [vmem:[#allocation7 + $0x1a80] ss:$84 sps:$4 sm:$0xff]  }
 0x6d0   :  { %v14328_v22 = vpop.f32.mrf.mxu0  ;;  %14740 = vmatprep.subr.bf16.mxu1 %v22600_v2  ;;  %v22616_v13 = vld [vmem:[#allocation7 + $0x36b8] ss:$84 sps:$4 sm:$0xff]  }
 0x6d1   :  { %v14329_v31 = vadd.f32 %v14328_v22, %v14276_v35  ;;  %v14286_v35 = vadd.f32 %v14285_v8, %v3054_v46  ;;  %v22610_v22 = vld [vmem:[#allocation7 + $0x2500] ss:$84 sps:$4 sm:$0xff]   ;;  %v22619_v8 = vld [vmem:[#allocation7 + $0x2e30] ss:$84 sps:$4 sm:$0xff]  }
 0x6d2   :  { %14688 = vmatpush2.bf16.msra.mxu0 %v22595_v9  ;;  %v24658_v39 = vpop.f32.mrf.mxu0  ;;  %v22624_v46 = vld [vmem:[#allocation7 + $0x3614] ss:$84 sps:$4 sm:$0xff]  }
 0x6d3   :  { %25554 = vst [vmem:[#allocation134_spill] sm:$0xff] %v24658_v39  ;;  %14741 = vmatpush2.bf16.msra.mxu1 %v22598_v42  ;;  %14689 = vmatprep.subr.bf16.mxu0 %v22603_v45  ;;  %v22618_v45 = vld [vmem:[#allocation7 + $0x36bc] ss:$84 sps:$4 sm:$0xff]   ;;  %v24661_v39 = vpop.f32.mrf.mxu1 }
 0x6d4   :  { %v14334_v4 = vpop.f32.mrf.mxu0  ;;  %14742 = vmatprep.subr.bf16.mxu1 %v22606_v36  ;;  %25555 = vst [vmem:[#allocation135_spill] sm:$0xff] %v24661_v39  ;;  %v22613_v36 = vld [vmem:[#allocation7 + $0x2ed8] ss:$84 sps:$4 sm:$0xff]  }
 0x6d5   :  { %v14335_v61 = vadd.f32 %v14334_v4, %v14282_v24 }
 0x6d6   :  { %14690 = vmatpush2.bf16.msra.mxu0 %v22601_v38  ;;  %v14336_v2 = vpop.f32.mrf.mxu0  ;;  %v22621_v38 = vld [vmem:[#allocation7 + $0x2e34] ss:$84 sps:$4 sm:$0xff]  }
 0x6d7   :  { %14743 = vmatpush2.bf16.msra.mxu1 %v22604_v37  ;;  %v14337_v9 = vadd.f32 %v14336_v2, %v14284_v20  ;;  %14691 = vmatprep.subr.bf16.mxu0 %v22609_v21  ;;  %v22627_v20 = vld [vmem:[#allocation7 + $0x2d8c] ss:$84 sps:$4 sm:$0xff]  }
 0x6d8   :  { %v14338_v42 = vpop.f32.mrf.mxu0  ;;  %14744 = vmatprep.subr.bf16.mxu1 %v22612_v34  ;;  %v22622_v34 = vld [vmem:[#allocation7 + $0x3610] ss:$84 sps:$4 sm:$0xff]  }
 0x6d9   :  { %v14339_v19 = vadd.f32 %v14338_v42, %v14286_v35  ;;  %v22633_v42 = vld [vmem:[#allocation7 + $0x2ce4] ss:$84 sps:$4 sm:$0xff]  }
 0x6da   :  { %14692 = vmatpush2.bf16.msra.mxu0 %v22607_v18  ;;  %v22630_v18 = vld [vmem:[#allocation7 + $0x356c] ss:$84 sps:$4 sm:$0xff]  }
 0x6db   :  { %14745 = vmatpush2.bf16.msra.mxu1 %v22610_v22  ;;  %14767 = vmatprep.subr.bf16.mxu0 %v22615_v14  ;;  %v22625_v22 = vld [vmem:[#allocation7 + $0x2d88] ss:$84 sps:$4 sm:$0xff]  }
 0x6dc   :  { %14828 = vmatprep.subr.bf16.mxu1 %v22618_v45  ;;  %v22628_v14 = vld [vmem:[#allocation7 + $0x3568] ss:$84 sps:$4 sm:$0xff]  }
 0x6dd   :  { %v14377_v24 = vpop.f32.mrf.mxu1  ;;  %14694 = vmatmul.mubr.bf16.vlgmr.msra.gmra.mxu0 %v23922_v53 }
 0x6de   :  { %v24664_v37 = vadd.f32 %v14377_v24, %v14325_v27  ;;  %14747 = vmatmul.mubr.bf16.vlgmr.msra.gmra.mxu1 %v23913_v15  ;;  %14703 = vmatprep.mubr.bf16.mxu0 %v23926_v47  ;;  %v22634_v24 = vld [vmem:[#allocation7 + $0x34c0] ss:$84 sps:$4 sm:$0xff]  }
 0x6df   :  { %14756 = vmatprep.mubr.bf16.mxu1 %v23928_v6  ;;  %14768 = vmatpush1.bf16.msra.mxu0 %v22613_v36  ;;  %v14379_v21 = vpop.f32.mrf.mxu1 }
 0x6e0   :  { %14829 = vmatpush1.bf16.msra.mxu1 %v22616_v13  ;;  %v24669_v4 = vadd.f32 %v14379_v21, %v14327_v0  ;;  %14769 = vmatprep.subr.bf16.mxu0 %v22621_v38  ;;  %v22636_v0 = vld [vmem:[#allocation7 + $0x34c4] ss:$84 sps:$4 sm:$0xff]   ;;  %v22631_v13 = vld [vmem:[#allocation7 + $0x2ce0] ss:$84 sps:$4 sm:$0xff]  }
 0x6e1   :  { %v14381_v2 = vpop.f32.mrf.mxu1  ;;  %14830 = vmatprep.subr.bf16.mxu1 %v22624_v46  ;;  %v22639_v46 = vld [vmem:[#allocation7 + $0x2c3c] ss:$84 sps:$4 sm:$0xff]  }
 0x6e2   :  { %v24671_v27 = vadd.f32 %v14381_v2, %v14329_v31  ;;  %v22645_v2 = vld [vmem:[#allocation7 + $0x2b94] ss:$84 sps:$4 sm:$0xff]  }
 0x6e3   :  { %14770 = vmatpush1.bf16.msra.mxu0 %v22619_v8  ;;  %v24673_v35 = vpop.f32.mrf.mxu1  ;;  %v22642_v8 = vld [vmem:[#allocation7 + $0x4e4] ss:$84 sps:$4 sm:$0xff]  }
 0x6e4   :  { %25556 = vst [vmem:[#allocation136_spill] sm:$0xff] %v24673_v35  ;;  %14831 = vmatpush1.bf16.msra.mxu1 %v22622_v34  ;;  %14771 = vmatprep.subr.bf16.mxu0 %v22627_v20  ;;  %v22637_v34 = vld [vmem:[#allocation7 + $0x2c38] ss:$84 sps:$4 sm:$0xff]   ;;  %v22640_v20 = vld [vmem:[#allocation7 + $0x4e0] ss:$84 sps:$4 sm:$0xff]  }
 0x6e5   :  { %v14387_v45 = vpop.f32.mrf.mxu1  ;;  %14704 = vmatmul.mubr.bf16.gmra.mxu0 %v23936_v5  ;;  %14832 = vmatprep.subr.bf16.mxu1 %v22630_v18  ;;  %v22648_v18 = vld [vmem:[#allocation7 + $0x43c] ss:$84 sps:$4 sm:$0xff]  }
 0x6e6   :  { %v24676_v36 = vadd.f32 %v14387_v45, %v14335_v61  ;;  %14757 = vmatmul.mubr.bf16.gmra.mxu1 %v23938_v10  ;;  %14799 = vmatprep.mubr.bf16.mxu0 %v23940_v23  ;;  %v22652_v45 = vld [vmem:[#allocation7 + $0x390] ss:$84 sps:$4 sm:$0xff]  }
 0x6e7   :  { %14772 = vmatpush1.bf16.msra.mxu0 %v22625_v22  ;;  %v14389_v31 = vpop.f32.mrf.mxu1  ;;  %14852 = vmatprep.mubr.bf16.mxu1 %v25462_v44  ;;  %v22646_v22 = vld [vmem:[#allocation7 + $0x438] ss:$84 sps:$4 sm:$0xff]  }
 0x6e8   :  { %14833 = vmatpush1.bf16.msra.mxu1 %v22628_v14  ;;  %v24681_v38 = vadd.f32 %v14389_v31, %v14337_v9  ;;  %14773 = vmatprep.subr.bf16.mxu0 %v22633_v42  ;;  %v22643_v9 = vld [vmem:[#allocation7 + $0x2b90] ss:$84 sps:$4 sm:$0xff]   ;;  %v22651_v14 = vld [vmem:[#allocation7 + $0x2aec] ss:$84 sps:$4 sm:$0xff]   ;;  %v22649_v42 = vld [vmem:[#allocation7 + $0x2ae8] ss:$84 sps:$4 sm:$0xff]  }
 0x6e9   :  { %v14391_v21 = vpop.f32.mrf.mxu1  ;;  %14834 = vmatprep.subr.bf16.mxu1 %v22636_v0  ;;  %v22657_v0 = vld [vmem:[#allocation7 + $0x2a44] ss:$84 sps:$4 sm:$0xff]   ;;  %v22660_v31 = vld [vmem:[#allocation7 + $0x2ec] ss:$84 sps:$4 sm:$0xff]  }
 0x6ea   :  { %v24683_v61 = vadd.f32 %v14391_v21, %v14339_v19  ;;  %v22654_v19 = vld [vmem:[#allocation7 + $0x394] ss:$84 sps:$4 sm:$0xff]   ;;  %v22666_v21 = vld [vmem:[#allocation7 + $0x244] ss:$84 sps:$4 sm:$0xff]  }
 0x6eb   :  { %14774 = vmatpush1.bf16.msra.mxu0 %v22631_v13  ;;  %v22655_v13 = vld [vmem:[#allocation7 + $0x2a40] ss:$84 sps:$4 sm:$0xff]  }
 0x6ec   :  { %14835 = vmatpush1.bf16.msra.mxu1 %v22634_v24  ;;  %14775 = vmatprep.subr.bf16.mxu0 %v22639_v46  ;;  %v22658_v24 = vld [vmem:[#allocation7 + $0x2e8] ss:$84 sps:$4 sm:$0xff]  }
 0x6ed   :  { %14873 = vmatprep.subr.bf16.mxu1 %v22642_v8  ;;  %v22663_v46 = vld [vmem:[#allocation7 + $0x341c] ss:$84 sps:$4 sm:$0xff]   ;;  %v22661_v8 = vld [vmem:[#allocation7 + $0x3418] ss:$84 sps:$4 sm:$0xff]  }
 0x6ef   :  { %19548 = vmatmul.mubr.msk.bf16.vlgmr.msra.gmra.mxu1 %vm12004_vm8, %v23947_v41  ;;  %14776 = vmatpush1.bf16.msra.mxu0 %v22637_v34  ;;  %v22664_v34 = vld [vmem:[#allocation7 + $0x240] ss:$84 sps:$4 sm:$0xff]  }
 0x6f0   :  { %14874 = vmatpush1.bf16.msra.mxu1 %v22640_v20  ;;  %14777 = vmatprep.subr.bf16.mxu0 %v22645_v2  ;;  %v22669_v20 = vld [vmem:[#allocation7 + $0x3374] ss:$84 sps:$4 sm:$0xff]   ;;  %v22672_v2 = vld [vmem:[#allocation7 + $0x19c] ss:$84 sps:$4 sm:$0xff]  }
 0x6f1   :  { %14875 = vmatprep.subr.bf16.mxu1 %v22648_v18  ;;  %14862 = vmatprep.mubr.bf16.mxu1 %v25462_v44  ;;  %v22667_v18 = vld [vmem:[#allocation7 + $0x3370] ss:$84 sps:$4 sm:$0xff]  }
 0x6f3   :  { %14778 = vmatpush1.bf16.msra.mxu0 %v22643_v9  ;;  %v22670_v9 = vld [vmem:[#allocation7 + $0x198] ss:$84 sps:$4 sm:$0xff]  }
 0x6f4   :  { %14876 = vmatpush1.bf16.msra.mxu1 %v22646_v22  ;;  %14779 = vmatprep.subr.bf16.mxu0 %v22651_v14  ;;  %v22675_v22 = vld [vmem:[#allocation7 + $0x32cc] ss:$84 sps:$4 sm:$0xff]   ;;  %v22678_v14 = vld [vmem:[#allocation7 + $0xf4] ss:$84 sps:$4 sm:$0xff]  }
 0x6f5   :  { %14877 = vmatprep.subr.bf16.mxu1 %v22654_v19  ;;  %v22673_v19 = vld [vmem:[#allocation7 + $0x32c8] ss:$84 sps:$4 sm:$0xff]  }
 0x6f7   :  { %19549 = vmatmul.mubr.msk.bf16.gmra.mxu1 %vm12004_vm8, %v23952_v59  ;;  %14780 = vmatpush1.bf16.msra.mxu0 %v22649_v42  ;;  %v22676_v42 = vld [vmem:[#allocation7 + $0xf0] ss:$84 sps:$4 sm:$0xff]  }
 0x6f8   :  { %14878 = vmatpush1.bf16.msra.mxu1 %v22652_v45  ;;  %14905 = vmatprep.mubr.bf16.mxu1 %v23825_v25  ;;  %v22681_v45 = vld [vmem:[#allocation7 + $0x3224] ss:$84 sps:$4 sm:$0xff]  }
 0x6f9   :  { %14781 = vmatprep.subr.bf16.mxu0 %v22657_v0  ;;  %14879 = vmatprep.subr.bf16.mxu1 %v22660_v31  ;;  %v22684_v0 = vld [vmem:[#allocation7 + $0x4c] ss:$84 sps:$4 sm:$0xff]  }
 0x6fa   :  { %v22679_v31 = vld [vmem:[#allocation7 + $0x3220] ss:$84 sps:$4 sm:$0xff]  }
 0x6fb   :  { %14782 = vmatpush1.bf16.msra.mxu0 %v22655_v13  ;;  %v22682_v13 = vld [vmem:[#allocation7 + $0x48] ss:$84 sps:$4 sm:$0xff]  }
 0x6fc   :  { %14880 = vmatpush1.bf16.msra.mxu1 %v22658_v24  ;;  %14783 = vmatprep.subr.bf16.mxu0 %v22663_v46  ;;  %v22687_v24 = vld [vmem:[#allocation7 + $0x317c] ss:$84 sps:$4 sm:$0xff]   ;;  %v22690_v46 = vld [vmem:[#allocation7 + $0xa24] ss:$84 sps:$4 sm:$0xff]  }
 0x6fd   :  { %14881 = vmatprep.subr.bf16.mxu1 %v22666_v21  ;;  %v24691_v21 = vpop.f32.mrf.mxu0 }
 0x6fe   :  { %25557 = vst [vmem:[#allocation137_spill] sm:$0xff] %v24691_v21 }
 0x6ff   :  { %14784 = vmatpush2.bf16.msra.mxu0 %v22661_v8  ;;  %v22685_v8 = vld [vmem:[#allocation7 + $0x3178] ss:$84 sps:$4 sm:$0xff]  }
 0x700   :  { %14882 = vmatpush1.bf16.msra.mxu1 %v22664_v34  ;;  %14785 = vmatprep.subr.bf16.mxu0 %v22669_v20  ;;  %v22688_v20 = vld [vmem:[#allocation7 + $0xa20] ss:$84 sps:$4 sm:$0xff]  }
 0x701   :  { %14883 = vmatprep.subr.bf16.mxu1 %v22672_v2  ;;  %v22693_v2 = vld [vmem:[#allocation7 + $0x30d4] ss:$84 sps:$4 sm:$0xff]  }
 0x703   :  { %14786 = vmatpush2.bf16.msra.mxu0 %v22667_v18 }
 0x704   :  { %14884 = vmatpush1.bf16.msra.mxu1 %v22670_v9  ;;  %14787 = vmatprep.subr.bf16.mxu0 %v22675_v22  ;;  %v22696_v9 = vld [vmem:[#allocation7 + $0x97c] ss:$84 sps:$4 sm:$0xff]  }
 0x705   :  { %14885 = vmatprep.subr.bf16.mxu1 %v22678_v14 }
 0x707   :  { %14788 = vmatpush2.bf16.msra.mxu0 %v22673_v19  ;;  %v22691_v19 = vld [vmem:[#allocation7 + $0x30d0] ss:$84 sps:$4 sm:$0xff]  }
 0x708   :  { %14886 = vmatpush1.bf16.msra.mxu1 %v22676_v42  ;;  %14789 = vmatprep.subr.bf16.mxu0 %v22681_v45  ;;  %v22694_v45 = vld [vmem:[#allocation7 + $0x978] ss:$84 sps:$4 sm:$0xff]  }
 0x709   :  { %14887 = vmatprep.subr.bf16.mxu1 %v22684_v0  ;;  %v22699_v0 = vld [vmem:[#allocation7 + $0x302c] ss:$84 sps:$4 sm:$0xff]  }
 0x70b   :  { %14790 = vmatpush2.bf16.msra.mxu0 %v22679_v31 }
 0x70c   :  { %14888 = vmatpush1.bf16.msra.mxu1 %v22682_v13  ;;  %v14430_v34 = vpop.f32.mrf.mxu0  ;;  %14791 = vmatprep.subr.bf16.mxu0 %v22687_v24  ;;  %v22702_v13 = vld [vmem:[#allocation7 + $0x8d4] ss:$84 sps:$4 sm:$0xff]  }
 0x70d   :  { %v14431_v18 = vadd.f32 %v14430_v34, %v24664_v37  ;;  %14889 = vmatprep.subr.bf16.mxu1 %v22690_v46  ;;  %v22697_v37 = vld [vmem:[#allocation7 + $0x3028] ss:$84 sps:$4 sm:$0xff]   ;;  %v22705_v34 = vld [vmem:[#allocation7 + $0x2f84] ss:$84 sps:$4 sm:$0xff]  }
 0x70e   :  { %v14432_v22 = vpop.f32.mrf.mxu0 }
 0x70f   :  { %14792 = vmatpush2.bf16.msra.mxu0 %v22685_v8  ;;  %v14433_v14 = vadd.f32 %v14432_v22, %v24669_v4  ;;  %v22700_v8 = vld [vmem:[#allocation7 + $0x8d0] ss:$84 sps:$4 sm:$0xff]  }
 0x710   :  { %14890 = vmatpush2.bf16.msra.mxu1 %v22688_v20  ;;  %v14434_v42 = vpop.f32.mrf.mxu0  ;;  %14793 = vmatprep.subr.bf16.mxu0 %v22693_v2  ;;  %v22708_v20 = vld [vmem:[#allocation7 + $0x82c] ss:$84 sps:$4 sm:$0xff]  }
 0x711   :  { %v14435_v31 = vadd.f32 %v14434_v42, %v24671_v27  ;;  %14891 = vmatprep.subr.bf16.mxu1 %v22696_v9  ;;  %v22703_v27 = vld [vmem:[#allocation7 + $0x2f80] ss:$84 sps:$4 sm:$0xff]   ;;  %v22714_v42 = vld [vmem:[#allocation7 + $0xf64] ss:$84 sps:$4 sm:$0xff]  }
 0x712   :  { %v24696_v24 = vpop.f32.mrf.mxu0 }
 0x713   :  { %25558 = vst [vmem:[#allocation138_spill] sm:$0xff] %v24696_v24  ;;  %14794 = vmatpush2.bf16.msra.mxu0 %v22691_v19  ;;  %v22706_v19 = vld [vmem:[#allocation7 + $0x828] ss:$84 sps:$4 sm:$0xff]  }
 0x714   :  { %14892 = vmatpush2.bf16.msra.mxu1 %v22694_v45  ;;  %v14440_v46 = vpop.f32.mrf.mxu0  ;;  %14795 = vmatprep.subr.bf16.mxu0 %v22699_v0  ;;  %v22711_v0 = vld [vmem:[#allocation7 + $0x784] ss:$84 sps:$4 sm:$0xff]  }
 0x715   :  { %v14441_v4 = vadd.f32 %v14440_v46, %v24676_v36  ;;  %14893 = vmatprep.subr.bf16.mxu1 %v22702_v13  ;;  %v24707_v36 = vpop.f32.mrf.mxu1  ;;  %v22712_v13 = vld [vmem:[#allocation7 + $0xf60] ss:$84 sps:$4 sm:$0xff]   ;;  %v22720_v46 = vld [vmem:[#allocation7 + $0xebc] ss:$84 sps:$4 sm:$0xff]  }
 0x716   :  { %v14442_v2 = vpop.f32.mrf.mxu0  ;;  %25560 = vst [vmem:[#allocation140_spill] sm:$0xff] %v24707_v36  ;;  %v22715_v36 = vld [vmem:[#allocation7 + $0x6d8] ss:$84 sps:$4 sm:$0xff]  }
 0x717   :  { %14796 = vmatpush2.bf16.msra.mxu0 %v22697_v37  ;;  %v24700_v22 = vadd.f32 %v14442_v2, %v24681_v38  ;;  %v22709_v37 = vld [vmem:[#allocation7 + $0x780] ss:$84 sps:$4 sm:$0xff]  }
 0x718   :  { %14894 = vmatpush2.bf16.msra.mxu1 %v22700_v8  ;;  %v14444_v9 = vpop.f32.mrf.mxu0  ;;  %14797 = vmatprep.subr.bf16.mxu0 %v22705_v34  ;;  %v22717_v34 = vld [vmem:[#allocation7 + $0x6dc] ss:$84 sps:$4 sm:$0xff]  }
 0x719   :  { %v24703_v45 = vadd.f32 %v14444_v9, %v24683_v61  ;;  %14895 = vmatprep.subr.bf16.mxu1 %v22708_v20  ;;  %v22718_v9 = vld [vmem:[#allocation7 + $0xeb8] ss:$84 sps:$4 sm:$0xff]  }
 0x71a   :  { %v24705_v21 = vpop.f32.mrf.mxu0 }
 0x71b   :  { %25559 = vst [vmem:[#allocation139_spill] sm:$0xff] %v24705_v21  ;;  %14798 = vmatpush2.bf16.msra.mxu0 %v22703_v27 }
 0x71c   :  { %14896 = vmatpush2.bf16.msra.mxu1 %v22706_v19  ;;  %v14536_v38 = vpop.f32.mrf.mxu0  ;;  %14926 = vmatprep.subr.bf16.mxu0 %v22714_v42  ;;  %v22726_v42 = vld [vmem:[#allocation7 + $0xe14] ss:$84 sps:$4 sm:$0xff]  }
 0x71d   :  { %v14483_v8 = vpop.f32.mrf.mxu1  ;;  %14897 = vmatprep.subr.bf16.mxu1 %v22711_v0  ;;  %v22723_v0 = vld [vmem:[#allocation7 + $0x634] ss:$84 sps:$4 sm:$0xff]  }
 0x71e   :  { %v14484_v2 = vadd.f32 %v14483_v8, %v14431_v18  ;;  %14800 = vmatmul.mubr.bf16.vlgmr.msra.gmra.mxu0 %v23963_v3  ;;  %v14538_v61 = vpop.f32.mrf.mxu0 }
 0x71f   :  { %14809 = vmatprep.mubr.bf16.mxu0 %v23965_v12  ;;  %14927 = vmatpush1.bf16.msra.mxu0 %v22712_v13  ;;  %v14485_v20 = vpop.f32.mrf.mxu1  ;;  %v22724_v13 = vld [vmem:[#allocation7 + $0xe10] ss:$84 sps:$4 sm:$0xff]  }
 0x720   :  { %v14537_v21 = vadd.f32 %v14536_v38, %v14484_v2  ;;  %14898 = vmatpush2.bf16.msra.mxu1 %v22709_v37  ;;  %v14486_v27 = vadd.f32 %v14485_v20, %v14433_v14  ;;  %v14540_v19 = vpop.f32.mrf.mxu0  ;;  %14928 = vmatprep.subr.bf16.mxu0 %v22720_v46  ;;  %v22721_v14 = vld [vmem:[#allocation7 + $0x630] ss:$84 sps:$4 sm:$0xff]   ;;  %v22732_v37 = vld [vmem:[#allocation7 + $0xd6c] ss:$84 sps:$4 sm:$0xff]  }
 0x721   :  { %v14487_v39 = vpop.f32.mrf.mxu1  ;;  %14899 = vmatprep.subr.bf16.mxu1 %v22717_v34  ;;  %v22729_v2 = vld [vmem:[#allocation7 + $0x58c] ss:$84 sps:$4 sm:$0xff]  }
 0x722   :  { %v24711_v24 = vadd.f32 %v14538_v61, %v14486_v27  ;;  %v14488_v18 = vadd.f32 %v14487_v39, %v14435_v31  ;;  %v24713_v8 = vpop.f32.mrf.mxu0  ;;  %v15499_v34 = vmax.f32 %v14537_v21, 0.0 }
 0x723   :  { %14929 = vmatpush1.bf16.msra.mxu0 %v22718_v9  ;;  %v24715_v35 = vpop.f32.mrf.mxu1  ;;  %v22730_v9 = vld [vmem:[#allocation7 + $0xd68] ss:$84 sps:$4 sm:$0xff]  }
 0x724   :  { %25561 = vst [vmem:[#allocation141_spill] sm:$0xff] %v24711_v24  ;;  %v14541_v16 = vadd.f32 %v14540_v19, %v14488_v18  ;;  %14900 = vmatpush2.bf16.msra.mxu1 %v22715_v36  ;;  %v14546_v38 = vpop.f32.mrf.mxu0  ;;  %14930 = vmatprep.subr.bf16.mxu0 %v22726_v42  ;;  %v22727_v42 = vld [vmem:[#allocation7 + $0x588] ss:$84 sps:$4 sm:$0xff]  }
 0x725   :  { %v14493_v46 = vpop.f32.mrf.mxu1  ;;  %14901 = vmatprep.subr.bf16.mxu1 %v22723_v0  ;;  %v22735_v0 = vld [vmem:[#allocation7 + $0xcc4] ss:$84 sps:$4 sm:$0xff]  }
 0x726   :  { %v15520_v20 = vmax.f32 %v14541_v16, 0.0  ;;  %v14494_v61 = vadd.f32 %v14493_v46, %v14441_v4  ;;  %14810 = vmatmul.mubr.bf16.gmra.mxu0 %v23969_v58  ;;  %v14548_v31 = vpop.f32.mrf.mxu0  ;;  %v22738_v16 = vld [vmem:[#allocation7 + $0x19e4] ss:$84 sps:$4 sm:$0xff]   ;;  %v22733_v46 = vld [vmem:[#allocation7 + $0xcc0] ss:$84 sps:$4 sm:$0xff]  }
 0x727   :  { %14931 = vmatpush1.bf16.msra.mxu0 %v22724_v13  ;;  %14958 = vmatprep.mubr.bf16.mxu0 %v23827_v26  ;;  %v14495_v39 = vpop.f32.mrf.mxu1 }
 0x728   :  { %v24719_v27 = vpack.c.bf16 %v15520_v20, %v15499_v34  ;;  %v14547_v36 = vadd.f32 %v14546_v38, %v14494_v61  ;;  %14902 = vmatpush2.bf16.msra.mxu1 %v22721_v14  ;;  %v14496_v19 = vadd.f32 %v14495_v39, %v24700_v22  ;;  %14932 = vmatprep.subr.bf16.mxu0 %v22732_v37  ;;  %v14550_v13 = vpop.f32.mrf.mxu0  ;;  %v22736_v38 = vld [vmem:[#allocation7 + $0x19e0] ss:$84 sps:$4 sm:$0xff]   ;;  %v22741_v14 = vld [vmem:[#allocation7 + $0xc1c] ss:$84 sps:$4 sm:$0xff]  }
 0x729   :  { %v14497_v21 = vpop.f32.mrf.mxu1  ;;  %14903 = vmatprep.subr.bf16.mxu1 %v22729_v2  ;;  %v22744_v22 = vld [vmem:[#allocation7 + $0x193c] ss:$84 sps:$4 sm:$0xff]   ;;  %v22739_v2 = vld [vmem:[#allocation7 + $0xc18] ss:$84 sps:$4 sm:$0xff]   ;;  %v22747_v61 = vld [vmem:[#allocation7 + $0xb74] ss:$84 sps:$4 sm:$0xff]  }
 0x72a   :  { %25562 = vst [vmem:[#allocation142_spill] sm:$0xff] %v24719_v27  ;;  %v24722_v4 = vadd.f32 %v14548_v31, %v14496_v19  ;;  %v14498_v18 = vadd.f32 %v14497_v21, %v24703_v45  ;;  %v15541_v34 = vmax.f32 %v14547_v36, 0.0  ;;  %v22742_v45 = vld [vmem:[#allocation7 + $0x1938] ss:$84 sps:$4 sm:$0xff]   ;;  %v22750_v39 = vld [vmem:[#allocation7 + $0x1894] ss:$84 sps:$4 sm:$0xff]  }
 0x72b   :  { %14933 = vmatpush1.bf16.msra.mxu0 %v22730_v9  ;;  %v22745_v31 = vld [vmem:[#allocation7 + $0xb70] ss:$84 sps:$4 sm:$0xff]   ;;  %v22756_v36 = vld [vmem:[#allocation7 + $0x17ec] ss:$84 sps:$4 sm:$0xff]   ;;  %v22751_v19 = vld [vmem:[#allocation7 + $0xac8] ss:$84 sps:$4 sm:$0xff]  }
 0x72c   :  { %25563 = vst [vmem:[#allocation143_spill] sm:$0xff] %v24722_v4  ;;  %v14551_v24 = vadd.f32 %v14550_v13, %v14498_v18  ;;  %14904 = vmatpush2.bf16.msra.mxu1 %v22727_v42  ;;  %14934 = vmatprep.subr.bf16.mxu0 %v22735_v0  ;;  %v22748_v9 = vld [vmem:[#allocation7 + $0x1890] ss:$84 sps:$4 sm:$0xff]   ;;  %v22754_v42 = vld [vmem:[#allocation7 + $0x17e8] ss:$84 sps:$4 sm:$0xff]  }
 0x72d   :  { %14979 = vmatprep.subr.bf16.mxu1 %v22738_v16  ;;  %v22759_v0 = vld [vmem:[#allocation7 + $0x14a4] ss:$84 sps:$4 sm:$0xff]   ;;  %v22757_v16 = vld [vmem:[#allocation7 + $0x14a0] ss:$84 sps:$4 sm:$0xff]   ;;  %v22765_v13 = vld [vmem:[#allocation7 + $0x13fc] ss:$84 sps:$4 sm:$0xff]  }
 0x72e   :  { %v15562_v37 = vmax.f32 %v14551_v24, 0.0  ;;  %v22753_v24 = vld [vmem:[#allocation7 + $0xacc] ss:$84 sps:$4 sm:$0xff]   ;;  %v22762_v21 = vld [vmem:[#allocation7 + $0x1744] ss:$84 sps:$4 sm:$0xff]  }
 0x72f   :  { %14906 = vmatmul.mubr.bf16.vlgmr.msra.gmra.mxu1 %v23830_v29  ;;  %14935 = vmatpush1.bf16.msra.mxu0 %v22733_v46  ;;  %v22760_v18 = vld [vmem:[#allocation7 + $0x1740] ss:$84 sps:$4 sm:$0xff]   ;;  %v22768_v46 = vld [vmem:[#allocation7 + $0x169c] ss:$84 sps:$4 sm:$0xff]  }
 0x730   :  { %v24726_v20 = vpack.c.bf16 %v15562_v37, %v15541_v34  ;;  %14915 = vmatprep.mubr.bf16.mxu1 %v23841_v54  ;;  %14980 = vmatpush1.bf16.msra.mxu1 %v22736_v38  ;;  %v22763_v38 = vld [vmem:[#allocation7 + $0x13f8] ss:$84 sps:$4 sm:$0xff]   ;;  %v22774_v34 = vld [vmem:[#allocation7 + $0x15f4] ss:$84 sps:$4 sm:$0xff]   ;;  %v22769_v37 = vld [vmem:[#allocation7 + $0x1350] ss:$84 sps:$4 sm:$0xff]  }
 0x731   :  { %14936 = vmatprep.subr.bf16.mxu0 %v22741_v14  ;;  %14981 = vmatprep.subr.bf16.mxu1 %v22744_v22  ;;  %v22766_v14 = vld [vmem:[#allocation7 + $0x1698] ss:$84 sps:$4 sm:$0xff]   ;;  %v22771_v22 = vld [vmem:[#allocation7 + $0x1354] ss:$84 sps:$4 sm:$0xff]  }
 0x732   :  { %25564 = vst [vmem:[#allocation144_spill] sm:$0xff] %v24726_v20  ;;  %v22817_v20 = vld [vmem:[#allocation7 + $0x1b30] ss:$84 sps:$4 sm:$0xff]  }
 0x733   :  { %14937 = vmatpush1.bf16.msra.mxu0 %v22739_v2  ;;  %v22772_v2 = vld [vmem:[#allocation7 + $0x15f0] ss:$84 sps:$4 sm:$0xff]  }
 0x734   :  { %14982 = vmatpush1.bf16.msra.mxu1 %v22742_v45  ;;  %14938 = vmatprep.subr.bf16.mxu0 %v22747_v61  ;;  %v22777_v45 = vld [vmem:[#allocation7 + $0x12ac] ss:$84 sps:$4 sm:$0xff]  }
 0x735   :  { %14983 = vmatprep.subr.bf16.mxu1 %v22750_v39  ;;  %v22780_v61 = vld [vmem:[#allocation7 + $0x154c] ss:$84 sps:$4 sm:$0xff]   ;;  %v22775_v39 = vld [vmem:[#allocation7 + $0x12a8] ss:$84 sps:$4 sm:$0xff]  }
 0x737   :  { %14916 = vmatmul.mubr.bf16.gmra.mxu1 %v23837_v63  ;;  %14939 = vmatpush1.bf16.msra.mxu0 %v22745_v31  ;;  %v22778_v31 = vld [vmem:[#allocation7 + $0x1548] ss:$84 sps:$4 sm:$0xff]  }
 0x738   :  { %14984 = vmatpush1.bf16.msra.mxu1 %v22748_v9  ;;  %15011 = vmatprep.mubr.bf16.mxu1 %v23875_v56  ;;  %v22783_v9 = vld [vmem:[#allocation7 + $0x1204] ss:$84 sps:$4 sm:$0xff]  }
 0x739   :  { %14940 = vmatprep.subr.bf16.mxu0 %v22753_v24  ;;  %14985 = vmatprep.subr.bf16.mxu1 %v22756_v36  ;;  %v22786_v24 = vld [vmem:[#allocation7 + $0x1f24] ss:$84 sps:$4 sm:$0xff]   ;;  %v22781_v36 = vld [vmem:[#allocation7 + $0x1200] ss:$84 sps:$4 sm:$0xff]  }
 0x73b   :  { %14941 = vmatpush1.bf16.msra.mxu0 %v22751_v19  ;;  %v22784_v19 = vld [vmem:[#allocation7 + $0x1f20] ss:$84 sps:$4 sm:$0xff]  }
 0x73c   :  { %14986 = vmatpush1.bf16.msra.mxu1 %v22754_v42  ;;  %14942 = vmatprep.subr.bf16.mxu0 %v22759_v0  ;;  %v22789_v42 = vld [vmem:[#allocation7 + $0x115c] ss:$84 sps:$4 sm:$0xff]  }
 0x73d   :  { %14987 = vmatprep.subr.bf16.mxu1 %v22762_v21  ;;  %v22792_v0 = vld [vmem:[#allocation7 + $0x1e7c] ss:$84 sps:$4 sm:$0xff]   ;;  %v22787_v21 = vld [vmem:[#allocation7 + $0x1158] ss:$84 sps:$4 sm:$0xff]  }
 0x73f   :  { %14943 = vmatpush2.bf16.msra.mxu0 %v22757_v16  ;;  %v22790_v16 = vld [vmem:[#allocation7 + $0x1e78] ss:$84 sps:$4 sm:$0xff]  }
 0x740   :  { %14988 = vmatpush1.bf16.msra.mxu1 %v22760_v18  ;;  %14944 = vmatprep.subr.bf16.mxu0 %v22765_v13  ;;  %v22795_v18 = vld [vmem:[#allocation7 + $0x10b4] ss:$84 sps:$4 sm:$0xff]  }
 0x741   :  { %14989 = vmatprep.subr.bf16.mxu1 %v22768_v46  ;;  %v22798_v13 = vld [vmem:[#allocation7 + $0x1dd4] ss:$84 sps:$4 sm:$0xff]   ;;  %v22793_v46 = vld [vmem:[#allocation7 + $0x10b0] ss:$84 sps:$4 sm:$0xff]  }
 0x743   :  { %14945 = vmatpush2.bf16.msra.mxu0 %v22763_v38  ;;  %v22796_v38 = vld [vmem:[#allocation7 + $0x1dd0] ss:$84 sps:$4 sm:$0xff]  }
 0x744   :  { %14990 = vmatpush1.bf16.msra.mxu1 %v22766_v14  ;;  %14946 = vmatprep.subr.bf16.mxu0 %v22771_v22  ;;  %v22801_v14 = vld [vmem:[#allocation7 + $0x100c] ss:$84 sps:$4 sm:$0xff]  }
 0x745   :  { %14991 = vmatprep.subr.bf16.mxu1 %v22774_v34  ;;  %v22804_v22 = vld [vmem:[#allocation7 + $0x1d2c] ss:$84 sps:$4 sm:$0xff]   ;;  %v2991_v34 = vld [vmem:[#allocation8 + $0x10] sm:$0x1f] }
 0x747   :  { %14947 = vmatpush2.bf16.msra.mxu0 %v22769_v37  ;;  %v22799_v37 = vld [vmem:[#allocation7 + $0x1008] ss:$84 sps:$4 sm:$0xff]  }
 0x748   :  { %14992 = vmatpush1.bf16.msra.mxu1 %v22772_v2  ;;  %14948 = vmatprep.subr.bf16.mxu0 %v22777_v45  ;;  %v22802_v2 = vld [vmem:[#allocation7 + $0x1d28] ss:$84 sps:$4 sm:$0xff]   ;;  %v22810_v45 = vld [vmem:[#allocation7 + $0x2464] ss:$84 sps:$4 sm:$0xff]  }
 0x749   :  { %14993 = vmatprep.subr.bf16.mxu1 %v22780_v61  ;;  %v3062_v61 = vrot.slane %v2991_v34, %v23809_v50 }
 0x74b   :  { %14949 = vmatpush2.bf16.msra.mxu0 %v22775_v39  ;;  %v22807_v39 = vld [vmem:[#allocation7 + $0x1c84] ss:$84 sps:$4 sm:$0xff]  }
 0x74c   :  { %14994 = vmatpush1.bf16.msra.mxu1 %v22778_v31  ;;  %14950 = vmatprep.subr.bf16.mxu0 %v22783_v9  ;;  %v24732_v31 = vpop.f32.mrf.mxu0  ;;  %v24734_v9 = vpop.f32.mrf.mxu1 }
 0x74d   :  { %14995 = vmatprep.subr.bf16.mxu1 %v22786_v24  ;;  %25565 = vst [vmem:[#allocation145_spill] sm:$0xff] %v24732_v31  ;;  %25566 = vst [vmem:[#allocation146_spill] sm:$0xff] %v24734_v9  ;;  %v22808_v24 = vld [vmem:[#allocation7 + $0x2460] ss:$84 sps:$4 sm:$0xff]   ;;  %v22834_v9 = vld [vmem:[#allocation7 + $0x2ee4] ss:$84 sps:$4 sm:$0xff]  }
 0x74f   :  { %14951 = vmatpush2.bf16.msra.mxu0 %v22781_v36 }
 0x750   :  { %14996 = vmatpush2.bf16.msra.mxu1 %v22784_v19  ;;  %14952 = vmatprep.subr.bf16.mxu0 %v22789_v42  ;;  %v22805_v19 = vld [vmem:[#allocation7 + $0x1c80] ss:$84 sps:$4 sm:$0xff]   ;;  %v22816_v42 = vld [vmem:[#allocation7 + $0x23bc] ss:$84 sps:$4 sm:$0xff]  }
 0x751   :  { %14997 = vmatprep.subr.bf16.mxu1 %v22792_v0 }
 0x753   :  { %14953 = vmatpush2.bf16.msra.mxu0 %v22787_v21 }
 0x754   :  { %14998 = vmatpush2.bf16.msra.mxu1 %v22790_v16  ;;  %14954 = vmatprep.subr.bf16.mxu0 %v22795_v18  ;;  %v22813_v16 = vld [vmem:[#allocation7 + $0x1bdc] ss:$84 sps:$4 sm:$0xff]  }
 0x755   :  { %14999 = vmatprep.subr.bf16.mxu1 %v22798_v13 }
 0x757   :  { %14955 = vmatpush2.bf16.msra.mxu0 %v22793_v46  ;;  %v22814_v46 = vld [vmem:[#allocation7 + $0x23b8] ss:$84 sps:$4 sm:$0xff]  }
 0x758   :  { %15000 = vmatpush2.bf16.msra.mxu1 %v22796_v38  ;;  %14956 = vmatprep.subr.bf16.mxu0 %v22801_v14  ;;  %v22811_v14 = vld [vmem:[#allocation7 + $0x1bd8] ss:$84 sps:$4 sm:$0xff]  }
 0x759   :  { %15001 = vmatprep.subr.bf16.mxu1 %v22804_v22  ;;  %v22822_v22 = vld [vmem:[#allocation7 + $0x2314] ss:$84 sps:$4 sm:$0xff]  }
 0x75b   :  { %14957 = vmatpush2.bf16.msra.mxu0 %v22799_v37 }
 0x75c   :  { %15002 = vmatpush2.bf16.msra.mxu1 %v22802_v2  ;;  %v14589_v36 = vpop.f32.mrf.mxu0  ;;  %15032 = vmatprep.subr.bf16.mxu0 %v22810_v45  ;;  %v22819_v45 = vld [vmem:[#allocation7 + $0x1b34] ss:$84 sps:$4 sm:$0xff]  }
 0x75d   :  { %v14590_v0 = vadd.f32 %v14589_v36, %v3062_v61  ;;  %v14642_v21 = vpop.f32.mrf.mxu1  ;;  %15003 = vmatprep.subr.bf16.mxu1 %v22807_v39 }
 0x75e   :  { %14959 = vmatmul.mubr.bf16.vlgmr.msra.gmra.mxu0 %v23823_v17  ;;  %v24737_v18 = vpop.f32.mrf.mxu0 }
 0x75f   :  { %25567 = vst [vmem:[#allocation147_spill] sm:$0xff] %v24737_v18  ;;  %v24739_v50 = vadd.f32 %v14642_v21, %v14590_v0  ;;  %14968 = vmatprep.mubr.bf16.mxu0 %v23843_v57  ;;  %15033 = vmatpush1.bf16.msra.mxu0 %v22808_v24  ;;  %v24742_v13 = vpop.f32.mrf.mxu1  ;;  %v22820_v24 = vld [vmem:[#allocation7 + $0x2310] ss:$84 sps:$4 sm:$0xff]  }
 0x760   :  { %25568 = vst [vmem:[#allocation148_spill] sm:$0xff] %v24742_v13  ;;  %15004 = vmatpush2.bf16.msra.mxu1 %v22805_v19  ;;  %v14593_v38 = vpop.f32.mrf.mxu0  ;;  %15034 = vmatprep.subr.bf16.mxu0 %v22816_v42  ;;  %v22828_v19 = vld [vmem:[#allocation7 + $0x226c] ss:$84 sps:$4 sm:$0xff]   ;;  %v24751_v42 = vrot.slane %v2991_v34, %v23806_v48  ;;  %v22823_v48 = vld [vmem:[#allocation7 + $0x1a88] ss:$84 sps:$4 sm:$0xff]  }
 0x761   :  { %v14594_v37 = vadd.f32 %v14593_v38, %v3062_v61  ;;  %v14646_v2 = vpop.f32.mrf.mxu1  ;;  %15005 = vmatprep.subr.bf16.mxu1 %v22813_v16  ;;  %v22825_v16 = vld [vmem:[#allocation7 + $0x1a8c] ss:$84 sps:$4 sm:$0xff]   ;;  %v22831_v34 = vld [vmem:[#allocation7 + $0x21c4] ss:$84 sps:$4 sm:$0xff]  }
 0x762   :  { %v24744_v39 = vpop.f32.mrf.mxu0 }
 0x763   :  { %v24746_v36 = vadd.f32 %v14646_v2, %v14594_v37  ;;  %15035 = vmatpush1.bf16.msra.mxu0 %v22814_v46  ;;  %v24748_v0 = vpop.f32.mrf.mxu1 }
 0x764   :  { %25569 = vst [vmem:[#allocation149_spill] sm:$0xff] %v24748_v0  ;;  %15006 = vmatpush2.bf16.msra.mxu1 %v22811_v14  ;;  %v14599_v21 = vpop.f32.mrf.mxu0  ;;  %15036 = vmatprep.subr.bf16.mxu0 %v22822_v22  ;;  %v22826_v22 = vld [vmem:[#allocation7 + $0x2268] ss:$84 sps:$4 sm:$0xff]  }
 0x765   :  { %v14600_v38 = vadd.f32 %v14599_v21, %v3062_v61  ;;  %v14652_v27 = vpop.f32.mrf.mxu1  ;;  %15007 = vmatprep.subr.bf16.mxu1 %v22819_v45 }
 0x766   :  { %14969 = vmatmul.mubr.bf16.gmra.mxu0 %v23839_v1  ;;  %v14601_v37 = vpop.f32.mrf.mxu0 }
 0x767   :  { %v24754_v2 = vadd.f32 %v14652_v27, %v14600_v38  ;;  %15037 = vmatpush1.bf16.msra.mxu0 %v22820_v24  ;;  %15064 = vmatprep.mubr.bf16.mxu0 %v23877_v43  ;;  %v14602_v46 = vadd.f32 %v14601_v37, %v24751_v42  ;;  %v14654_v14 = vpop.f32.mrf.mxu1  ;;  %v22829_v37 = vld [vmem:[#allocation7 + $0x21c0] ss:$84 sps:$4 sm:$0xff]  }
 0x768   :  { %15008 = vmatpush2.bf16.msra.mxu1 %v22817_v20  ;;  %v14603_v4 = vpop.f32.mrf.mxu0  ;;  %15038 = vmatprep.subr.bf16.mxu0 %v22828_v19  ;;  %v22832_v20 = vld [vmem:[#allocation7 + $0x2ee0] ss:$84 sps:$4 sm:$0xff]   ;;  %v22837_v19 = vld [vmem:[#allocation7 + $0x211c] ss:$84 sps:$4 sm:$0xff]  }
 0x769   :  { %v24758_v21 = vadd.f32 %v14654_v14, %v14602_v46  ;;  %v14604_v45 = vadd.f32 %v14603_v4, %v3062_v61  ;;  %v14656_v31 = vpop.f32.mrf.mxu1  ;;  %15009 = vmatprep.subr.bf16.mxu1 %v22825_v16  ;;  %v22840_v46 = vld [vmem:[#allocation7 + $0x2e3c] ss:$84 sps:$4 sm:$0xff]   ;;  %v22835_v4 = vld [vmem:[#allocation7 + $0x2118] ss:$84 sps:$4 sm:$0xff]   ;;  %v22846_v16 = vld [vmem:[#allocation7 + $0x2d94] ss:$84 sps:$4 sm:$0xff]  }
 0x76a   :  { %v14605_v27 = vpop.f32.mrf.mxu0  ;;  %v22838_v61 = vld [vmem:[#allocation7 + $0x2e38] ss:$84 sps:$4 sm:$0xff]   ;;  %v22841_v14 = vld [vmem:[#allocation7 + $0x2070] ss:$84 sps:$4 sm:$0xff]  }
 0x76b   :  { %v24760_v38 = vadd.f32 %v14656_v31, %v14604_v45  ;;  %15039 = vmatpush1.bf16.msra.mxu0 %v22826_v22  ;;  %v14606_v24 = vadd.f32 %v14605_v27, %v24751_v42  ;;  %v14658_v13 = vpop.f32.mrf.mxu1  ;;  %v22843_v31 = vld [vmem:[#allocation7 + $0x2074] ss:$84 sps:$4 sm:$0xff]   ;;  %v22852_v22 = vld [vmem:[#allocation7 + $0x2cec] ss:$84 sps:$4 sm:$0xff]   ;;  %v22855_v45 = vld [vmem:[#allocation7 + $0x29a4] ss:$84 sps:$4 sm:$0xff]  }
 0x76c   :  { %15010 = vmatpush2.bf16.msra.mxu1 %v22823_v48  ;;  %15040 = vmatprep.subr.bf16.mxu0 %v22831_v34  ;;  %v22847_v48 = vld [vmem:[#allocation7 + $0x1fc8] ss:$84 sps:$4 sm:$0xff]   ;;  %v22858_v27 = vld [vmem:[#allocation7 + $0x2c44] ss:$84 sps:$4 sm:$0xff]  }
 0x76d   :  { %v24763_v0 = vadd.f32 %v14658_v13, %v14606_v24  ;;  %15085 = vmatprep.subr.bf16.mxu1 %v22834_v9  ;;  %v22844_v13 = vld [vmem:[#allocation7 + $0x2d90] ss:$84 sps:$4 sm:$0xff]   ;;  %v22849_v9 = vld [vmem:[#allocation7 + $0x1fcc] ss:$84 sps:$4 sm:$0xff]   ;;  %v22850_v34 = vld [vmem:[#allocation7 + $0x2ce8] ss:$84 sps:$4 sm:$0xff]  }
 0x76e   :  { %v22853_v24 = vld [vmem:[#allocation7 + $0x29a0] ss:$84 sps:$4 sm:$0xff]  }
 0x76f   :  { %15012 = vmatmul.mubr.bf16.vlgmr.msra.gmra.mxu1 %v23922_v53  ;;  %15041 = vmatpush1.bf16.msra.mxu0 %v22829_v37  ;;  %v22856_v37 = vld [vmem:[#allocation7 + $0x2c40] ss:$84 sps:$4 sm:$0xff]  }
 0x770   :  { %15021 = vmatprep.mubr.bf16.mxu1 %v23926_v47  ;;  %15086 = vmatpush1.bf16.msra.mxu1 %v22832_v20  ;;  %v22861_v20 = vld [vmem:[#allocation7 + $0x28fc] ss:$84 sps:$4 sm:$0xff]  }
 0x771   :  { %15042 = vmatprep.subr.bf16.mxu0 %v22837_v19  ;;  %15087 = vmatprep.subr.bf16.mxu1 %v22840_v46  ;;  %v22864_v19 = vld [vmem:[#allocation7 + $0x2b9c] ss:$84 sps:$4 sm:$0xff]   ;;  %v22859_v46 = vld [vmem:[#allocation7 + $0x28f8] ss:$84 sps:$4 sm:$0xff]  }
 0x773   :  { %15043 = vmatpush1.bf16.msra.mxu0 %v22835_v4  ;;  %v22862_v4 = vld [vmem:[#allocation7 + $0x2b98] ss:$84 sps:$4 sm:$0xff]  }
 0x774   :  { %15088 = vmatpush1.bf16.msra.mxu1 %v22838_v61  ;;  %15044 = vmatprep.subr.bf16.mxu0 %v22843_v31  ;;  %v22867_v61 = vld [vmem:[#allocation7 + $0x2854] ss:$84 sps:$4 sm:$0xff]  }
 0x775   :  { %15089 = vmatprep.subr.bf16.mxu1 %v22846_v16  ;;  %v22870_v31 = vld [vmem:[#allocation7 + $0x2af4] ss:$84 sps:$4 sm:$0xff]   ;;  %v22865_v16 = vld [vmem:[#allocation7 + $0x2850] ss:$84 sps:$4 sm:$0xff]  }
 0x777   :  { %15022 = vmatmul.mubr.bf16.gmra.mxu1 %v23936_v5  ;;  %15045 = vmatpush1.bf16.msra.mxu0 %v22841_v14  ;;  %v22868_v14 = vld [vmem:[#allocation7 + $0x2af0] ss:$84 sps:$4 sm:$0xff]  }
 0x778   :  { %15090 = vmatpush1.bf16.msra.mxu1 %v22844_v13  ;;  %15117 = vmatprep.mubr.bf16.mxu1 %v23940_v23  ;;  %v22873_v13 = vld [vmem:[#allocation7 + $0x27ac] ss:$84 sps:$4 sm:$0xff]  }
 0x779   :  { %15046 = vmatprep.subr.bf16.mxu0 %v22849_v9  ;;  %15091 = vmatprep.subr.bf16.mxu1 %v22852_v22  ;;  %v22876_v9 = vld [vmem:[#allocation7 + $0x2a4c] ss:$84 sps:$4 sm:$0xff]   ;;  %v22871_v22 = vld [vmem:[#allocation7 + $0x27a8] ss:$84 sps:$4 sm:$0xff]  }
 0x77b   :  { %15047 = vmatpush1.bf16.msra.mxu0 %v22847_v48  ;;  %v22874_v48 = vld [vmem:[#allocation7 + $0x2a48] ss:$84 sps:$4 sm:$0xff]  }
 0x77c   :  { %15092 = vmatpush1.bf16.msra.mxu1 %v22850_v34  ;;  %15048 = vmatprep.subr.bf16.mxu0 %v22855_v45  ;;  %v22879_v34 = vld [vmem:[#allocation7 + $0x2704] ss:$84 sps:$4 sm:$0xff]  }
 0x77d   :  { %15093 = vmatprep.subr.bf16.mxu1 %v22858_v27  ;;  %v22882_v45 = vld [vmem:[#allocation7 + $0x3424] ss:$84 sps:$4 sm:$0xff]   ;;  %v22877_v27 = vld [vmem:[#allocation7 + $0x2700] ss:$84 sps:$4 sm:$0xff]  }
 0x77f   :  { %15049 = vmatpush2.bf16.msra.mxu0 %v22853_v24  ;;  %v22880_v24 = vld [vmem:[#allocation7 + $0x3420] ss:$84 sps:$4 sm:$0xff]  }
 0x780   :  { %15094 = vmatpush1.bf16.msra.mxu1 %v22856_v37  ;;  %15050 = vmatprep.subr.bf16.mxu0 %v22861_v20  ;;  %v22885_v37 = vld [vmem:[#allocation7 + $0x265c] ss:$84 sps:$4 sm:$0xff]  }
 0x781   :  { %15095 = vmatprep.subr.bf16.mxu1 %v22864_v19  ;;  %v22888_v20 = vld [vmem:[#allocation7 + $0x337c] ss:$84 sps:$4 sm:$0xff]   ;;  %v22883_v19 = vld [vmem:[#allocation7 + $0x2658] ss:$84 sps:$4 sm:$0xff]  }
 0x783   :  { %15051 = vmatpush2.bf16.msra.mxu0 %v22859_v46  ;;  %v22886_v46 = vld [vmem:[#allocation7 + $0x3378] ss:$84 sps:$4 sm:$0xff]  }
 0x784   :  { %15096 = vmatpush1.bf16.msra.mxu1 %v22862_v4  ;;  %15052 = vmatprep.subr.bf16.mxu0 %v22867_v61  ;;  %v22891_v4 = vld [vmem:[#allocation7 + $0x25b4] ss:$84 sps:$4 sm:$0xff]  }
 0x785   :  { %15097 = vmatprep.subr.bf16.mxu1 %v22870_v31  ;;  %v22894_v61 = vld [vmem:[#allocation7 + $0x32d4] ss:$84 sps:$4 sm:$0xff]   ;;  %v22889_v31 = vld [vmem:[#allocation7 + $0x25b0] ss:$84 sps:$4 sm:$0xff]  }
 0x787   :  { %15053 = vmatpush2.bf16.msra.mxu0 %v22865_v16  ;;  %v22892_v16 = vld [vmem:[#allocation7 + $0x32d0] ss:$84 sps:$4 sm:$0xff]  }
 0x788   :  { %15098 = vmatpush1.bf16.msra.mxu1 %v22868_v14  ;;  %15054 = vmatprep.subr.bf16.mxu0 %v22873_v13  ;;  %v22897_v14 = vld [vmem:[#allocation7 + $0x250c] ss:$84 sps:$4 sm:$0xff]  }
 0x789   :  { %15099 = vmatprep.subr.bf16.mxu1 %v22876_v9  ;;  %v22900_v13 = vld [vmem:[#allocation7 + $0x322c] ss:$84 sps:$4 sm:$0xff]   ;;  %v22895_v9 = vld [vmem:[#allocation7 + $0x2508] ss:$84 sps:$4 sm:$0xff]  }
 0x78b   :  { %15055 = vmatpush2.bf16.msra.mxu0 %v22871_v22  ;;  %v22898_v22 = vld [vmem:[#allocation7 + $0x3228] ss:$84 sps:$4 sm:$0xff]  }
 0x78c   :  { %15100 = vmatpush1.bf16.msra.mxu1 %v22874_v48  ;;  %15056 = vmatprep.subr.bf16.mxu0 %v22879_v34  ;;  %v22906_v48 = vld [vmem:[#allocation7 + $0x36c4] ss:$84 sps:$4 sm:$0xff]  }
 0x78d   :  { %15101 = vmatprep.subr.bf16.mxu1 %v22882_v45  ;;  %v22903_v34 = vld [vmem:[#allocation7 + $0x3184] ss:$84 sps:$4 sm:$0xff]   ;;  %v22904_v45 = vld [vmem:[#allocation7 + $0x36c0] ss:$84 sps:$4 sm:$0xff]  }
 0x78f   :  { %15057 = vmatpush2.bf16.msra.mxu0 %v22877_v27  ;;  %v22901_v27 = vld [vmem:[#allocation7 + $0x3180] ss:$84 sps:$4 sm:$0xff]  }
 0x790   :  { %15102 = vmatpush2.bf16.msra.mxu1 %v22880_v24  ;;  %15058 = vmatprep.subr.bf16.mxu0 %v22885_v37  ;;  %v22912_v24 = vld [vmem:[#allocation7 + $0x361c] ss:$84 sps:$4 sm:$0xff]  }
 0x791   :  { %15103 = vmatprep.subr.bf16.mxu1 %v22888_v20  ;;  %v22909_v20 = vld [vmem:[#allocation7 + $0x30dc] ss:$84 sps:$4 sm:$0xff]  }
 0x793   :  { %15059 = vmatpush2.bf16.msra.mxu0 %v22883_v19 }
 0x794   :  { %15104 = vmatpush2.bf16.msra.mxu1 %v22886_v46  ;;  %15060 = vmatprep.subr.bf16.mxu0 %v22891_v4 }
 0x795   :  { %15105 = vmatprep.subr.bf16.mxu1 %v22894_v61  ;;  %v22910_v61 = vld [vmem:[#allocation7 + $0x3618] ss:$84 sps:$4 sm:$0xff]  }
 0x797   :  { %15061 = vmatpush2.bf16.msra.mxu0 %v22889_v31 }
 0x798   :  { %15106 = vmatpush2.bf16.msra.mxu1 %v22892_v16  ;;  %15062 = vmatprep.subr.bf16.mxu0 %v22897_v14  ;;  %v22907_v14 = vld [vmem:[#allocation7 + $0x30d8] ss:$84 sps:$4 sm:$0xff]  }
 0x799   :  { %15107 = vmatprep.subr.bf16.mxu1 %v22900_v13  ;;  %v22918_v13 = vld [vmem:[#allocation7 + $0x3574] ss:$84 sps:$4 sm:$0xff]  }
 0x79b   :  { %15063 = vmatpush2.bf16.msra.mxu0 %v22895_v9 }
 0x79c   :  { %15108 = vmatpush2.bf16.msra.mxu1 %v22898_v22  ;;  %15146 = vmatprep.subr.bf16.mxu0 %v22906_v48 }
 0x79d   :  { %v14695_v37 = vpop.f32.mrf.mxu0  ;;  %15109 = vmatprep.subr.bf16.mxu1 %v22903_v34 }
 0x79e   :  { %v14696_v19 = vadd.f32 %v14695_v37, %v24739_v50  ;;  %v14748_v46 = vpop.f32.mrf.mxu1  ;;  %15065 = vmatmul.mubr.bf16.vlgmr.msra.gmra.mxu0 %v23913_v15  ;;  %v22915_v50 = vld [vmem:[#allocation7 + $0x3034] ss:$84 sps:$4 sm:$0xff]  }
 0x79f   :  { %15074 = vmatprep.mubr.bf16.mxu0 %v23928_v6  ;;  %15147 = vmatpush1.bf16.msra.mxu0 %v22904_v45  ;;  %v24772_v4 = vpop.f32.mrf.mxu0  ;;  %v22916_v45 = vld [vmem:[#allocation7 + $0x3570] ss:$84 sps:$4 sm:$0xff]  }
 0x7a0   :  { %25570 = vst [vmem:[#allocation150_spill] sm:$0xff] %v24772_v4  ;;  %v24774_v31 = vadd.f32 %v14748_v46, %v14696_v19  ;;  %15110 = vmatpush2.bf16.msra.mxu1 %v22901_v27  ;;  %v24776_v16 = vpop.f32.mrf.mxu1  ;;  %15148 = vmatprep.subr.bf16.mxu0 %v22912_v24  ;;  %v22913_v27 = vld [vmem:[#allocation7 + $0x3030] ss:$84 sps:$4 sm:$0xff]   ;;  %v22924_v46 = vld [vmem:[#allocation7 + $0x34cc] ss:$84 sps:$4 sm:$0xff]  }
 0x7a1   :  { %25571 = vst [vmem:[#allocation151_spill] sm:$0xff] %v24776_v16  ;;  %v14699_v9 = vpop.f32.mrf.mxu0  ;;  %15111 = vmatprep.subr.bf16.mxu1 %v22909_v20  ;;  %v22921_v16 = vld [vmem:[#allocation7 + $0x2f8c] ss:$84 sps:$4 sm:$0xff]  }
 0x7a2   :  { %v14700_v22 = vadd.f32 %v14699_v9, %v24746_v36  ;;  %v14752_v48 = vpop.f32.mrf.mxu1 }
 0x7a3   :  { %15149 = vmatpush1.bf16.msra.mxu0 %v22910_v61  ;;  %v24779_v34 = vpop.f32.mrf.mxu0  ;;  %v22922_v61 = vld [vmem:[#allocation7 + $0x34c8] ss:$84 sps:$4 sm:$0xff]  }
 0x7a4   :  { %25572 = vst [vmem:[#allocation152_spill] sm:$0xff] %v24779_v34  ;;  %v24781_v37 = vadd.f32 %v14752_v48, %v14700_v22  ;;  %15112 = vmatpush2.bf16.msra.mxu1 %v22907_v14  ;;  %v24783_v19 = vpop.f32.mrf.mxu1  ;;  %15150 = vmatprep.subr.bf16.mxu0 %v22918_v13  ;;  %v22919_v22 = vld [vmem:[#allocation7 + $0x2f88] ss:$84 sps:$4 sm:$0xff]  }
 0x7a5   :  { %25573 = vst [vmem:[#allocation153_spill] sm:$0xff] %v24783_v19  ;;  %v14705_v24 = vpop.f32.mrf.mxu0  ;;  %15113 = vmatprep.subr.bf16.mxu1 %v22915_v50  ;;  %v22925_v50 = vld [vmem:[#allocation7 + $0xa28] ss:$84 sps:$4 sm:$0xff]  }
 0x7a6   :  { %v14706_v20 = vadd.f32 %v14705_v24, %v24754_v2  ;;  %v14758_v4 = vpop.f32.mrf.mxu1  ;;  %15075 = vmatmul.mubr.bf16.gmra.mxu0 %v23938_v10  ;;  %v22926_v2 = vld [vmem:[#allocation7 + $0x14a8] ss:$84 sps:$4 sm:$0xff]  }
 0x7a7   :  { %15151 = vmatpush1.bf16.msra.mxu0 %v22916_v45  ;;  %v14707_v36 = vpop.f32.mrf.mxu0  ;;  %15170 = vmatprep.mubr.bf16.mxu0 %v25462_v44  ;;  %v22927_v34 = vld [vmem:[#allocation7 + $0x4e8] ss:$84 sps:$4 sm:$0xff]  }
 0x7a8   :  { %v24788_v9 = vadd.f32 %v14758_v4, %v14706_v20  ;;  %15114 = vmatpush2.bf16.msra.mxu1 %v22913_v27  ;;  %v14708_v14 = vadd.f32 %v14707_v36, %v24758_v21  ;;  %v14760_v13 = vpop.f32.mrf.mxu1  ;;  %15152 = vmatprep.subr.bf16.mxu0 %v22924_v46  ;;  %v22928_v4 = vld [vmem:[#allocation7 + $0xf68] ss:$84 sps:$4 sm:$0xff]   ;;  %v22929_v21 = vld [vmem:[#allocation7 + $0x980] ss:$84 sps:$4 sm:$0xff]   ;;  %v22933_v46 = vld [vmem:[#allocation7 + $0x8d8] ss:$84 sps:$4 sm:$0xff]  }
 0x7a9   :  { %v14709_v48 = vpop.f32.mrf.mxu0  ;;  %15115 = vmatprep.subr.bf16.mxu1 %v22921_v16  ;;  %v22930_v27 = vld [vmem:[#allocation7 + $0x1400] ss:$84 sps:$4 sm:$0xff]   ;;  %v22935_v20 = vld [vmem:[#allocation7 + $0x398] ss:$84 sps:$4 sm:$0xff]  }
 0x7aa   :  { %v24791_v24 = vadd.f32 %v14760_v13, %v14708_v14  ;;  %v14710_v45 = vadd.f32 %v14709_v48, %v24760_v38  ;;  %v14762_v19 = vpop.f32.mrf.mxu1  ;;  %v22931_v16 = vld [vmem:[#allocation7 + $0x440] ss:$84 sps:$4 sm:$0xff]   ;;  %v22936_v36 = vld [vmem:[#allocation7 + $0xe18] ss:$84 sps:$4 sm:$0xff]   ;;  %v22939_v14 = vld [vmem:[#allocation7 + $0x2f0] ss:$84 sps:$4 sm:$0xff]  }
 0x7ab   :  { %15153 = vmatpush1.bf16.msra.mxu0 %v22922_v61  ;;  %v22932_v38 = vld [vmem:[#allocation7 + $0xec0] ss:$84 sps:$4 sm:$0xff]   ;;  %v22937_v61 = vld [vmem:[#allocation7 + $0x830] ss:$84 sps:$4 sm:$0xff]   ;;  %v22944_v48 = vld [vmem:[#allocation7 + $0xcc8] ss:$84 sps:$4 sm:$0xff]  }
 0x7ac   :  { %v24794_v18 = vadd.f32 %v14762_v19, %v14710_v45  ;;  %15116 = vmatpush2.bf16.msra.mxu1 %v22919_v22  ;;  %19742 = vmatprep.subr.bf16.mxu0 %v22925_v50  ;;  %v22934_v19 = vld [vmem:[#allocation7 + $0x1358] ss:$84 sps:$4 sm:$0xff]   ;;  %v22940_v13 = vld [vmem:[#allocation7 + $0xd70] ss:$84 sps:$4 sm:$0xff]   ;;  %v22942_v22 = vld [vmem:[#allocation7 + $0x1208] ss:$84 sps:$4 sm:$0xff]  }
 0x7ad   :  { %19770 = vmatprep.subr.bf16.mxu1 %v22926_v2  ;;  %v22943_v50 = vld [vmem:[#allocation7 + $0x248] ss:$84 sps:$4 sm:$0xff]   ;;  %v22945_v2 = vld [vmem:[#allocation7 + $0x6e0] ss:$84 sps:$4 sm:$0xff]  }
 0x7ae   :  { %19550 = vmatmul.mubr.msk.bf16.vlgmr.msra.gmra.mxu0 %vm12004_vm8, %v23947_v41  ;;  %v22946_v45 = vld [vmem:[#allocation7 + $0x1160] ss:$84 sps:$4 sm:$0xff]  }
 0x7af   :  { %15118 = vmatmul.mubr.bf16.vlgmr.msra.gmra.mxu1 %v23963_v3  ;;  %19743 = vmatpush3.bf16.msra.mxu0 %v22927_v34  ;;  %v22938_v34 = vld [vmem:[#allocation7 + $0x12b0] ss:$84 sps:$4 sm:$0xff]  }
 0x7b0   :  { %15127 = vmatprep.mubr.bf16.mxu1 %v23965_v12  ;;  %19771 = vmatpush3.bf16.msra.mxu1 %v22928_v4  ;;  %v22947_v4 = vld [vmem:[#allocation7 + $0x1a0] ss:$84 sps:$4 sm:$0xff]  }
 0x7b1   :  { %19744 = vmatprep.subr.bf16.mxu0 %v22929_v21  ;;  %19772 = vmatprep.subr.bf16.mxu1 %v22930_v27  ;;  %v22949_v21 = vld [vmem:[#allocation7 + $0x638] ss:$84 sps:$4 sm:$0xff]  }
 0x7b2   :  { %15180 = vmatprep.mubr.bf16.mxu0 %v25462_v44  ;;  %v22941_v44 = vld [vmem:[#allocation7 + $0x788] ss:$84 sps:$4 sm:$0xff]   ;;  %v22950_v27 = vld [vmem:[#allocation7 + $0x10b8] ss:$84 sps:$4 sm:$0xff]  }
 0x7b3   :  { %19745 = vmatpush3.bf16.msra.mxu0 %v22931_v16  ;;  %v22952_v16 = vld [vmem:[#allocation7 + $0xb78] ss:$84 sps:$4 sm:$0xff]  }
 0x7b4   :  { %19773 = vmatpush3.bf16.msra.mxu1 %v22932_v38  ;;  %19746 = vmatprep.subr.bf16.mxu0 %v22933_v46  ;;  %v22953_v38 = vld [vmem:[#allocation7 + $0x590] ss:$84 sps:$4 sm:$0xff]  }
 0x7b5   :  { %19774 = vmatprep.subr.bf16.mxu1 %v22934_v19  ;;  %v22954_v46 = vld [vmem:[#allocation7 + $0x1010] ss:$84 sps:$4 sm:$0xff]  }
 0x7b6   :  { %19551 = vmatmul.mubr.msk.bf16.gmra.mxu0 %vm12004_vm8, %v23952_v59  ;;  %v22955_v19 = vld [vmem:[#allocation7 + $0x50] ss:$84 sps:$4 sm:$0xff]  }
 0x7b7   :  { %15128 = vmatmul.mubr.bf16.gmra.mxu1 %v23969_v58  ;;  %19747 = vmatpush3.bf16.msra.mxu0 %v22935_v20  ;;  %v22956_v20 = vld [vmem:[#allocation7 + $0xad0] ss:$84 sps:$4 sm:$0xff]  }
 0x7b8   :  { %15223 = vmatprep.mubr.bf16.mxu0 %v23825_v25  ;;  %19775 = vmatpush3.bf16.msra.mxu1 %v22936_v36  ;;  %v22948_v25 = vld [vmem:[#allocation7 + $0xc20] ss:$84 sps:$4 sm:$0xff]   ;;  %v22957_v36 = vld [vmem:[#allocation7 + $0x1f28] ss:$84 sps:$4 sm:$0xff]  }
 0x7b9   :  { %15272 = vmatprep.mubr.bf16.mxu1 %v23827_v26  ;;  %19748 = vmatprep.subr.bf16.mxu0 %v22937_v61  ;;  %v22951_v26 = vld [vmem:[#allocation7 + $0xf8] ss:$84 sps:$4 sm:$0xff]   ;;  %v22958_v61 = vld [vmem:[#allocation7 + $0x29a8] ss:$84 sps:$4 sm:$0xff]  }
 0x7ba   :  { %19776 = vmatprep.subr.bf16.mxu1 %v22938_v34  ;;  %v22959_v34 = vld [vmem:[#allocation7 + $0x19e8] ss:$84 sps:$4 sm:$0xff]  }
 0x7bb   :  { %19749 = vmatpush3.bf16.msra.mxu0 %v22939_v14  ;;  %v22960_v14 = vld [vmem:[#allocation7 + $0x2468] ss:$84 sps:$4 sm:$0xff]  }
 0x7bc   :  { %19777 = vmatpush3.bf16.msra.mxu1 %v22940_v13  ;;  %19750 = vmatprep.subr.bf16.mxu0 %v22941_v44  ;;  %v22961_v13 = vld [vmem:[#allocation7 + $0x1e80] ss:$84 sps:$4 sm:$0xff]   ;;  %v24806_v44 = vpop.f32.mrf.mxu1 }
 0x7bd   :  { %19778 = vmatprep.subr.bf16.mxu1 %v22942_v22  ;;  %v22962_v22 = vld [vmem:[#allocation7 + $0x2900] ss:$84 sps:$4 sm:$0xff]  }
 0x7bf   :  { %19751 = vmatpush3.bf16.msra.mxu0 %v22943_v50  ;;  %v22963_v50 = vld [vmem:[#allocation7 + $0x1940] ss:$84 sps:$4 sm:$0xff]  }
 0x7c0   :  { %19779 = vmatpush3.bf16.msra.mxu1 %v22944_v48  ;;  %19752 = vmatprep.subr.bf16.mxu0 %v22945_v2  ;;  %v22964_v48 = vld [vmem:[#allocation7 + $0x23c0] ss:$84 sps:$4 sm:$0xff]   ;;  %v22965_v2 = vld [vmem:[#allocation7 + $0x1dd8] ss:$84 sps:$4 sm:$0xff]  }
 0x7c1   :  { %19780 = vmatprep.subr.bf16.mxu1 %v22946_v45  ;;  %v14854_v45 = vpop.f32.mrf.mxu1 }
 0x7c3   :  { %19753 = vmatpush3.bf16.msra.mxu0 %v22947_v4  ;;  %v22966_v4 = vld [vmem:[#allocation7 + $0x2858] ss:$84 sps:$4 sm:$0xff]  }
 0x7c4   :  { %19781 = vmatpush3.bf16.msra.mxu1 %v22948_v25  ;;  %19754 = vmatprep.subr.bf16.mxu0 %v22949_v21  ;;  %v22967_v25 = vld [vmem:[#allocation7 + $0x1898] ss:$84 sps:$4 sm:$0xff]   ;;  %v22969_v21 = vld [vmem:[#allocation7 + $0x1d30] ss:$84 sps:$4 sm:$0xff]  }
 0x7c5   :  { %19782 = vmatprep.subr.bf16.mxu1 %v22950_v27  ;;  %v22972_v27 = vld [vmem:[#allocation7 + $0x2270] ss:$84 sps:$4 sm:$0xff]  }
 0x7c7   :  { %19755 = vmatpush3.bf16.msra.mxu0 %v22951_v26  ;;  %v22973_v26 = vld [vmem:[#allocation7 + $0x1c88] ss:$84 sps:$4 sm:$0xff]  }
 0x7c8   :  { %19783 = vmatpush3.bf16.msra.mxu1 %v22952_v16  ;;  %19756 = vmatprep.subr.bf16.mxu0 %v22953_v38  ;;  %v22974_v38 = vld [vmem:[#allocation7 + $0x2708] ss:$84 sps:$4 sm:$0xff]  }
 0x7c9   :  { %19784 = vmatprep.subr.bf16.mxu1 %v22954_v46  ;;  %v14711_v46 = vpop.f32.mrf.mxu0 }
 0x7cb   :  { %19757 = vmatpush3.bf16.msra.mxu0 %v22955_v19  ;;  %v22976_v19 = vld [vmem:[#allocation7 + $0x21c8] ss:$84 sps:$4 sm:$0xff]  }
 0x7cc   :  { %19785 = vmatpush3.bf16.msra.mxu1 %v22956_v20  ;;  %19798 = vmatprep.subr.bf16.mxu0 %v22957_v36 }
 0x7cd   :  { %19826 = vmatprep.subr.bf16.mxu1 %v22958_v61 }
 0x7ce   :  { %15224 = vmatmul.mubr.bf16.vlgmr.msra.gmra.mxu0 %v23830_v29  ;;  %v22968_v29 = vld [vmem:[#allocation7 + $0x2318] ss:$84 sps:$4 sm:$0xff]  }
 0x7cf   :  { %15273 = vmatmul.mubr.bf16.vlgmr.msra.gmra.mxu1 %v23823_v17  ;;  %15231 = vmatprep.mubr.bf16.mxu0 %v23841_v54  ;;  %v24812_v17 = vpop.f32.mrf.mxu1  ;;  %v22970_v54 = vld [vmem:[#allocation7 + $0x27b0] ss:$84 sps:$4 sm:$0xff]  }
 0x7d0   :  { %15280 = vmatprep.mubr.bf16.mxu1 %v23843_v57  ;;  %19799 = vmatpush3.bf16.msra.mxu0 %v22959_v34  ;;  %v22971_v57 = vld [vmem:[#allocation7 + $0x17f0] ss:$84 sps:$4 sm:$0xff]   ;;  %v22979_v34 = vld [vmem:[#allocation7 + $0x16a0] ss:$84 sps:$4 sm:$0xff]  }
 0x7d1   :  { %19827 = vmatpush3.bf16.msra.mxu1 %v22960_v14  ;;  %19800 = vmatprep.subr.bf16.mxu0 %v22961_v13  ;;  %v14858_v16 = vpop.f32.mrf.mxu1  ;;  %v22980_v13 = vld [vmem:[#allocation7 + $0x2120] ss:$84 sps:$4 sm:$0xff]  }
 0x7d2   :  { %19828 = vmatprep.subr.bf16.mxu1 %v22962_v22  ;;  %v22981_v22 = vld [vmem:[#allocation7 + $0x1b38] ss:$84 sps:$4 sm:$0xff]  }
 0x7d3   :  { %v24818_v20 = vpop.f32.mrf.mxu1 }
 0x7d4   :  { %19801 = vmatpush3.bf16.msra.mxu0 %v22963_v50 }
 0x7d5   :  { %19829 = vmatpush3.bf16.msra.mxu1 %v22964_v48  ;;  %19802 = vmatprep.subr.bf16.mxu0 %v22965_v2  ;;  %v14864_v50 = vpop.f32.mrf.mxu1  ;;  %v22982_v2 = vld [vmem:[#allocation7 + $0x25b8] ss:$84 sps:$4 sm:$0xff]  }
 0x7d6   :  { %15232 = vmatmul.mubr.bf16.gmra.mxu0 %v23837_v63  ;;  %19830 = vmatprep.subr.bf16.mxu1 %v22966_v4  ;;  %v22975_v63 = vld [vmem:[#allocation7 + $0x1748] ss:$84 sps:$4 sm:$0xff]  }
 0x7d7   :  { %15281 = vmatmul.mubr.bf16.gmra.mxu1 %v23839_v1  ;;  %15321 = vmatprep.mubr.bf16.mxu0 %v23875_v56  ;;  %v22977_v1 = vld [vmem:[#allocation7 + $0x1be0] ss:$84 sps:$4 sm:$0xff]  }
 0x7d8   :  { %19803 = vmatpush3.bf16.msra.mxu0 %v22967_v25  ;;  %15370 = vmatprep.mubr.bf16.mxu1 %v23877_v43  ;;  %v22978_v43 = vld [vmem:[#allocation7 + $0x2660] ss:$84 sps:$4 sm:$0xff]  }
 0x7d9   :  { %19831 = vmatpush3.bf16.msra.mxu1 %v22968_v29  ;;  %19804 = vmatprep.subr.bf16.mxu0 %v22969_v21  ;;  %v22983_v29 = vld [vmem:[#allocation7 + $0x15f8] ss:$84 sps:$4 sm:$0xff]  }
 0x7da   :  { %19832 = vmatprep.subr.bf16.mxu1 %v22970_v54  ;;  %v22984_v21 = vld [vmem:[#allocation7 + $0x2078] ss:$84 sps:$4 sm:$0xff]   ;;  %v22985_v54 = vld [vmem:[#allocation7 + $0x1a90] ss:$84 sps:$4 sm:$0xff]  }
 0x7dc   :  { %19805 = vmatpush3.bf16.msra.mxu0 %v22971_v57 }
 0x7dd   :  { %19833 = vmatpush3.bf16.msra.mxu1 %v22972_v27  ;;  %19806 = vmatprep.subr.bf16.mxu0 %v22973_v26  ;;  %v22986_v27 = vld [vmem:[#allocation7 + $0x2510] ss:$84 sps:$4 sm:$0xff]   ;;  %v14712_v26 = vadd.f32 %v14711_v46, %v24763_v0 }
 0x7de   :  { %v14801_v56 = vpop.f32.mrf.mxu0  ;;  %19834 = vmatprep.subr.bf16.mxu1 %v22974_v38 }
 0x7df   :  { %v14802_v36 = vadd.f32 %v14801_v56, %v24774_v31 }
 0x7e0   :  { %19807 = vmatpush3.bf16.msra.mxu0 %v22975_v63  ;;  %v24821_v61 = vpop.f32.mrf.mxu0 }
 0x7e1   :  { %v14855_v14 = vadd.f32 %v14854_v45, %v14802_v36  ;;  %19835 = vmatpush3.bf16.msra.mxu1 %v22976_v19  ;;  %19808 = vmatprep.subr.bf16.mxu0 %v22977_v1  ;;  %v14866_v45 = vpop.f32.mrf.mxu1 }
 0x7e2   :  { %v14805_v48 = vpop.f32.mrf.mxu0  ;;  %19836 = vmatprep.subr.bf16.mxu1 %v22978_v43 }
 0x7e3   :  { %v14806_v4 = vadd.f32 %v14805_v48, %v24781_v37  ;;  %v15501_v38 = vmax.f32 %v14855_v14, 0.0  ;;  %v12052_v37 = vadd.f32 %v23988_v30, %v23979_v28  ;;  %v14868_v0 = vpop.f32.mrf.mxu1  ;;  %v22990_v14 = vld [vmem:[#allocation7 + $0x36c8] ss:$84 sps:$4 sm:$0xff]  }
 0x7e4   :  { %19809 = vmatpush3.bf16.msra.mxu0 %v22979_v34  ;;  %v24824_v25 = vpop.f32.mrf.mxu0  ;;  %v22988_v34 = vld [vmem:[#allocation7 + $0x1fd0] ss:$84 sps:$4 sm:$0xff]  }
 0x7e5   :  { %v14859_v31 = vadd.f32 %v14858_v16, %v14806_v4  ;;  %19837 = vmatpush3.bf16.msra.mxu1 %v22980_v13  ;;  %19810 = vmatprep.subr.bf16.mxu0 %v22981_v22  ;;  %v22987_v16 = vld [vmem:[#allocation7 + $0x1550] ss:$84 sps:$4 sm:$0xff]   ;;  %v22989_v13 = vld [vmem:[#allocation7 + $0x3428] ss:$84 sps:$4 sm:$0xff]   ;;  %v12105_v22 = vadd.f32 %v23990_v33, %v12052_v37 }
 0x7e6   :  { %v14811_v57 = vpop.f32.mrf.mxu0  ;;  %19838 = vmatprep.subr.bf16.mxu1 %v22982_v2  ;;  %v22998_v37 = vld [vmem:[#allocation7 + $0x3230] ss:$84 sps:$4 sm:$0xff]  }
 0x7e7   :  { %v15522_v63 = vmax.f32 %v14859_v31, 0.0  ;;  %v14812_v19 = vadd.f32 %v14811_v57, %v24788_v9  ;;  %v14765_v9 = vadd.f32 %v24806_v44, %v14712_v26  ;;  %v14870_v31 = vpop.f32.mrf.mxu1 }
 0x7e8   :  { %19811 = vmatpush3.bf16.msra.mxu0 %v22983_v29  ;;  %v14813_v1 = vpop.f32.mrf.mxu0  ;;  %v12158_v29 = vadd.f32 %v24020_v32, %v12105_v22  ;;  %v22994_v32 = vld [vmem:[#allocation7 + $0x2e40] ss:$84 sps:$4 sm:$0xff]  }
 0x7e9   :  { %v24830_v56 = vpack.c.bf16 %v15522_v63, %v15501_v38  ;;  %v14865_v43 = vadd.f32 %v14864_v50, %v14812_v19  ;;  %19839 = vmatpush3.bf16.msra.mxu1 %v22984_v21  ;;  %v14814_v36 = vadd.f32 %v14813_v1, %v24791_v24  ;;  %19812 = vmatprep.subr.bf16.mxu0 %v22985_v54  ;;  %v22991_v24 = vld [vmem:[#allocation7 + $0x2ee8] ss:$84 sps:$4 sm:$0xff]   ;;  %v22992_v21 = vld [vmem:[#allocation7 + $0x3380] ss:$84 sps:$4 sm:$0xff]   ;;  %v22995_v38 = vld [vmem:[#allocation7 + $0x32d8] ss:$84 sps:$4 sm:$0xff]  }
 0x7ea   :  { %v14815_v46 = vpop.f32.mrf.mxu0  ;;  %19840 = vmatprep.subr.bf16.mxu1 %v22986_v27  ;;  %v12211_v26 = vadd.f32 %v24022_v60, %v12158_v29  ;;  %v25576_v1 = vld [vmem:[#allocation30_spill] sm:$0xff] }
 0x7eb   :  { %v14816_v30 = vadd.f32 %v14815_v46, %v24794_v18  ;;  %v14867_v2 = vadd.f32 %v14866_v45, %v14814_v36  ;;  %v15543_v54 = vmax.f32 %v14865_v43, 0.0  ;;  %v22993_v18 = vld [vmem:[#allocation7 + $0x3620] ss:$84 sps:$4 sm:$0xff]   ;;  %v23001_v43 = vld [vmem:[#allocation7 + $0x3188] ss:$84 sps:$4 sm:$0xff]  }
 0x7ec   :  { %19813 = vmatpush3.bf16.msra.mxu0 %v22987_v16  ;;  %v14817_v48 = vpop.f32.mrf.mxu0  ;;  %v23000_v16 = vld [vmem:[#allocation7 + $0x2cf0] ss:$84 sps:$4 sm:$0xff]   ;;  %v23011_v29 = vld [vmem:[#allocation7 + $0x2af8] ss:$84 sps:$4 sm:$0xff]  }
 0x7ed   :  { %v14869_v50 = vadd.f32 %v14868_v0, %v14816_v30  ;;  %19841 = vmatpush3.bf16.msra.mxu1 %v22988_v34  ;;  %v14818_v4 = vadd.f32 %v14817_v48, %v14765_v9  ;;  %19854 = vmatprep.subr.bf16.mxu0 %v22989_v13  ;;  %v15544_v33 = vmax.f32 %v14867_v2, 0.0  ;;  %v23002_v36 = vld [vmem:[#allocation10 + $0x78] sm:$0xff]   ;;  %v25577_v13 = vld [vmem:[#allocation31_spill] sm:$0xff]  ;;  %v23006_v46 = vld [vmem:[#allocation10 + $0x70] sm:$0xff]  }
 0x7ee   :  { %20208 = vmatprep.subr.bf16.mxu1 %v22990_v14  ;;  %v15486_v0 = vmax.f32 %v25577_v13, 0.0  ;;  %v23008_v9 = vld [vmem:[#allocation10 + $0x30] sm:$0xff]   ;;  %v25578_v22 = vld [vmem:[#allocation38_spill] sm:$0xff] }
 0x7ef   :  { %v15564_v57 = vmax.f32 %v14869_v50, 0.0  ;;  %v14871_v44 = vadd.f32 %v14870_v31, %v14818_v4  ;;  %15322 = vmatmul.mubr.bf16.vlgmr.msra.gmra.mxu0 %v23922_v53  ;;  %v22996_v53 = vld [vmem:[#allocation7 + $0x3578] ss:$84 sps:$4 sm:$0xff]   ;;  %v23010_v50 = vld [vmem:[#allocation10 + $0x68] sm:$0xff]  }
 0x7f0   :  { %15371 = vmatmul.mubr.bf16.vlgmr.msra.gmra.mxu1 %v23913_v15  ;;  %15329 = vmatprep.mubr.bf16.mxu0 %v23926_v47  ;;  %v25575_v15 = vld [vmem:[#allocation32_spill] sm:$0xff]  ;;  %v22997_v47 = vld [vmem:[#allocation7 + $0x2d98] ss:$84 sps:$4 sm:$0xff]  }
 0x7f1   :  { %v24840_v45 = vpack.c.bf16 %v15564_v57, %v15543_v54  ;;  %v15565_v27 = vmax.f32 %v14871_v44, 0.0  ;;  %15378 = vmatprep.mubr.bf16.mxu1 %v23928_v6  ;;  %19855 = vmatpush3.bf16.msra.mxu0 %v22991_v24  ;;  %v12264_v19 = vadd.f32 %v25575_v15, %v12211_v26  ;;  %v22999_v6 = vld [vmem:[#allocation7 + $0x34d0] ss:$84 sps:$4 sm:$0xff]   ;;  %v23009_v30 = vld [vmem:[#allocation7 + $0x3038] ss:$84 sps:$4 sm:$0xff]  }
 0x7f2   :  { %20209 = vmatpush3.bf16.msra.mxu1 %v22990_v14  ;;  %19856 = vmatprep.subr.bf16.mxu0 %v22992_v21  ;;  %v25579_v48 = vld [vmem:[#allocation37_spill] sm:$0xff]  ;;  %v25580_v4 = vld [vmem:[#allocation40_spill] sm:$0xff]  ;;  %v25581_v21 = vld [vmem:[#allocation42_spill] sm:$0xff] }
 0x7f3   :  { %25574 = vst [vmem:[#allocation154_spill] sm:$0xff] %v24840_v45  ;;  %20210 = vmatprep.subr.bf16.mxu1 %v22993_v18  ;;  %v24844_v63 = vpack.c.bf16 %v15565_v27, %v15544_v33  ;;  %v12317_v60 = vadd.f32 %v25576_v1, %v12264_v19  ;;  %v12370_v2 = vadd.f32 %v25579_v48, %v25578_v22  ;;  %v23012_v31 = vld [vmem:[#allocation10 + $0x28] sm:$0xff]   ;;  %v23014_v57 = vld [vmem:[#allocation10 + $0x60] sm:$0xff]   ;;  %v23017_v15 = vld [vmem:[#allocation10 + $0x58] sm:$0xff]  }
 0x7f4   :  { %v25582_v44 = vld [vmem:[#allocation26_spill] sm:$0xff]  ;;  %v25583_v33 = vld [vmem:[#allocation44_spill] sm:$0xff]  ;;  %v25584_v19 = vld [vmem:[#allocation27_spill] sm:$0xff] }
 0x7f5   :  { %19857 = vmatpush3.bf16.msra.mxu0 %v22994_v32  ;;  %v15507_v34 = vmax.f32 %v12317_v60, 0.0  ;;  %v12423_v24 = vadd.f32 %v25580_v4, %v12370_v2  ;;  %v23015_v32 = vld [vmem:[#allocation7 + $0x2a50] ss:$84 sps:$4 sm:$0xff]   ;;  %v23016_v26 = vld [vmem:[#allocation10 + $0x20] sm:$0xff]  }
 0x7f6   :  { %20211 = vmatpush3.bf16.msra.mxu1 %v22993_v18  ;;  %19858 = vmatprep.subr.bf16.mxu0 %v22995_v38  ;;  %v12062_v18 = vadd.f32 %v25582_v44, %v23979_v28  ;;  %v23018_v38 = vld [vmem:[#allocation10 + $0xf8] sm:$0xff]   ;;  %v23022_v60 = vld [vmem:[#allocation10 + $0xf0] sm:$0xff]   ;;  %v23032_v44 = vld [vmem:[#allocation10 + $0xa0] sm:$0xff]  }
 0x7f7   :  { %15330 = vmatmul.mubr.bf16.gmra.mxu0 %v23936_v5  ;;  %20212 = vmatprep.subr.bf16.mxu1 %v22996_v53  ;;  %v23003_v5 = vld [vmem:[#allocation7 + $0x2c48] ss:$84 sps:$4 sm:$0xff]   ;;  %v15570_v14 = vpack.c.bf16 %v15507_v34, %v15486_v0  ;;  %v12476_v54 = vadd.f32 %v25581_v21, %v12423_v24  ;;  %v23019_v28 = vld [vmem:[#allocation10 + $0x18] sm:$0xff]  }
 0x7f8   :  { %15379 = vmatmul.mubr.bf16.gmra.mxu1 %v23938_v10  ;;  %15419 = vmatprep.mubr.bf16.mxu0 %v23940_v23  ;;  %v23004_v10 = vld [vmem:[#allocation10 + $0x38] sm:$0xff]   ;;  %v25589_v0 = vld [vmem:[#allocation28_spill] sm:$0xff]  ;;  %v23029_v21 = vld [vmem:[#allocation10 + $0x40] sm:$0xff]  }
 0x7f9   :  { %19859 = vmatpush3.bf16.msra.mxu0 %v22997_v47  ;;  %20216 = vmatprep.mubr.msk.bf16.mxu1 %vm12004_vm8, %v23947_v41  ;;  %v23005_v23 = vld [vmem:[#allocation7 + $0x30e0] ss:$84 sps:$4 sm:$0xff]   ;;  %v12529_v27 = vadd.f32 %v25583_v33, %v12476_v54  ;;  %v12115_v47 = vadd.f32 %v25584_v19, %v12062_v18  ;;  %v25597_v19 = vld [vmem:[#allocation65_spill] sm:$0xff] }
 0x7fa   :  { %20213 = vmatpush3.bf16.msra.mxu1 %v22996_v53  ;;  %19860 = vmatprep.subr.bf16.mxu0 %v22998_v37  ;;  %v23007_v41 = vld [vmem:[#allocation7 + $0x2ba0] ss:$84 sps:$4 sm:$0xff]  }
 0x7fb   :  { %20214 = vmatprep.subr.bf16.mxu1 %v22999_v6  ;;  %v12582_v53 = vadd.f32 %v24145_v7, %v12529_v27  ;;  %v23020_v37 = vld [vmem:[#allocation10 + $0xb8] sm:$0xff]   ;;  %v23024_v7 = vld [vmem:[#allocation10 + $0xb0] sm:$0xff]   ;;  %v23031_v27 = vld [vmem:[#allocation10] sm:$0xff]  }
 0x7fc   :  { %v25587_v34 = vld [vmem:[#allocation54_spill] sm:$0xff]  ;;  %v25591_v48 = vld [vmem:[#allocation56_spill] sm:$0xff] }
 0x7fd   :  { %19861 = vmatpush3.bf16.msra.mxu0 %v23000_v16  ;;  %v25586_v16 = vld [vmem:[#allocation48_spill] sm:$0xff] }
 0x7fe   :  { %20215 = vmatpush3.bf16.msra.mxu1 %v22999_v6  ;;  %19862 = vmatprep.subr.bf16.mxu0 %v23001_v43  ;;  %v25585_v6 = vld [vmem:[#allocation29_spill] sm:$0xff]  ;;  %v12635_v43 = vadd.f32 %v25586_v16, %v12582_v53  ;;  %v25594_v54 = vld [vmem:[#allocation36_spill] sm:$0xff]  ;;  %v25600_v16 = vld [vmem:[#allocation46_spill] sm:$0xff] }
 0x7ff   :  { %19888 = vmatprep.subr.bf16.mxu1 %v23002_v36  ;;  %v12168_v1 = vadd.f32 %v25585_v6, %v12115_v47  ;;  %v23021_v36 = vld [vmem:[#allocation10 + $0x50] sm:$0xff]   ;;  %v23034_v53 = vld [vmem:[#allocation10 + $0x178] sm:$0xff]  }
 0x800   :  { %v25595_v18 = vld [vmem:[#allocation60_spill] sm:$0xff] }
 0x801   :  { %20217 = vmatmul.mubr.msk.bf16.vlgmr.msra.gmra.mxu1 %vm12004_vm8, %v23952_v59  ;;  %19863 = vmatpush3.bf16.msra.mxu0 %v23003_v5  ;;  %v23013_v59 = vld [vmem:[#allocation7 + $0x2f90] ss:$84 sps:$4 sm:$0xff]   ;;  %v25588_v5 = vld [vmem:[#allocation55_spill] sm:$0xff] }
 0x802   :  { %19889 = vmatpush3.bf16.msra.mxu1 %v23004_v10  ;;  %16994 = vmatprep.mubr.bf16.mxu1 %v15570_v14  ;;  %v12688_v13 = vadd.f32 %v25588_v5, %v25587_v34  ;;  %v12221_v10 = vadd.f32 %v25589_v0, %v12168_v1  ;;  %v15509_v14 = vmax.f32 %v12635_v43, 0.0  ;;  %v25599_v1 = vld [vmem:[#allocation34_spill] sm:$0xff]  ;;  %v23038_v5 = vld [vmem:[#allocation10 + $0x170] sm:$0xff]  }
 0x803   :  { %19864 = vmatprep.subr.bf16.mxu0 %v23005_v23  ;;  %19890 = vmatprep.subr.bf16.mxu1 %v23006_v46  ;;  %v23023_v23 = vld [vmem:[#allocation10 + $0x10] sm:$0xff]   ;;  %v23026_v46 = vld [vmem:[#allocation10 + $0xe8] sm:$0xff]  }
 0x804   :  { %v12741_v2 = vadd.f32 %v25591_v48, %v12688_v13  ;;  %v25602_v0 = vld [vmem:[#allocation45_spill] sm:$0xff]  ;;  %v25605_v48 = vld [vmem:[#allocation71_spill] sm:$0xff] }
 0x805   :  { %19865 = vmatpush3.bf16.msra.mxu0 %v23007_v41  ;;  %v23025_v41 = vld [vmem:[#allocation10 + $0x48] sm:$0xff]  }
 0x806   :  { %19891 = vmatpush3.bf16.msra.mxu1 %v23008_v9  ;;  %19866 = vmatprep.subr.bf16.mxu0 %v23009_v30  ;;  %v25590_v9 = vld [vmem:[#allocation39_spill] sm:$0xff] }
 0x807   :  { %19892 = vmatprep.subr.bf16.mxu1 %v23010_v50  ;;  %v12274_v30 = vadd.f32 %v25590_v9, %v12221_v10  ;;  %v25592_v50 = vld [vmem:[#allocation47_spill] sm:$0xff]  ;;  %v25604_v9 = vld [vmem:[#allocation53_spill] sm:$0xff] }
 0x808   :  { %v15488_v4 = vmax.f32 %v25592_v50, 0.0 }
 0x809   :  { %19867 = vmatpush3.bf16.msra.mxu0 %v23011_v29  ;;  %v23027_v29 = vld [vmem:[#allocation10 + $0x8] sm:$0xff]  }
 0x80a   :  { %19893 = vmatpush3.bf16.msra.mxu1 %v23012_v31  ;;  %19868 = vmatprep.subr.bf16.mxu0 %v23013_v59  ;;  %v23030_v31 = vld [vmem:[#allocation10 + $0xe0] sm:$0xff]   ;;  %v15572_v59 = vpack.c.bf16 %v15509_v14, %v15488_v4  ;;  %v23040_v14 = vld [vmem:[#allocation10 + $0x130] sm:$0xff]   ;;  %v23042_v4 = vld [vmem:[#allocation10 + $0x168] sm:$0xff]  }
 0x80b   :  { %19894 = vmatprep.subr.bf16.mxu1 %v23014_v57  ;;  %v12327_v57 = vadd.f32 %v25594_v54, %v12274_v30  ;;  %v25609_v54 = vld [vmem:[#allocation52_spill] sm:$0xff] }
 0x80d   :  { %19869 = vmatpush3.bf16.msra.mxu0 %v23015_v32  ;;  %v23033_v32 = vld [vmem:[#allocation10 + $0xd8] sm:$0xff]  }
 0x80e   :  { %19895 = vmatpush3.bf16.msra.mxu1 %v23016_v26  ;;  %19916 = vmatprep.subr.bf16.mxu0 %v23018_v38  ;;  %v25596_v26 = vld [vmem:[#allocation41_spill] sm:$0xff] }
 0x80f   :  { %19896 = vmatprep.subr.bf16.mxu1 %v23017_v15  ;;  %v12380_v38 = vadd.f32 %v25596_v26, %v25578_v22  ;;  %v15549_v15 = vmax.f32 %v12327_v57, 0.0  ;;  %v25601_v22 = vld [vmem:[#allocation63_spill] sm:$0xff] }
 0x810   :  { %15420 = vmatmul.mubr.bf16.vlgmr.msra.gmra.mxu0 %v23963_v3  ;;  %v23028_v3 = vld [vmem:[#allocation10 + $0xa8] sm:$0xff]  }
 0x811   :  { %15427 = vmatprep.mubr.bf16.mxu0 %v23965_v12  ;;  %19917 = vmatpush3.bf16.msra.mxu0 %v23020_v37  ;;  %v25593_v12 = vld [vmem:[#allocation59_spill] sm:$0xff] }
 0x812   :  { %19897 = vmatpush3.bf16.msra.mxu1 %v23019_v28  ;;  %19918 = vmatprep.subr.bf16.mxu0 %v23022_v60  ;;  %v12794_v24 = vadd.f32 %v25593_v12, %v12741_v2  ;;  %v25598_v37 = vld [vmem:[#allocation43_spill] sm:$0xff]  ;;  %v15528_v28 = vmax.f32 %v25599_v1, 0.0  ;;  %v23036_v60 = vld [vmem:[#allocation10 + $0x138] sm:$0xff]  }
 0x813   :  { %19898 = vmatprep.subr.bf16.mxu1 %v23021_v36  ;;  %v12433_v6 = vadd.f32 %v25598_v37, %v12380_v38  ;;  %v23037_v36 = vld [vmem:[#allocation10 + $0xd0] sm:$0xff]   ;;  %v25606_v2 = vld [vmem:[#allocation70_spill] sm:$0xff] }
 0x814   :  { %v12847_v33 = vadd.f32 %v25595_v18, %v12794_v24  ;;  %v13006_v50 = vadd.f32 %v25606_v2, %v25605_v48  ;;  %v25607_v12 = vld [vmem:[#allocation73_spill] sm:$0xff]  ;;  %v23048_v37 = vld [vmem:[#allocation10 + $0x120] sm:$0xff]  }
 0x815   :  { %19919 = vmatpush3.bf16.msra.mxu0 %v23024_v7  ;;  %v12486_v43 = vadd.f32 %v25600_v16, %v12433_v6  ;;  %v15591_v7 = vpack.c.bf16 %v15549_v15, %v15528_v28  ;;  %v23050_v6 = vld [vmem:[#allocation10 + $0x1f8] sm:$0xff]  }
 0x816   :  { %19899 = vmatpush3.bf16.msra.mxu1 %v23023_v23  ;;  %19920 = vmatprep.subr.bf16.mxu0 %v23026_v46  ;;  %v12900_v47 = vadd.f32 %v25597_v19, %v12847_v33  ;;  %v25603_v23 = vld [vmem:[#allocation33_spill] sm:$0xff]  ;;  %v13059_v24 = vadd.f32 %v25607_v12, %v13006_v50  ;;  %v23045_v33 = vld [vmem:[#allocation10 + $0xc0] sm:$0xff]  }
 0x817   :  { %19900 = vmatprep.subr.bf16.mxu1 %v23025_v41  ;;  %v12539_v10 = vadd.f32 %v25602_v0, %v12486_v43  ;;  %v23039_v46 = vld [vmem:[#allocation10 + $0x90] sm:$0xff]   ;;  %v23041_v41 = vld [vmem:[#allocation10 + $0xc8] sm:$0xff]   ;;  %v23049_v28 = vld [vmem:[#allocation10 + $0x158] sm:$0xff]  }
 0x818   :  { %15428 = vmatmul.mubr.bf16.gmra.mxu0 %v23969_v58  ;;  %v23035_v58 = vld [vmem:[#allocation10 + $0x98] sm:$0xff]   ;;  %v12953_v13 = vadd.f32 %v25601_v22, %v12900_v47  ;;  %v25613_v19 = vld [vmem:[#allocation35_spill] sm:$0xff] }
 0x819   :  { %19921 = vmatpush3.bf16.msra.mxu0 %v23028_v3  ;;  %17043 = vmatprep.mubr.bf16.mxu0 %v15572_v59  ;;  %v12592_v30 = vadd.f32 %v25604_v9, %v12539_v10  ;;  %v23047_v47 = vld [vmem:[#allocation10 + $0x80] sm:$0xff]   ;;  %v25617_v0 = vld [vmem:[#allocation81_spill] sm:$0xff] }
 0x81a   :  { %19901 = vmatpush3.bf16.msra.mxu1 %v23027_v29  ;;  %19922 = vmatprep.subr.bf16.mxu0 %v23030_v31  ;;  %v15511_v3 = vmax.f32 %v12953_v13, 0.0  ;;  %v23043_v29 = vld [vmem:[#allocation10 + $0x88] sm:$0xff]   ;;  %v23051_v13 = vld [vmem:[#allocation10 + $0x118] sm:$0xff]  }
 0x81b   :  { %19902 = vmatprep.subr.bf16.mxu1 %v23029_v21  ;;  %v25608_v31 = vld [vmem:[#allocation64_spill] sm:$0xff]  ;;  %v12645_v57 = vadd.f32 %v25609_v54, %v12592_v30  ;;  %v25620_v9 = vld [vmem:[#allocation49_spill] sm:$0xff] }
 0x81c   :  { %v15490_v59 = vmax.f32 %v25608_v31, 0.0  ;;  %v23044_v21 = vld [vmem:[#allocation10 + $0x128] sm:$0xff]   ;;  %v23056_v30 = vld [vmem:[#allocation10 + $0x1b0] sm:$0xff]  }
 0x81d   :  { %19923 = vmatpush3.bf16.msra.mxu0 %v23032_v44  ;;  %v25610_v44 = vld [vmem:[#allocation75_spill] sm:$0xff]  ;;  %v25621_v2 = vld [vmem:[#allocation61_spill] sm:$0xff]  ;;  %v25624_v54 = vld [vmem:[#allocation80_spill] sm:$0xff] }
 0x81e   :  { %19903 = vmatpush3.bf16.msra.mxu1 %v23031_v27  ;;  %19924 = vmatprep.subr.bf16.mxu0 %v23033_v32  ;;  %v13112_v18 = vadd.f32 %v25610_v44, %v13059_v24  ;;  %v23046_v27 = vld [vmem:[#allocation10 + $0x160] sm:$0xff]   ;;  %v25611_v32 = vld [vmem:[#allocation57_spill] sm:$0xff]  ;;  %v15574_v38 = vpack.c.bf16 %v15511_v3, %v15490_v59  ;;  %v23058_v3 = vld [vmem:[#allocation10 + $0x1e8] sm:$0xff]  }
 0x81f   :  { %19944 = vmatprep.subr.bf16.mxu1 %v23034_v53  ;;  %v12698_v26 = vadd.f32 %v25611_v32, %v25587_v34  ;;  %v25612_v53 = vld [vmem:[#allocation77_spill] sm:$0xff]  ;;  %v25615_v34 = vld [vmem:[#allocation50_spill] sm:$0xff]  ;;  %v23057_v24 = vld [vmem:[#allocation10 + $0x148] sm:$0xff]  }
 0x820   :  { %v13165_v15 = vadd.f32 %v25612_v53, %v13112_v18  ;;  %v15530_v43 = vmax.f32 %v25615_v34, 0.0  ;;  %v25623_v59 = vld [vmem:[#allocation89_spill] sm:$0xff]  ;;  %v23060_v44 = vld [vmem:[#allocation10 + $0x1a8] sm:$0xff]   ;;  %v23062_v32 = vld [vmem:[#allocation10 + $0x1e0] sm:$0xff]  }
 0x821   :  { %16995 = vmatmul.mubr.bf16.vlgmr.msra.gmra.mxu1 %v25603_v23  ;;  %19925 = vmatpush3.bf16.msra.mxu0 %v23035_v58  ;;  %v15551_v58 = vmax.f32 %v12645_v57, 0.0  ;;  %v15492_v57 = vmax.f32 %v25624_v54, 0.0  ;;  %v25625_v18 = vld [vmem:[#allocation92_spill] sm:$0xff]  ;;  %v25626_v53 = vld [vmem:[#allocation69_spill] sm:$0xff]  ;;  %v25637_v54 = vld [vmem:[#allocation103_spill] sm:$0xff] }
 0x822   :  { %17002 = vmatprep.mubr.bf16.mxu1 %v15591_v7  ;;  %19945 = vmatpush3.bf16.msra.mxu1 %v23036_v60  ;;  %v13218_v1 = vadd.f32 %v24333_v49, %v13165_v15  ;;  %v25614_v60 = vld [vmem:[#allocation58_spill] sm:$0xff]  ;;  %v23054_v7 = vld [vmem:[#allocation10 + $0x1f0] sm:$0xff]  }
 0x823   :  { %19926 = vmatprep.subr.bf16.mxu0 %v23037_v36  ;;  %19946 = vmatprep.subr.bf16.mxu1 %v23038_v5  ;;  %v12751_v16 = vadd.f32 %v25614_v60, %v12698_v26  ;;  %v23052_v36 = vld [vmem:[#allocation10 + $0x1b8] sm:$0xff]   ;;  %v15593_v23 = vpack.c.bf16 %v15551_v58, %v15530_v43  ;;  %v23053_v49 = vld [vmem:[#allocation10 + $0x150] sm:$0xff]  }
 0x824   :  { %v25616_v5 = vld [vmem:[#allocation62_spill] sm:$0xff]  ;;  %v13271_v10 = vadd.f32 %v25617_v0, %v13218_v1  ;;  %v25631_v0 = vld [vmem:[#allocation67_spill] sm:$0xff] }
 0x825   :  { %19927 = vmatpush3.bf16.msra.mxu0 %v23039_v46  ;;  %v12804_v22 = vadd.f32 %v25616_v5, %v12751_v16  ;;  %v25618_v46 = vld [vmem:[#allocation87_spill] sm:$0xff]  ;;  %v25629_v60 = vld [vmem:[#allocation74_spill] sm:$0xff] }
 0x826   :  { %19947 = vmatpush3.bf16.msra.mxu1 %v23040_v14  ;;  %19928 = vmatprep.subr.bf16.mxu0 %v23041_v41  ;;  %v25619_v14 = vld [vmem:[#allocation88_spill] sm:$0xff]  ;;  %v15513_v12 = vmax.f32 %v13271_v10, 0.0  ;;  %v23063_v1 = vld [vmem:[#allocation10 + $0x100] sm:$0xff]   ;;  %v13016_v16 = vadd.f32 %v25629_v60, %v25605_v48  ;;  %v23066_v34 = vld [vmem:[#allocation10 + $0x278] sm:$0xff]   ;;  %v15532_v10 = vmax.f32 %v25631_v0, 0.0 }
 0x827   :  { %19948 = vmatprep.subr.bf16.mxu1 %v23042_v4  ;;  %v13324_v41 = vadd.f32 %v25619_v14, %v25618_v46  ;;  %v12857_v50 = vadd.f32 %v25621_v2, %v12804_v22  ;;  %v23055_v4 = vld [vmem:[#allocation10 + $0x110] sm:$0xff]   ;;  %v23077_v60 = vld [vmem:[#allocation10 + $0x1c0] sm:$0xff]  }
 0x828   :  { %v15576_v26 = vpack.c.bf16 %v15513_v12, %v15492_v57  ;;  %v25630_v22 = vld [vmem:[#allocation76_spill] sm:$0xff]  ;;  %v25635_v12 = vld [vmem:[#allocation66_spill] sm:$0xff] }
 0x829   :  { %17003 = vmatmul.mubr.bf16.gmra.mxu1 %v25613_v19  ;;  %19929 = vmatpush3.bf16.msra.mxu0 %v23043_v29  ;;  %v25622_v29 = vld [vmem:[#allocation72_spill] sm:$0xff]  ;;  %v24913_v19 = vpop.f32.mrf.mxu1  ;;  %v25638_v57 = vld [vmem:[#allocation102_spill] sm:$0xff] }
 0x82a   :  { %19949 = vmatpush3.bf16.msra.mxu1 %v23044_v21  ;;  %17092 = vmatprep.mubr.bf16.mxu1 %v15574_v38  ;;  %v12910_v31 = vadd.f32 %v25622_v29, %v12857_v50  ;;  %v13377_v21 = vadd.f32 %v25623_v59, %v13324_v41  ;;  %v23061_v38 = vld [vmem:[#allocation10 + $0x140] sm:$0xff]   ;;  %v23069_v48 = vld [vmem:[#allocation10 + $0x1d0] sm:$0xff]  }
 0x82b   :  { %19930 = vmatprep.subr.bf16.mxu0 %v23045_v33  ;;  %19950 = vmatprep.subr.bf16.mxu1 %v23046_v27  ;;  %v23059_v27 = vld [vmem:[#allocation10 + $0x108] sm:$0xff]   ;;  %v24920_v5 = vpop.f32.mrf.mxu1  ;;  %v23070_v41 = vld [vmem:[#allocation10 + $0x270] sm:$0xff]   ;;  %v25636_v59 = vld [vmem:[#allocation86_spill] sm:$0xff] }
 0x82c   :  { %v13430_v33 = vadd.f32 %v25625_v18, %v13377_v21  ;;  %v12963_v15 = vadd.f32 %v25626_v53, %v12910_v31  ;;  %v23072_v29 = vld [vmem:[#allocation10 + $0x230] sm:$0xff]   ;;  %v23073_v31 = vld [vmem:[#allocation10 + $0x1c8] sm:$0xff]  }
 0x82d   :  { %19931 = vmatpush3.bf16.msra.mxu0 %v23047_v47  ;;  %v25627_v47 = vld [vmem:[#allocation51_spill] sm:$0xff]  ;;  %v24926_v2 = vpop.f32.mrf.mxu1 }
 0x82e   :  { %19951 = vmatpush3.bf16.msra.mxu1 %v23048_v37  ;;  %19972 = vmatprep.subr.bf16.mxu0 %v23050_v6  ;;  %v23064_v37 = vld [vmem:[#allocation10 + $0x1a0] sm:$0xff]   ;;  %v25628_v6 = vld [vmem:[#allocation93_spill] sm:$0xff]  ;;  %v15553_v43 = vmax.f32 %v12963_v15, 0.0  ;;  %v23074_v18 = vld [vmem:[#allocation10 + $0x268] sm:$0xff]  }
 0x82f   :  { %19952 = vmatprep.subr.bf16.mxu1 %v23049_v28  ;;  %v13483_v58 = vadd.f32 %v25628_v6, %v13430_v33  ;;  %v23065_v28 = vld [vmem:[#allocation10 + $0x1d8] sm:$0xff]   ;;  %v23075_v53 = vld [vmem:[#allocation10 + $0x188] sm:$0xff]  }
 0x830   :  { %17044 = vmatmul.mubr.bf16.vlgmr.msra.gmra.mxu0 %v25620_v9  ;;  %v25633_v9 = vld [vmem:[#allocation96_spill] sm:$0xff]  ;;  %v15595_v50 = vpack.c.bf16 %v15553_v43, %v15532_v10  ;;  %v25640_v15 = vld [vmem:[#allocation97_spill] sm:$0xff] }
 0x831   :  { %17051 = vmatprep.mubr.bf16.mxu0 %v15593_v23  ;;  %19973 = vmatpush3.bf16.msra.mxu0 %v23052_v36  ;;  %v13536_v36 = vadd.f32 %v24434_v51, %v13483_v58  ;;  %v23068_v23 = vld [vmem:[#allocation10 + $0x238] sm:$0xff]   ;;  %v24928_v51 = vpop.f32.mrf.mxu0  ;;  %v25645_v10 = vld [vmem:[#allocation68_spill] sm:$0xff] }
 0x832   :  { %19953 = vmatpush3.bf16.msra.mxu1 %v23051_v13  ;;  %19974 = vmatprep.subr.bf16.mxu0 %v23054_v7  ;;  %v13069_v13 = vadd.f32 %v25630_v22, %v13016_v16  ;;  %v23067_v7 = vld [vmem:[#allocation10 + $0x198] sm:$0xff]   ;;  %v23078_v16 = vld [vmem:[#allocation10 + $0x260] sm:$0xff]  }
 0x833   :  { %19954 = vmatprep.subr.bf16.mxu1 %v23053_v49  ;;  %v25632_v49 = vld [vmem:[#allocation79_spill] sm:$0xff]  ;;  %v25641_v6 = vld [vmem:[#allocation85_spill] sm:$0xff] }
 0x834   :  { %v13122_v14 = vadd.f32 %v25632_v49, %v13069_v13  ;;  %v23080_v49 = vld [vmem:[#allocation10 + $0x220] sm:$0xff]  }
 0x835   :  { %19975 = vmatpush3.bf16.msra.mxu0 %v23056_v30  ;;  %v13589_v30 = vadd.f32 %v25633_v9, %v13536_v36  ;;  %v25646_v9 = vld [vmem:[#allocation91_spill] sm:$0xff] }
 0x836   :  { %19955 = vmatpush3.bf16.msra.mxu1 %v23055_v4  ;;  %19976 = vmatprep.subr.bf16.mxu0 %v23058_v3  ;;  %v25634_v4 = vld [vmem:[#allocation78_spill] sm:$0xff] }
 0x837   :  { %19956 = vmatprep.subr.bf16.mxu1 %v23057_v24  ;;  %v13175_v3 = vadd.f32 %v25634_v4, %v13122_v14  ;;  %v23071_v24 = vld [vmem:[#allocation10 + $0x190] sm:$0xff]   ;;  %v15515_v33 = vmax.f32 %v13589_v30, 0.0  ;;  %v23082_v14 = vld [vmem:[#allocation10 + $0x2f8] sm:$0xff]  }
 0x838   :  { %17052 = vmatmul.mubr.bf16.gmra.mxu0 %v25627_v47  ;;  %v15494_v47 = vmax.f32 %v25640_v15, 0.0  ;;  %v23088_v15 = vld [vmem:[#allocation10 + $0x2b0] sm:$0xff]  }
 0x839   :  { %19977 = vmatpush3.bf16.msra.mxu0 %v23060_v44  ;;  %17141 = vmatprep.mubr.bf16.mxu0 %v15576_v26  ;;  %v13228_v21 = vadd.f32 %v25636_v59, %v13175_v3  ;;  %v13642_v44 = vadd.f32 %v25638_v57, %v25637_v54  ;;  %v25639_v26 = vld [vmem:[#allocation105_spill] sm:$0xff]  ;;  %v25647_v3 = vld [vmem:[#allocation83_spill] sm:$0xff] }
 0x83a   :  { %19957 = vmatpush3.bf16.msra.mxu1 %v23059_v27  ;;  %19978 = vmatprep.subr.bf16.mxu0 %v23062_v32  ;;  %v24935_v27 = vpop.f32.mrf.mxu1  ;;  %v24937_v32 = vpop.f32.mrf.mxu0  ;;  %v15578_v13 = vpack.c.bf16 %v15515_v33, %v15494_v47  ;;  %v23083_v59 = vld [vmem:[#allocation10 + $0x218] sm:$0xff]  }
 0x83b   :  { %19958 = vmatprep.subr.bf16.mxu1 %v23061_v38  ;;  %v13695_v38 = vadd.f32 %v25639_v26, %v13642_v44  ;;  %v13281_v58 = vadd.f32 %v25641_v6, %v13228_v21  ;;  %v23086_v21 = vld [vmem:[#allocation10 + $0x2f0] sm:$0xff]   ;;  %v25651_v47 = vld [vmem:[#allocation94_spill] sm:$0xff]  ;;  %v23090_v6 = vld [vmem:[#allocation10 + $0x2e8] sm:$0xff]  }
 0x83c   :  { %v24945_v36 = vpop.f32.mrf.mxu1  ;;  %v24947_v22 = vpop.f32.mrf.mxu0  ;;  %v23085_v44 = vld [vmem:[#allocation10 + $0x250] sm:$0xff]  }
 0x83d   :  { %19979 = vmatpush3.bf16.msra.mxu0 %v23064_v37  ;;  %v23076_v37 = vld [vmem:[#allocation10 + $0x228] sm:$0xff]  }
 0x83e   :  { %19959 = vmatpush3.bf16.msra.mxu1 %v23063_v1  ;;  %19980 = vmatprep.subr.bf16.mxu0 %v23065_v28  ;;  %v25642_v1 = vld [vmem:[#allocation107_spill] sm:$0xff]  ;;  %v24955_v4 = vpop.f32.mrf.mxu0 }
 0x83f   :  { %20000 = vmatprep.subr.bf16.mxu1 %v23066_v34  ;;  %v13748_v28 = vadd.f32 %v25642_v1, %v13695_v38  ;;  %v25643_v34 = vld [vmem:[#allocation90_spill] sm:$0xff]  ;;  %v23089_v1 = vld [vmem:[#allocation10 + $0x248] sm:$0xff]  }
 0x840   :  { %v13334_v43 = vadd.f32 %v25643_v34, %v25618_v46  ;;  %v23081_v46 = vld [vmem:[#allocation10 + $0x258] sm:$0xff]   ;;  %v24964_v38 = vpop.f32.mrf.mxu0 }
 0x841   :  { %17093 = vmatmul.mubr.bf16.vlgmr.msra.gmra.mxu1 %v25635_v12  ;;  %19981 = vmatpush3.bf16.msra.mxu0 %v23067_v7  ;;  %v25644_v7 = vld [vmem:[#allocation109_spill] sm:$0xff]  ;;  %v15534_v12 = vmax.f32 %v25647_v3, 0.0 }
 0x842   :  { %17100 = vmatprep.mubr.bf16.mxu1 %v15595_v50  ;;  %20001 = vmatpush3.bf16.msra.mxu1 %v23068_v23  ;;  %v13801_v0 = vadd.f32 %v25644_v7, %v13748_v28  ;;  %v23079_v23 = vld [vmem:[#allocation10 + $0x180] sm:$0xff]   ;;  %v13387_v30 = vadd.f32 %v25646_v9, %v13334_v43  ;;  %v24953_v50 = vpop.f32.mrf.mxu1  ;;  %v25652_v28 = vld [vmem:[#allocation104_spill] sm:$0xff] }
 0x843   :  { %19982 = vmatprep.subr.bf16.mxu0 %v23069_v48  ;;  %20002 = vmatprep.subr.bf16.mxu1 %v23070_v41  ;;  %v15555_v48 = vmax.f32 %v13281_v58, 0.0  ;;  %v25654_v7 = vld [vmem:[#allocation112_spill] sm:$0xff]  ;;  %v23093_v9 = vld [vmem:[#allocation10 + $0x240] sm:$0xff]  }
 0x844   :  { %v13854_v41 = vadd.f32 %v24525_v62, %v13801_v0  ;;  %v24962_v26 = vpop.f32.mrf.mxu1  ;;  %v15496_v0 = vmax.f32 %v25654_v7, 0.0  ;;  %v23101_v7 = vld [vmem:[#allocation10 + $0x2d0] sm:$0xff]  }
 0x845   :  { %19983 = vmatpush3.bf16.msra.mxu0 %v23071_v24  ;;  %v23084_v24 = vld [vmem:[#allocation10 + $0x2b8] sm:$0xff]   ;;  %v15597_v57 = vpack.c.bf16 %v15555_v48, %v15534_v12  ;;  %v23091_v48 = vld [vmem:[#allocation10 + $0x208] sm:$0xff]  }
 0x846   :  { %20003 = vmatpush3.bf16.msra.mxu1 %v23072_v29  ;;  %19984 = vmatprep.subr.bf16.mxu0 %v23073_v31  ;;  %v25648_v29 = vld [vmem:[#allocation95_spill] sm:$0xff]  ;;  %v13907_v62 = vadd.f32 %v24523_v55, %v13854_v41  ;;  %v23087_v55 = vld [vmem:[#allocation10 + $0x210] sm:$0xff]   ;;  %v24970_v43 = vpop.f32.mrf.mxu1 }
 0x847   :  { %20004 = vmatprep.subr.bf16.mxu1 %v23074_v18  ;;  %v13440_v31 = vadd.f32 %v25648_v29, %v13387_v30  ;;  %v25649_v18 = vld [vmem:[#allocation118_spill] sm:$0xff]  ;;  %v25656_v30 = vld [vmem:[#allocation101_spill] sm:$0xff] }
 0x848   :  { %v13960_v33 = vadd.f32 %v25649_v18, %v24549_v52  ;;  %v15517_v58 = vmax.f32 %v13907_v62, 0.0  ;;  %v23094_v41 = vld [vmem:[#allocation10 + $0x2e0] sm:$0xff]  }
 0x849   :  { %17101 = vmatmul.mubr.bf16.gmra.mxu1 %v25645_v10  ;;  %19985 = vmatpush3.bf16.msra.mxu0 %v23075_v53  ;;  %v25650_v53 = vld [vmem:[#allocation82_spill] sm:$0xff]  ;;  %v23092_v10 = vld [vmem:[#allocation10 + $0x2a8] sm:$0xff]  }
 0x84a   :  { %20005 = vmatpush3.bf16.msra.mxu1 %v23076_v37  ;;  %17190 = vmatprep.mubr.bf16.mxu1 %v15578_v13  ;;  %v13493_v37 = vadd.f32 %v25651_v47, %v13440_v31  ;;  %v24972_v13 = vpop.f32.mrf.mxu0  ;;  %v23096_v29 = vld [vmem:[#allocation10 + $0x2a0] sm:$0xff]  }
 0x84b   :  { %19986 = vmatprep.subr.bf16.mxu0 %v23077_v60  ;;  %20006 = vmatprep.subr.bf16.mxu1 %v23078_v16  ;;  %v25653_v16 = vld [vmem:[#allocation119_spill] sm:$0xff] }
 0x84c   :  { %v13546_v60 = vadd.f32 %v25652_v28, %v13493_v37  ;;  %v14013_v34 = vadd.f32 %v25653_v16, %v13960_v33  ;;  %v24979_v12 = vpop.f32.mrf.mxu0  ;;  %v25658_v31 = vld [vmem:[#allocation123_spill] sm:$0xff]  ;;  %v23098_v33 = vld [vmem:[#allocation10 + $0x378] sm:$0xff]   ;;  %v25660_v37 = vld [vmem:[#allocation108_spill] sm:$0xff] }
 0x84d   :  { %19987 = vmatpush3.bf16.msra.mxu0 %v23079_v23  ;;  %v25655_v23 = vld [vmem:[#allocation122_spill] sm:$0xff]  ;;  %v25662_v16 = vld [vmem:[#allocation111_spill] sm:$0xff] }
 0x84e   :  { %20007 = vmatpush3.bf16.msra.mxu1 %v23080_v49  ;;  %20028 = vmatprep.subr.bf16.mxu0 %v23082_v14  ;;  %v14066_v49 = vadd.f32 %v25655_v23, %v14013_v34  ;;  %v24976_v14 = vpop.f32.mrf.mxu1  ;;  %v13599_v3 = vadd.f32 %v25656_v30, %v13546_v60  ;;  %v23095_v62 = vld [vmem:[#allocation10 + $0x200] sm:$0xff]   ;;  %v24988_v47 = vpop.f32.mrf.mxu0 }
 0x84f   :  { %20008 = vmatprep.subr.bf16.mxu1 %v23081_v46  ;;  %v15580_v46 = vpack.c.bf16 %v15517_v58, %v15496_v0  ;;  %v25661_v58 = vld [vmem:[#allocation99_spill] sm:$0xff]  ;;  %v25663_v0 = vld [vmem:[#allocation126_spill] sm:$0xff] }
 0x850   :  { %17142 = vmatmul.mubr.bf16.vlgmr.msra.gmra.mxu0 %v25650_v53  ;;  %v15557_v53 = vmax.f32 %v13599_v3, 0.0 }
 0x851   :  { %17149 = vmatprep.mubr.bf16.mxu0 %v15597_v57  ;;  %20029 = vmatpush3.bf16.msra.mxu0 %v23084_v24  ;;  %v25657_v24 = vld [vmem:[#allocation84_spill] sm:$0xff]  ;;  %v23097_v57 = vld [vmem:[#allocation10 + $0x2d8] sm:$0xff]  }
 0x852   :  { %20009 = vmatpush3.bf16.msra.mxu1 %v23083_v59  ;;  %20030 = vmatprep.subr.bf16.mxu0 %v23086_v21  ;;  %v14119_v59 = vadd.f32 %v25658_v31, %v14066_v49  ;;  %v24983_v21 = vpop.f32.mrf.mxu1  ;;  %v25666_v31 = vld [vmem:[#allocation117_spill] sm:$0xff] }
 0x853   :  { %20010 = vmatprep.subr.bf16.mxu1 %v23085_v44  ;;  %v25659_v44 = vld [vmem:[#allocation106_spill] sm:$0xff] }
 0x854   :  { %v13652_v18 = vadd.f32 %v25659_v44, %v25637_v54  ;;  %v24992_v28 = vpop.f32.mrf.mxu1  ;;  %v23100_v54 = vld [vmem:[#allocation10 + $0x338] sm:$0xff]   ;;  %v23106_v44 = vld [vmem:[#allocation10 + $0x368] sm:$0xff]  }
 0x855   :  { %20031 = vmatpush3.bf16.msra.mxu0 %v23088_v15  ;;  %v14172_v15 = vadd.f32 %v24628_v40, %v14119_v59  ;;  %v23102_v40 = vld [vmem:[#allocation10 + $0x370] sm:$0xff]  }
 0x856   :  { %20011 = vmatpush3.bf16.msra.mxu1 %v23087_v55  ;;  %20032 = vmatprep.subr.bf16.mxu0 %v23090_v6  ;;  %v13705_v55 = vadd.f32 %v25660_v37, %v13652_v18  ;;  %v23099_v6 = vld [vmem:[#allocation10 + $0x298] sm:$0xff]   ;;  %v25002_v30 = vpop.f32.mrf.mxu1  ;;  %v23107_v37 = vld [vmem:[#allocation10 + $0x288] sm:$0xff]  }
 0x857   :  { %20012 = vmatprep.subr.bf16.mxu1 %v23089_v1  ;;  %v15536_v1 = vmax.f32 %v25661_v58, 0.0 }
 0x858   :  { %17150 = vmatmul.mubr.bf16.gmra.mxu0 %v25657_v24  ;;  %v13758_v34 = vadd.f32 %v25662_v16, %v13705_v55  ;;  %v23104_v24 = vld [vmem:[#allocation10 + $0x330] sm:$0xff]   ;;  %v25669_v55 = vld [vmem:[#allocation127_spill] sm:$0xff]  ;;  %v25013_v58 = vpop.f32.mrf.mxu1 }
 0x859   :  { %20033 = vmatpush3.bf16.msra.mxu0 %v23092_v10  ;;  %17239 = vmatprep.mubr.bf16.mxu0 %v15580_v46  ;;  %v14225_v10 = vadd.f32 %v25663_v0, %v14172_v15  ;;  %v15599_v23 = vpack.c.bf16 %v15557_v53, %v15536_v1  ;;  %v25665_v46 = vld [vmem:[#allocation98_spill] sm:$0xff]  ;;  %v25671_v16 = vld [vmem:[#allocation116_spill] sm:$0xff] }
 0x85a   :  { %20013 = vmatpush3.bf16.msra.mxu1 %v23091_v48  ;;  %20034 = vmatprep.subr.bf16.mxu0 %v23094_v41  ;;  %v25664_v48 = vld [vmem:[#allocation110_spill] sm:$0xff] }
 0x85b   :  { %20014 = vmatprep.subr.bf16.mxu1 %v23093_v9  ;;  %v13811_v41 = vadd.f32 %v25664_v48, %v13758_v34  ;;  %v23103_v9 = vld [vmem:[#allocation10 + $0x290] sm:$0xff]   ;;  %v15519_v18 = vmax.f32 %v14225_v10, 0.0  ;;  %v25668_v53 = vld [vmem:[#allocation134_spill] sm:$0xff] }
 0x85c   :  { %v23109_v0 = vld [vmem:[#allocation10 + $0x2c0] sm:$0xff]  }
 0x85d   :  { %20035 = vmatpush3.bf16.msra.mxu0 %v23096_v29  ;;  %v23105_v29 = vld [vmem:[#allocation10 + $0x2c8] sm:$0xff]   ;;  %v13864_v59 = vadd.f32 %v25666_v31, %v13811_v41  ;;  %v23110_v10 = vld [vmem:[#allocation10 + $0x360] sm:$0xff]  }
 0x85e   :  { %20015 = vmatpush3.bf16.msra.mxu1 %v23095_v62  ;;  %v24994_v60 = vpop.f32.mrf.mxu0  ;;  %20036 = vmatprep.subr.bf16.mxu0 %v23097_v57  ;;  %v25667_v62 = vld [vmem:[#allocation132_spill] sm:$0xff] }
 0x85f   :  { %20056 = vmatprep.subr.bf16.mxu1 %v23098_v33  ;;  %v14278_v57 = vadd.f32 %v25667_v62, %v24653_v11  ;;  %v13917_v34 = vadd.f32 %v25671_v16, %v13864_v59  ;;  %v25675_v31 = vld [vmem:[#allocation100_spill] sm:$0xff]  ;;  %v25023_v62 = vpop.f32.mrf.mxu1  ;;  %v23112_v59 = vld [vmem:[#allocation10 + $0x320] sm:$0xff]   ;;  %v25678_v16 = vld [vmem:[#allocation125_spill] sm:$0xff] }
 0x860   :  { %v24998_v49 = vpop.f32.mrf.mxu0 }
 0x861   :  { %17191 = vmatmul.mubr.bf16.vlgmr.msra.gmra.mxu1 %v25665_v46  ;;  %20037 = vmatpush3.bf16.msra.mxu0 %v23099_v6  ;;  %v14331_v15 = vadd.f32 %v25668_v53, %v14278_v57  ;;  %v15498_v6 = vmax.f32 %v25669_v55, 0.0  ;;  %v25674_v46 = vld [vmem:[#allocation138_spill] sm:$0xff] }
 0x862   :  { %17198 = vmatprep.mubr.bf16.mxu1 %v15599_v23  ;;  %20057 = vmatpush3.bf16.msra.mxu1 %v23100_v54  ;;  %v25004_v3 = vpop.f32.mrf.mxu0  ;;  %v23108_v54 = vld [vmem:[#allocation10 + $0x328] sm:$0xff]   ;;  %v23114_v57 = vld [vmem:[#allocation10 + $0x3f8] sm:$0xff]  }
 0x863   :  { %20038 = vmatprep.subr.bf16.mxu0 %v23101_v7  ;;  %20058 = vmatprep.subr.bf16.mxu1 %v23102_v40  ;;  %v25672_v7 = vld [vmem:[#allocation136_spill] sm:$0xff]  ;;  %v15582_v41 = vpack.c.bf16 %v15519_v18, %v15498_v6  ;;  %v25676_v18 = vld [vmem:[#allocation121_spill] sm:$0xff]  ;;  %v25677_v55 = vld [vmem:[#allocation114_spill] sm:$0xff] }
 0x864   :  { %v25009_v33 = vpop.f32.mrf.mxu0  ;;  %v14384_v40 = vadd.f32 %v25672_v7, %v14331_v15  ;;  %v25673_v23 = vld [vmem:[#allocation120_spill] sm:$0xff]  ;;  %v15538_v6 = vmax.f32 %v25677_v55, 0.0  ;;  %v25683_v55 = vld [vmem:[#allocation149_spill] sm:$0xff] }
 0x865   :  { %20039 = vmatpush3.bf16.msra.mxu0 %v23103_v9  ;;  %v13970_v48 = vadd.f32 %v25673_v23, %v24549_v52  ;;  %v23113_v52 = vld [vmem:[#allocation10 + $0x358] sm:$0xff]   ;;  %v23118_v23 = vld [vmem:[#allocation10 + $0x3f0] sm:$0xff]  }
 0x866   :  { %20059 = vmatpush3.bf16.msra.mxu1 %v23104_v24  ;;  %v25015_v1 = vpop.f32.mrf.mxu0  ;;  %20040 = vmatprep.subr.bf16.mxu0 %v23105_v29  ;;  %v14437_v9 = vadd.f32 %v25674_v46, %v14384_v40  ;;  %v23111_v24 = vld [vmem:[#allocation10 + $0x280] sm:$0xff]   ;;  %v23120_v46 = vld [vmem:[#allocation10 + $0x3b0] sm:$0xff]  }
 0x867   :  { %25670 = vst [vmem:[#allocation32_spill] sm:$0xff] %v25015_v1  ;;  %20060 = vmatprep.subr.bf16.mxu1 %v23106_v44  ;;  %v15559_v44 = vmax.f32 %v13917_v34, 0.0  ;;  %v14023_v15 = vadd.f32 %v25676_v18, %v13970_v48  ;;  %v23115_v34 = vld [vmem:[#allocation10 + $0x318] sm:$0xff]   ;;  %v14596_v48 = vadd.f32 %v24744_v39, %v24751_v42  ;;  %v23121_v39 = vld [vmem:[#allocation10 + $0x348] sm:$0xff]  }
 0x868   :  { %v25025_v29 = vpop.f32.mrf.mxu0  ;;  %v14490_v53 = vadd.f32 %v24715_v35, %v14437_v9  ;;  %v25680_v9 = vld [vmem:[#allocation124_spill] sm:$0xff] }
 0x869   :  { %17199 = vmatmul.mubr.bf16.gmra.mxu1 %v25675_v31  ;;  %20041 = vmatpush3.bf16.msra.mxu0 %v23107_v37  ;;  %v23116_v37 = vld [vmem:[#allocation10 + $0x3b8] sm:$0xff]   ;;  %v14076_v7 = vadd.f32 %v25678_v16, %v14023_v15 }
 0x86a   :  { %20061 = vmatpush3.bf16.msra.mxu1 %v23108_v54  ;;  %17288 = vmatprep.mubr.bf16.mxu1 %v15582_v41  ;;  %v25031_v54 = vpop.f32.mrf.mxu1  ;;  %v25033_v40 = vpop.f32.mrf.mxu0  ;;  %v14543_v35 = vadd.f32 %v24713_v8, %v14490_v53  ;;  %v25679_v41 = vld [vmem:[#allocation113_spill] sm:$0xff] }
 0x86b   :  { %20042 = vmatprep.subr.bf16.mxu0 %v23109_v0  ;;  %20062 = vmatprep.subr.bf16.mxu1 %v23110_v10  ;;  %v15601_v0 = vpack.c.bf16 %v15559_v44, %v15538_v6  ;;  %v23117_v10 = vld [vmem:[#allocation10 + $0x350] sm:$0xff]   ;;  %v14129_v31 = vadd.f32 %v25680_v9, %v14076_v7  ;;  %v23122_v44 = vld [vmem:[#allocation10 + $0x3e8] sm:$0xff]   ;;  %v14649_v6 = vadd.f32 %v25683_v55, %v14596_v48  ;;  %v25688_v55 = vld [vmem:[#allocation150_spill] sm:$0xff] }
 0x86c   :  { %v25044_v18 = vpop.f32.mrf.mxu0  ;;  %v23119_v8 = vld [vmem:[#allocation10 + $0x310] sm:$0xff]   ;;  %v15521_v53 = vmax.f32 %v14543_v35, 0.0  ;;  %v23123_v35 = vld [vmem:[#allocation10 + $0x308] sm:$0xff]  }
 0x86d   :  { %20043 = vmatpush3.bf16.msra.mxu0 %v23111_v24  ;;  %v25681_v24 = vld [vmem:[#allocation147_spill] sm:$0xff]  ;;  %v25684_v16 = vld [vmem:[#allocation141_spill] sm:$0xff]  ;;  %v25686_v9 = vld [vmem:[#allocation152_spill] sm:$0xff] }
 0x86e   :  { %20063 = vmatpush3.bf16.msra.mxu1 %v23112_v59  ;;  %20084 = vmatprep.subr.bf16.mxu0 %v23114_v57  ;;  %v14592_v59 = vadd.f32 %v25681_v24, %v24751_v42  ;;  %v25042_v57 = vpop.f32.mrf.mxu1  ;;  %v15500_v7 = vmax.f32 %v25684_v16, 0.0  ;;  %v23124_v42 = vld [vmem:[#allocation10 + $0x3a8] sm:$0xff]   ;;  %v23125_v24 = vld [vmem:[#allocation10 + $0x340] sm:$0xff]  }
 0x86f   :  { %20064 = vmatprep.subr.bf16.mxu1 %v23113_v52  ;;  %v25682_v52 = vld [vmem:[#allocation133_spill] sm:$0xff]  ;;  %v25687_v48 = vld [vmem:[#allocation131_spill] sm:$0xff] }
 0x870   :  { %17240 = vmatmul.mubr.bf16.vlgmr.msra.gmra.mxu0 %v25679_v41  ;;  %v14182_v15 = vadd.f32 %v25682_v52, %v14129_v31  ;;  %v15584_v31 = vpack.c.bf16 %v15521_v53, %v15500_v7  ;;  %v23129_v53 = vld [vmem:[#allocation10 + $0x3d8] sm:$0xff]  }
 0x871   :  { %17247 = vmatprep.mubr.bf16.mxu0 %v15601_v0  ;;  %20085 = vmatpush3.bf16.msra.mxu0 %v23116_v37  ;;  %v25048_v37 = vpop.f32.mrf.mxu1  ;;  %v25685_v0 = vld [vmem:[#allocation148_spill] sm:$0xff]  ;;  %v23130_v7 = vld [vmem:[#allocation10 + $0x478] sm:$0xff]  }
 0x872   :  { %20065 = vmatpush3.bf16.msra.mxu1 %v23115_v34  ;;  %20086 = vmatprep.subr.bf16.mxu0 %v23118_v23  ;;  %v14645_v41 = vadd.f32 %v25685_v0, %v14592_v59  ;;  %v14702_v34 = vadd.f32 %v25686_v9, %v14649_v6  ;;  %v25053_v23 = vpop.f32.mrf.mxu0  ;;  %v14235_v52 = vadd.f32 %v25687_v48, %v14182_v15  ;;  %v23128_v59 = vld [vmem:[#allocation10 + $0x3a0] sm:$0xff]   ;;  %v25690_v6 = vld [vmem:[#allocation153_spill] sm:$0xff] }
 0x873   :  { %20066 = vmatprep.subr.bf16.mxu1 %v23117_v10  ;;  %v23126_v10 = vld [vmem:[#allocation10 + $0x3e0] sm:$0xff]   ;;  %v25057_v16 = vpop.f32.mrf.mxu1 }
 0x874   :  { %v14698_v1 = vadd.f32 %v25688_v55, %v14645_v41  ;;  %v14755_v0 = vadd.f32 %v25690_v6, %v14702_v34  ;;  %v15561_v41 = vmax.f32 %v14235_v52, 0.0  ;;  %v25692_v9 = vld [vmem:[#allocation151_spill] sm:$0xff]  ;;  %v25693_v55 = vld [vmem:[#allocation137_spill] sm:$0xff] }
 0x875   :  { %20087 = vmatpush3.bf16.msra.mxu0 %v23120_v46  ;;  %v25689_v46 = vld [vmem:[#allocation115_spill] sm:$0xff] }
 0x876   :  { %20067 = vmatpush3.bf16.msra.mxu1 %v23119_v8  ;;  %20088 = vmatprep.subr.bf16.mxu0 %v23122_v44  ;;  %v25061_v8 = vpop.f32.mrf.mxu0  ;;  %v23127_v44 = vld [vmem:[#allocation10 + $0x300] sm:$0xff]   ;;  %v14751_v48 = vadd.f32 %v25692_v9, %v14698_v1  ;;  %v23133_v1 = vld [vmem:[#allocation10 + $0x3d0] sm:$0xff]  }
 0x877   :  { %20068 = vmatprep.subr.bf16.mxu1 %v23121_v39  ;;  %v25691_v39 = vld [vmem:[#allocation135_spill] sm:$0xff] }
 0x878   :  { %17248 = vmatmul.mubr.bf16.gmra.mxu0 %v25689_v46  ;;  %v14288_v15 = vadd.f32 %v25691_v39, %v24653_v11  ;;  %v23131_v46 = vld [vmem:[#allocation10 + $0x398] sm:$0xff]   ;;  %v14804_v6 = vadd.f32 %v24821_v61, %v14751_v48  ;;  %v25072_v45 = vpop.f32.mrf.mxu0 }
 0x879   :  { %20089 = vmatpush3.bf16.msra.mxu0 %v23124_v42  ;;  %17337 = vmatprep.mubr.bf16.mxu0 %v15584_v31  ;;  %v14808_v42 = vadd.f32 %v24824_v25, %v14755_v0  ;;  %v25067_v31 = vpop.f32.mrf.mxu1  ;;  %v23132_v11 = vld [vmem:[#allocation10 + $0x438] sm:$0xff]   ;;  %v23134_v25 = vld [vmem:[#allocation10 + $0x470] sm:$0xff]  }
 0x87a   :  { %20069 = vmatpush3.bf16.msra.mxu1 %v23123_v35  ;;  %20090 = vmatprep.subr.bf16.mxu0 %v23126_v10  ;;  %v14341_v34 = vadd.f32 %v25693_v55, %v14288_v15  ;;  %v25694_v35 = vld [vmem:[#allocation129_spill] sm:$0xff]  ;;  %v15178_v48 = vpop.f32.mrf.mxu0 }
 0x87b   :  { %20070 = vmatprep.subr.bf16.mxu1 %v23125_v24  ;;  %v15540_v10 = vmax.f32 %v25694_v35, 0.0  ;;  %v25695_v24 = vld [vmem:[#allocation140_spill] sm:$0xff]  ;;  %v14861_v0 = vadd.f32 %v24818_v20, %v14808_v42  ;;  %v15125_v39 = vpop.f32.mrf.mxu1  ;;  %v25077_v55 = vld [vmem:[#allocation8 + $0x10] sm:$0x1f] }
 0x87c   :  { %v14394_v52 = vadd.f32 %v25695_v24, %v14341_v34  ;;  %v25697_v35 = vld [vmem:[#allocation24_spill] sm:$0xff] }
 0x87d   :  { %20091 = vmatpush3.bf16.msra.mxu0 %v23128_v59  ;;  %v15603_v15 = vpack.c.bf16 %v15561_v41, %v15540_v10  ;;  %v25696_v59 = vld [vmem:[#allocation139_spill] sm:$0xff]  ;;  %v25081_v61 = vrot.slane %v25077_v55, %v25697_v35  ;;  %v23136_v20 = vld [vmem:[#allocation10 + $0x430] sm:$0xff]   ;;  %v25699_v41 = vld [vmem:[#allocation146_spill] sm:$0xff] }
 0x87e   :  { %20071 = vmatpush3.bf16.msra.mxu1 %v23127_v44  ;;  %20092 = vmatprep.subr.bf16.mxu0 %v23129_v53  ;;  %v14447_v9 = vadd.f32 %v25696_v59, %v14394_v52  ;;  %v25698_v44 = vld [vmem:[#allocation128_spill] sm:$0xff]  ;;  %v15523_v52 = vmax.f32 %v14861_v0, 0.0  ;;  %v25088_v59 = vpop.f32.mrf.mxu1  ;;  %v23141_v35 = vld [vmem:[#allocation10 + $0x3c0] sm:$0xff]  }
 0x87f   :  { %20112 = vmatprep.subr.bf16.mxu1 %v23130_v7  ;;  %v23135_v53 = vld [vmem:[#allocation10 + $0x390] sm:$0xff]   ;;  %v14857_v7 = vadd.f32 %v24812_v17, %v14804_v6  ;;  %v23137_v42 = vld [vmem:[#allocation10 + $0x3c8] sm:$0xff]   ;;  %v14914_v10 = vadd.f32 %v24935_v27, %v25081_v61 }
 0x880   :  { %v14500_v34 = vadd.f32 %v25699_v41, %v14447_v9  ;;  %v23138_v24 = vld [vmem:[#allocation10 + $0x468] sm:$0xff]   ;;  %v25700_v27 = vld [vmem:[#allocation145_spill] sm:$0xff]  ;;  %v25701_v41 = vld [vmem:[#allocation130_spill] sm:$0xff] }
 0x881   :  { %17289 = vmatmul.mubr.bf16.vlgmr.msra.gmra.mxu1 %v25698_v44  ;;  %20093 = vmatpush3.bf16.msra.mxu0 %v23131_v46  ;;  %v14910_v46 = vadd.f32 %v24920_v5, %v25081_v61  ;;  %v14967_v17 = vadd.f32 %v24955_v4, %v14914_v10  ;;  %v23139_v6 = vld [vmem:[#allocation10 + $0x388] sm:$0xff]   ;;  %v23142_v44 = vld [vmem:[#allocation10 + $0x460] sm:$0xff]   ;;  %v25098_v5 = vpop.f32.mrf.mxu1 }
 0x882   :  { %17296 = vmatprep.mubr.bf16.mxu1 %v15603_v15  ;;  %20113 = vmatpush3.bf16.msra.mxu1 %v23132_v11  ;;  %v15502_v11 = vmax.f32 %v14857_v7, 0.0  ;;  %v25093_v15 = vpop.f32.mrf.mxu0  ;;  %v23140_v9 = vld [vmem:[#allocation10 + $0x428] sm:$0xff]  }
 0x883   :  { %20094 = vmatprep.subr.bf16.mxu0 %v23133_v1  ;;  %20114 = vmatprep.subr.bf16.mxu1 %v23134_v25  ;;  %v14553_v1 = vadd.f32 %v25700_v27, %v14500_v34  ;;  %v14963_v25 = vadd.f32 %v24937_v32, %v14910_v46  ;;  %v15020_v0 = vadd.f32 %v25002_v30, %v14967_v17  ;;  %v23144_v32 = vld [vmem:[#allocation10 + $0x420] sm:$0xff]   ;;  %v23146_v30 = vld [vmem:[#allocation10 + $0x4f8] sm:$0xff]   ;;  %v23150_v27 = vld [vmem:[#allocation10 + $0x4f0] sm:$0xff]  }
 0x884   :  { %v15586_v4 = vpack.c.bf16 %v15523_v52, %v15502_v11  ;;  %v23145_v52 = vld [vmem:[#allocation10 + $0x458] sm:$0xff]  }
 0x885   :  { %20095 = vmatpush3.bf16.msra.mxu0 %v23135_v53  ;;  %v15016_v53 = vadd.f32 %v24983_v21, %v14963_v25  ;;  %v15073_v7 = vadd.f32 %v25009_v33, %v15020_v0  ;;  %v15563_v34 = vmax.f32 %v14553_v1, 0.0  ;;  %v25106_v21 = vpop.f32.mrf.mxu1  ;;  %v25702_v33 = vld [vmem:[#allocation143_spill] sm:$0xff]  ;;  %v25703_v0 = vld [vmem:[#allocation142_spill] sm:$0xff] }
 0x886   :  { %20115 = vmatpush3.bf16.msra.mxu1 %v23136_v20  ;;  %20096 = vmatprep.subr.bf16.mxu0 %v23137_v42  ;;  %v23143_v20 = vld [vmem:[#allocation10 + $0x380] sm:$0xff]   ;;  %v25103_v42 = vpop.f32.mrf.mxu0  ;;  %v15542_v46 = vmax.f32 %v25702_v33, 0.0 }
 0x887   :  { %20116 = vmatprep.subr.bf16.mxu1 %v23138_v24  ;;  %v15069_v10 = vadd.f32 %v24998_v49, %v15016_v53  ;;  %v15126_v24 = vadd.f32 %v15125_v39, %v15073_v7  ;;  %v23149_v39 = vld [vmem:[#allocation10 + $0x450] sm:$0xff]   ;;  %v25112_v25 = vpop.f32.mrf.mxu1  ;;  %v25704_v33 = vld [vmem:[#allocation23_spill] sm:$0xff] }
 0x888   :  { %v25110_v11 = vpop.f32.mrf.mxu0  ;;  %v15605_v49 = vpack.c.bf16 %v15563_v34, %v15542_v46  ;;  %v23151_v53 = vld [vmem:[#allocation10 + $0x410] sm:$0xff]   ;;  %v23155_v34 = vld [vmem:[#allocation10 + $0x408] sm:$0xff]   ;;  %v3070_v46 = vrot.slane %v25077_v55, %v25704_v33 }
 0x889   :  { %17297 = vmatmul.mubr.bf16.gmra.mxu1 %v25701_v41  ;;  %20097 = vmatpush3.bf16.msra.mxu0 %v23139_v6  ;;  %v15122_v17 = vadd.f32 %v25057_v16, %v15069_v10  ;;  %v23148_v6 = vld [vmem:[#allocation10 + $0x4b8] sm:$0xff]   ;;  %v15179_v1 = vadd.f32 %v15178_v48, %v15126_v24  ;;  %v23152_v16 = vld [vmem:[#allocation10 + $0x4b0] sm:$0xff]   ;;  %v23154_v48 = vld [vmem:[#allocation10 + $0x4e8] sm:$0xff]  }
 0x88a   :  { %20117 = vmatpush3.bf16.msra.mxu1 %v23140_v9  ;;  %17386 = vmatprep.mubr.bf16.mxu1 %v15586_v4  ;;  %v23147_v9 = vld [vmem:[#allocation10 + $0x418] sm:$0xff]   ;;  %v23153_v41 = vld [vmem:[#allocation10 + $0x448] sm:$0xff]   ;;  %v23158_v10 = vld [vmem:[#allocation10 + $0x4e0] sm:$0xff]  }
 0x88b   :  { %20098 = vmatprep.subr.bf16.mxu0 %v23141_v35  ;;  %20118 = vmatprep.subr.bf16.mxu1 %v23142_v44  ;;  %v15175_v35 = vadd.f32 %v25061_v8, %v15122_v17  ;;  %v25116_v44 = vpop.f32.mrf.mxu0  ;;  %v15525_v7 = vmax.f32 %v15179_v1, 0.0 }
 0x88d   :  { %20099 = vmatpush3.bf16.msra.mxu0 %v23143_v20 }
 0x88e   :  { %20119 = vmatpush3.bf16.msra.mxu1 %v23144_v32  ;;  %20140 = vmatprep.subr.bf16.mxu0 %v23146_v30  ;;  %v25120_v20 = vpop.f32.mrf.mxu0  ;;  %v15504_v32 = vmax.f32 %v15175_v35, 0.0  ;;  %v23156_v30 = vld [vmem:[#allocation10 + $0x4a8] sm:$0xff]   ;;  %v23169_v35 = vld [vmem:[#allocation10 + $0x538] sm:$0xff]  }
 0x88f   :  { %20120 = vmatprep.subr.bf16.mxu1 %v23145_v52  ;;  %v25118_v4 = vpop.f32.mrf.mxu1  ;;  %v23157_v52 = vld [vmem:[#allocation10 + $0x440] sm:$0xff]  }
 0x890   :  { %17338 = vmatmul.mubr.bf16.vlgmr.msra.gmra.mxu0 %v25703_v0  ;;  %v15588_v24 = vpack.c.bf16 %v15525_v7, %v15504_v32  ;;  %v25126_v17 = vpop.f32.mrf.mxu0  ;;  %v14924_v0 = vadd.f32 %v24970_v43, %v25081_v61 }
 0x891   :  { %17345 = vmatprep.mubr.bf16.mxu0 %v15605_v49  ;;  %20141 = vmatpush3.bf16.msra.mxu0 %v23148_v6  ;;  %v25122_v8 = vpop.f32.mrf.mxu1  ;;  %v25705_v6 = vld [vmem:[#allocation144_spill] sm:$0xff]  ;;  %v23159_v49 = vld [vmem:[#allocation10 + $0x400] sm:$0xff]  }
 0x892   :  { %20121 = vmatpush3.bf16.msra.mxu1 %v23147_v9  ;;  %20142 = vmatprep.subr.bf16.mxu0 %v23150_v27  ;;  %v23160_v9 = vld [vmem:[#allocation10 + $0x4a0] sm:$0xff]   ;;  %v14912_v27 = vadd.f32 %v24926_v2, %v3070_v46  ;;  %v14920_v2 = vadd.f32 %v24953_v50, %v25081_v61  ;;  %v14977_v7 = vadd.f32 %v24988_v47, %v14924_v0  ;;  %v25707_v0 = vld [vmem:[#allocation32_spill] sm:$0xff] }
 0x893   :  { %20122 = vmatprep.subr.bf16.mxu1 %v23149_v39  ;;  %v25130_v1 = vpop.f32.mrf.mxu1  ;;  %v23161_v39 = vld [vmem:[#allocation10 + $0x4d8] sm:$0xff]  }
 0x895   :  { %20143 = vmatpush3.bf16.msra.mxu0 %v23152_v16  ;;  %v14908_v16 = vadd.f32 %v24913_v19, %v3070_v46  ;;  %v25143_v43 = vpop.f32.mrf.mxu1  ;;  %v23163_v19 = vld [vmem:[#allocation10 + $0x4d0] sm:$0xff]  }
 0x896   :  { %20123 = vmatpush3.bf16.msra.mxu1 %v23151_v53  ;;  %20144 = vmatprep.subr.bf16.mxu0 %v23154_v48  ;;  %v14965_v53 = vadd.f32 %v24947_v22, %v14912_v27  ;;  %v25136_v48 = vpop.f32.mrf.mxu0  ;;  %v14973_v22 = vadd.f32 %v24972_v13, %v14920_v2  ;;  %v14922_v13 = vadd.f32 %v24962_v26, %v3070_v46 }
 0x897   :  { %20124 = vmatprep.subr.bf16.mxu1 %v23153_v41  ;;  %v23162_v41 = vld [vmem:[#allocation10 + $0x498] sm:$0xff]   ;;  %v14961_v32 = vadd.f32 %v24928_v51, %v14908_v16 }
 0x898   :  { %17346 = vmatmul.mubr.bf16.gmra.mxu0 %v25705_v6  ;;  %v25149_v61 = vpop.f32.mrf.mxu0  ;;  %v15026_v51 = vadd.f32 %v25023_v62, %v14973_v22  ;;  %v14975_v33 = vadd.f32 %v24979_v12, %v14922_v13 }
 0x899   :  { %20145 = vmatpush3.bf16.msra.mxu0 %v23156_v30  ;;  %17435 = vmatprep.mubr.bf16.mxu0 %v15588_v24  ;;  %v15018_v30 = vadd.f32 %v24992_v28, %v14965_v53  ;;  %v15014_v50 = vadd.f32 %v24976_v14, %v14961_v32  ;;  %v23164_v24 = vld [vmem:[#allocation10 + $0x490] sm:$0xff]   ;;  %v25157_v14 = vpop.f32.mrf.mxu1 }
 0x89a   :  { %20125 = vmatpush3.bf16.msra.mxu1 %v23155_v34  ;;  %20146 = vmatprep.subr.bf16.mxu0 %v23158_v10  ;;  %v15030_v34 = vadd.f32 %v25042_v57, %v14977_v7  ;;  %v23170_v10 = vld [vmem:[#allocation10 + $0x530] sm:$0xff]   ;;  %v15079_v62 = vadd.f32 %v25025_v29, %v15026_v51  ;;  %v15028_v29 = vadd.f32 %v25031_v54, %v14975_v33 }
 0x89b   :  { %20126 = vmatprep.subr.bf16.mxu1 %v23157_v52  ;;  %v15071_v47 = vadd.f32 %v25004_v3, %v15018_v30  ;;  %v15067_v57 = vadd.f32 %v24994_v60, %v15014_v50  ;;  %v23165_v3 = vld [vmem:[#allocation10 + $0x4c8] sm:$0xff]   ;;  %v25165_v60 = vpop.f32.mrf.mxu0  ;;  %v25171_v27 = vpop.f32.mrf.mxu1  ;;  %v23174_v50 = vld [vmem:[#allocation10 + $0x510] sm:$0xff]  }
 0x89c   :  { %v15083_v28 = vadd.f32 %v25044_v18, %v15030_v34  ;;  %v15132_v6 = vadd.f32 %v25098_v5, %v15079_v62  ;;  %v25708_v33 = vld [vmem:[#allocation25_spill] sm:$0xff] }
 0x89d   :  { %20147 = vmatpush3.bf16.msra.mxu0 %v23160_v9  ;;  %v15124_v52 = vadd.f32 %v25067_v31, %v15071_v47  ;;  %v15120_v26 = vadd.f32 %v25048_v37, %v15067_v57  ;;  %v23171_v31 = vld [vmem:[#allocation10 + $0x528] sm:$0xff]  }
 0x89e   :  { %20127 = vmatpush3.bf16.msra.mxu1 %v23159_v49  ;;  %20148 = vmatprep.subr.bf16.mxu0 %v23161_v39  ;;  %v15136_v18 = vadd.f32 %v25112_v25, %v15083_v28  ;;  %v25177_v49 = vpop.f32.mrf.mxu0  ;;  %v15185_v54 = vadd.f32 %v25103_v42, %v15132_v6  ;;  %v23168_v39 = vld [vmem:[#allocation10 + $0x480] sm:$0xff]   ;;  %v23173_v42 = vld [vmem:[#allocation10 + $0x518] sm:$0xff]   ;;  %v23175_v28 = vld [vmem:[#allocation10 + $0x508] sm:$0xff]  }
 0x89f   :  { %20220 = vmatprep.subr.bf16.mxu1 %v23169_v35  ;;  %v15177_v25 = vadd.f32 %v25072_v45, %v15124_v52  ;;  %v15173_v5 = vadd.f32 %v25053_v23, %v15120_v26  ;;  %v25706_v45 = vld [vmem:[#allocation154_spill] sm:$0xff]  ;;  %v3078_v26 = vrot.slane %v25077_v55, %v25708_v33  ;;  %v19766_v55 = vadd.f32 %v25177_v49, %v25165_v60 }
 0x8a0   :  { %v15189_v12 = vadd.f32 %v25116_v44, %v15136_v18  ;;  %v19767_v2 = vpop.f32.mrf.mxu0  ;;  %v15546_v7 = vmax.f32 %v15185_v54, 0.0 }
 0x8a1   :  { %17387 = vmatmul.mubr.bf16.vlgmr.msra.gmra.mxu1 %v24830_v56  ;;  %20149 = vmatpush3.bf16.msra.mxu0 %v23162_v41  ;;  %v14918_v56 = vadd.f32 %v24945_v36, %v3070_v46  ;;  %v23167_v36 = vld [vmem:[#allocation10 + $0x4c0] sm:$0xff]   ;;  %v15081_v46 = vadd.f32 %v25033_v40, %v15028_v29  ;;  %v15524_v44 = vmax.f32 %v15177_v25, 0.0  ;;  %v15503_v23 = vmax.f32 %v15173_v5, 0.0 }
 0x8a2   :  { %17394 = vmatprep.mubr.bf16.mxu1 %v24844_v63  ;;  %20150 = vmatprep.subr.bf16.mxu0 %v23163_v19  ;;  %v23166_v63 = vld [vmem:[#allocation10 + $0x488] sm:$0xff]   ;;  %v15567_v40 = vmax.f32 %v15189_v12, 0.0  ;;  %v19768_v22 = vpop.f32.mrf.mxu0  ;;  %v19763_v29 = vadd.f32 %v25149_v61, %v25136_v48  ;;  %v19788_v12 = vadd.f32 %v25122_v8, %v25118_v4  ;;  %v15234_v61 = vadd.f32 %v19766_v55, %v3078_v26 }
 0x8a3   :  { %20221 = vmatpush3.bf16.msra.mxu1 %v23169_v35  ;;  %v14971_v9 = vadd.f32 %v24964_v38, %v14918_v56  ;;  %v23172_v38 = vld [vmem:[#allocation10 + $0x520] sm:$0xff]   ;;  %v15134_v16 = vadd.f32 %v25106_v21, %v15081_v46  ;;  %v15587_v41 = vpack.c.bf16 %v15524_v44, %v15503_v23  ;;  %v19794_v4 = vadd.f32 %v25171_v27, %v25157_v14 }
 0x8a4   :  { %20222 = vmatprep.subr.bf16.mxu1 %v23170_v10  ;;  %v15609_v19 = vpack.c.bf16 %v15567_v40, %v15546_v7  ;;  %v15229_v5 = vadd.f32 %v19763_v29, %v3078_v26  ;;  %v23177_v29 = vld [vmem:[#allocation13 + $0x38] sm:$0xff]  }
 0x8a5   :  { %20151 = vmatpush3.bf16.msra.mxu0 %v23164_v24  ;;  %v15024_v37 = vadd.f32 %v25013_v58, %v14971_v9  ;;  %v25183_v58 = vpop.f32.mrf.mxu1  ;;  %v15187_v32 = vadd.f32 %v25110_v11, %v15134_v16 }
 0x8a6   :  { %20152 = vmatprep.subr.bf16.mxu0 %v23165_v3 }
 0x8a7   :  { %20223 = vmatpush3.bf16.msra.mxu1 %v23170_v10  ;;  %v15077_v35 = vadd.f32 %v25707_v0, %v15024_v37  ;;  %v25187_v30 = vpop.f32.mrf.mxu1  ;;  %v19769_v0 = vadd.f32 %v19768_v22, %v19767_v2 }
 0x8a8   :  { %20224 = vmatprep.subr.bf16.mxu1 %v23171_v31  ;;  %v19797_v7 = vadd.f32 %v25187_v30, %v25183_v58 }
 0x8a9   :  { %17395 = vmatmul.mubr.bf16.gmra.mxu1 %v25706_v45  ;;  %20153 = vmatpush3.bf16.msra.mxu0 %v23166_v63  ;;  %v15130_v53 = vadd.f32 %v25088_v59, %v15077_v35  ;;  %v15566_v59 = vmax.f32 %v15187_v32, 0.0 }
 0x8aa   :  { %20154 = vmatprep.subr.bf16.mxu0 %v23167_v36 }
 0x8ab   :  { %20225 = vmatpush3.bf16.msra.mxu1 %v23171_v31  ;;  %v15183_v21 = vadd.f32 %v25093_v15, %v15130_v53  ;;  %v23176_v15 = vld [vmem:[#allocation10 + $0x500] sm:$0xff]   ;;  %v19760_v31 = vadd.f32 %v25126_v17, %v25120_v20  ;;  %v19791_v20 = vadd.f32 %v25143_v43, %v25130_v1  ;;  %v15283_v53 = vadd.f32 %v19794_v4, %v15234_v61  ;;  %v23182_v4 = vld [vmem:[#allocation13 + $0x10] sm:$0xff]  }
 0x8ac   :  { %20226 = vmatprep.subr.bf16.mxu1 %v23172_v38 }
 0x8ad   :  { %20155 = vmatpush3.bf16.msra.mxu0 %v23168_v39  ;;  %v15545_v51 = vmax.f32 %v15183_v21, 0.0  ;;  %v15226_v9 = vadd.f32 %v19760_v31, %v3078_v26  ;;  %v15278_v48 = vadd.f32 %v19791_v20, %v15229_v5 }
 0x8ae   :  { %20240 = vmatprep.subr.bf16.mxu0 %v23177_v29 }
 0x8af   :  { %20227 = vmatpush3.bf16.msra.mxu1 %v23172_v38  ;;  %v19814_v47 = vpop.f32.mrf.mxu0  ;;  %v15608_v11 = vpack.c.bf16 %v15566_v59, %v15545_v51  ;;  %v15275_v46 = vadd.f32 %v19788_v12, %v15226_v9  ;;  %v23181_v12 = vld [vmem:[#allocation13 + $0x18] sm:$0xff]  }
 0x8b0   :  { %v19842_v34 = vpop.f32.mrf.mxu1  ;;  %17436 = vmatmul.mubr.bf16.vlgmr.msra.gmra.mxu0 %v15587_v41  ;;  %20228 = vmatprep.subr.bf16.mxu1 %v23173_v42 }
 0x8b1   :  { %17443 = vmatprep.mubr.bf16.mxu0 %v15609_v19  ;;  %v19815_v24 = vpop.f32.mrf.mxu0  ;;  %20241 = vmatpush3.bf16.msra.mxu0 %v23177_v29 }
 0x8b2   :  { %v19843_v10 = vpop.f32.mrf.mxu1  ;;  %v19816_v37 = vadd.f32 %v19815_v24, %v19814_v47 }
 0x8b3   :  { %20229 = vmatpush3.bf16.msra.mxu1 %v23173_v42  ;;  %v19817_v57 = vpop.f32.mrf.mxu0  ;;  %v19844_v35 = vadd.f32 %v19843_v10, %v19842_v34  ;;  %v15237_v42 = vadd.f32 %v19769_v0, %v3078_v26 }
 0x8b4   :  { %20230 = vmatprep.subr.bf16.mxu1 %v23174_v50  ;;  %v19845_v13 = vpop.f32.mrf.mxu1  ;;  %v15324_v17 = vadd.f32 %v19816_v37, %v15275_v46 }
 0x8b5   :  { %v19818_v3 = vpop.f32.mrf.mxu0  ;;  %v15286_v22 = vadd.f32 %v19797_v7, %v15237_v42 }
 0x8b6   :  { %v19846_v52 = vpop.f32.mrf.mxu1  ;;  %v19819_v45 = vadd.f32 %v19818_v3, %v19817_v57  ;;  %v15373_v16 = vadd.f32 %v19844_v35, %v15324_v17 }
 0x8b7   :  { %20231 = vmatpush3.bf16.msra.mxu1 %v23174_v50  ;;  %v19820_v18 = vpop.f32.mrf.mxu0  ;;  %v19847_v1 = vadd.f32 %v19846_v52, %v19845_v13 }
 0x8b8   :  { %17444 = vmatmul.mubr.bf16.gmra.mxu0 %v15608_v11  ;;  %20232 = vmatprep.subr.bf16.mxu1 %v23175_v28  ;;  %v19848_v62 = vpop.f32.mrf.mxu1  ;;  %v15327_v40 = vadd.f32 %v19819_v45, %v15278_v48 }
 0x8b9   :  { %v19821_v6 = vpop.f32.mrf.mxu0 }
 0x8ba   :  { %v19849_v56 = vpop.f32.mrf.mxu1  ;;  %v19822_v60 = vadd.f32 %v19821_v6, %v19820_v18  ;;  %v15376_v32 = vadd.f32 %v19847_v1, %v15327_v40  ;;  %v23183_v40 = vld [vmem:[#allocation13 + $0x8] sm:$0xff]  }
 0x8bb   :  { %20233 = vmatpush3.bf16.msra.mxu1 %v23175_v28  ;;  %v19823_v25 = vpop.f32.mrf.mxu0  ;;  %v19850_v34 = vadd.f32 %v19849_v56, %v19848_v62 }
 0x8bc   :  { %20234 = vmatprep.subr.bf16.mxu1 %v23176_v15  ;;  %v19851_v63 = vpop.f32.mrf.mxu1  ;;  %v15332_v19 = vadd.f32 %v19822_v60, %v15283_v53 }
 0x8bd   :  { %v19824_v38 = vpop.f32.mrf.mxu0 }
 0x8be   :  { %v19852_v36 = vpop.f32.mrf.mxu1  ;;  %v19825_v21 = vadd.f32 %v19824_v38, %v19823_v25  ;;  %v15381_v51 = vadd.f32 %v19850_v34, %v15332_v19  ;;  %v23178_v25 = vld [vmem:[#allocation13 + $0x30] sm:$0xff]  }
 0x8bf   :  { %20235 = vmatpush3.bf16.msra.mxu1 %v23176_v15  ;;  %v19853_v15 = vadd.f32 %v19852_v36, %v19851_v63  ;;  %20242 = vmatprep.subr.bf16.mxu0 %v23178_v25  ;;  %v23179_v63 = vld [vmem:[#allocation13 + $0x28] sm:$0xff]   ;;  %v23180_v36 = vld [vmem:[#allocation13 + $0x20] sm:$0xff]  }
 0x8c0   :  { %v15335_v28 = vadd.f32 %v19825_v21, %v15286_v22  ;;  %20243 = vmatpush3.bf16.msra.mxu0 %v23178_v25 }
 0x8c1   :  { %v20218_v54 = vpop.f32.mrf.mxu1  ;;  %20244 = vmatprep.subr.bf16.mxu0 %v23179_v63 }
 0x8c2   :  { %v15384_v3 = vadd.f32 %v19853_v15, %v15335_v28 }
 0x8c3   :  { %v15470_v8 = vpop.f32.mrf.mxu1 }
 0x8c4   :  { %20245 = vmatpush3.bf16.msra.mxu0 %v23179_v63 }
 0x8c5   :  { %v20219_v41 = vpop.f32.mrf.mxu1  ;;  %20246 = vmatprep.subr.bf16.mxu0 %v23180_v36 }
 0x8c7   :  { %v15473_v47 = vpop.f32.mrf.mxu1 }
 0x8c8   :  { %20247 = vmatpush3.bf16.msra.mxu0 %v23180_v36 }
 0x8c9   :  { %20248 = vmatprep.subr.bf16.mxu0 %v23181_v12 }
 0x8cc   :  { %20249 = vmatpush3.bf16.msra.mxu0 %v23181_v12 }
 0x8cd   :  { %20250 = vmatprep.subr.bf16.mxu0 %v23182_v4 }
 0x8d0   :  { %v19870_v39 = vpop.f32.mrf.mxu0  ;;  %20251 = vmatpush3.bf16.msra.mxu0 %v23182_v4 }
 0x8d1   :  { %20252 = vmatprep.subr.bf16.mxu0 %v23183_v40 }
 0x8d2   :  { %v19871_v44 = vpop.f32.mrf.mxu0 }
 0x8d3   :  { %v19872_v49 = vadd.f32 %v19871_v44, %v19870_v39 }
 0x8d4   :  { %v19873_v23 = vpop.f32.mrf.mxu0  ;;  %20253 = vmatpush3.bf16.msra.mxu0 %v23183_v40 }
 0x8d5   :  { %v15422_v43 = vadd.f32 %v19872_v49, %v15373_v16 }
 0x8d6   :  { %v19874_v2 = vpop.f32.mrf.mxu0 }
 0x8d7   :  { %v19875_v14 = vadd.f32 %v19874_v2, %v19873_v23  ;;  %v15471_v50 = vadd.f32 %v15470_v8, %v15422_v43  ;;  %v23184_v23 = vld [vmem:[#allocation13] sm:$0xff]  }
 0x8d8   :  { %v19876_v27 = vpop.f32.mrf.mxu0  ;;  %20254 = vmatprep.subr.bf16.mxu0 %v23184_v23 }
 0x8d9   :  { %v15425_v59 = vadd.f32 %v19875_v14, %v15376_v32  ;;  %v15505_v58 = vmax.f32 %v15471_v50, 0.0  ;;  %20255 = vmatpush3.bf16.msra.mxu0 %v23184_v23 }
 0x8da   :  { %v19877_v10 = vpop.f32.mrf.mxu0 }
 0x8db   :  { %v15474_v11 = vadd.f32 %v15473_v47, %v15425_v59  ;;  %v19878_v24 = vadd.f32 %v19877_v10, %v19876_v27 }
 0x8dc   :  { %v19879_v13 = vpop.f32.mrf.mxu0 }
 0x8dd   :  { %v15526_v30 = vmax.f32 %v15474_v11, 0.0  ;;  %v15430_v57 = vadd.f32 %v19878_v24, %v15381_v51 }
 0x8de   :  { %v19880_v52 = vpop.f32.mrf.mxu0 }
 0x8df   :  { %v19881_v18 = vadd.f32 %v19880_v52, %v19879_v13  ;;  %v15589_v33 = vpack.c.bf16 %v15526_v30, %v15505_v58  ;;  %v15479_v26 = vadd.f32 %v20218_v54, %v15430_v57 }
 0x8e1   :  { %v15433_v31 = vadd.f32 %v19881_v18, %v15384_v3  ;;  %20236 = vmatprep.mubr.bf16.mxu1 %v15589_v33  ;;  %v15547_v56 = vmax.f32 %v15479_v26, 0.0  ;;  %v25206_v37 = vpop.f32.mrf.mxu1 }
 0x8e3   :  { %v15482_v62 = vadd.f32 %v20219_v41, %v15433_v31  ;;  %v25210_v5 = vpop.f32.mrf.mxu1 }
 0x8e5   :  { %v15568_v6 = vmax.f32 %v15482_v62, 0.0  ;;  %v25214_v38 = vpop.f32.mrf.mxu1 }
 0x8e7   :  { %v15610_v9 = vpack.c.bf16 %v15568_v6, %v15547_v56  ;;  %v25218_v20 = vpop.f32.mrf.mxu1 }
 0x8e9   :  { %20237 = vmatmul.mubr.bf16.vlgmr.msra.gmra.mxu1 %v15610_v9  ;;  %v25222_v45 = vpop.f32.mrf.mxu1 }
 0x8eb   :  { %v25226_v48 = vpop.f32.mrf.mxu1 }
 0x8ed   :  { %v25230_v0 = vpop.f32.mrf.mxu1 }
 0x8ef   :  { %v25234_v8 = vpop.f32.mrf.mxu1 }
 0x8f0   :  { %v25208_v46 = vpop.f32.mrf.mxu0 }
 0x8f2   :  { %v25212_v55 = vpop.f32.mrf.mxu0 }
 0x8f4   :  { %v25216_v54 = vpop.f32.mrf.mxu0 }
 0x8f6   :  { %v25220_v17 = vpop.f32.mrf.mxu0 }
 0x8f8   :  { %v25224_v39 = vpop.f32.mrf.mxu0 }
 0x8fa   :  { %v25228_v61 = vpop.f32.mrf.mxu0 }
 0x8fc   :  { %v25232_v35 = vpop.f32.mrf.mxu0 }
 0x8fe   :  { %v25236_v44 = vpop.f32.mrf.mxu0 }
 0x901   :  { %v25238_v16 = vpop.f32.mrf.mxu1 }
 0x903   :  { %v25242_v49 = vpop.f32.mrf.mxu1 }
 0x905   :  { %v25246_v42 = vpop.f32.mrf.mxu1 }
 0x907   :  { %v25250_v43 = vpop.f32.mrf.mxu1 }
 0x909   :  { %v25254_v41 = vpop.f32.mrf.mxu1 }
 0x90b   :  { %v19967_v32 = vpop.f32.mrf.mxu1 }
 0x90d   :  { %v19969_v21 = vpop.f32.mrf.mxu1 }
 0x90f   :  { %v19970_v27 = vpop.f32.mrf.mxu1 }
 0x910   :  { %v25240_v60 = vpop.f32.mrf.mxu0 }
 0x912   :  { %v25244_v53 = vpop.f32.mrf.mxu0 }
 0x914   :  { %v25248_v1 = vpop.f32.mrf.mxu0 }
 0x916   :  { %v25252_v7 = vpop.f32.mrf.mxu0 }
 0x918   :  { %v25256_v2 = vpop.f32.mrf.mxu0 }
 0x91a   :  { %v25258_v19 = vpop.f32.mrf.mxu0 }
 0x91c   :  { %v25260_v14 = vpop.f32.mrf.mxu0 }
 0x91e   :  { %v25262_v22 = vpop.f32.mrf.mxu0 }
 0x921   :  { %v25264_v34 = vpop.f32.mrf.mxu1 }
 0x923   :  { %v25268_v59 = vpop.f32.mrf.mxu1 }
 0x925   :  { %v25272_v10 = vpop.f32.mrf.mxu1 }
 0x927   :  { %v25276_v28 = vpop.f32.mrf.mxu1 }
 0x929   :  { %v25280_v24 = vpop.f32.mrf.mxu1 }
 0x92b   :  { %v25284_v15 = vpop.f32.mrf.mxu1 }
 0x92d   :  { %v25288_v30 = vpop.f32.mrf.mxu1 }
 0x92f   :  { %v20026_v52 = vpop.f32.mrf.mxu1 }
 0x930   :  { %v25266_v50 = vpop.f32.mrf.mxu0 }
 0x932   :  { %v25270_v47 = vpop.f32.mrf.mxu0 }
 0x934   :  { %v25274_v51 = vpop.f32.mrf.mxu0 }
 0x936   :  { %v25278_v11 = vpop.f32.mrf.mxu0 }
 0x938   :  { %v25282_v13 = vpop.f32.mrf.mxu0 }
 0x93a   :  { %v25286_v58 = vpop.f32.mrf.mxu0 }
 0x93c   :  { %v25290_v57 = vpop.f32.mrf.mxu0 }
 0x93e   :  { %v25292_v3 = vpop.f32.mrf.mxu0 }
 0x941   :  { %v25294_v18 = vpop.f32.mrf.mxu1 }
 0x943   :  { %v25298_v26 = vpop.f32.mrf.mxu1 }
 0x945   :  { %v25302_v62 = vpop.f32.mrf.mxu1 }
 0x947   :  { %v25306_v6 = vpop.f32.mrf.mxu1 }
 0x949   :  { %v25310_v29 = vpop.f32.mrf.mxu1 }
 0x94a   :  { %25713 = vst [vmem:[#allocation40_spill] sm:$0xff] %v25310_v29  ;;  %v19554_v29 = vld [vmem:[#allocation11] ss:$0 sm:$0xff] }
 0x94b   :  { %v25314_v63 = vpop.f32.mrf.mxu1 }
 0x94c   :  { %25715 = vst [vmem:[#allocation26_spill] sm:$0xff] %v25314_v63 }
 0x94d   :  { %v25318_v12 = vpop.f32.mrf.mxu1 }
 0x94f   :  { %v20082_v40 = vpop.f32.mrf.mxu1 }
 0x950   :  { %v25296_v33 = vpop.f32.mrf.mxu0 }
 0x951   :  { %25709 = vst [vmem:[#allocation30_spill] sm:$0xff] %v25296_v33 }
 0x952   :  { %v25300_v31 = vpop.f32.mrf.mxu0 }
 0x953   :  { %25710 = vst [vmem:[#allocation31_spill] sm:$0xff] %v25300_v31 }
 0x954   :  { %v25304_v56 = vpop.f32.mrf.mxu0 }
 0x955   :  { %25711 = vst [vmem:[#allocation38_spill] sm:$0xff] %v25304_v56 }
 0x956   :  { %v25308_v9 = vpop.f32.mrf.mxu0 }
 0x957   :  { %25712 = vst [vmem:[#allocation37_spill] sm:$0xff] %v25308_v9 }
 0x958   :  { %v25312_v25 = vpop.f32.mrf.mxu0 }
 0x959   :  { %25714 = vst [vmem:[#allocation42_spill] sm:$0xff] %v25312_v25 }
 0x95a   :  { %v25316_v36 = vpop.f32.mrf.mxu0 }
 0x95b   :  { %25716 = vst [vmem:[#allocation44_spill] sm:$0xff] %v25316_v36 }
 0x95c   :  { %v25320_v4 = vpop.f32.mrf.mxu0 }
 0x95d   :  { %25717 = vst [vmem:[#allocation27_spill] sm:$0xff] %v25320_v4  ;;  %v19906_v4 = vadd.f32 %v25210_v5, %v25206_v37  ;;  %v19940_v37 = vadd.f32 %v25228_v61, %v25224_v39 }
 0x95e   :  { %v25322_v23 = vpop.f32.mrf.mxu0 }
 0x95f   :  { %25718 = vst [vmem:[#allocation29_spill] sm:$0xff] %v25322_v23  ;;  %v19909_v23 = vadd.f32 %v25218_v20, %v25214_v38  ;;  %v16997_v38 = vadd.f32 %v19906_v4, %v19554_v29  ;;  %v19990_v4 = vadd.f32 %v25244_v53, %v25240_v60  ;;  %v20021_v60 = vadd.f32 %v25276_v28, %v25272_v10 }
 0x960   :  { %v20024_v53 = vadd.f32 %v25284_v15, %v25280_v24  ;;  %v20049_v10 = vadd.f32 %v25278_v11, %v25274_v51  ;;  %v20052_v28 = vadd.f32 %v25286_v58, %v25282_v13  ;;  %v20074_v24 = vadd.f32 %v25298_v26, %v25294_v18  ;;  %v25727_v51 = vld [vmem:[#allocation30_spill] sm:$0xff]  ;;  %v25728_v11 = vld [vmem:[#allocation31_spill] sm:$0xff] }
 0x961   :  { %v25324_v56 = vpop.f32.mrf.mxu1  ;;  %v17000_v20 = vadd.f32 %v19909_v23, %v19554_v29 }
 0x962   :  { %25719 = vst [vmem:[#allocation48_spill] sm:$0xff] %v25324_v56 }
 0x963   :  { %v25328_v9 = vpop.f32.mrf.mxu1 }
 0x965   :  { %v25332_v25 = vpop.f32.mrf.mxu1 }
 0x966   :  { %v25730_v18 = vld [vmem:[#allocation29_spill] sm:$0xff] }
 0x967   :  { %v25336_v36 = vpop.f32.mrf.mxu1 }
 0x968   :  { %25723 = vst [vmem:[#allocation39_spill] sm:$0xff] %v25336_v36  ;;  %v19937_v36 = vadd.f32 %v25220_v17, %v25216_v54 }
 0x969   :  { %v25354_v5 = vpop.f32.mrf.mxu1 }
 0x96a   :  { %v17049_v61 = vadd.f32 %v19937_v36, %v17000_v20  ;;  %v25729_v36 = vld [vmem:[#allocation27_spill] sm:$0xff] }
 0x96b   :  { %v20135_v23 = vpop.f32.mrf.mxu1  ;;  %v20111_v26 = vadd.f32 %v25730_v18, %v25729_v36 }
 0x970   :  { %v25326_v31 = vpop.f32.mrf.mxu0 }
 0x971   :  { %25720 = vst [vmem:[#allocation54_spill] sm:$0xff] %v25326_v31  ;;  %v19912_v31 = vadd.f32 %v25226_v48, %v25222_v45  ;;  %v19943_v45 = vadd.f32 %v25236_v44, %v25232_v35  ;;  %v19993_v44 = vadd.f32 %v25252_v7, %v25248_v1  ;;  %v20027_v1 = vadd.f32 %v20026_v52, %v25288_v30 }
 0x972   :  { %v25330_v33 = vpop.f32.mrf.mxu0  ;;  %v20083_v52 = vadd.f32 %v20082_v40, %v25318_v12  ;;  %v25732_v12 = vld [vmem:[#allocation44_spill] sm:$0xff] }
 0x973   :  { %25721 = vst [vmem:[#allocation55_spill] sm:$0xff] %v25330_v33  ;;  %v19915_v33 = vadd.f32 %v25234_v8, %v25230_v0  ;;  %v17005_v48 = vadd.f32 %v19912_v31, %v19554_v29  ;;  %v19962_v0 = vadd.f32 %v25242_v49, %v25238_v16  ;;  %v19971_v8 = vadd.f32 %v19970_v27, %v19969_v21 }
 0x974   :  { %v25334_v63 = vpop.f32.mrf.mxu0  ;;  %v19996_v16 = vadd.f32 %v25258_v19, %v25256_v2  ;;  %v19999_v49 = vadd.f32 %v25262_v22, %v25260_v14  ;;  %v20046_v2 = vadd.f32 %v25270_v47, %v25266_v50  ;;  %v20137_v19 = vpop.f32.mrf.mxu1 }
 0x975   :  { %25722 = vst [vmem:[#allocation28_spill] sm:$0xff] %v25334_v63  ;;  %v19934_v63 = vadd.f32 %v25212_v55, %v25208_v46  ;;  %v19965_v46 = vadd.f32 %v25250_v43, %v25246_v42  ;;  %v19968_v55 = vadd.f32 %v19967_v32, %v25254_v41  ;;  %v17008_v17 = vadd.f32 %v19915_v33, %v19554_v29 }
 0x976   :  { %v25344_v56 = vpop.f32.mrf.mxu0  ;;  %v20018_v32 = vadd.f32 %v25268_v59, %v25264_v34  ;;  %v20055_v34 = vadd.f32 %v25292_v3, %v25290_v57  ;;  %v20077_v57 = vadd.f32 %v25306_v6, %v25302_v62  ;;  %v25725_v3 = vld [vmem:[#allocation40_spill] sm:$0xff]  ;;  %v20138_v13 = vpop.f32.mrf.mxu1  ;;  %v25733_v62 = vld [vmem:[#allocation38_spill] sm:$0xff]  ;;  %v25734_v6 = vld [vmem:[#allocation37_spill] sm:$0xff] }
 0x977   :  { %25724 = vst [vmem:[#allocation56_spill] sm:$0xff] %v25344_v56  ;;  %v17046_v39 = vadd.f32 %v19934_v63, %v16997_v38  ;;  %v17054_v56 = vadd.f32 %v19940_v37, %v17005_v48  ;;  %v17057_v35 = vadd.f32 %v19943_v45, %v17008_v17  ;;  %v17098_v43 = vadd.f32 %v19965_v46, %v17049_v61  ;;  %v25731_v45 = vld [vmem:[#allocation42_spill] sm:$0xff] }
 0x978   :  { %v20162_v54 = vpop.f32.mrf.mxu0  ;;  %v20102_v63 = vadd.f32 %v25728_v11, %v25727_v51  ;;  %v20108_v40 = vadd.f32 %v25732_v12, %v25731_v45  ;;  %v20105_v46 = vadd.f32 %v25734_v6, %v25733_v62 }
 0x979   :  { %v17095_v42 = vadd.f32 %v19962_v0, %v17046_v39  ;;  %v17103_v41 = vadd.f32 %v19968_v55, %v17054_v56  ;;  %v17106_v27 = vadd.f32 %v19971_v8, %v17057_v35  ;;  %v17147_v14 = vadd.f32 %v19993_v44, %v17098_v43  ;;  %v25726_v56 = vld [vmem:[#allocation26_spill] sm:$0xff]  ;;  %v25735_v55 = vld [vmem:[#allocation48_spill] sm:$0xff] }
 0x97a   :  { %v20163_v21 = vpop.f32.mrf.mxu0  ;;  %v20080_v29 = vadd.f32 %v25726_v56, %v25725_v3  ;;  %v20130_v17 = vadd.f32 %v25328_v9, %v25735_v55  ;;  %v20139_v8 = vadd.f32 %v20138_v13, %v20137_v19  ;;  %v20136_v35 = vadd.f32 %v20135_v23, %v25354_v5  ;;  %v25738_v43 = vld [vmem:[#allocation55_spill] sm:$0xff]  ;;  %v19723_v3 = vld [vmem:[#allocation14] ss:$0 sm:$0xff] }
 0x97b   :  { %v17144_v7 = vadd.f32 %v19990_v4, %v17095_v42  ;;  %v17152_v22 = vadd.f32 %v19996_v16, %v17103_v41  ;;  %v17155_v33 = vadd.f32 %v19999_v49, %v17106_v27  ;;  %v17196_v30 = vadd.f32 %v20021_v60, %v17147_v14  ;;  %v25736_v16 = vld [vmem:[#allocation39_spill] sm:$0xff]  ;;  %v25737_v42 = vld [vmem:[#allocation54_spill] sm:$0xff] }
 0x97c   :  { %v20165_v15 = vpop.f32.mrf.mxu0  ;;  %v20133_v49 = vadd.f32 %v25736_v16, %v25332_v25  ;;  %v20158_v41 = vadd.f32 %v25738_v43, %v25737_v42  ;;  %v20164_v60 = vadd.f32 %v20163_v21, %v20162_v54 }
 0x97d   :  { %v17193_v59 = vadd.f32 %v20018_v32, %v17144_v7  ;;  %v17201_v50 = vadd.f32 %v20024_v53, %v17152_v22  ;;  %v17204_v47 = vadd.f32 %v20027_v1, %v17155_v33  ;;  %v17245_v37 = vadd.f32 %v20049_v10, %v17196_v30 }
 0x97e   :  { %v20166_v48 = vpop.f32.mrf.mxu0  ;;  %v25740_v19 = vld [vmem:[#allocation56_spill] sm:$0xff] }
 0x97f   :  { %v17242_v31 = vadd.f32 %v20046_v2, %v17193_v59  ;;  %v17253_v58 = vadd.f32 %v20055_v34, %v17204_v47  ;;  %v17250_v38 = vadd.f32 %v20052_v28, %v17201_v50  ;;  %v17294_v39 = vadd.f32 %v20077_v57, %v17245_v37  ;;  %v25739_v2 = vld [vmem:[#allocation28_spill] sm:$0xff] }
 0x980   :  { %v20167_v32 = vadd.f32 %v20166_v48, %v20165_v15  ;;  %v20161_v14 = vadd.f32 %v25740_v19, %v25739_v2 }
 0x981   :  { %v17291_v20 = vadd.f32 %v20074_v24, %v17242_v31  ;;  %v17302_v0 = vadd.f32 %v20083_v52, %v17253_v58  ;;  %v17299_v61 = vadd.f32 %v20080_v29, %v17250_v38  ;;  %v17343_v1 = vadd.f32 %v20105_v46, %v17294_v39 }
 0x983   :  { %v17340_v4 = vadd.f32 %v20102_v63, %v17291_v20  ;;  %v17351_v44 = vadd.f32 %v20111_v26, %v17302_v0  ;;  %v17348_v27 = vadd.f32 %v20108_v40, %v17299_v61  ;;  %v17392_v5 = vadd.f32 %v20133_v49, %v17343_v1 }
 0x985   :  { %v17389_v7 = vadd.f32 %v20130_v17, %v17340_v4  ;;  %v17400_v9 = vadd.f32 %v20139_v8, %v17351_v44  ;;  %v17397_v22 = vadd.f32 %v20136_v35, %v17348_v27  ;;  %v17441_v24 = vadd.f32 %v20161_v14, %v17392_v5 }
 0x987   :  { %v17438_v23 = vadd.f32 %v20158_v41, %v17389_v7  ;;  %v17449_v34 = vadd.f32 %v20167_v32, %v17400_v9  ;;  %v17446_v59 = vadd.f32 %v20164_v60, %v17397_v22 }
 0x9a9   :  { %v20238_v53 = vpop.f32.mrf.mxu1 }
 0x9aa   :  { %v17495_v15 = vadd.f32 %v20238_v53, %v17446_v59 }
 0x9ab   :  { %v17486_v33 = vpop.f32.mrf.mxu1 }
 0x9ac   :  { %v17487_v10 = vadd.f32 %v17486_v33, %v17438_v23  ;;  %v17503_v52 = vmax.f32 %v17495_v15, 0.0 }
 0x9ad   :  { %v20239_v25 = vpop.f32.mrf.mxu1 }
 0x9ae   :  { %v17498_v28 = vadd.f32 %v20239_v25, %v17449_v34  ;;  %v17501_v50 = vmax.f32 %v17487_v10, 0.0 }
 0x9af   :  { %v17489_v30 = vpop.f32.mrf.mxu1 }
 0x9b0   :  { %v17490_v54 = vadd.f32 %v17489_v30, %v17441_v24  ;;  %v17504_v21 = vmax.f32 %v17498_v28, 0.0 }
 0x9b2   :  { %v17502_v47 = vmax.f32 %v17490_v54, 0.0  ;;  %v17506_v57 = vpack.c.bf16 %v17504_v21, %v17503_v52 }
 0x9b4   :  { %v17505_v31 = vpack.c.bf16 %v17502_v47, %v17501_v50 }
 0x9b6   :  { %20256 = vmatprep.mubr.bf16.mxu0 %v17505_v31 }
 0x9b7   :  { %20257 = vmatmul.mubr.bf16.vlgmr.msra.gmra.mxu0 %v17506_v57 }
 0xa77   :  { %v20258_v56 = vpop.f32.mrf.mxu0 }
 0xa78   :  { %v17621_v29 = vadd.f32 %v20258_v56, %v19723_v3 }
 0xa79   :  { %v17612_v51 = vpop.f32.mrf.mxu0 }
 0xa7a   :  { %17629 = vst [vmem:[#allocation16 + $0x10] sm:$0xff] %v17621_v29  ;;  %v17613_v11 = vadd.f32 %v19723_v3, %v17612_v51 }
 0xa7b   :  { %v20259_v63 = vpop.f32.mrf.mxu0 }
 0xa7c   :  { %17627 = vst [vmem:[#allocation16] sm:$0xff] %v17613_v11  ;;  %v17624_v13 = vadd.f32 %v20259_v63, %v19723_v3 }
 0xa7d   :  { %v17615_v58 = vpop.f32.mrf.mxu0 }
 0xa7e   :  { %17630 = vst [vmem:[#allocation16 + $0x18] sm:$0xff] %v17624_v13  ;;  %v17616_v36 = vadd.f32 %v19723_v3, %v17615_v58 }
 0xa80   :  { %17628 = vst [vmem:[#allocation16 + $0x8] sm:$0xff] %v17616_v36 }
 0xa81   :  { %23362 = shalt.err (!%p23359_p2)
}
 0xa82   :  { %s23398_s30 = smov 128   ;;  %s23399_s10 = smov 8  }
 0xa83   :  { %17642 = dma.vmem_to_hbm [thread:$0]  %s17637_s8, 512, %s25422_s9, [#allocation4], %s23398_s30, %s23398_s30, %s23399_s10  }
 0xa84   :  { %23381 = dma.done.wait [#allocation4], 512  }
 0xa85   :  { %23382 = vsyncadd [#allocation4], 4294966784 }
 0xa86   :  { %17646 = vsyncpa [#allocation3], 1 }
 0xa87   :  { %17647 = vsyncpa [#allocation6], 1 }
 0xa88   :  { %17648 = vsyncpa [#allocation9], 1 }
 0xa89   :  { %17649 = vsyncpa [#allocation12], 1 }
 0xa8a   :  { %17650 = vsyncpa [#allocation15], 1 }
 0xa8b   :  { %17651 = vsyncpa [#allocation4], 1 }

</bundles_post_ra>
